<compile_context>
chip_gen: v6e
topology: v6e:2x2x1
jax: 0.10.0
libtpu: 0.0.40
codegen_flags: <defaults>
</compile_context>

<pallas_src>
import functools

import jax
import jax.numpy as jnp
from jax.experimental import pallas as pl
from jax.experimental.pallas import tpu as pltpu


# ----------------------------------------------------------------------------
# Fused Pallas kernel: conv1+relu -> conv2+relu -> conv3 -> alpha*bp + reg
# ----------------------------------------------------------------------------
def _fused_gradient_kernel(scalars_ref, p1_ref, bp_ref,
                           w1_ref, b1_ref, w2_ref, b2_ref, w3_ref,
                           o_ref, h1pad_ref, h2pad_ref,
                           *, H, W, K, C):
    pad = K // 2

    # Zero the padded activation scratches so the conv halo is 0 for every
    # image (scratch persists across grid steps / lives per-core).
    h1pad_ref[...] = jnp.zeros_like(h1pad_ref)
    h2pad_ref[...] = jnp.zeros_like(h2pad_ref)

    # ---- conv1 + ReLU: one MXU contraction over all K*K taps (Cin == 1) ----
    h1 = jnp.dot(p1_ref[0], w1_ref[...],            # (H*W, K*K) @ (K*K, C)
                 preferred_element_type=jnp.float32)
    h1 = jnp.maximum(h1 + b1_ref[...], 0.0)         # (H*W, C) f32
    h1pad_ref[pad:pad + H, pad:pad + W, :] = h1.reshape(H, W, C)

    # ---- conv2 + ReLU: fold the K kw-taps into one depth-(K*C) contraction
    # per kh -> 5 bf16 matmuls of depth 240 instead of 25 of depth 48. ----
    acc2 = jnp.zeros((H * W, C), jnp.float32)
    for kh in range(K):
        patch = jnp.concatenate(
            [h1pad_ref[kh:kh + H, kw:kw + W, :].astype(jnp.bfloat16)
             for kw in range(K)],
            axis=-1)                                 # (H, W, K*C) bf16
        patch = patch.reshape(H * W, K * C)
        acc2 = acc2 + jnp.dot(patch, w2_ref[kh],
                              preferred_element_type=jnp.float32)
    h2 = jnp.maximum(acc2 + b2_ref[...], 0.0)        # (H*W, C) f32
    h2pad_ref[pad:pad + H, pad:pad + W, :] = h2.reshape(H, W, C)

    # ---- conv3 (Cout == 1): VPU multiply-accumulate over the 25 taps, then a
    # single lane reduction -> lane-dense (H, W) slab for the fused epilogue.
    acc3 = jnp.zeros((H, W, C), jnp.float32)
    for kh in range(K):
        for kw in range(K):
            tap = kh * K + kw
            acc3 = acc3 + (h2pad_ref[kh:kh + H, kw:kw + W, :]
                           * w3_ref[tap:tap + 1, :])
    alpha = scalars_ref[0]
    b3 = scalars_ref[1]
    reg = jnp.sum(acc3, axis=-1) + b3                # (H, W), W on lanes

    # Fused epilogue: gradient = alpha * bp_data_fidelity + reg_value
    o_ref[0] = alpha * bp_ref[0] + reg


# ----------------------------------------------------------------------------
# Wrapper
# ----------------------------------------------------------------------------
def _im2col_c1(x, K):
    """Single-channel im2col (plain XLA, tiny C=1 tensor): (N,H,W)->(N,H*W,K*K)."""
    N, H, W = x.shape
    pad = K // 2
    xp = jnp.pad(x, ((0, 0), (pad, pad), (pad, pad)))
    cols = [xp[:, kh:kh + H, kw:kw + W] for kh in range(K) for kw in range(K)]
    return jnp.stack(cols, axis=-1).reshape(N, H * W, K * K)


def gradient_function_forward(params, x_t, y, forward_module, backward_module):
    """x_t, y: NCHW float32 (C == 1).  Returns the NCHW gradient."""
    # Data-fidelity path: user-supplied operators stay as plain JAX callables.
    data_fidelity_term = forward_module(x_t) - y
    bp_data_fidelity = backward_module(data_fidelity_term)

    N, Cin, H, W = x_t.shape
    assert Cin == 1, "RegularizationBlock is defined for in_channels == 1"
    K = params["w1"].shape[0]
    C = params["w1"].shape[3]          # hidden channels (48)
    KK = K * K

    # Lane-dense (N, H, W) views of the C==1 tensors.
    x2d = x_t[:, 0].astype(jnp.float32)
    bp2d = bp_data_fidelity[:, 0].astype(jnp.float32)

    # conv1 im2col built once outside the kernel (Cin == 1, so it is small).
    p1 = _im2col_c1(x2d, K).astype(jnp.bfloat16)                 # (N, H*W, KK)

    # Fold weights to match the in-kernel contractions; bf16 matmul operands.
    w1f = params["w1"].reshape(KK, C).astype(jnp.bfloat16)       # (KK, C)
    w2f = params["w2"].reshape(K, K * C, C).astype(jnp.bfloat16)  # (K, K*C, C)
    w3f = params["w3"].reshape(KK, C).astype(jnp.float32)        # (KK, C)
    b1 = params["b1"].astype(jnp.float32)                        # (1, C)
    b2 = params["b2"].astype(jnp.float32)                        # (1, C)
    scalars = jnp.concatenate(
        [params["alpha"].reshape(1), params["b3"].reshape(1)]
    ).astype(jnp.float32)                                        # (2,) -> SMEM

    Hp, Wp = H + K - 1, W + K - 1
    kernel = functools.partial(_fused_gradient_kernel, H=H, W=W, K=K, C=C)

    grad2d = pl.pallas_call(
        kernel,
        out_shape=jax.ShapeDtypeStruct((N, H, W), jnp.float32),
        grid=(N,),
        in_specs=[
            pl.BlockSpec(memory_space=pltpu.MemorySpace.SMEM),    # alpha, b3
            pl.BlockSpec((1, H * W, KK), lambda n: (n, 0, 0)),    # p1
            pl.BlockSpec((1, H, W), lambda n: (n, 0, 0)),         # bp
            pl.BlockSpec((KK, C), lambda n: (0, 0)),              # w1f
            pl.BlockSpec((1, C), lambda n: (0, 0)),               # b1
            pl.BlockSpec((K, K * C, C), lambda n: (0, 0, 0)),     # w2f
            pl.BlockSpec((1, C), lambda n: (0, 0)),               # b2
            pl.BlockSpec((KK, C), lambda n: (0, 0)),              # w3f
        ],
        out_specs=pl.BlockSpec((1, H, W), lambda n: (n, 0, 0)),
        scratch_shapes=[
            pltpu.VMEM((Hp, Wp, C), jnp.float32),                 # padded h1
            pltpu.VMEM((Hp, Wp, C), jnp.float32),                 # padded h2
        ],
        compiler_params=pltpu.CompilerParams(
            dimension_semantics=("parallel",)),
    )(scalars, p1, bp2d, w1f, b1, w2f, b2, w3f)

    return grad2d[:, None, :, :]        # back to NCHW (N, 1, H, W)


# ----------------------------------------------------------------------------
# Parameters
# ----------------------------------------------------------------------------
def init_params(key, kernel_size=5, in_channels=1, out_channels=1, hidden=48):
    k1, k2, k3, k4, k5, k6 = jax.random.split(key, 6)
    # Weights stored in HWIO (K, K, Cin, Cout), matching PyTorch semantics
    # (cross-correlation, 'same' padding), std=0.01 normal init.
    return {
        "w1": 0.01 * jax.random.normal(
            k1, (kernel_size, kernel_size, in_channels, hidden), jnp.float32),
        "b1": 0.02 * jax.random.normal(k4, (1, hidden), jnp.float32),
        "w2": 0.01 * jax.random.normal(
            k2, (kernel_size, kernel_size, hidden, hidden), jnp.float32),
        "b2": 0.02 * jax.random.normal(k5, (1, hidden), jnp.float32),
        "w3": 0.01 * jax.random.normal(
            k3, (kernel_size, kernel_size, hidden, out_channels), jnp.float32),
        "b3": 0.02 * jax.random.normal(k6, (1,), jnp.float32),
        "alpha": jnp.array([0.1], jnp.float32),
    }


# ----------------------------------------------------------------------------
# Pure-JAX reference for correctness checking
# ----------------------------------------------------------------------------
def _conv_ref(x_nhwc, w_hwio, b):
    out = jax.lax.conv_general_dilated(
        x_nhwc, w_hwio, window_strides=(1, 1), padding="SAME",
        dimension_numbers=("NHWC", "HWIO", "NHWC"))
    return out + b.reshape(1, 1, 1, -1)


def _ref_forward(params, x_t, y, forward_module, backward_module):
    bp = backward_module(forward_module(x_t) - y)
    x = jnp.transpose(x_t, (0, 2, 3, 1))
    bp = jnp.transpose(bp, (0, 2, 3, 1))
    h = jax.nn.relu(_conv_ref(x, params["w1"], params["b1"]))
    h = jax.nn.relu(_conv_ref(h, params["w2"], params["b2"]))
    reg = _conv_ref(h, params["w3"], params["b3"])
    grad = params["alpha"][0] * bp + reg
    return jnp.transpose(grad, (0, 3, 1, 2))


# ----------------------------------------------------------------------------
if __name__ == "__main__":
    key = jax.random.PRNGKey(0)
    kx, ky, kp = jax.random.split(key, 3)

    N, C, H, W = 2, 1, 16, 16
    x_t = jax.random.normal(kx, (N, C, H, W), jnp.float32)
    y = jax.random.normal(ky, (N, C, H, W), jnp.float32)

    params = init_params(kp)

    # Example system operators (user-supplied in the PyTorch API).
    forward_module = lambda z: 2.0 * z      # simple linear forward operator A
    backward_module = lambda z: 2.0 * z     # its adjoint A^T

    grad = gradient_function_forward(params, x_t, y,
                                     forward_module, backward_module)
    grad = jax.block_until_ready(grad)

    ref = _ref_forward(params, x_t, y, forward_module, backward_module)
    assert grad.shape == (N, C, H, W)
    max_err = float(jnp.max(jnp.abs(grad - ref)))
    assert jnp.allclose(grad, ref, rtol=2e-2, atol=2e-3), max_err

    print("KERNEL_OK")
</pallas_src>

<mosaic_0001>
module attributes {stable_mosaic.version = 11 : i64} {
  func.func @_fused_gradient_kernel(%arg0: i32, %arg1: memref<2xf32, #tpu.memory_space<smem>>, %arg2: memref<1x256x25xbf16, #tpu.memory_space<vmem>>, %arg3: memref<1x16x16xf32, #tpu.memory_space<vmem>>, %arg4: memref<25x48xbf16, #tpu.memory_space<vmem>>, %arg5: memref<1x48xf32, #tpu.memory_space<vmem>>, %arg6: memref<5x240x48xbf16, #tpu.memory_space<vmem>>, %arg7: memref<1x48xf32, #tpu.memory_space<vmem>>, %arg8: memref<25x48xf32, #tpu.memory_space<vmem>>, %arg9: memref<1x16x16xf32, #tpu.memory_space<vmem>>, %arg10: memref<20x20x48xf32, #tpu.memory_space<vmem>>, %arg11: memref<20x20x48xf32, #tpu.memory_space<vmem>>) attributes {dimension_semantics = [#tpu.dimension_semantics<parallel>], iteration_bounds = array<i64: 2>, scalar_prefetch = 0 : i64, scratch_operands = 2 : i64, tpu.core_type = #tpu.core_type<tc>, window_params = [{transform_indices = @transform_0, window_bounds = array<i64: 2>}, {transform_indices = @transform_1, window_bounds = array<i64: 1, 256, 25>}, {transform_indices = @transform_2, window_bounds = array<i64: 1, 16, 16>}, {pipeline_mode = #tpu.pipeline_mode<synchronous>, transform_indices = @transform_3, window_bounds = array<i64: 25, 48>}, {pipeline_mode = #tpu.pipeline_mode<synchronous>, transform_indices = @transform_4, window_bounds = array<i64: 1, 48>}, {pipeline_mode = #tpu.pipeline_mode<synchronous>, transform_indices = @transform_5, window_bounds = array<i64: 5, 240, 48>}, {pipeline_mode = #tpu.pipeline_mode<synchronous>, transform_indices = @transform_6, window_bounds = array<i64: 1, 48>}, {pipeline_mode = #tpu.pipeline_mode<synchronous>, transform_indices = @transform_7, window_bounds = array<i64: 25, 48>}, {transform_indices = @transform_8, window_bounds = array<i64: 1, 16, 16>}]} {
    %cst = arith.constant 0.000000e+00 : f32
    %0 = vector.broadcast %cst : f32 to vector<20x20x48xf32>
    %c0 = arith.constant 0 : index
    %c0_0 = arith.constant 0 : index
    %c0_1 = arith.constant 0 : index
    %1 = vector.load %arg10[%c0, %c0_0, %c0_1] : memref<20x20x48xf32, #tpu.memory_space<vmem>>, vector<20x20x48xf32>
    tpu.vector_store %arg10[%c0, %c0_0, %c0_1], %0 {strides = array<i32>} : memref<20x20x48xf32, #tpu.memory_space<vmem>>, vector<20x20x48xf32>,
    %cst_2 = arith.constant 0.000000e+00 : f32
    %2 = vector.broadcast %cst_2 : f32 to vector<20x20x48xf32>
    %c0_3 = arith.constant 0 : index
    %c0_4 = arith.constant 0 : index
    %c0_5 = arith.constant 0 : index
    %3 = vector.load %arg11[%c0_3, %c0_4, %c0_5] : memref<20x20x48xf32, #tpu.memory_space<vmem>>, vector<20x20x48xf32>
    tpu.vector_store %arg11[%c0_3, %c0_4, %c0_5], %2 {strides = array<i32>} : memref<20x20x48xf32, #tpu.memory_space<vmem>>, vector<20x20x48xf32>,
    %c0_6 = arith.constant 0 : index
    %c0_7 = arith.constant 0 : index
    %c0_8 = arith.constant 0 : index
    %4 = vector.load %arg2[%c0_6, %c0_7, %c0_8] : memref<1x256x25xbf16, #tpu.memory_space<vmem>>, vector<1x256x25xbf16>
    %5 = vector.shape_cast %4 : vector<1x256x25xbf16> to vector<256x25xbf16>
    %c0_9 = arith.constant 0 : index
    %c0_10 = arith.constant 0 : index
    %6 = vector.load %arg4[%c0_9, %c0_10] : memref<25x48xbf16, #tpu.memory_space<vmem>>, vector<25x48xbf16>
    %cst_11 = arith.constant dense<0.000000e+00> : vector<256x48xf32>
    %7 = tpu.matmul %5, %6, %cst_11 {dimension_numbers = #tpu.dot_dimension_numbers<[1], [0], [0], [1], [0, 0, 1, 1], [], []>} : vector<256x25xbf16>, vector<25x48xbf16>, vector<256x48xf32> -> vector<256x48xf32>
    %c0_12 = arith.constant 0 : index
    %c0_13 = arith.constant 0 : index
    %8 = vector.load %arg5[%c0_12, %c0_13] : memref<1x48xf32, #tpu.memory_space<vmem>>, vector<1x48xf32>
    %9 = vector.broadcast %8 : vector<1x48xf32> to vector<256x48xf32>
    %10 = arith.addf %7, %9 : vector<256x48xf32>
    %cst_14 = arith.constant 0.000000e+00 : f32
    %11 = vector.broadcast %cst_14 : f32 to vector<256x48xf32>
    %12 = arith.maximumf %10, %11 : vector<256x48xf32>
    %13 = vector.shape_cast %12 : vector<256x48xf32> to vector<16x16x48xf32>
    %c2 = arith.constant 2 : index
    %c2_15 = arith.constant 2 : index
    %c0_16 = arith.constant 0 : index
    %14 = vector.load %arg10[%c2, %c2_15, %c0_16] : memref<20x20x48xf32, #tpu.memory_space<vmem>>, vector<16x16x48xf32>
    tpu.vector_store %arg10[%c2, %c2_15, %c0_16], %13 {strides = array<i32>} : memref<20x20x48xf32, #tpu.memory_space<vmem>>, vector<16x16x48xf32>,
    %cst_17 = arith.constant 0.000000e+00 : f32
    %15 = vector.broadcast %cst_17 : f32 to vector<256x48xf32>
    %c0_18 = arith.constant 0 : index
    %c0_19 = arith.constant 0 : index
    %c0_20 = arith.constant 0 : index
    %16 = vector.load %arg10[%c0_18, %c0_19, %c0_20] : memref<20x20x48xf32, #tpu.memory_space<vmem>>, vector<16x16x48xf32>
    %17 = arith.truncf %16 : vector<16x16x48xf32> to vector<16x16x48xbf16>
    %c0_21 = arith.constant 0 : index
    %c1 = arith.constant 1 : index
    %c0_22 = arith.constant 0 : index
    %18 = vector.load %arg10[%c0_21, %c1, %c0_22] : memref<20x20x48xf32, #tpu.memory_space<vmem>>, vector<16x16x48xf32>
    %19 = arith.truncf %18 : vector<16x16x48xf32> to vector<16x16x48xbf16>
    %c0_23 = arith.constant 0 : index
    %c2_24 = arith.constant 2 : index
    %c0_25 = arith.constant 0 : index
    %20 = vector.load %arg10[%c0_23, %c2_24, %c0_25] : memref<20x20x48xf32, #tpu.memory_space<vmem>>, vector<16x16x48xf32>
    %21 = arith.truncf %20 : vector<16x16x48xf32> to vector<16x16x48xbf16>
    %c0_26 = arith.constant 0 : index
    %c3 = arith.constant 3 : index
    %c0_27 = arith.constant 0 : index
    %22 = vector.load %arg10[%c0_26, %c3, %c0_27] : memref<20x20x48xf32, #tpu.memory_space<vmem>>, vector<16x16x48xf32>
    %23 = arith.truncf %22 : vector<16x16x48xf32> to vector<16x16x48xbf16>
    %c0_28 = arith.constant 0 : index
    %c4 = arith.constant 4 : index
    %c0_29 = arith.constant 0 : index
    %24 = vector.load %arg10[%c0_28, %c4, %c0_29] : memref<20x20x48xf32, #tpu.memory_space<vmem>>, vector<16x16x48xf32>
    %25 = arith.truncf %24 : vector<16x16x48xf32> to vector<16x16x48xbf16>
    %26 = tpu.concatenate %17, %19, %21, %23, %25 in 2 : vector<16x16x48xbf16>, vector<16x16x48xbf16>, vector<16x16x48xbf16>, vector<16x16x48xbf16>, vector<16x16x48xbf16> -> vector<16x16x240xbf16>
    %27 = vector.shape_cast %26 : vector<16x16x240xbf16> to vector<256x240xbf16>
    %c0_30 = arith.constant 0 : index
    %c0_31 = arith.constant 0 : index
    %c0_32 = arith.constant 0 : index
    %28 = vector.load %arg6[%c0_30, %c0_31, %c0_32] : memref<5x240x48xbf16, #tpu.memory_space<vmem>>, vector<1x240x48xbf16>
    %29 = vector.shape_cast %28 : vector<1x240x48xbf16> to vector<240x48xbf16>
    %cst_33 = arith.constant dense<0.000000e+00> : vector<256x48xf32>
    %30 = tpu.matmul %27, %29, %cst_33 {dimension_numbers = #tpu.dot_dimension_numbers<[1], [0], [0], [1], [0, 0, 1, 1], [], []>} : vector<256x240xbf16>, vector<240x48xbf16>, vector<256x48xf32> -> vector<256x48xf32>
    %31 = arith.addf %15, %30 : vector<256x48xf32>
    %c1_34 = arith.constant 1 : index
    %c0_35 = arith.constant 0 : index
    %c0_36 = arith.constant 0 : index
    %32 = vector.load %arg10[%c1_34, %c0_35, %c0_36] : memref<20x20x48xf32, #tpu.memory_space<vmem>>, vector<16x16x48xf32>
    %33 = arith.truncf %32 : vector<16x16x48xf32> to vector<16x16x48xbf16>
    %c1_37 = arith.constant 1 : index
    %c1_38 = arith.constant 1 : index
    %c0_39 = arith.constant 0 : index
    %34 = vector.load %arg10[%c1_37, %c1_38, %c0_39] : memref<20x20x48xf32, #tpu.memory_space<vmem>>, vector<16x16x48xf32>
    %35 = arith.truncf %34 : vector<16x16x48xf32> to vector<16x16x48xbf16>
    %c1_40 = arith.constant 1 : index
    %c2_41 = arith.constant 2 : index
    %c0_42 = arith.constant 0 : index
    %36 = vector.load %arg10[%c1_40, %c2_41, %c0_42] : memref<20x20x48xf32, #tpu.memory_space<vmem>>, vector<16x16x48xf32>
    %37 = arith.truncf %36 : vector<16x16x48xf32> to vector<16x16x48xbf16>
    %c1_43 = arith.constant 1 : index
    %c3_44 = arith.constant 3 : index
    %c0_45 = arith.constant 0 : index
    %38 = vector.load %arg10[%c1_43, %c3_44, %c0_45] : memref<20x20x48xf32, #tpu.memory_space<vmem>>, vector<16x16x48xf32>
    %39 = arith.truncf %38 : vector<16x16x48xf32> to vector<16x16x48xbf16>
    %c1_46 = arith.constant 1 : index
    %c4_47 = arith.constant 4 : index
    %c0_48 = arith.constant 0 : index
    %40 = vector.load %arg10[%c1_46, %c4_47, %c0_48] : memref<20x20x48xf32, #tpu.memory_space<vmem>>, vector<16x16x48xf32>
    %41 = arith.truncf %40 : vector<16x16x48xf32> to vector<16x16x48xbf16>
    %42 = tpu.concatenate %33, %35, %37, %39, %41 in 2 : vector<16x16x48xbf16>, vector<16x16x48xbf16>, vector<16x16x48xbf16>, vector<16x16x48xbf16>, vector<16x16x48xbf16> -> vector<16x16x240xbf16>
    %43 = vector.shape_cast %42 : vector<16x16x240xbf16> to vector<256x240xbf16>
    %c1_49 = arith.constant 1 : index
    %c0_50 = arith.constant 0 : index
    %c0_51 = arith.constant 0 : index
    %44 = vector.load %arg6[%c1_49, %c0_50, %c0_51] : memref<5x240x48xbf16, #tpu.memory_space<vmem>>, vector<1x240x48xbf16>
    %45 = vector.shape_cast %44 : vector<1x240x48xbf16> to vector<240x48xbf16>
    %cst_52 = arith.constant dense<0.000000e+00> : vector<256x48xf32>
    %46 = tpu.matmul %43, %45, %cst_52 {dimension_numbers = #tpu.dot_dimension_numbers<[1], [0], [0], [1], [0, 0, 1, 1], [], []>} : vector<256x240xbf16>, vector<240x48xbf16>, vector<256x48xf32> -> vector<256x48xf32>
    %47 = arith.addf %31, %46 : vector<256x48xf32>
    %c2_53 = arith.constant 2 : index
    %c0_54 = arith.constant 0 : index
    %c0_55 = arith.constant 0 : index
    %48 = vector.load %arg10[%c2_53, %c0_54, %c0_55] : memref<20x20x48xf32, #tpu.memory_space<vmem>>, vector<16x16x48xf32>
    %49 = arith.truncf %48 : vector<16x16x48xf32> to vector<16x16x48xbf16>
    %c2_56 = arith.constant 2 : index
    %c1_57 = arith.constant 1 : index
    %c0_58 = arith.constant 0 : index
    %50 = vector.load %arg10[%c2_56, %c1_57, %c0_58] : memref<20x20x48xf32, #tpu.memory_space<vmem>>, vector<16x16x48xf32>
    %51 = arith.truncf %50 : vector<16x16x48xf32> to vector<16x16x48xbf16>
    %c2_59 = arith.constant 2 : index
    %c2_60 = arith.constant 2 : index
    %c0_61 = arith.constant 0 : index
    %52 = vector.load %arg10[%c2_59, %c2_60, %c0_61] : memref<20x20x48xf32, #tpu.memory_space<vmem>>, vector<16x16x48xf32>
    %53 = arith.truncf %52 : vector<16x16x48xf32> to vector<16x16x48xbf16>
    %c2_62 = arith.constant 2 : index
    %c3_63 = arith.constant 3 : index
    %c0_64 = arith.constant 0 : index
    %54 = vector.load %arg10[%c2_62, %c3_63, %c0_64] : memref<20x20x48xf32, #tpu.memory_space<vmem>>, vector<16x16x48xf32>
    %55 = arith.truncf %54 : vector<16x16x48xf32> to vector<16x16x48xbf16>
    %c2_65 = arith.constant 2 : index
    %c4_66 = arith.constant 4 : index
    %c0_67 = arith.constant 0 : index
    %56 = vector.load %arg10[%c2_65, %c4_66, %c0_67] : memref<20x20x48xf32, #tpu.memory_space<vmem>>, vector<16x16x48xf32>
    %57 = arith.truncf %56 : vector<16x16x48xf32> to vector<16x16x48xbf16>
    %58 = tpu.concatenate %49, %51, %53, %55, %57 in 2 : vector<16x16x48xbf16>, vector<16x16x48xbf16>, vector<16x16x48xbf16>, vector<16x16x48xbf16>, vector<16x16x48xbf16> -> vector<16x16x240xbf16>
    %59 = vector.shape_cast %58 : vector<16x16x240xbf16> to vector<256x240xbf16>
    %c2_68 = arith.constant 2 : index
    %c0_69 = arith.constant 0 : index
    %c0_70 = arith.constant 0 : index
    %60 = vector.load %arg6[%c2_68, %c0_69, %c0_70] : memref<5x240x48xbf16, #tpu.memory_space<vmem>>, vector<1x240x48xbf16>
    %61 = vector.shape_cast %60 : vector<1x240x48xbf16> to vector<240x48xbf16>
    %cst_71 = arith.constant dense<0.000000e+00> : vector<256x48xf32>
    %62 = tpu.matmul %59, %61, %cst_71 {dimension_numbers = #tpu.dot_dimension_numbers<[1], [0], [0], [1], [0, 0, 1, 1], [], []>} : vector<256x240xbf16>, vector<240x48xbf16>, vector<256x48xf32> -> vector<256x48xf32>
    %63 = arith.addf %47, %62 : vector<256x48xf32>
    %c3_72 = arith.constant 3 : index
    %c0_73 = arith.constant 0 : index
    %c0_74 = arith.constant 0 : index
    %64 = vector.load %arg10[%c3_72, %c0_73, %c0_74] : memref<20x20x48xf32, #tpu.memory_space<vmem>>, vector<16x16x48xf32>
    %65 = arith.truncf %64 : vector<16x16x48xf32> to vector<16x16x48xbf16>
    %c3_75 = arith.constant 3 : index
    %c1_76 = arith.constant 1 : index
    %c0_77 = arith.constant 0 : index
    %66 = vector.load %arg10[%c3_75, %c1_76, %c0_77] : memref<20x20x48xf32, #tpu.memory_space<vmem>>, vector<16x16x48xf32>
    %67 = arith.truncf %66 : vector<16x16x48xf32> to vector<16x16x48xbf16>
    %c3_78 = arith.constant 3 : index
    %c2_79 = arith.constant 2 : index
    %c0_80 = arith.constant 0 : index
    %68 = vector.load %arg10[%c3_78, %c2_79, %c0_80] : memref<20x20x48xf32, #tpu.memory_space<vmem>>, vector<16x16x48xf32>
    %69 = arith.truncf %68 : vector<16x16x48xf32> to vector<16x16x48xbf16>
    %c3_81 = arith.constant 3 : index
    %c3_82 = arith.constant 3 : index
    %c0_83 = arith.constant 0 : index
    %70 = vector.load %arg10[%c3_81, %c3_82, %c0_83] : memref<20x20x48xf32, #tpu.memory_space<vmem>>, vector<16x16x48xf32>
    %71 = arith.truncf %70 : vector<16x16x48xf32> to vector<16x16x48xbf16>
    %c3_84 = arith.constant 3 : index
    %c4_85 = arith.constant 4 : index
    %c0_86 = arith.constant 0 : index
    %72 = vector.load %arg10[%c3_84, %c4_85, %c0_86] : memref<20x20x48xf32, #tpu.memory_space<vmem>>, vector<16x16x48xf32>
    %73 = arith.truncf %72 : vector<16x16x48xf32> to vector<16x16x48xbf16>
    %74 = tpu.concatenate %65, %67, %69, %71, %73 in 2 : vector<16x16x48xbf16>, vector<16x16x48xbf16>, vector<16x16x48xbf16>, vector<16x16x48xbf16>, vector<16x16x48xbf16> -> vector<16x16x240xbf16>
    %75 = vector.shape_cast %74 : vector<16x16x240xbf16> to vector<256x240xbf16>
    %c3_87 = arith.constant 3 : index
    %c0_88 = arith.constant 0 : index
    %c0_89 = arith.constant 0 : index
    %76 = vector.load %arg6[%c3_87, %c0_88, %c0_89] : memref<5x240x48xbf16, #tpu.memory_space<vmem>>, vector<1x240x48xbf16>
    %77 = vector.shape_cast %76 : vector<1x240x48xbf16> to vector<240x48xbf16>
    %cst_90 = arith.constant dense<0.000000e+00> : vector<256x48xf32>
    %78 = tpu.matmul %75, %77, %cst_90 {dimension_numbers = #tpu.dot_dimension_numbers<[1], [0], [0], [1], [0, 0, 1, 1], [], []>} : vector<256x240xbf16>, vector<240x48xbf16>, vector<256x48xf32> -> vector<256x48xf32>
    %79 = arith.addf %63, %78 : vector<256x48xf32>
    %c4_91 = arith.constant 4 : index
    %c0_92 = arith.constant 0 : index
    %c0_93 = arith.constant 0 : index
    %80 = vector.load %arg10[%c4_91, %c0_92, %c0_93] : memref<20x20x48xf32, #tpu.memory_space<vmem>>, vector<16x16x48xf32>
    %81 = arith.truncf %80 : vector<16x16x48xf32> to vector<16x16x48xbf16>
    %c4_94 = arith.constant 4 : index
    %c1_95 = arith.constant 1 : index
    %c0_96 = arith.constant 0 : index
    %82 = vector.load %arg10[%c4_94, %c1_95, %c0_96] : memref<20x20x48xf32, #tpu.memory_space<vmem>>, vector<16x16x48xf32>
    %83 = arith.truncf %82 : vector<16x16x48xf32> to vector<16x16x48xbf16>
    %c4_97 = arith.constant 4 : index
    %c2_98 = arith.constant 2 : index
    %c0_99 = arith.constant 0 : index
    %84 = vector.load %arg10[%c4_97, %c2_98, %c0_99] : memref<20x20x48xf32, #tpu.memory_space<vmem>>, vector<16x16x48xf32>
    %85 = arith.truncf %84 : vector<16x16x48xf32> to vector<16x16x48xbf16>
    %c4_100 = arith.constant 4 : index
    %c3_101 = arith.constant 3 : index
    %c0_102 = arith.constant 0 : index
    %86 = vector.load %arg10[%c4_100, %c3_101, %c0_102] : memref<20x20x48xf32, #tpu.memory_space<vmem>>, vector<16x16x48xf32>
    %87 = arith.truncf %86 : vector<16x16x48xf32> to vector<16x16x48xbf16>
    %c4_103 = arith.constant 4 : index
    %c4_104 = arith.constant 4 : index
    %c0_105 = arith.constant 0 : index
    %88 = vector.load %arg10[%c4_103, %c4_104, %c0_105] : memref<20x20x48xf32, #tpu.memory_space<vmem>>, vector<16x16x48xf32>
    %89 = arith.truncf %88 : vector<16x16x48xf32> to vector<16x16x48xbf16>
    %90 = tpu.concatenate %81, %83, %85, %87, %89 in 2 : vector<16x16x48xbf16>, vector<16x16x48xbf16>, vector<16x16x48xbf16>, vector<16x16x48xbf16>, vector<16x16x48xbf16> -> vector<16x16x240xbf16>
    %91 = vector.shape_cast %90 : vector<16x16x240xbf16> to vector<256x240xbf16>
    %c4_106 = arith.constant 4 : index
    %c0_107 = arith.constant 0 : index
    %c0_108 = arith.constant 0 : index
    %92 = vector.load %arg6[%c4_106, %c0_107, %c0_108] : memref<5x240x48xbf16, #tpu.memory_space<vmem>>, vector<1x240x48xbf16>
    %93 = vector.shape_cast %92 : vector<1x240x48xbf16> to vector<240x48xbf16>
    %cst_109 = arith.constant dense<0.000000e+00> : vector<256x48xf32>
    %94 = tpu.matmul %91, %93, %cst_109 {dimension_numbers = #tpu.dot_dimension_numbers<[1], [0], [0], [1], [0, 0, 1, 1], [], []>} : vector<256x240xbf16>, vector<240x48xbf16>, vector<256x48xf32> -> vector<256x48xf32>
    %95 = arith.addf %79, %94 : vector<256x48xf32>
    %c0_110 = arith.constant 0 : index
    %c0_111 = arith.constant 0 : index
    %96 = vector.load %arg7[%c0_110, %c0_111] : memref<1x48xf32, #tpu.memory_space<vmem>>, vector<1x48xf32>
    %97 = vector.broadcast %96 : vector<1x48xf32> to vector<256x48xf32>
    %98 = arith.addf %95, %97 : vector<256x48xf32>
    %cst_112 = arith.constant 0.000000e+00 : f32
    %99 = vector.broadcast %cst_112 : f32 to vector<256x48xf32>
    %100 = arith.maximumf %98, %99 : vector<256x48xf32>
    %101 = vector.shape_cast %100 : vector<256x48xf32> to vector<16x16x48xf32>
    %c2_113 = arith.constant 2 : index
    %c2_114 = arith.constant 2 : index
    %c0_115 = arith.constant 0 : index
    %102 = vector.load %arg11[%c2_113, %c2_114, %c0_115] : memref<20x20x48xf32, #tpu.memory_space<vmem>>, vector<16x16x48xf32>
    tpu.vector_store %arg11[%c2_113, %c2_114, %c0_115], %101 {strides = array<i32>} : memref<20x20x48xf32, #tpu.memory_space<vmem>>, vector<16x16x48xf32>,
    %cst_116 = arith.constant 0.000000e+00 : f32
    %103 = vector.broadcast %cst_116 : f32 to vector<16x16x48xf32>
    %c0_117 = arith.constant 0 : index
    %c0_118 = arith.constant 0 : index
    %c0_119 = arith.constant 0 : index
    %104 = vector.load %arg11[%c0_117, %c0_118, %c0_119] : memref<20x20x48xf32, #tpu.memory_space<vmem>>, vector<16x16x48xf32>
    %c0_120 = arith.constant 0 : index
    %c0_121 = arith.constant 0 : index
    %105 = vector.load %arg8[%c0_120, %c0_121] : memref<25x48xf32, #tpu.memory_space<vmem>>, vector<1x48xf32>
    %106 = vector.shape_cast %105 : vector<1x48xf32> to vector<1x1x48xf32>
    %107 = vector.broadcast %106 : vector<1x1x48xf32> to vector<16x16x48xf32>
    %108 = arith.mulf %104, %107 : vector<16x16x48xf32>
    %109 = arith.addf %103, %108 : vector<16x16x48xf32>
    %c0_122 = arith.constant 0 : index
    %c1_123 = arith.constant 1 : index
    %c0_124 = arith.constant 0 : index
    %110 = vector.load %arg11[%c0_122, %c1_123, %c0_124] : memref<20x20x48xf32, #tpu.memory_space<vmem>>, vector<16x16x48xf32>
    %c1_125 = arith.constant 1 : index
    %c0_126 = arith.constant 0 : index
    %111 = vector.load %arg8[%c1_125, %c0_126] : memref<25x48xf32, #tpu.memory_space<vmem>>, vector<1x48xf32>
    %112 = vector.shape_cast %111 : vector<1x48xf32> to vector<1x1x48xf32>
    %113 = vector.broadcast %112 : vector<1x1x48xf32> to vector<16x16x48xf32>
    %114 = arith.mulf %110, %113 : vector<16x16x48xf32>
    %115 = arith.addf %109, %114 : vector<16x16x48xf32>
    %c0_127 = arith.constant 0 : index
    %c2_128 = arith.constant 2 : index
    %c0_129 = arith.constant 0 : index
    %116 = vector.load %arg11[%c0_127, %c2_128, %c0_129] : memref<20x20x48xf32, #tpu.memory_space<vmem>>, vector<16x16x48xf32>
    %c2_130 = arith.constant 2 : index
    %c0_131 = arith.constant 0 : index
    %117 = vector.load %arg8[%c2_130, %c0_131] : memref<25x48xf32, #tpu.memory_space<vmem>>, vector<1x48xf32>
    %118 = vector.shape_cast %117 : vector<1x48xf32> to vector<1x1x48xf32>
    %119 = vector.broadcast %118 : vector<1x1x48xf32> to vector<16x16x48xf32>
    %120 = arith.mulf %116, %119 : vector<16x16x48xf32>
    %121 = arith.addf %115, %120 : vector<16x16x48xf32>
    %c0_132 = arith.constant 0 : index
    %c3_133 = arith.constant 3 : index
    %c0_134 = arith.constant 0 : index
    %122 = vector.load %arg11[%c0_132, %c3_133, %c0_134] : memref<20x20x48xf32, #tpu.memory_space<vmem>>, vector<16x16x48xf32>
    %c3_135 = arith.constant 3 : index
    %c0_136 = arith.constant 0 : index
    %123 = vector.load %arg8[%c3_135, %c0_136] : memref<25x48xf32, #tpu.memory_space<vmem>>, vector<1x48xf32>
    %124 = vector.shape_cast %123 : vector<1x48xf32> to vector<1x1x48xf32>
    %125 = vector.broadcast %124 : vector<1x1x48xf32> to vector<16x16x48xf32>
    %126 = arith.mulf %122, %125 : vector<16x16x48xf32>
    %127 = arith.addf %121, %126 : vector<16x16x48xf32>
    %c0_137 = arith.constant 0 : index
    %c4_138 = arith.constant 4 : index
    %c0_139 = arith.constant 0 : index
    %128 = vector.load %arg11[%c0_137, %c4_138, %c0_139] : memref<20x20x48xf32, #tpu.memory_space<vmem>>, vector<16x16x48xf32>
    %c4_140 = arith.constant 4 : index
    %c0_141 = arith.constant 0 : index
    %129 = vector.load %arg8[%c4_140, %c0_141] : memref<25x48xf32, #tpu.memory_space<vmem>>, vector<1x48xf32>
    %130 = vector.shape_cast %129 : vector<1x48xf32> to vector<1x1x48xf32>
    %131 = vector.broadcast %130 : vector<1x1x48xf32> to vector<16x16x48xf32>
    %132 = arith.mulf %128, %131 : vector<16x16x48xf32>
    %133 = arith.addf %127, %132 : vector<16x16x48xf32>
    %c1_142 = arith.constant 1 : index
    %c0_143 = arith.constant 0 : index
    %c0_144 = arith.constant 0 : index
    %134 = vector.load %arg11[%c1_142, %c0_143, %c0_144] : memref<20x20x48xf32, #tpu.memory_space<vmem>>, vector<16x16x48xf32>
    %c5 = arith.constant 5 : index
    %c0_145 = arith.constant 0 : index
    %135 = vector.load %arg8[%c5, %c0_145] : memref<25x48xf32, #tpu.memory_space<vmem>>, vector<1x48xf32>
    %136 = vector.shape_cast %135 : vector<1x48xf32> to vector<1x1x48xf32>
    %137 = vector.broadcast %136 : vector<1x1x48xf32> to vector<16x16x48xf32>
    %138 = arith.mulf %134, %137 : vector<16x16x48xf32>
    %139 = arith.addf %133, %138 : vector<16x16x48xf32>
    %c1_146 = arith.constant 1 : index
    %c1_147 = arith.constant 1 : index
    %c0_148 = arith.constant 0 : index
    %140 = vector.load %arg11[%c1_146, %c1_147, %c0_148] : memref<20x20x48xf32, #tpu.memory_space<vmem>>, vector<16x16x48xf32>
    %c6 = arith.constant 6 : index
    %c0_149 = arith.constant 0 : index
    %141 = vector.load %arg8[%c6, %c0_149] : memref<25x48xf32, #tpu.memory_space<vmem>>, vector<1x48xf32>
    %142 = vector.shape_cast %141 : vector<1x48xf32> to vector<1x1x48xf32>
    %143 = vector.broadcast %142 : vector<1x1x48xf32> to vector<16x16x48xf32>
    %144 = arith.mulf %140, %143 : vector<16x16x48xf32>
    %145 = arith.addf %139, %144 : vector<16x16x48xf32>
    %c1_150 = arith.constant 1 : index
    %c2_151 = arith.constant 2 : index
    %c0_152 = arith.constant 0 : index
    %146 = vector.load %arg11[%c1_150, %c2_151, %c0_152] : memref<20x20x48xf32, #tpu.memory_space<vmem>>, vector<16x16x48xf32>
    %c7 = arith.constant 7 : index
    %c0_153 = arith.constant 0 : index
    %147 = vector.load %arg8[%c7, %c0_153] : memref<25x48xf32, #tpu.memory_space<vmem>>, vector<1x48xf32>
    %148 = vector.shape_cast %147 : vector<1x48xf32> to vector<1x1x48xf32>
    %149 = vector.broadcast %148 : vector<1x1x48xf32> to vector<16x16x48xf32>
    %150 = arith.mulf %146, %149 : vector<16x16x48xf32>
    %151 = arith.addf %145, %150 : vector<16x16x48xf32>
    %c1_154 = arith.constant 1 : index
    %c3_155 = arith.constant 3 : index
    %c0_156 = arith.constant 0 : index
    %152 = vector.load %arg11[%c1_154, %c3_155, %c0_156] : memref<20x20x48xf32, #tpu.memory_space<vmem>>, vector<16x16x48xf32>
    %c8 = arith.constant 8 : index
    %c0_157 = arith.constant 0 : index
    %153 = vector.load %arg8[%c8, %c0_157] : memref<25x48xf32, #tpu.memory_space<vmem>>, vector<1x48xf32>
    %154 = vector.shape_cast %153 : vector<1x48xf32> to vector<1x1x48xf32>
    %155 = vector.broadcast %154 : vector<1x1x48xf32> to vector<16x16x48xf32>
    %156 = arith.mulf %152, %155 : vector<16x16x48xf32>
    %157 = arith.addf %151, %156 : vector<16x16x48xf32>
    %c1_158 = arith.constant 1 : index
    %c4_159 = arith.constant 4 : index
    %c0_160 = arith.constant 0 : index
    %158 = vector.load %arg11[%c1_158, %c4_159, %c0_160] : memref<20x20x48xf32, #tpu.memory_space<vmem>>, vector<16x16x48xf32>
    %c9 = arith.constant 9 : index
    %c0_161 = arith.constant 0 : index
    %159 = vector.load %arg8[%c9, %c0_161] : memref<25x48xf32, #tpu.memory_space<vmem>>, vector<1x48xf32>
    %160 = vector.shape_cast %159 : vector<1x48xf32> to vector<1x1x48xf32>
    %161 = vector.broadcast %160 : vector<1x1x48xf32> to vector<16x16x48xf32>
    %162 = arith.mulf %158, %161 : vector<16x16x48xf32>
    %163 = arith.addf %157, %162 : vector<16x16x48xf32>
    %c2_162 = arith.constant 2 : index
    %c0_163 = arith.constant 0 : index
    %c0_164 = arith.constant 0 : index
    %164 = vector.load %arg11[%c2_162, %c0_163, %c0_164] : memref<20x20x48xf32, #tpu.memory_space<vmem>>, vector<16x16x48xf32>
    %c10 = arith.constant 10 : index
    %c0_165 = arith.constant 0 : index
    %165 = vector.load %arg8[%c10, %c0_165] : memref<25x48xf32, #tpu.memory_space<vmem>>, vector<1x48xf32>
    %166 = vector.shape_cast %165 : vector<1x48xf32> to vector<1x1x48xf32>
    %167 = vector.broadcast %166 : vector<1x1x48xf32> to vector<16x16x48xf32>
    %168 = arith.mulf %164, %167 : vector<16x16x48xf32>
    %169 = arith.addf %163, %168 : vector<16x16x48xf32>
    %c2_166 = arith.constant 2 : index
    %c1_167 = arith.constant 1 : index
    %c0_168 = arith.constant 0 : index
    %170 = vector.load %arg11[%c2_166, %c1_167, %c0_168] : memref<20x20x48xf32, #tpu.memory_space<vmem>>, vector<16x16x48xf32>
    %c11 = arith.constant 11 : index
    %c0_169 = arith.constant 0 : index
    %171 = vector.load %arg8[%c11, %c0_169] : memref<25x48xf32, #tpu.memory_space<vmem>>, vector<1x48xf32>
    %172 = vector.shape_cast %171 : vector<1x48xf32> to vector<1x1x48xf32>
    %173 = vector.broadcast %172 : vector<1x1x48xf32> to vector<16x16x48xf32>
    %174 = arith.mulf %170, %173 : vector<16x16x48xf32>
    %175 = arith.addf %169, %174 : vector<16x16x48xf32>
    %c2_170 = arith.constant 2 : index
    %c2_171 = arith.constant 2 : index
    %c0_172 = arith.constant 0 : index
    %176 = vector.load %arg11[%c2_170, %c2_171, %c0_172] : memref<20x20x48xf32, #tpu.memory_space<vmem>>, vector<16x16x48xf32>
    %c12 = arith.constant 12 : index
    %c0_173 = arith.constant 0 : index
    %177 = vector.load %arg8[%c12, %c0_173] : memref<25x48xf32, #tpu.memory_space<vmem>>, vector<1x48xf32>
    %178 = vector.shape_cast %177 : vector<1x48xf32> to vector<1x1x48xf32>
    %179 = vector.broadcast %178 : vector<1x1x48xf32> to vector<16x16x48xf32>
    %180 = arith.mulf %176, %179 : vector<16x16x48xf32>
    %181 = arith.addf %175, %180 : vector<16x16x48xf32>
    %c2_174 = arith.constant 2 : index
    %c3_175 = arith.constant 3 : index
    %c0_176 = arith.constant 0 : index
    %182 = vector.load %arg11[%c2_174, %c3_175, %c0_176] : memref<20x20x48xf32, #tpu.memory_space<vmem>>, vector<16x16x48xf32>
    %c13 = arith.constant 13 : index
    %c0_177 = arith.constant 0 : index
    %183 = vector.load %arg8[%c13, %c0_177] : memref<25x48xf32, #tpu.memory_space<vmem>>, vector<1x48xf32>
    %184 = vector.shape_cast %183 : vector<1x48xf32> to vector<1x1x48xf32>
    %185 = vector.broadcast %184 : vector<1x1x48xf32> to vector<16x16x48xf32>
    %186 = arith.mulf %182, %185 : vector<16x16x48xf32>
    %187 = arith.addf %181, %186 : vector<16x16x48xf32>
    %c2_178 = arith.constant 2 : index
    %c4_179 = arith.constant 4 : index
    %c0_180 = arith.constant 0 : index
    %188 = vector.load %arg11[%c2_178, %c4_179, %c0_180] : memref<20x20x48xf32, #tpu.memory_space<vmem>>, vector<16x16x48xf32>
    %c14 = arith.constant 14 : index
    %c0_181 = arith.constant 0 : index
    %189 = vector.load %arg8[%c14, %c0_181] : memref<25x48xf32, #tpu.memory_space<vmem>>, vector<1x48xf32>
    %190 = vector.shape_cast %189 : vector<1x48xf32> to vector<1x1x48xf32>
    %191 = vector.broadcast %190 : vector<1x1x48xf32> to vector<16x16x48xf32>
    %192 = arith.mulf %188, %191 : vector<16x16x48xf32>
    %193 = arith.addf %187, %192 : vector<16x16x48xf32>
    %c3_182 = arith.constant 3 : index
    %c0_183 = arith.constant 0 : index
    %c0_184 = arith.constant 0 : index
    %194 = vector.load %arg11[%c3_182, %c0_183, %c0_184] : memref<20x20x48xf32, #tpu.memory_space<vmem>>, vector<16x16x48xf32>
    %c15 = arith.constant 15 : index
    %c0_185 = arith.constant 0 : index
    %195 = vector.load %arg8[%c15, %c0_185] : memref<25x48xf32, #tpu.memory_space<vmem>>, vector<1x48xf32>
    %196 = vector.shape_cast %195 : vector<1x48xf32> to vector<1x1x48xf32>
    %197 = vector.broadcast %196 : vector<1x1x48xf32> to vector<16x16x48xf32>
    %198 = arith.mulf %194, %197 : vector<16x16x48xf32>
    %199 = arith.addf %193, %198 : vector<16x16x48xf32>
    %c3_186 = arith.constant 3 : index
    %c1_187 = arith.constant 1 : index
    %c0_188 = arith.constant 0 : index
    %200 = vector.load %arg11[%c3_186, %c1_187, %c0_188] : memref<20x20x48xf32, #tpu.memory_space<vmem>>, vector<16x16x48xf32>
    %c16 = arith.constant 16 : index
    %c0_189 = arith.constant 0 : index
    %201 = vector.load %arg8[%c16, %c0_189] : memref<25x48xf32, #tpu.memory_space<vmem>>, vector<1x48xf32>
    %202 = vector.shape_cast %201 : vector<1x48xf32> to vector<1x1x48xf32>
    %203 = vector.broadcast %202 : vector<1x1x48xf32> to vector<16x16x48xf32>
    %204 = arith.mulf %200, %203 : vector<16x16x48xf32>
    %205 = arith.addf %199, %204 : vector<16x16x48xf32>
    %c3_190 = arith.constant 3 : index
    %c2_191 = arith.constant 2 : index
    %c0_192 = arith.constant 0 : index
    %206 = vector.load %arg11[%c3_190, %c2_191, %c0_192] : memref<20x20x48xf32, #tpu.memory_space<vmem>>, vector<16x16x48xf32>
    %c17 = arith.constant 17 : index
    %c0_193 = arith.constant 0 : index
    %207 = vector.load %arg8[%c17, %c0_193] : memref<25x48xf32, #tpu.memory_space<vmem>>, vector<1x48xf32>
    %208 = vector.shape_cast %207 : vector<1x48xf32> to vector<1x1x48xf32>
    %209 = vector.broadcast %208 : vector<1x1x48xf32> to vector<16x16x48xf32>
    %210 = arith.mulf %206, %209 : vector<16x16x48xf32>
    %211 = arith.addf %205, %210 : vector<16x16x48xf32>
    %c3_194 = arith.constant 3 : index
    %c3_195 = arith.constant 3 : index
    %c0_196 = arith.constant 0 : index
    %212 = vector.load %arg11[%c3_194, %c3_195, %c0_196] : memref<20x20x48xf32, #tpu.memory_space<vmem>>, vector<16x16x48xf32>
    %c18 = arith.constant 18 : index
    %c0_197 = arith.constant 0 : index
    %213 = vector.load %arg8[%c18, %c0_197] : memref<25x48xf32, #tpu.memory_space<vmem>>, vector<1x48xf32>
    %214 = vector.shape_cast %213 : vector<1x48xf32> to vector<1x1x48xf32>
    %215 = vector.broadcast %214 : vector<1x1x48xf32> to vector<16x16x48xf32>
    %216 = arith.mulf %212, %215 : vector<16x16x48xf32>
    %217 = arith.addf %211, %216 : vector<16x16x48xf32>
    %c3_198 = arith.constant 3 : index
    %c4_199 = arith.constant 4 : index
    %c0_200 = arith.constant 0 : index
    %218 = vector.load %arg11[%c3_198, %c4_199, %c0_200] : memref<20x20x48xf32, #tpu.memory_space<vmem>>, vector<16x16x48xf32>
    %c19 = arith.constant 19 : index
    %c0_201 = arith.constant 0 : index
    %219 = vector.load %arg8[%c19, %c0_201] : memref<25x48xf32, #tpu.memory_space<vmem>>, vector<1x48xf32>
    %220 = vector.shape_cast %219 : vector<1x48xf32> to vector<1x1x48xf32>
    %221 = vector.broadcast %220 : vector<1x1x48xf32> to vector<16x16x48xf32>
    %222 = arith.mulf %218, %221 : vector<16x16x48xf32>
    %223 = arith.addf %217, %222 : vector<16x16x48xf32>
    %c4_202 = arith.constant 4 : index
    %c0_203 = arith.constant 0 : index
    %c0_204 = arith.constant 0 : index
    %224 = vector.load %arg11[%c4_202, %c0_203, %c0_204] : memref<20x20x48xf32, #tpu.memory_space<vmem>>, vector<16x16x48xf32>
    %c20 = arith.constant 20 : index
    %c0_205 = arith.constant 0 : index
    %225 = vector.load %arg8[%c20, %c0_205] : memref<25x48xf32, #tpu.memory_space<vmem>>, vector<1x48xf32>
    %226 = vector.shape_cast %225 : vector<1x48xf32> to vector<1x1x48xf32>
    %227 = vector.broadcast %226 : vector<1x1x48xf32> to vector<16x16x48xf32>
    %228 = arith.mulf %224, %227 : vector<16x16x48xf32>
    %229 = arith.addf %223, %228 : vector<16x16x48xf32>
    %c4_206 = arith.constant 4 : index
    %c1_207 = arith.constant 1 : index
    %c0_208 = arith.constant 0 : index
    %230 = vector.load %arg11[%c4_206, %c1_207, %c0_208] : memref<20x20x48xf32, #tpu.memory_space<vmem>>, vector<16x16x48xf32>
    %c21 = arith.constant 21 : index
    %c0_209 = arith.constant 0 : index
    %231 = vector.load %arg8[%c21, %c0_209] : memref<25x48xf32, #tpu.memory_space<vmem>>, vector<1x48xf32>
    %232 = vector.shape_cast %231 : vector<1x48xf32> to vector<1x1x48xf32>
    %233 = vector.broadcast %232 : vector<1x1x48xf32> to vector<16x16x48xf32>
    %234 = arith.mulf %230, %233 : vector<16x16x48xf32>
    %235 = arith.addf %229, %234 : vector<16x16x48xf32>
    %c4_210 = arith.constant 4 : index
    %c2_211 = arith.constant 2 : index
    %c0_212 = arith.constant 0 : index
    %236 = vector.load %arg11[%c4_210, %c2_211, %c0_212] : memref<20x20x48xf32, #tpu.memory_space<vmem>>, vector<16x16x48xf32>
    %c22 = arith.constant 22 : index
    %c0_213 = arith.constant 0 : index
    %237 = vector.load %arg8[%c22, %c0_213] : memref<25x48xf32, #tpu.memory_space<vmem>>, vector<1x48xf32>
    %238 = vector.shape_cast %237 : vector<1x48xf32> to vector<1x1x48xf32>
    %239 = vector.broadcast %238 : vector<1x1x48xf32> to vector<16x16x48xf32>
    %240 = arith.mulf %236, %239 : vector<16x16x48xf32>
    %241 = arith.addf %235, %240 : vector<16x16x48xf32>
    %c4_214 = arith.constant 4 : index
    %c3_215 = arith.constant 3 : index
    %c0_216 = arith.constant 0 : index
    %242 = vector.load %arg11[%c4_214, %c3_215, %c0_216] : memref<20x20x48xf32, #tpu.memory_space<vmem>>, vector<16x16x48xf32>
    %c23 = arith.constant 23 : index
    %c0_217 = arith.constant 0 : index
    %243 = vector.load %arg8[%c23, %c0_217] : memref<25x48xf32, #tpu.memory_space<vmem>>, vector<1x48xf32>
    %244 = vector.shape_cast %243 : vector<1x48xf32> to vector<1x1x48xf32>
    %245 = vector.broadcast %244 : vector<1x1x48xf32> to vector<16x16x48xf32>
    %246 = arith.mulf %242, %245 : vector<16x16x48xf32>
    %247 = arith.addf %241, %246 : vector<16x16x48xf32>
    %c4_218 = arith.constant 4 : index
    %c4_219 = arith.constant 4 : index
    %c0_220 = arith.constant 0 : index
    %248 = vector.load %arg11[%c4_218, %c4_219, %c0_220] : memref<20x20x48xf32, #tpu.memory_space<vmem>>, vector<16x16x48xf32>
    %c24 = arith.constant 24 : index
    %c0_221 = arith.constant 0 : index
    %249 = vector.load %arg8[%c24, %c0_221] : memref<25x48xf32, #tpu.memory_space<vmem>>, vector<1x48xf32>
    %250 = vector.shape_cast %249 : vector<1x48xf32> to vector<1x1x48xf32>
    %251 = vector.broadcast %250 : vector<1x1x48xf32> to vector<16x16x48xf32>
    %252 = arith.mulf %248, %251 : vector<16x16x48xf32>
    %253 = arith.addf %247, %252 : vector<16x16x48xf32>
    %c0_222 = arith.constant 0 : index
    %254 = memref.load %arg1[%c0_222] : memref<2xf32, #tpu.memory_space<smem>>
    %c1_223 = arith.constant 1 : index
    %255 = memref.load %arg1[%c1_223] : memref<2xf32, #tpu.memory_space<smem>>
    %cst_224 = arith.constant dense<0.000000e+00> : vector<16x16xf32>
    %256 = vector.multi_reduction <add>, %253, %cst_224 [2] : vector<16x16x48xf32> to vector<16x16xf32>
    %257 = vector.broadcast %255 : f32 to vector<16x16xf32>
    %258 = arith.addf %256, %257 : vector<16x16xf32>
    %c0_225 = arith.constant 0 : index
    %c0_226 = arith.constant 0 : index
    %c0_227 = arith.constant 0 : index
    %259 = vector.load %arg3[%c0_225, %c0_226, %c0_227] : memref<1x16x16xf32, #tpu.memory_space<vmem>>, vector<1x16x16xf32>
    %260 = vector.shape_cast %259 : vector<1x16x16xf32> to vector<16x16xf32>
    %261 = vector.broadcast %254 : f32 to vector<16x16xf32>
    %262 = arith.mulf %261, %260 : vector<16x16xf32>
    %263 = arith.addf %262, %258 : vector<16x16xf32>
    %c0_228 = arith.constant 0 : index
    %c0_229 = arith.constant 0 : index
    %c0_230 = arith.constant 0 : index
    %264 = vector.load %arg9[%c0_228, %c0_229, %c0_230] : memref<1x16x16xf32, #tpu.memory_space<vmem>>, vector<1x16x16xf32>
    %265 = vector.shape_cast %264 : vector<1x16x16xf32> to vector<16x16xf32>
    %266 = vector.shape_cast %263 : vector<16x16xf32> to vector<1x16x16xf32>
    tpu.vector_store %arg9[%c0_228, %c0_229, %c0_230], %266 {strides = array<i32>} : memref<1x16x16xf32, #tpu.memory_space<vmem>>, vector<1x16x16xf32>,
    return
  }
  func.func @transform_0(%arg0: i32) -> i32 {
    %c0_i32 = arith.constant 0 : i32
    %c0_i32_0 = arith.constant 0 : i32
    return %c0_i32 : i32
  }
  func.func @transform_1(%arg0: i32) -> (i32, i32, i32) {
    %c0_i32 = arith.constant 0 : i32
    %c0_i32_0 = arith.constant 0 : i32
    %c0_i32_1 = arith.constant 0 : i32
    return %arg0, %c0_i32, %c0_i32_0 : i32, i32, i32
  }
  func.func @transform_2(%arg0: i32) -> (i32, i32, i32) {
    %c0_i32 = arith.constant 0 : i32
    %c0_i32_0 = arith.constant 0 : i32
    %c0_i32_1 = arith.constant 0 : i32
    return %arg0, %c0_i32, %c0_i32_0 : i32, i32, i32
  }
  func.func @transform_3(%arg0: i32) -> (i32, i32) {
    %c0_i32 = arith.constant 0 : i32
    %c0_i32_0 = arith.constant 0 : i32
    %c0_i32_1 = arith.constant 0 : i32
    return %c0_i32, %c0_i32_0 : i32, i32
  }
  func.func @transform_4(%arg0: i32) -> (i32, i32) {
    %c0_i32 = arith.constant 0 : i32
    %c0_i32_0 = arith.constant 0 : i32
    %c0_i32_1 = arith.constant 0 : i32
    return %c0_i32, %c0_i32_0 : i32, i32
  }
  func.func @transform_5(%arg0: i32) -> (i32, i32, i32) {
    %c0_i32 = arith.constant 0 : i32
    %c0_i32_0 = arith.constant 0 : i32
    %c0_i32_1 = arith.constant 0 : i32
    %c0_i32_2 = arith.constant 0 : i32
    return %c0_i32, %c0_i32_0, %c0_i32_1 : i32, i32, i32
  }
  func.func @transform_6(%arg0: i32) -> (i32, i32) {
    %c0_i32 = arith.constant 0 : i32
    %c0_i32_0 = arith.constant 0 : i32
    %c0_i32_1 = arith.constant 0 : i32
    return %c0_i32, %c0_i32_0 : i32, i32
  }
  func.func @transform_7(%arg0: i32) -> (i32, i32) {
    %c0_i32 = arith.constant 0 : i32
    %c0_i32_0 = arith.constant 0 : i32
    %c0_i32_1 = arith.constant 0 : i32
    return %c0_i32, %c0_i32_0 : i32, i32
  }
  func.func @transform_8(%arg0: i32) -> (i32, i32, i32) {
    %c0_i32 = arith.constant 0 : i32
    %c0_i32_0 = arith.constant 0 : i32
    %c0_i32_1 = arith.constant 0 : i32
    return %arg0, %c0_i32, %c0_i32_0 : i32, i32, i32
  }
}

</mosaic_0001>

<bundles_post_ra>
// kernel: tpu_custom_call.1
= control target key start
LH: loop header
LB: loop body
LE: loop exit
PB: predicated region body
PF: predicated region fallthrough
CT: control target
= control target key end

     0   :  { %13 = vsyncpa [#allocation6], 0  ;;  %s14632_s0 = inlined_call_operand.vmem [shape: f32[2], index: 0, kind: input, shape index: {}]   ;;  %s14633_s1 = inlined_call_operand.vmem [shape: bf16[2,256,25], index: 1, kind: input, shape index: {}]   ;;  %s14634_s2 = inlined_call_operand.vmem [shape: f32[2,16,16], index: 2, kind: input, shape index: {}]   ;;  %s14635_s3 = inlined_call_operand.vmem [shape: bf16[25,48], index: 3, kind: input, shape index: {}]   ;;  %s14636_s4 = inlined_call_operand.vmem [shape: f32[1,48], index: 4, kind: input, shape index: {}]   ;;  %s14637_s5 = inlined_call_operand.vmem [shape: bf16[5,240,48], index: 5, kind: input, shape index: {}]   ;;  %s14638_s6 = inlined_call_operand.vmem [shape: f32[1,48], index: 6, kind: input, shape index: {}]   ;;  %s14639_s7 = inlined_call_operand.vmem [shape: f32[25,48], index: 7, kind: input, shape index: {}]   ;;  %s14640_s8 = inlined_call_operand.hbm [shape: f32[2,16,16], index: 8, kind: output, shape index: {}]  }
   0x1   :  { %14 = vsyncpa [#allocation5], 0 }
   0x2   :  { %16 = vsyncpa [#allocation5 + $0x1], 0  ;;  %s9397_s27 = smov 0   ;;  %s9399_s28 = smov 0  }
   0x3   :  { %s9401_s29 = smov 0   ;;  %s9403_s30 = smov 0  }
   0x4 LB: > { %s9418_s9 = sadd.s32 4294967295, %s9339_s30   ;;  %s8584_s10 = sadd.s32 4294967294, %s9339_s30   ;;  %s9339_s30 = sphi %s9403_s30, %s15246_s30   ;;  %s9335_s29 = sphi %s9401_s29, %s15245_s29   ;;  %s9331_s28 = sphi %s9399_s28, %s15244_s28   ;;  %s9327_s27 = sphi %s9397_s27, %s15243_s27  }
   0x5   : > { %s9422_s11 = sadd.s32 1, %s9339_s30   ;;  %s207_s12 = sadd.s32 1, %s9335_s29 }
   0x6   : > { %s204_s13 = ssub.s32 %s9339_s30, %s9422_s11  ;;  %p217_p0 = scmp.ne.s32.totalorder %s9335_s29, %s9331_s28 }
   0x7   : > { %p205_p1 = scmp.eq.s32.totalorder %s204_s13, 0  ;;  %p218_p2 = scmp.eq.s32.totalorder %s9418_s9, 1 }
   0x8   : > { %p223_p3 = scmp.ne.s32.totalorder %s9331_s28, %s9327_s27  ;;  %p224_p4 = scmp.eq.s32.totalorder %s8584_s10, 1 }
   0x9   : > { %s9433_s14 = scalar_select %p205_p1, %s9335_s29, %s207_s12  }
   0xa   : > { %p9435_p5 = por %p218_p2, %p217_p0  ;;  %p9439_p6 = por %p224_p4, %p223_p3 }
   0xb   : > { %p8585_p7 = scmp.ge.s32.totalorder %s9339_s30, 1  ;;  %p231_p8 = scmp.lt.s32.totalorder %s9339_s30, 3 }
   0xc   : > { %p9038_p9 = scmp.eq.s32.totalorder %s9418_s9, 0  ;;  %s244_s20 = sshll.u32 %s14632_s0, 4  ;;  %s245_s20 = int_to_ptr.vmem [resolvable:$true] %s244_s20 }
   0xd   : > { %p9446_p10 = pnand %p8585_p7, %p231_p8  ;;  %s9260_s21 = scalar_lea.vmem %s245_s20, 16 }
   0xe   : > { %p9261_p13 = scmp.ne.s32.totalorder %s245_s20, %s9260_s21  ;;  %p9268_p3 = scmp.lt.s32.totalorder %s245_s20, %s245_s20 }
   0xf   : > { %p9030_p11 = pneg %p9446_p10  ;;  %p9269_p4 = scmp.lt.s32.totalorder %s9260_s21, %s9260_s21 }
  0x11   : > { %p9031_p12 = pnand %p9038_p9, %p9030_p11  ;;  %p9270_p7 = por %p9269_p4, %p9268_p3 }
  0x13   : > { %p9262_p0 = pneg %p9031_p12 }
  0x15   : > { %p9263_p1 = pnand %p9262_p0, %p9261_p13 }
  0x17   : > { %p9264_p2 = pneg %p9263_p1 }
  0x19   : > { %p9271_p8 = pnand %p9270_p7, %p9264_p2 }
  0x1b   : > { %9274 = shalt.err (!%p9271_p8)
}
  0x1c   : > { %s9341_s22 = smov [#allocation4]   ;;  %288 = sbr.rel (%p9446_p10) target bundleno = 1684 (0x694), region = 52 }
  0x1d   : > { %9033 = dma.vmem_to_smem (!%p9031_p12), %s245_s20, 16, %s9341_s22, [#allocation6]  }
  0x21   : > { %9318 = dma.done.wait (%p9038_p9), [#allocation6], 16  }
  0x22   : > { %9320 = vsyncadd (%p9038_p9), [#allocation6], 4294967280 }
  0x23   : > { %294 = sfence }
  0x24   : > { %v9083_v0 = vld [vmem:[%s14635_s3 + $0x8] sm:$0x1f]   ;;  %vm644_vm0 = vcmask 1043456   ;;  %vm645_vm1 = vcmask 1044480   ;;  %v9342_v1 = vmov 65535   ;;  %p328_p11 = scmp.lt.s32.totalorder %s9418_s9, 1 }
  0x25   : > { %v646_v2 = vsel %vm644_vm0, 4294967295, %v9342_v1  ;;  %vm339_vm2 = vcmask 392192   ;;  %vm342_vm3 = vcmask 388096   ;;  %v9472_v5 = vld [vmem:[%s14635_s3] sm:$0xff]   ;;  %v9343_v6 = vmov 0.0   ;;  %s9344_s19 = smov 48  }
  0x26   : > { %v647_v3 = vsel %vm645_vm1, %v646_v2, 0  ;;  %s9475_s10 = scalar_select %p328_p11, %s9418_s9, 1  ;;  %340 = vst.msk [vmem:[#allocation2] sm:$0xff] %vm339_vm2, %v9343_v6  ;;  %341 = vst.msk [vmem:[#allocation2 + $0x8] sm:$0xff] %vm339_vm2, %v9343_v6  ;;  %vm595_vm4 = vcmask 203776   ;;  %v9099_v45 = vld [vmem:[%s14637_s5 + $0x38] sm:$0xff]  }
  0x27   : > { %v9467_v4 = vand.u32 %v9083_v0, %v647_v3  ;;  %343 = vst.msk [vmem:[#allocation2 + $0x10] sm:$0xf] %vm342_vm3, %v9343_v6  ;;  %346 = vst.msk [vmem:[#allocation2 + $0x28] sm:$0xf] %vm342_vm3, %v9343_v6  ;;  %s9345_s20 = smov 96   ;;  %s9346_s21 = smov 64  }
  0x28   : > { %344 = vst.msk [vmem:[#allocation2 + $0x18] sm:$0xff] %vm339_vm2, %v9343_v6  ;;  %345 = vst.msk [vmem:[#allocation2 + $0x20] sm:$0xff] %vm339_vm2, %v9343_v6  ;;  %s8937_s12 = sshll.u32 %s9475_s10, 7  ;;  %s9347_s22 = smov 16   ;;  %v9348_v46 = vmov 0   ;;  %v9100_v47 = vld [vmem:[%s14637_s5 + $0x30] sm:$0xff]  }
  0x29   : > { %347 = vst.msk [vmem:[#allocation2 + $0x30] sm:$0xff] %vm339_vm2, %v9343_v6  ;;  %348 = vst.msk [vmem:[#allocation2 + $0x38] sm:$0xff] %vm339_vm2, %v9343_v6  ;;  %8958 = vmatprep.subr.bf16.mxu0 %v9467_v4  ;;  %s9723_s18 = scalar_lea.vmem %s14633_s1, %s8937_s12  ;;  %2249 = vmatprep.subr.bf16.mxu1 %v9348_v46  ;;  %v9101_v48 = vld [vmem:[%s14637_s5 + $0xb0] sm:$0xff]   ;;  %v9104_v51 = vld [vmem:[%s14637_s5 + $0x28] sm:$0xff]   ;;  %vm1406_vm5 = vcmask 130048   ;;  %vm1439_vm6 = vcmask 523264  }
  0x2a   : > { %349 = vst.msk [vmem:[#allocation2 + $0x40] sm:$0xf] %vm342_vm3, %v9343_v6  ;;  %352 = vst.msk [vmem:[#allocation2 + $0x58] sm:$0xf] %vm342_vm3, %v9343_v6  ;;  %8959 = vmatpush3.bf16.msra.mxu0 %v9467_v4  ;;  %v9085_v7 = vld [vmem:[%s9723_s18] sm:$0xff]   ;;  %v9086_v8 = vld [vmem:[%s9723_s18 + $0x8] sm:$0xff]   ;;  %2250 = vmatpush1.bf16.msra.mxu1 %v9101_v48 }
  0x2b   : > { %350 = vst.msk [vmem:[#allocation2 + $0x48] sm:$0xff] %vm339_vm2, %v9343_v6  ;;  %351 = vst.msk [vmem:[#allocation2 + $0x50] sm:$0xff] %vm339_vm2, %v9343_v6  ;;  %8960 = vmatprep.subr.bf16.mxu0 %v9472_v5  ;;  %8962 = vmatprep.mubr.msk.bf16.mxu0 %vm595_vm4, %v9085_v7  ;;  %v9087_v9 = vld [vmem:[%s9723_s18 + $0x10] sm:$0xff]   ;;  %v9088_v10 = vld [vmem:[%s9723_s18 + $0x18] sm:$0xff]   ;;  %vm1357_vm7 = vcmask 785408   ;;  %vm2216_vm8 = vcmask 916480  }
  0x2c   : > { %353 = vst.msk [vmem:[#allocation2 + $0x60] sm:$0xff] %vm339_vm2, %v9343_v6  ;;  %354 = vst.msk [vmem:[#allocation2 + $0x68] sm:$0xff] %vm339_vm2, %v9343_v6  ;;  %v9089_v11 = vld [vmem:[%s9723_s18 + $0x20] sm:$0xff]   ;;  %v9090_v28 = vld [vmem:[%s9723_s18 + $0x28] sm:$0xff]   ;;  %2251 = vmatprep.subr.bf16.mxu1 %v9348_v46  ;;  %s14402_s24 = sld [smem:[#allocation4 + $0x1]]  ;;  %vm8320_vm9 = vcmask 130112  }
  0x2d   : > { %355 = vst.msk [vmem:[#allocation2 + $0x70] sm:$0xf] %vm342_vm3, %v9343_v6  ;;  %358 = vst.msk [vmem:[#allocation2 + $0x88] sm:$0xf] %vm342_vm3, %v9343_v6  ;;  %v925_v12 = vld [vmem:[#allocation2 + $0x1] sm:$0xff]  ;;  %v9091_v31 = vld [vmem:[%s9723_s18 + $0x30] sm:$0xff]  }
  0x2e   : > { %356 = vst.msk [vmem:[#allocation2 + $0x78] sm:$0xff] %vm339_vm2, %v9343_v6  ;;  %357 = vst.msk [vmem:[#allocation2 + $0x80] sm:$0xff] %vm339_vm2, %v9343_v6  ;;  %8961 = vmatpush3.bf16.msra.mxu0 %v9472_v5  ;;  %v926_v13 = vld [vmem:[#allocation2 + $0x9] sm:$0xff]  ;;  %v9092_v38 = vld [vmem:[%s9723_s18 + $0x38] sm:$0xff]   ;;  %s14484_s25 = sld [smem:[#allocation4]]  ;;  %vm8457_vm10 = vcmask 1041409  }
  0x2f   : > { %359 = vst.msk [vmem:[#allocation2 + $0x90] sm:$0xff] %vm339_vm2, %v9343_v6  ;;  %360 = vst.msk [vmem:[#allocation2 + $0x98] sm:$0xff] %vm339_vm2, %v9343_v6  ;;  %v927_v14 = vld [vmem:[#allocation2 + $0x19] sm:$0xff]  ;;  %v957_v15 = vpack.c.bf16 %v926_v13, %v925_v12  ;;  %v928_v16 = vld [vmem:[#allocation2 + $0x21] sm:$0xff]  ;;  %2532 = vmatprep.subr.bf16.mxu0 %v9348_v46  ;;  %s8938_s26 = sshll.u32 %s9475_s10, 4  ;;  %vm8459_vm11 = vcmask 1042434  }
  0x30   : > { %361 = vst.msk [vmem:[#allocation2 + $0xa0] sm:$0xf] %vm342_vm3, %v9343_v6  ;;  %364 = vst.msk [vmem:[#allocation2 + $0xb8] sm:$0xf] %vm342_vm3, %v9343_v6  ;;  %v973_v17 = vld [vmem:[#allocation2 + $0x2] sm:$0xff]  ;;  %v974_v18 = vld [vmem:[#allocation2 + $0xa] sm:$0xff]  ;;  %v958_v21 = vpack.c.bf16 %v928_v16, %v927_v14 }
  0x31   : > { %362 = vst.msk [vmem:[#allocation2 + $0xa8] sm:$0xff] %vm339_vm2, %v9343_v6  ;;  %363 = vst.msk [vmem:[#allocation2 + $0xb0] sm:$0xff] %vm339_vm2, %v9343_v6  ;;  %8963 = vmatmul.mubr.msk.bf16.vlgmr.msra.gmra.mxu0 %vm595_vm4, %v9086_v8  ;;  %v1005_v19 = vpack.c.bf16 %v974_v18, %v973_v17  ;;  %v1069_v20 = vld [vmem:[#allocation2 + $0x4] sm:$0xff]  ;;  %1133 = vrot.lane.b32.xlu0 %v957_v15, %s9344_s19  ;;  %v1070_v22 = vld [vmem:[#allocation2 + $0xc] sm:$0xff]  ;;  %vm8461_vm12 = vcmask 1043459   ;;  %vm8463_vm13 = vcmask 1044484  }
  0x32   : > { %365 = vst.msk [vmem:[#allocation2 + $0xc0] sm:$0xff] %vm339_vm2, %v9343_v6  ;;  %366 = vst.msk [vmem:[#allocation2 + $0xc8] sm:$0xff] %vm339_vm2, %v9343_v6  ;;  %8966 = vmatprep.mubr.msk.bf16.mxu0 %vm595_vm4, %v9087_v9  ;;  %v1021_v23 = vld [vmem:[#allocation2 + $0x3] sm:$0xff]  ;;  %v1022_v24 = vld [vmem:[#allocation2 + $0xb] sm:$0xff]  ;;  %v1101_v25 = vpack.c.bf16 %v1070_v22, %v1069_v20  ;;  %2533 = vmatpush1.bf16.msra.mxu0 %v9099_v45  ;;  %s325_s13 = sand.u32 1, %s9331_s28   ;;  %vm8465_vm14 = vcmask 1045509  }
  0x33   : > { %367 = vst.msk [vmem:[#allocation2 + $0xd0] sm:$0xf] %vm342_vm3, %v9343_v6  ;;  %370 = vst.msk [vmem:[#allocation2 + $0xe8] sm:$0xf] %vm342_vm3, %v9343_v6  ;;  %1181 = vrot.lane.b32.xlu1 %v1005_v19, %s9345_s20  ;;  %v1647_v26 = vld [vmem:[#allocation2 + $0x1b] sm:$0xff]  ;;  %v1648_v27 = vld [vmem:[#allocation2 + $0x23] sm:$0xff]  ;;  %v1053_v32 = vpack.c.bf16 %v1022_v24, %v1021_v23  ;;  %2534 = vmatprep.subr.bf16.mxu0 %v9348_v46 }
  0x34   : > { %368 = vst.msk [vmem:[#allocation2 + $0xd8] sm:$0xff] %vm339_vm2, %v9343_v6  ;;  %369 = vst.msk [vmem:[#allocation2 + $0xe0] sm:$0xff] %vm339_vm2, %v9343_v6  ;;  %v1599_v29 = vld [vmem:[#allocation2 + $0x1a] sm:$0xff]  ;;  %v1600_v30 = vld [vmem:[#allocation2 + $0x22] sm:$0xff]  ;;  %v1679_v35 = vpack.c.bf16 %v1648_v27, %v1647_v26  ;;  %vm8467_vm15 = vcmask 1046534   ;;  %vm8469_vm0 = vcmask 1047559  }
  0x35   : > { %371 = vst.msk [vmem:[#allocation2 + $0xf0] sm:$0xff] %vm339_vm2, %v9343_v6  ;;  %372 = vst.msk [vmem:[#allocation2 + $0xf8] sm:$0xff] %vm339_vm2, %v9343_v6  ;;  %1135 = vrot.lane.b32.xlu0 %v958_v21, %s9344_s19  ;;  %v1695_v33 = vld [vmem:[#allocation2 + $0x1c] sm:$0xff]  ;;  %v1696_v34 = vld [vmem:[#allocation2 + $0x24] sm:$0xff]  ;;  %v1631_v36 = vpack.c.bf16 %v1600_v30, %v1599_v29  ;;  %s8590_s17 = sshll.u32 %s325_s13, 4 }
  0x36   : > { %373 = vst.msk [vmem:[#allocation2 + $0x100] sm:$0xf] %vm342_vm3, %v9343_v6  ;;  %376 = vst.msk [vmem:[#allocation2 + $0x118] sm:$0xf] %vm342_vm3, %v9343_v6  ;;  %v1727_v37 = vpack.c.bf16 %v1696_v34, %v1695_v33  ;;  %v9093_v39 = vld [vmem:[%s9723_s18 + $0x40] sm:$0xff]   ;;  %v9094_v40 = vld [vmem:[%s9723_s18 + $0x48] sm:$0xff]   ;;  %2535 = vmatpush1.bf16.msra.mxu0 %v9100_v47 }
  0x37   : > { %374 = vst.msk [vmem:[#allocation2 + $0x108] sm:$0xff] %vm339_vm2, %v9343_v6  ;;  %375 = vst.msk [vmem:[#allocation2 + $0x110] sm:$0xff] %vm339_vm2, %v9343_v6  ;;  %1277 = vrot.lane.b32.xlu1 %v1101_v25, %s9346_s21  ;;  %v9095_v41 = vld [vmem:[%s9723_s18 + $0x50] sm:$0xff]   ;;  %v9096_v42 = vld [vmem:[%s9723_s18 + $0x58] sm:$0xff]   ;;  %2536 = vmatprep.subr.bf16.mxu0 %v9348_v46  ;;  %s14535_s23 = scalar_lea.vmem [#allocation7], %s8590_s17 }
  0x38   : > { %377 = vst.msk [vmem:[#allocation2 + $0x120] sm:$0xff] %vm339_vm2, %v9343_v6  ;;  %378 = vst.msk [vmem:[#allocation2 + $0x128] sm:$0xff] %vm339_vm2, %v9343_v6  ;;  %v9097_v43 = vld [vmem:[%s9723_s18 + $0x60] sm:$0xff]   ;;  %v9098_v44 = vld [vmem:[%s9723_s18 + $0x68] sm:$0xff]  }
  0x39   : > { %379 = vst.msk [vmem:[#allocation2 + $0x130] sm:$0xf] %vm342_vm3, %v9343_v6  ;;  %382 = vst.msk [vmem:[#allocation2 + $0x148] sm:$0xf] %vm342_vm3, %v9343_v6  ;;  %8967 = vmatmul.mubr.msk.bf16.gmra.mxu0 %vm595_vm4, %v9088_v10  ;;  %1229 = vrot.lane.b32.xlu0 %v1053_v32, %s9347_s22  ;;  %v9102_v49 = vld [vmem:[%s9723_s18 + $0x70] sm:$0xff]   ;;  %v9103_v50 = vld [vmem:[%s9723_s18 + $0x78] sm:$0xff]   ;;  %s14509_s18 = scalar_lea.vmem %s14634_s2, %s8938_s26 }
  0x3a   : > { %380 = vst.msk [vmem:[#allocation2 + $0x138] sm:$0xff] %vm339_vm2, %v9343_v6  ;;  %381 = vst.msk [vmem:[#allocation2 + $0x140] sm:$0xff] %vm339_vm2, %v9343_v6  ;;  %8970 = vmatprep.mubr.msk.bf16.mxu0 %vm595_vm4, %v9089_v11  ;;  %2537 = vmatpush1.bf16.msra.mxu0 %v9104_v51  ;;  %v9105_v52 = vld [vmem:[%s14637_s5 + $0xa8] sm:$0xff]   ;;  %v9106_v53 = vld [vmem:[%s14637_s5 + $0x20] sm:$0xff]   ;;  %s9349_s26 = smov [#allocation7]  }
  0x3b   : > { %383 = vst.msk [vmem:[#allocation2 + $0x150] sm:$0xff] %vm339_vm2, %v9343_v6  ;;  %384 = vst.msk [vmem:[#allocation2 + $0x158] sm:$0xff] %vm339_vm2, %v9343_v6  ;;  %1855 = vrot.lane.b32.xlu1 %v1679_v35, %s9347_s22  ;;  %2538 = vmatprep.subr.bf16.mxu0 %v9348_v46  ;;  %v9107_v54 = vld [vmem:[%s14637_s5 + $0xa0] sm:$0xff]   ;;  %v9108_v55 = vld [vmem:[%s14637_s5 + $0x18] sm:$0xff]   ;;  %s9279_s10 = sshll.u32 %s9349_s26, 4  ;;  %s9280_s10 = int_to_ptr.vmem [resolvable:$false] %s9279_s10 }
  0x3c   : > { %385 = vst.msk [vmem:[#allocation2 + $0x160] sm:$0xf] %vm342_vm3, %v9343_v6  ;;  %388 = vst.msk [vmem:[#allocation2 + $0x178] sm:$0xf] %vm342_vm3, %v9343_v6  ;;  %2252 = vmatpush1.bf16.msra.mxu1 %v9105_v52  ;;  %v9109_v56 = vld [vmem:[%s14637_s5 + $0x98] sm:$0xff]   ;;  %v9110_v57 = vld [vmem:[%s14637_s5 + $0x10] sm:$0xff]  }
  0x3d   : > { %386 = vst.msk [vmem:[#allocation2 + $0x168] sm:$0xff] %vm339_vm2, %v9343_v6  ;;  %387 = vst.msk [vmem:[#allocation2 + $0x170] sm:$0xff] %vm339_vm2, %v9343_v6  ;;  %1807 = vrot.lane.b32.xlu0 %v1631_v36, %s9345_s20  ;;  %2253 = vmatprep.subr.bf16.mxu1 %v9348_v46  ;;  %v9111_v58 = vld [vmem:[%s14637_s5 + $0x90] sm:$0xff]   ;;  %v9112_v59 = vld [vmem:[%s14637_s5 + $0x8] sm:$0xff]   ;;  %s9281_s12 = scalar_lea.vmem %s9280_s10, 512 }
  0x3e   : > { %389 = vst.msk [vmem:[#allocation2 + $0x180] sm:$0xff] %vm339_vm2, %v9343_v6  ;;  %390 = vst.msk [vmem:[#allocation2 + $0x188] sm:$0xff] %vm339_vm2, %v9343_v6  ;;  %2539 = vmatpush1.bf16.msra.mxu0 %v9106_v53  ;;  %v9113_v60 = vld [vmem:[%s14637_s5 + $0x88] sm:$0xff]   ;;  %v9114_v61 = vld [vmem:[%s14637_s5] sm:$0xff]  }
  0x3f   : > { %391 = vst.msk [vmem:[#allocation2 + $0x190] sm:$0xf] %vm342_vm3, %v9343_v6  ;;  %394 = vst.msk [vmem:[#allocation2 + $0x1a8] sm:$0xf] %vm342_vm3, %v9343_v6  ;;  %1903 = vrot.lane.b32.xlu1 %v1727_v37, %s9346_s21  ;;  %2540 = vmatprep.subr.bf16.mxu0 %v9348_v46  ;;  %v9115_v62 = vld [vmem:[%s14637_s5 + $0x80] sm:$0xff]   ;;  %v9116_v63 = vld [vmem:[%s14637_s5 + $0x70] sm:$0xff]  }
  0x40   : > { %392 = vst.msk [vmem:[#allocation2 + $0x198] sm:$0xff] %vm339_vm2, %v9343_v6  ;;  %393 = vst.msk [vmem:[#allocation2 + $0x1a0] sm:$0xff] %vm339_vm2, %v9343_v6  ;;  %2254 = vmatpush1.bf16.msra.mxu1 %v9107_v54  ;;  %v9117_v0 = vld [vmem:[%s14637_s5 + $0x78] sm:$0xff]   ;;  %v9118_v1 = vld [vmem:[%s14637_s5 + $0x68] sm:$0xff]  }
  0x41   : > { %395 = vst.msk [vmem:[#allocation2 + $0x1b0] sm:$0xff] %vm339_vm2, %v9343_v6  ;;  %396 = vst.msk [vmem:[#allocation2 + $0x1b8] sm:$0xff] %vm339_vm2, %v9343_v6  ;;  %8971 = vmatmul.mubr.msk.bf16.gmra.mxu0 %vm595_vm4, %v9090_v28  ;;  %1759 = vrot.lane.b32.xlu0 %v958_v21, %s9344_s19  ;;  %v9119_v2 = vld [vmem:[%s14637_s5 + $0xe8] sm:$0xff]   ;;  %v9120_v4 = vld [vmem:[%s14637_s5 + $0x60] sm:$0xff]  }
  0x42   : > { %397 = vst.msk [vmem:[#allocation2 + $0x1c0] sm:$0xf] %vm342_vm3, %v9343_v6  ;;  %400 = vst.msk [vmem:[#allocation2 + $0x1d8] sm:$0xf] %vm342_vm3, %v9343_v6  ;;  %8974 = vmatprep.mubr.msk.bf16.mxu0 %vm595_vm4, %v9091_v31  ;;  %2255 = vmatprep.subr.bf16.mxu1 %v9348_v46  ;;  %v9121_v5 = vld [vmem:[%s14637_s5 + $0xe0] sm:$0xff]   ;;  %v9122_v7 = vld [vmem:[%s14637_s5 + $0x58] sm:$0xff]  }
  0x43   : > { %398 = vst.msk [vmem:[#allocation2 + $0x1c8] sm:$0xff] %vm339_vm2, %v9343_v6  ;;  %399 = vst.msk [vmem:[#allocation2 + $0x1d0] sm:$0xff] %vm339_vm2, %v9343_v6  ;;  %1231 = vrot.lane.b32.xlu1 %v1679_v35, %s9347_s22  ;;  %2541 = vmatpush1.bf16.msra.mxu0 %v9108_v55  ;;  %v9123_v8 = vld [vmem:[%s14637_s5 + $0xd8] sm:$0xff]   ;;  %v9124_v11 = vld [vmem:[%s14637_s5 + $0x50] sm:$0xff]  }
  0x44   : > { %401 = vst.msk [vmem:[#allocation3] sm:$0xff] %vm339_vm2, %v9343_v6  ;;  %402 = vst.msk [vmem:[#allocation3 + $0x8] sm:$0xff] %vm339_vm2, %v9343_v6  ;;  %2542 = vmatprep.subr.bf16.mxu0 %v9348_v46  ;;  %2256 = vmatpush1.bf16.msra.mxu1 %v9109_v56  ;;  %v878_v12 = vld [vmem:[#allocation2 + $0x8] sm:$0xff]  ;;  %v877_v13 = vld [vmem:[#allocation2] sm:$0xff] }
  0x45   : > { %403 = vst.msk [vmem:[#allocation3 + $0x10] sm:$0xf] %vm342_vm3, %v9343_v6  ;;  %406 = vst.msk [vmem:[#allocation3 + $0x28] sm:$0xf] %vm342_vm3, %v9343_v6  ;;  %1183 = vrot.lane.b32.xlu0 %v1631_v36, %s9345_s20  ;;  %2257 = vmatprep.subr.bf16.mxu1 %v9348_v46  ;;  %v9125_v14 = vld [vmem:[%s14637_s5 + $0xd0] sm:$0xff]   ;;  %v9126_v17 = vld [vmem:[%s14637_s5 + $0x48] sm:$0xff]   ;;  %v909_v18 = vpack.c.bf16 %v878_v12, %v877_v13 }
  0x46   : > { %404 = vst.msk [vmem:[#allocation3 + $0x18] sm:$0xff] %vm339_vm2, %v9343_v6  ;;  %405 = vst.msk [vmem:[#allocation3 + $0x20] sm:$0xff] %vm339_vm2, %v9343_v6  ;;  %v879_v19 = vld [vmem:[#allocation2 + $0x18] sm:$0xff]  ;;  %v880_v21 = vld [vmem:[#allocation2 + $0x20] sm:$0xff] }
  0x47   : > { %407 = vst.msk [vmem:[#allocation3 + $0x30] sm:$0xff] %vm339_vm2, %v9343_v6  ;;  %408 = vst.msk [vmem:[#allocation3 + $0x38] sm:$0xff] %vm339_vm2, %v9343_v6  ;;  %2543 = vmatpush1.bf16.msra.mxu0 %v9110_v57  ;;  %v9127_v22 = vld [vmem:[%s14637_s5 + $0xc8] sm:$0xff]   ;;  %v9128_v25 = vld [vmem:[%s14637_s5 + $0x40] sm:$0xff]   ;;  %v910_v28 = vpack.c.bf16 %v880_v21, %v879_v19 }
  0x48   : > { %409 = vst.msk [vmem:[#allocation3 + $0x40] sm:$0xf] %vm342_vm3, %v9343_v6  ;;  %412 = vst.msk [vmem:[#allocation3 + $0x58] sm:$0xf] %vm342_vm3, %v9343_v6  ;;  %2544 = vmatprep.subr.bf16.mxu0 %v9348_v46  ;;  %2258 = vmatpush1.bf16.msra.mxu1 %v9111_v58  ;;  %v9129_v30 = vld [vmem:[%s14637_s5 + $0xc0] sm:$0xff]   ;;  %v9130_v35 = vld [vmem:[%s14637_s5 + $0xb8] sm:$0xff]  }
  0x49   : > { %410 = vst.msk [vmem:[#allocation3 + $0x48] sm:$0xff] %vm339_vm2, %v9343_v6  ;;  %411 = vst.msk [vmem:[#allocation3 + $0x50] sm:$0xff] %vm339_vm2, %v9343_v6  ;;  %8975 = vmatmul.mubr.msk.bf16.gmra.mxu0 %vm595_vm4, %v9092_v38  ;;  %1279 = vrot.lane.b32.xlu0 %v1727_v37, %s9346_s21 }
  0x4a   : > { %413 = vst.msk [vmem:[#allocation3 + $0x60] sm:$0xff] %vm339_vm2, %v9343_v6  ;;  %414 = vst.msk [vmem:[#allocation3 + $0x68] sm:$0xff] %vm339_vm2, %v9343_v6  ;;  %8978 = vmatprep.mubr.msk.bf16.mxu0 %vm595_vm4, %v9093_v39  ;;  %2259 = vmatprep.subr.bf16.mxu1 %v9348_v46 }
  0x4b   : > { %415 = vst.msk [vmem:[#allocation3 + $0x70] sm:$0xf] %vm342_vm3, %v9343_v6  ;;  %418 = vst.msk [vmem:[#allocation3 + $0x88] sm:$0xf] %vm342_vm3, %v9343_v6  ;;  %2545 = vmatpush1.bf16.msra.mxu0 %v9112_v59 }
  0x4c   : > { %416 = vst.msk [vmem:[#allocation3 + $0x78] sm:$0xff] %vm339_vm2, %v9343_v6  ;;  %417 = vst.msk [vmem:[#allocation3 + $0x80] sm:$0xff] %vm339_vm2, %v9343_v6  ;;  %2546 = vmatprep.subr.bf16.mxu0 %v9348_v46  ;;  %2260 = vmatpush1.bf16.msra.mxu1 %v9113_v60 }
  0x4d   : > { %419 = vst.msk [vmem:[#allocation3 + $0x90] sm:$0xff] %vm339_vm2, %v9343_v6  ;;  %420 = vst.msk [vmem:[#allocation3 + $0x98] sm:$0xff] %vm339_vm2, %v9343_v6  ;;  %2261 = vmatprep.subr.bf16.mxu1 %v9348_v46 }
  0x4e   : > { %421 = vst.msk [vmem:[#allocation3 + $0xa0] sm:$0xf] %vm342_vm3, %v9343_v6  ;;  %424 = vst.msk [vmem:[#allocation3 + $0xb8] sm:$0xf] %vm342_vm3, %v9343_v6 }
  0x4f   : > { %422 = vst.msk [vmem:[#allocation3 + $0xa8] sm:$0xff] %vm339_vm2, %v9343_v6  ;;  %423 = vst.msk [vmem:[#allocation3 + $0xb0] sm:$0xff] %vm339_vm2, %v9343_v6  ;;  %2547 = vmatpush1.bf16.msra.mxu0 %v9114_v61 }
  0x50   : > { %425 = vst.msk [vmem:[#allocation3 + $0xc0] sm:$0xff] %vm339_vm2, %v9343_v6  ;;  %426 = vst.msk [vmem:[#allocation3 + $0xc8] sm:$0xff] %vm339_vm2, %v9343_v6  ;;  %2550 = vmatprep.subr.bf16.mxu0 %v9348_v46  ;;  %2262 = vmatpush1.bf16.msra.mxu1 %v9115_v62 }
  0x51   : > { %427 = vst.msk [vmem:[#allocation3 + $0xd0] sm:$0xf] %vm342_vm3, %v9343_v6  ;;  %430 = vst.msk [vmem:[#allocation3 + $0xe8] sm:$0xf] %vm342_vm3, %v9343_v6  ;;  %8979 = vmatmul.mubr.msk.bf16.gmra.mxu0 %vm595_vm4, %v9094_v40  ;;  %2263 = vmatprep.subr.bf16.mxu1 %v9348_v46 }
  0x52   : > { %428 = vst.msk [vmem:[#allocation3 + $0xd8] sm:$0xff] %vm339_vm2, %v9343_v6  ;;  %429 = vst.msk [vmem:[#allocation3 + $0xe0] sm:$0xff] %vm339_vm2, %v9343_v6  ;;  %8982 = vmatprep.mubr.msk.bf16.mxu0 %vm595_vm4, %v9095_v41 }
  0x53   : > { %431 = vst.msk [vmem:[#allocation3 + $0xf0] sm:$0xff] %vm339_vm2, %v9343_v6  ;;  %432 = vst.msk [vmem:[#allocation3 + $0xf8] sm:$0xff] %vm339_vm2, %v9343_v6  ;;  %2551 = vmatpush2.bf16.msra.mxu0 %v9116_v63 }
  0x54   : > { %433 = vst.msk [vmem:[#allocation3 + $0x100] sm:$0xf] %vm342_vm3, %v9343_v6  ;;  %436 = vst.msk [vmem:[#allocation3 + $0x118] sm:$0xf] %vm342_vm3, %v9343_v6  ;;  %2552 = vmatprep.subr.bf16.mxu0 %v9348_v46  ;;  %2264 = vmatpush1.bf16.msra.mxu1 %v9117_v0 }
  0x55   : > { %434 = vst.msk [vmem:[#allocation3 + $0x108] sm:$0xff] %vm339_vm2, %v9343_v6  ;;  %435 = vst.msk [vmem:[#allocation3 + $0x110] sm:$0xff] %vm339_vm2, %v9343_v6  ;;  %2267 = vmatprep.subr.bf16.mxu1 %v9348_v46 }
  0x56   : > { %437 = vst.msk [vmem:[#allocation3 + $0x120] sm:$0xff] %vm339_vm2, %v9343_v6  ;;  %438 = vst.msk [vmem:[#allocation3 + $0x128] sm:$0xff] %vm339_vm2, %v9343_v6 }
  0x57   : > { %439 = vst.msk [vmem:[#allocation3 + $0x130] sm:$0xf] %vm342_vm3, %v9343_v6  ;;  %442 = vst.msk [vmem:[#allocation3 + $0x148] sm:$0xf] %vm342_vm3, %v9343_v6  ;;  %2553 = vmatpush2.bf16.msra.mxu0 %v9118_v1 }
  0x58   : > { %440 = vst.msk [vmem:[#allocation3 + $0x138] sm:$0xff] %vm339_vm2, %v9343_v6  ;;  %441 = vst.msk [vmem:[#allocation3 + $0x140] sm:$0xff] %vm339_vm2, %v9343_v6  ;;  %2554 = vmatprep.subr.bf16.mxu0 %v9348_v46  ;;  %2268 = vmatpush2.bf16.msra.mxu1 %v9119_v2 }
  0x59   : > { %443 = vst.msk [vmem:[#allocation3 + $0x150] sm:$0xff] %vm339_vm2, %v9343_v6  ;;  %444 = vst.msk [vmem:[#allocation3 + $0x158] sm:$0xff] %vm339_vm2, %v9343_v6  ;;  %8983 = vmatmul.mubr.msk.bf16.gmra.mxu0 %vm595_vm4, %v9096_v42  ;;  %2269 = vmatprep.subr.bf16.mxu1 %v9348_v46 }
  0x5a   : > { %445 = vst.msk [vmem:[#allocation3 + $0x160] sm:$0xf] %vm342_vm3, %v9343_v6  ;;  %448 = vst.msk [vmem:[#allocation3 + $0x178] sm:$0xf] %vm342_vm3, %v9343_v6  ;;  %8986 = vmatprep.mubr.msk.bf16.mxu0 %vm595_vm4, %v9097_v43 }
  0x5b   : > { %446 = vst.msk [vmem:[#allocation3 + $0x168] sm:$0xff] %vm339_vm2, %v9343_v6  ;;  %447 = vst.msk [vmem:[#allocation3 + $0x170] sm:$0xff] %vm339_vm2, %v9343_v6  ;;  %2555 = vmatpush2.bf16.msra.mxu0 %v9120_v4 }
  0x5c   : > { %449 = vst.msk [vmem:[#allocation3 + $0x180] sm:$0xff] %vm339_vm2, %v9343_v6  ;;  %450 = vst.msk [vmem:[#allocation3 + $0x188] sm:$0xff] %vm339_vm2, %v9343_v6  ;;  %2556 = vmatprep.subr.bf16.mxu0 %v9348_v46  ;;  %2270 = vmatpush2.bf16.msra.mxu1 %v9121_v5 }
  0x5d   : > { %451 = vst.msk [vmem:[#allocation3 + $0x190] sm:$0xf] %vm342_vm3, %v9343_v6  ;;  %454 = vst.msk [vmem:[#allocation3 + $0x1a8] sm:$0xf] %vm342_vm3, %v9343_v6  ;;  %2271 = vmatprep.subr.bf16.mxu1 %v9348_v46 }
  0x5e   : > { %452 = vst.msk [vmem:[#allocation3 + $0x198] sm:$0xff] %vm339_vm2, %v9343_v6  ;;  %453 = vst.msk [vmem:[#allocation3 + $0x1a0] sm:$0xff] %vm339_vm2, %v9343_v6 }
  0x5f   : > { %455 = vst.msk [vmem:[#allocation3 + $0x1b0] sm:$0xff] %vm339_vm2, %v9343_v6  ;;  %456 = vst.msk [vmem:[#allocation3 + $0x1b8] sm:$0xff] %vm339_vm2, %v9343_v6  ;;  %2557 = vmatpush2.bf16.msra.mxu0 %v9122_v7 }
  0x60   : > { %457 = vst.msk [vmem:[#allocation3 + $0x1c0] sm:$0xf] %vm342_vm3, %v9343_v6  ;;  %460 = vst.msk [vmem:[#allocation3 + $0x1d8] sm:$0xf] %vm342_vm3, %v9343_v6  ;;  %2558 = vmatprep.subr.bf16.mxu0 %v9348_v46  ;;  %2272 = vmatpush2.bf16.msra.mxu1 %v9123_v8 }
  0x61   : > { %458 = vst.msk [vmem:[#allocation3 + $0x1c8] sm:$0xff] %vm339_vm2, %v9343_v6  ;;  %459 = vst.msk [vmem:[#allocation3 + $0x1d0] sm:$0xff] %vm339_vm2, %v9343_v6  ;;  %8987 = vmatmul.mubr.msk.bf16.gmra.mxu0 %vm595_vm4, %v9098_v44  ;;  %2273 = vmatprep.subr.bf16.mxu1 %v9348_v46  ;;  %v9911_v44 = vld [vmem:[%s14636_s4] ss:$0 sm:$0xff] }
  0x62   : > { %8990 = vmatprep.mubr.msk.bf16.mxu0 %vm595_vm4, %v9102_v49 }
  0x63   : > { %2559 = vmatpush2.bf16.msra.mxu0 %v9124_v11 }
  0x64   : > { %2560 = vmatprep.subr.bf16.mxu0 %v9348_v46  ;;  %2274 = vmatpush2.bf16.msra.mxu1 %v9125_v14 }
  0x65   : > { %2275 = vmatprep.subr.bf16.mxu1 %v9348_v46 }
  0x67   : > { %2561 = vmatpush2.bf16.msra.mxu0 %v9126_v17 }
  0x68   : > { %2562 = vmatprep.subr.bf16.mxu0 %v9348_v46  ;;  %2276 = vmatpush2.bf16.msra.mxu1 %v9127_v22 }
  0x69   : > { %8991 = vmatmul.mubr.msk.bf16.gmra.mxu0 %vm595_vm4, %v9103_v50  ;;  %2277 = vmatprep.subr.bf16.mxu1 %v9348_v46 }
  0x6b   : > { %2563 = vmatpush2.bf16.msra.mxu0 %v9128_v25 }
  0x6c   : > { %4377 = vmatprep.subr.bf16.mxu0 %v9348_v46  ;;  %2278 = vmatpush2.bf16.msra.mxu1 %v9129_v30 }
  0x6d   : > { %2279 = vmatprep.subr.bf16.mxu1 %v9348_v46 }
  0x70   : > { %2280 = vmatpush2.bf16.msra.mxu1 %v9130_v35 }
  0x71   : > { %3438 = vmatprep.subr.bf16.mxu1 %v9348_v46 }
  0xa3   : > { %v1134_v3 = vpop.permute.xlu0 %1133 }
  0xa4   : > { %v1311_v26 = vsel %vm339_vm2, %v909_v18, %v1134_v3 }
  0xa5   : > { %v1182_v9 = vpop.permute.xlu1 %1181 }
  0xa6   : > { %v1359_v29 = vsel %vm1357_vm7, %v1311_v26, %v1182_v9 }
  0xa7   : > { %v1136_v6 = vpop.permute.xlu0 %1135 }
  0xa8   : > { %v1314_v39 = vsel %vm339_vm2, %v910_v28, %v1136_v6 }
  0xa9   : > { %v1278_v15 = vpop.permute.xlu1 %1277 }
  0xab   : > { %v1230_v10 = vpop.permute.xlu0 %1229 }
  0xac   : > { %v1408_v20 = vsel %vm1406_vm5, %v1182_v9, %v1230_v10 }
  0xad   : > { %v1856_v23 = vpop.permute.xlu1 %1855  ;;  %v1441_v27 = vsel %vm1439_vm6, %v1408_v20, %v1278_v15 }
  0xae   : > { %8706 = vmatprep.mubr.msk.bf16.mxu0 %vm2216_vm8, %v1441_v27 }
  0xaf   : > { %v1808_v16 = vpop.permute.xlu0 %1807  ;;  %2565 = vmatmul.mubr.bf16.vlgmr.msra.gmra.mxu0 %v1359_v29 }
  0xb0   : > { %v2032_v33 = vsel %vm1406_vm5, %v1808_v16, %v1856_v23 }
  0xb1   : > { %v1904_v31 = vpop.permute.xlu1 %1903 }
  0xb2   : > { %v2064_v37 = vsel %vm1439_vm6, %v2032_v33, %v1904_v31 }
  0xb3   : > { %v1760_v24 = vpop.permute.xlu0 %1759  ;;  %8675 = vmatprep.mubr.msk.bf16.mxu1 %vm2216_vm8, %v2064_v37 }
  0xb4   : > { %v1937_v34 = vsel %vm339_vm2, %v910_v28, %v1760_v24 }
  0xb5   : > { %v1232_v36 = vpop.permute.xlu1 %1231  ;;  %v1984_v41 = vsel %vm1357_vm7, %v1937_v34, %v1808_v16 }
  0xb6   : > { %2282 = vmatmul.mubr.bf16.vlgmr.msra.gmra.mxu1 %v1984_v41 }
  0xb7   : > { %v1184_v32 = vpop.permute.xlu0 %1183 }
  0xb8   : > { %v1410_v40 = vsel %vm1406_vm5, %v1184_v32, %v1232_v36  ;;  %v1362_v43 = vsel %vm1357_vm7, %v1314_v39, %v1184_v32 }
  0xbb   : > { %v1280_v38 = vpop.permute.xlu0 %1279 }
  0xbc   : > { %v1443_v42 = vsel %vm1439_vm6, %v1410_v40, %v1280_v38 }
  0xbd   : > { %8707 = vmatprep.mubr.msk.bf16.mxu0 %vm2216_vm8, %v1443_v42 }
  0xbe   : > { %2573 = vmatmul.mubr.bf16.gmra.mxu0 %v1362_v43 }
  0xf1   : > { %v8964_v45 = vpop.f32.mrf.mxu0 }
  0xf2   : > { %v694_v47 = vadd.f32 %v8964_v45, %v9911_v44 }
  0xf3   : > { %v685_v48 = vpop.f32.mrf.mxu0 }
  0xf4   : > { %v814_v49 = vmax.f32 %v694_v47, 0.0  ;;  %v686_v50 = vadd.f32 %v9911_v44, %v685_v48 }
  0xf5   : > { %v8965_v51 = vpop.f32.mrf.mxu0 }
  0xf6   : > { %847 = vst.msk [vmem:[#allocation2 + $0x4a] sm:$0xff] %vm339_vm2, %v814_v49  ;;  %v812_v52 = vmax.f32 %v686_v50, 0.0  ;;  %v697_v53 = vadd.f32 %v8965_v51, %v9911_v44 }
  0xf7   : > { %v688_v54 = vpop.f32.mrf.mxu0 }
  0xf8   : > { %845 = vst.msk [vmem:[#allocation2 + $0x32] sm:$0xff] %vm339_vm2, %v812_v52  ;;  %v815_v55 = vmax.f32 %v697_v53, 0.0  ;;  %v689_v56 = vadd.f32 %v9911_v44, %v688_v54 }
  0xf9   : > { %v8968_v57 = vpop.f32.mrf.mxu0 }
  0xfa   : > { %848 = vst.msk [vmem:[#allocation2 + $0x52] sm:$0xff] %vm339_vm2, %v815_v55  ;;  %v813_v58 = vmax.f32 %v689_v56, 0.0  ;;  %v710_v59 = vadd.f32 %v8968_v57, %v9911_v44 }
  0xfb   : > { %v701_v60 = vpop.f32.mrf.mxu0 }
  0xfc   : > { %846 = vst.msk [vmem:[#allocation2 + $0x3a] sm:$0xff] %vm339_vm2, %v813_v58  ;;  %v818_v61 = vmax.f32 %v710_v59, 0.0  ;;  %v702_v62 = vadd.f32 %v9911_v44, %v701_v60 }
  0xfd   : > { %v8969_v63 = vpop.f32.mrf.mxu0  ;;  %v1603_v3 = vld [vmem:[#allocation2 + $0x4a] sm:$0xff] }
  0xfe   : > { %851 = vst.msk [vmem:[#allocation2 + $0x7a] sm:$0xff] %vm339_vm2, %v818_v61  ;;  %v816_v0 = vmax.f32 %v702_v62, 0.0  ;;  %v713_v1 = vadd.f32 %v8969_v63, %v9911_v44  ;;  %v1555_v20 = vld [vmem:[#allocation2 + $0x49] sm:$0xff] }
  0xff   : > { %v704_v2 = vpop.f32.mrf.mxu0  ;;  %v929_v59 = vld [vmem:[#allocation2 + $0x31] sm:$0xff] }
 0x100   : > { %849 = vst.msk [vmem:[#allocation2 + $0x62] sm:$0xff] %vm339_vm2, %v816_v0  ;;  %v819_v4 = vmax.f32 %v713_v1, 0.0  ;;  %v705_v5 = vadd.f32 %v9911_v44, %v704_v2  ;;  %v1601_v1 = vld [vmem:[#allocation2 + $0x32] sm:$0xff] }
 0x101   : > { %v1651_v6 = vld [vmem:[#allocation2 + $0x4b] sm:$0xff]  ;;  %v1652_v7 = vld [vmem:[#allocation2 + $0x53] sm:$0xff]  ;;  %v8972_v9 = vpop.f32.mrf.mxu0 }
 0x102   : > { %v1604_v8 = vld [vmem:[#allocation2 + $0x52] sm:$0xff]  ;;  %v9927_v10 = vpack.c.bf16 %v1652_v7, %v1651_v6  ;;  %852 = vst.msk [vmem:[#allocation2 + $0x82] sm:$0xff] %vm339_vm2, %v819_v4  ;;  %v817_v12 = vmax.f32 %v705_v5, 0.0  ;;  %v726_v13 = vadd.f32 %v8972_v9, %v9911_v44 }
 0x103   : > { %v9929_v11 = vpack.c.bf16 %v1604_v8, %v1603_v3  ;;  %v1699_v14 = vld [vmem:[#allocation2 + $0x4c] sm:$0xff]  ;;  %v1700_v15 = vld [vmem:[#allocation2 + $0x54] sm:$0xff]  ;;  %v717_v17 = vpop.f32.mrf.mxu0  ;;  %v1698_v63 = vld [vmem:[#allocation2 + $0x3c] sm:$0xff] }
 0x104   : > { %v1556_v16 = vld [vmem:[#allocation2 + $0x51] sm:$0xff]  ;;  %1859 = vrot.lane.b32.xlu1 %v9927_v10, %s9347_s22  ;;  %850 = vst.msk [vmem:[#allocation2 + $0x6a] sm:$0xff] %vm339_vm2, %v817_v12  ;;  %v822_v18 = vmax.f32 %v726_v13, 0.0  ;;  %v718_v19 = vadd.f32 %v9911_v44, %v717_v17  ;;  %v1729_v22 = vpack.c.bf16 %v1700_v15, %v1699_v14  ;;  %v1650_v57 = vld [vmem:[#allocation2 + $0x3b] sm:$0xff] }
 0x105   : > { %1811 = vrot.lane.b32.xlu0 %v9929_v11, %s9345_s20  ;;  %v8973_v21 = vpop.f32.mrf.mxu0  ;;  %v1585_v23 = vpack.c.bf16 %v1556_v16, %v1555_v20  ;;  %v1649_v56 = vld [vmem:[#allocation2 + $0x33] sm:$0xff] }
 0x106   : > { %855 = vst.msk [vmem:[#allocation2 + $0xaa] sm:$0xff] %vm339_vm2, %v822_v18  ;;  %v820_v24 = vmax.f32 %v718_v19, 0.0  ;;  %v729_v25 = vadd.f32 %v8973_v21, %v9911_v44  ;;  %v930_v58 = vld [vmem:[#allocation2 + $0x39] sm:$0xff]  ;;  %v1680_v60 = vpack.c.bf16 %v1650_v57, %v1649_v56 }
 0x107   : > { %v720_v26 = vpop.f32.mrf.mxu0  ;;  %v959_v61 = vpack.c.bf16 %v930_v58, %v929_v59  ;;  %v1697_v62 = vld [vmem:[#allocation2 + $0x34] sm:$0xff] }
 0x108   : > { %1907 = vrot.lane.b32.xlu1 %v1729_v22, %s9346_s21  ;;  %853 = vst.msk [vmem:[#allocation2 + $0x92] sm:$0xff] %vm339_vm2, %v820_v24  ;;  %v823_v27 = vmax.f32 %v729_v25, 0.0  ;;  %v721_v28 = vadd.f32 %v9911_v44, %v720_v26  ;;  %v1602_v0 = vld [vmem:[#allocation2 + $0x3a] sm:$0xff]  ;;  %v1728_v2 = vpack.c.bf16 %v1698_v63, %v1697_v62 }
 0x109   : > { %1763 = vrot.lane.b32.xlu0 %v1585_v23, %s9344_s19  ;;  %v8976_v29 = vpop.f32.mrf.mxu0  ;;  %v1632_v3 = vpack.c.bf16 %v1602_v0, %v1601_v1  ;;  %v1607_v9 = vld [vmem:[#allocation2 + $0x7a] sm:$0xff]  ;;  %v1704_v26 = vld [vmem:[#allocation2 + $0x84] sm:$0xff] }
 0x10a   : > { %856 = vst.msk [vmem:[#allocation2 + $0xb2] sm:$0xff] %vm339_vm2, %v823_v27  ;;  %v821_v30 = vmax.f32 %v721_v28, 0.0  ;;  %v742_v31 = vadd.f32 %v8976_v29, %v9911_v44  ;;  %v1559_v17 = vld [vmem:[#allocation2 + $0x79] sm:$0xff]  ;;  %v1560_v18 = vld [vmem:[#allocation2 + $0x81] sm:$0xff] }
 0x10b   : > { %v733_v32 = vpop.f32.mrf.mxu0  ;;  %v1587_v21 = vpack.c.bf16 %v1560_v18, %v1559_v17  ;;  %v1703_v25 = vld [vmem:[#allocation2 + $0x7c] sm:$0xff]  ;;  %v1606_v29 = vld [vmem:[#allocation2 + $0x6a] sm:$0xff] }
 0x10c   : > { %1235 = vrot.lane.b32.xlu1 %v9927_v10, %s9347_s22  ;;  %854 = vst.msk [vmem:[#allocation2 + $0x9a] sm:$0xff] %vm339_vm2, %v821_v30  ;;  %v826_v33 = vmax.f32 %v742_v31, 0.0  ;;  %v734_v34 = vadd.f32 %v9911_v44, %v733_v32  ;;  %v1731_v27 = vpack.c.bf16 %v1704_v26, %v1703_v25  ;;  %v1605_v28 = vld [vmem:[#allocation2 + $0x62] sm:$0xff] }
 0x10d   : > { %1187 = vrot.lane.b32.xlu0 %v9929_v11, %s9345_s20  ;;  %v8977_v35 = vpop.f32.mrf.mxu0  ;;  %v1634_v30 = vpack.c.bf16 %v1606_v29, %v1605_v28  ;;  %v1557_v31 = vld [vmem:[#allocation2 + $0x61] sm:$0xff]  ;;  %v1558_v32 = vld [vmem:[#allocation2 + $0x69] sm:$0xff] }
 0x10e   : > { %859 = vst.msk [vmem:[#allocation2 + $0xda] sm:$0xff] %vm339_vm2, %v826_v33  ;;  %v824_v36 = vmax.f32 %v734_v34, 0.0  ;;  %v745_v37 = vadd.f32 %v8977_v35, %v9911_v44  ;;  %v1586_v33 = vpack.c.bf16 %v1558_v32, %v1557_v31  ;;  %v1653_v34 = vld [vmem:[#allocation2 + $0x63] sm:$0xff]  ;;  %v1654_v35 = vld [vmem:[#allocation2 + $0x6b] sm:$0xff] }
 0x10f   : > { %v736_v38 = vpop.f32.mrf.mxu0  ;;  %v1563_v57 = vld [vmem:[#allocation2 + $0xa9] sm:$0xff] }
 0x110   : > { %1283 = vrot.lane.b32.xlu1 %v1729_v22, %s9346_s21  ;;  %857 = vst.msk [vmem:[#allocation2 + $0xc2] sm:$0xff] %vm339_vm2, %v824_v36  ;;  %v827_v39 = vmax.f32 %v745_v37, 0.0  ;;  %v737_v40 = vadd.f32 %v9911_v44, %v736_v38  ;;  %v1682_v36 = vpack.c.bf16 %v1654_v35, %v1653_v34  ;;  %v1701_v38 = vld [vmem:[#allocation2 + $0x64] sm:$0xff] }
 0x111   : > { %1139 = vrot.lane.b32.xlu0 %v1585_v23, %s9344_s19  ;;  %v8980_v41 = vpop.f32.mrf.mxu0  ;;  %v1564_v58 = vld [vmem:[#allocation2 + $0xb1] sm:$0xff] }
 0x112   : > { %860 = vst.msk [vmem:[#allocation2 + $0xe2] sm:$0xff] %vm339_vm2, %v827_v39  ;;  %v825_v42 = vmax.f32 %v737_v40, 0.0  ;;  %v758_v43 = vadd.f32 %v8980_v41, %v9911_v44  ;;  %v1702_v39 = vld [vmem:[#allocation2 + $0x6c] sm:$0xff]  ;;  %v1589_v59 = vpack.c.bf16 %v1564_v58, %v1563_v57  ;;  %v1708_v0 = vld [vmem:[#allocation2 + $0xb4] sm:$0xff] }
 0x113   : > { %v749_v45 = vpop.f32.mrf.mxu0  ;;  %v1707_v63 = vld [vmem:[#allocation2 + $0xac] sm:$0xff] }
 0x114   : > { %3984 = vrot.lane.b32.xlu1 %v9927_v10, %s9347_s22  ;;  %858 = vst.msk [vmem:[#allocation2 + $0xca] sm:$0xff] %vm339_vm2, %v825_v42  ;;  %v830_v47 = vmax.f32 %v758_v43, 0.0  ;;  %v750_v48 = vadd.f32 %v9911_v44, %v749_v45  ;;  %v1730_v45 = vpack.c.bf16 %v1702_v39, %v1701_v38  ;;  %v1733_v1 = vpack.c.bf16 %v1708_v0, %v1707_v63 }
 0x115   : > { %3936 = vrot.lane.b32.xlu0 %v9929_v11, %s9345_s20  ;;  %v8981_v49 = vpop.f32.mrf.mxu0  ;;  %v1615_v25 = vld [vmem:[#allocation2 + $0xda] sm:$0xff] }
 0x116   : > { %863 = vst.msk [vmem:[#allocation2 + $0x10a] sm:$0xff] %vm339_vm2, %v830_v47  ;;  %v828_v50 = vmax.f32 %v750_v48, 0.0  ;;  %v761_v51 = vadd.f32 %v8981_v49, %v9911_v44 }
 0x117   : > { %v752_v52 = vpop.f32.mrf.mxu0 }
 0x118   : > { %4032 = vrot.lane.b32.xlu1 %v1729_v22, %s9346_s21  ;;  %861 = vst.msk [vmem:[#allocation2 + $0xf2] sm:$0xff] %vm339_vm2, %v828_v50  ;;  %v831_v53 = vmax.f32 %v761_v51, 0.0  ;;  %v753_v54 = vadd.f32 %v9911_v44, %v752_v52  ;;  %v1655_v22 = vld [vmem:[#allocation2 + $0x7b] sm:$0xff] }
 0x119   : > { %3888 = vrot.lane.b32.xlu0 %v1585_v23, %s9344_s19  ;;  %v8984_v4 = vpop.f32.mrf.mxu0  ;;  %v1656_v23 = vld [vmem:[#allocation2 + $0x83] sm:$0xff] }
 0x11a   : > { %864 = vst.msk [vmem:[#allocation2 + $0x112] sm:$0xff] %vm339_vm2, %v831_v53  ;;  %v829_v55 = vmax.f32 %v753_v54, 0.0  ;;  %v774_v5 = vadd.f32 %v8984_v4, %v9911_v44  ;;  %v1683_v24 = vpack.c.bf16 %v1656_v23, %v1655_v22  ;;  %v1611_v54 = vld [vmem:[#allocation2 + $0xaa] sm:$0xff]  ;;  %v1705_v23 = vld [vmem:[#allocation2 + $0x94] sm:$0xff]  ;;  %v1568_v31 = vld [vmem:[#allocation2 + $0xe1] sm:$0xff] }
 0x11b   : > { %v765_v7 = vpop.f32.mrf.mxu0  ;;  %v1664_v38 = vld [vmem:[#allocation2 + $0xe3] sm:$0xff] }
 0x11c   : > { %3047 = vrot.lane.b32.xlu1 %v9927_v10, %s9347_s22  ;;  %862 = vst.msk [vmem:[#allocation2 + $0xfa] sm:$0xff] %vm339_vm2, %v829_v55  ;;  %v834_v6 = vmax.f32 %v774_v5, 0.0  ;;  %v766_v8 = vadd.f32 %v9911_v44, %v765_v7  ;;  %v1608_v10 = vld [vmem:[#allocation2 + $0x82] sm:$0xff]  ;;  %v1612_v55 = vld [vmem:[#allocation2 + $0xb2] sm:$0xff] }
 0x11d   : > { %2999 = vrot.lane.b32.xlu0 %v9929_v11, %s9345_s20  ;;  %v8985_v11 = vpop.f32.mrf.mxu0  ;;  %v1635_v14 = vpack.c.bf16 %v1608_v10, %v1607_v9  ;;  %v1637_v56 = vpack.c.bf16 %v1612_v55, %v1611_v54  ;;  %v1561_v10 = vld [vmem:[#allocation2 + $0x91] sm:$0xff]  ;;  %v1565_v54 = vld [vmem:[#allocation2 + $0xc1] sm:$0xff]  ;;  %v1566_v55 = vld [vmem:[#allocation2 + $0xc9] sm:$0xff] }
 0x11e   : > { %867 = vst.msk [vmem:[#allocation2 + $0x13a] sm:$0xff] %vm339_vm2, %v834_v6  ;;  %v832_v12 = vmax.f32 %v766_v8, 0.0  ;;  %v777_v13 = vadd.f32 %v8985_v11, %v9911_v44  ;;  %v1562_v11 = vld [vmem:[#allocation2 + $0x99] sm:$0xff]  ;;  %v1590_v58 = vpack.c.bf16 %v1566_v55, %v1565_v54  ;;  %v1709_v0 = vld [vmem:[#allocation2 + $0xc4] sm:$0xff] }
 0x11f   : > { %v768_v16 = vpop.f32.mrf.mxu0 }
 0x120   : > { %1137 = vrot.lane.b32.xlu1 %v959_v61, %s9344_s19  ;;  %865 = vst.msk [vmem:[#allocation2 + $0x122] sm:$0xff] %vm339_vm2, %v832_v12  ;;  %v835_v15 = vmax.f32 %v777_v13, 0.0  ;;  %v769_v19 = vadd.f32 %v9911_v44, %v768_v16  ;;  %v1588_v16 = vpack.c.bf16 %v1562_v11, %v1561_v10 }
 0x121   : > { %1857 = vrot.lane.b32.xlu0 %v1680_v60, %s9347_s22  ;;  %v8988_v37 = vpop.f32.mrf.mxu0 }
 0x122   : > { %868 = vst.msk [vmem:[#allocation2 + $0x142] sm:$0xff] %vm339_vm2, %v835_v15  ;;  %v833_v20 = vmax.f32 %v769_v19, 0.0  ;;  %v790_v40 = vadd.f32 %v8988_v37, %v9911_v44  ;;  %v1657_v19 = vld [vmem:[#allocation2 + $0x93] sm:$0xff]  ;;  %v1663_v37 = vld [vmem:[#allocation2 + $0xdb] sm:$0xff] }
 0x123   : > { %v781_v41 = vpop.f32.mrf.mxu0 }
 0x124   : > { %1809 = vrot.lane.b32.xlu1 %v1632_v3, %s9345_s20  ;;  %866 = vst.msk [vmem:[#allocation2 + $0x12a] sm:$0xff] %vm339_vm2, %v833_v20  ;;  %v838_v42 = vmax.f32 %v790_v40, 0.0  ;;  %v782_v43 = vadd.f32 %v9911_v44, %v781_v41  ;;  %v1658_v20 = vld [vmem:[#allocation2 + $0x9b] sm:$0xff]  ;;  %v1687_v41 = vpack.c.bf16 %v1664_v38, %v1663_v37 }
 0x125   : > { %1905 = vrot.lane.b32.xlu0 %v1728_v2, %s9346_s21  ;;  %v8989_v47 = vpop.f32.mrf.mxu0  ;;  %v1684_v22 = vpack.c.bf16 %v1658_v20, %v1657_v19  ;;  %v1508_v20 = vld [vmem:[#allocation2 + $0x50] sm:$0xff] }
 0x126   : > { %871 = vst.msk [vmem:[#allocation2 + $0x16a] sm:$0xff] %vm339_vm2, %v838_v42  ;;  %v836_v48 = vmax.f32 %v782_v43, 0.0  ;;  %v793_v49 = vadd.f32 %v8989_v47, %v9911_v44  ;;  %v1711_v42 = vld [vmem:[#allocation2 + $0xdc] sm:$0xff]  ;;  %v1712_v43 = vld [vmem:[#allocation2 + $0xe4] sm:$0xff] }
 0x127   : > { %v784_v50 = vpop.f32.mrf.mxu0 }
 0x128   : > { %1761 = vrot.lane.b32.xlu1 %v959_v61, %s9344_s19  ;;  %869 = vst.msk [vmem:[#allocation2 + $0x152] sm:$0xff] %vm339_vm2, %v836_v48  ;;  %v839_v51 = vmax.f32 %v793_v49, 0.0  ;;  %v785_v52 = vadd.f32 %v9911_v44, %v784_v50  ;;  %v1735_v48 = vpack.c.bf16 %v1712_v43, %v1711_v42  ;;  %v1613_v49 = vld [vmem:[#allocation2 + $0xc2] sm:$0xff]  ;;  %v1614_v50 = vld [vmem:[#allocation2 + $0xca] sm:$0xff] }
 0x129   : > { %1233 = vrot.lane.b32.xlu0 %v1680_v60, %s9347_s22  ;;  %v8992_v4 = vpop.f32.mrf.mxu0 }
 0x12a   : > { %872 = vst.msk [vmem:[#allocation2 + $0x172] sm:$0xff] %vm339_vm2, %v839_v51  ;;  %v837_v53 = vmax.f32 %v785_v52, 0.0  ;;  %v806_v5 = vadd.f32 %v8992_v4, %v9911_v44  ;;  %v882_v4 = vld [vmem:[#allocation2 + $0x38] sm:$0xff] }
 0x12b   : > { %v797_v6 = vpop.f32.mrf.mxu0 }
 0x12c   : > { %1185 = vrot.lane.b32.xlu1 %v1632_v3, %s9345_s20  ;;  %870 = vst.msk [vmem:[#allocation2 + $0x15a] sm:$0xff] %vm339_vm2, %v837_v53  ;;  %v842_v8 = vmax.f32 %v806_v5, 0.0  ;;  %v798_v9 = vadd.f32 %v9911_v44, %v797_v6  ;;  %v1638_v53 = vpack.c.bf16 %v1614_v50, %v1613_v49  ;;  %v1715_v50 = vld [vmem:[#allocation2 + $0x10c] sm:$0xff] }
 0x12d   : > { %2997 = vrot.lane.b32.xlu0 %v1632_v3, %s9345_s20  ;;  %v1610_v3 = vld [vmem:[#allocation2 + $0x9a] sm:$0xff]  ;;  %v8993_v12 = vpop.f32.mrf.mxu0 }
 0x12e   : > { %875 = vst.msk [vmem:[#allocation2 + $0x19a] sm:$0xff] %vm339_vm2, %v842_v8  ;;  %v840_v13 = vmax.f32 %v798_v9, 0.0  ;;  %v881_v9 = vld [vmem:[#allocation2 + $0x30] sm:$0xff] }
 0x12f   : > { %v800_v15 = vpop.f32.mrf.mxu0 }
 0x130   : > { %1281 = vrot.lane.b32.xlu1 %v1728_v2, %s9346_s21  ;;  %873 = vst.msk [vmem:[#allocation2 + $0x182] sm:$0xff] %vm339_vm2, %v840_v13  ;;  %v801_v18 = vadd.f32 %v9911_v44, %v800_v15  ;;  %v1571_v13 = vld [vmem:[#allocation2 + $0x109] sm:$0xff] }
 0x131   : > { %2949 = vrot.lane.b32.xlu0 %v959_v61, %s9344_s19  ;;  %v1660_v61 = vld [vmem:[#allocation2 + $0xb3] sm:$0xff] }
 0x134   : > { %3045 = vrot.lane.b32.xlu1 %v1680_v60, %s9347_s22  ;;  %v1659_v60 = vld [vmem:[#allocation2 + $0xab] sm:$0xff] }
 0x135   : > { %1815 = vrot.lane.b32.xlu0 %v1635_v14, %s9345_s20  ;;  %v1685_v62 = vpack.c.bf16 %v1660_v61, %v1659_v60  ;;  %v1662_v60 = vld [vmem:[#allocation2 + $0xcb] sm:$0xff] }
 0x138   : > { %3093 = vrot.lane.b32.xlu1 %v1728_v2, %s9346_s21  ;;  %v1609_v2 = vld [vmem:[#allocation2 + $0x92] sm:$0xff] }
 0x139   : > { %1767 = vrot.lane.b32.xlu0 %v1587_v21, %s9344_s19  ;;  %v1636_v7 = vpack.c.bf16 %v1610_v3, %v1609_v2  ;;  %v1619_v2 = vld [vmem:[#allocation2 + $0x10a] sm:$0xff]  ;;  %v1620_v3 = vld [vmem:[#allocation2 + $0x112] sm:$0xff] }
 0x13a   : > { %v1641_v11 = vpack.c.bf16 %v1620_v3, %v1619_v2  ;;  %v1618_v3 = vld [vmem:[#allocation2 + $0xfa] sm:$0xff] }
 0x13c   : > { %1863 = vrot.lane.b32.xlu1 %v1683_v24, %s9347_s22 }
 0x13d   : > { %1191 = vrot.lane.b32.xlu0 %v1635_v14, %s9345_s20  ;;  %v809_v14 = vadd.f32 %v8993_v12, %v9911_v44  ;;  %v1616_v44 = vld [vmem:[#allocation2 + $0xe2] sm:$0xff]  ;;  %v10095_v12 = vpack.c.bf16 %v882_v4, %v881_v9 }
 0x13e   : > { %v1639_v29 = vpack.c.bf16 %v1616_v44, %v1615_v25  ;;  %v1507_v25 = vld [vmem:[#allocation2 + $0x48] sm:$0xff] }
 0x13f   : > { %v843_v17 = vmax.f32 %v809_v14, 0.0  ;;  %v1572_v14 = vld [vmem:[#allocation2 + $0x111] sm:$0xff] }
 0x140   : > { %1911 = vrot.lane.b32.xlu1 %v1731_v27, %s9346_s21 }
 0x141   : > { %1143 = vrot.lane.b32.xlu0 %v1587_v21, %s9344_s19  ;;  %876 = vst.msk [vmem:[#allocation2 + $0x1a2] sm:$0xff] %vm339_vm2, %v843_v17  ;;  %v841_v21 = vmax.f32 %v801_v18, 0.0 }
 0x143   : > { %874 = vst.msk [vmem:[#allocation2 + $0x18a] sm:$0xff] %vm339_vm2, %v841_v21 }
 0x144   : > { %1239 = vrot.lane.b32.xlu1 %v1683_v24, %s9347_s22  ;;  %v1706_v24 = vld [vmem:[#allocation2 + $0x9c] sm:$0xff] }
 0x145   : > { %1813 = vrot.lane.b32.xlu0 %v1634_v30, %s9345_s20  ;;  %v1732_v28 = vpack.c.bf16 %v1706_v24, %v1705_v23 }
 0x148   : > { %1287 = vrot.lane.b32.xlu1 %v1731_v27, %s9346_s21 }
 0x149   : > { %1765 = vrot.lane.b32.xlu0 %v1586_v33, %s9344_s19 }
 0x14c   : > { %1861 = vrot.lane.b32.xlu1 %v1682_v36, %s9347_s22 }
 0x14d   : > { %1189 = vrot.lane.b32.xlu0 %v1634_v30, %s9345_s20 }
 0x150   : > { %1909 = vrot.lane.b32.xlu1 %v1730_v45, %s9346_s21 }
 0x151   : > { %1141 = vrot.lane.b32.xlu0 %v1586_v33, %s9344_s19 }
 0x154   : > { %1237 = vrot.lane.b32.xlu1 %v1682_v36, %s9347_s22 }
 0x155   : > { %3938 = vrot.lane.b32.xlu0 %v1634_v30, %s9345_s20  ;;  %v1567_v30 = vld [vmem:[#allocation2 + $0xd9] sm:$0xff] }
 0x156   : > { %v1591_v34 = vpack.c.bf16 %v1568_v31, %v1567_v30  ;;  %v1668_v30 = vld [vmem:[#allocation2 + $0x113] sm:$0xff] }
 0x158   : > { %1285 = vrot.lane.b32.xlu1 %v1730_v45, %s9346_s21 }
 0x159   : > { %3890 = vrot.lane.b32.xlu0 %v1586_v33, %s9344_s19 }
 0x15c   : > { %3986 = vrot.lane.b32.xlu1 %v1682_v36, %s9347_s22 }
 0x15d   : > { %1819 = vrot.lane.b32.xlu0 %v1637_v56, %s9345_s20 }
 0x160   : > { %4034 = vrot.lane.b32.xlu1 %v1730_v45, %s9346_s21 }
 0x161   : > { %1771 = vrot.lane.b32.xlu0 %v1589_v59, %s9344_s19 }
 0x164   : > { %1867 = vrot.lane.b32.xlu1 %v1685_v62, %s9347_s22 }
 0x165   : > { %1195 = vrot.lane.b32.xlu0 %v1637_v56, %s9345_s20 }
 0x168   : > { %1915 = vrot.lane.b32.xlu1 %v1733_v1, %s9346_s21 }
 0x169   : > { %1147 = vrot.lane.b32.xlu0 %v1589_v59, %s9344_s19  ;;  %v1661_v59 = vld [vmem:[#allocation2 + $0xc3] sm:$0xff] }
 0x16a   : > { %v1686_v63 = vpack.c.bf16 %v1662_v60, %v1661_v59 }
 0x16c   : > { %1243 = vrot.lane.b32.xlu1 %v1685_v62, %s9347_s22 }
 0x16d   : > { %1817 = vrot.lane.b32.xlu0 %v1636_v7, %s9345_s20 }
 0x16f   : > { %v2566_v18 = vpop.f32.mrf.mxu0 }
 0x170   : > { %1291 = vrot.lane.b32.xlu1 %v1733_v1, %s9346_s21  ;;  %v1710_v1 = vld [vmem:[#allocation2 + $0xcc] sm:$0xff] }
 0x171   : > { %1769 = vrot.lane.b32.xlu0 %v1588_v16, %s9344_s19  ;;  %v2568_v24 = vpop.f32.mrf.mxu0 }
 0x173   : > { %v2569_v31 = vpop.f32.mrf.mxu0 }
 0x174   : > { %1865 = vrot.lane.b32.xlu1 %v1684_v22, %s9347_s22 }
 0x175   : > { %1193 = vrot.lane.b32.xlu0 %v1636_v7, %s9345_s20  ;;  %v1734_v7 = vpack.c.bf16 %v1710_v1, %v1709_v0  ;;  %v2571_v37 = vpop.f32.mrf.mxu0 }
 0x176   : > { %v10047_v26 = vpop.permute.xlu1 %1859 }
 0x177   : > { %v10049_v27 = vpop.permute.xlu0 %1811 }
 0x178   : > { %1913 = vrot.lane.b32.xlu1 %v1732_v28, %s9346_s21  ;;  %v2036_v19 = vsel %vm1406_vm5, %v10049_v27, %v10047_v26  ;;  %v10111_v26 = vpack.c.bf16 %v1508_v20, %v1507_v25 }
 0x179   : > { %1145 = vrot.lane.b32.xlu0 %v1588_v16, %s9344_s19 }
 0x17a   : > { %v10053_v32 = vpop.permute.xlu1 %1907 }
 0x17b   : > { %v10055_v33 = vpop.permute.xlu0 %1763  ;;  %v2068_v23 = vsel %vm1439_vm6, %v2036_v19, %v10053_v32 }
 0x17c   : > { %1241 = vrot.lane.b32.xlu1 %v1684_v22, %s9347_s22  ;;  %v1593_v22 = vpack.c.bf16 %v1572_v14, %v1571_v13  ;;  %v1943_v32 = vsel %vm339_vm2, %v10111_v26, %v10055_v33 }
 0x17d   : > { %1823 = vrot.lane.b32.xlu0 %v1639_v29, %s9345_s20 }
 0x17e   : > { %v10059_v35 = vpop.permute.xlu1 %1235  ;;  %v10124_v55 = vpop.f32.mrf.mxu0 }
 0x17f   : > { %v10061_v36 = vpop.permute.xlu0 %1187 }
 0x180   : > { %1289 = vrot.lane.b32.xlu1 %v1732_v28, %s9346_s21  ;;  %v1414_v59 = vsel %vm1406_vm5, %v10061_v36, %v10059_v35  ;;  %v1617_v35 = vld [vmem:[#allocation2 + $0xf2] sm:$0xff] }
 0x181   : > { %1775 = vrot.lane.b32.xlu0 %v1591_v34, %s9344_s19  ;;  %v1640_v9 = vpack.c.bf16 %v1618_v3, %v1617_v35  ;;  %v1511_v35 = vld [vmem:[#allocation2 + $0x78] sm:$0xff]  ;;  %v1512_v3 = vld [vmem:[#allocation2 + $0x80] sm:$0xff] }
 0x182   : > { %v10065_v39 = vpop.permute.xlu1 %1283 }
 0x183   : > { %v10067_v40 = vpop.permute.xlu0 %1139 }
 0x184   : > { %1871 = vrot.lane.b32.xlu1 %v1687_v41, %s9347_s22 }
 0x185   : > { %1199 = vrot.lane.b32.xlu0 %v1639_v29, %s9345_s20  ;;  %v1667_v29 = vld [vmem:[#allocation2 + $0x10b] sm:$0xff] }
 0x186   : > { %v10071_v45 = vpop.permute.xlu1 %3984  ;;  %v1689_v43 = vpack.c.bf16 %v1668_v30, %v1667_v29  ;;  %v1575_v30 = vld [vmem:[#allocation2 + $0x139] sm:$0xff] }
 0x187   : > { %v10073_v47 = vpop.permute.xlu0 %3936 }
 0x188   : > { %1919 = vrot.lane.b32.xlu1 %v1735_v48, %s9346_s21 }
 0x189   : > { %1151 = vrot.lane.b32.xlu0 %v1591_v34, %s9344_s19  ;;  %v2283_v34 = vpop.f32.mrf.mxu1 }
 0x18a   : > { %v10077_v51 = vpop.permute.xlu1 %4032 }
 0x18b   : > { %v10079_v52 = vpop.permute.xlu0 %3888  ;;  %v2285_v54 = vpop.f32.mrf.mxu1 }
 0x18c   : > { %1247 = vrot.lane.b32.xlu1 %v1687_v41, %s9347_s22 }
 0x18d   : > { %1821 = vrot.lane.b32.xlu0 %v1638_v53, %s9345_s20 }
 0x18e   : > { %v10083_v56 = vpop.permute.xlu1 %3047 }
 0x18f   : > { %v10085_v57 = vpop.permute.xlu0 %2999 }
 0x190   : > { %1295 = vrot.lane.b32.xlu1 %v1735_v48, %s9346_s21  ;;  %v10121_v48 = vadd.f32 %v2566_v18, %v2283_v34 }
 0x191   : > { %1773 = vrot.lane.b32.xlu0 %v1590_v58, %s9344_s19 }
 0x192   : > { %v1138_v62 = vpop.permute.xlu1 %1137 }
 0x193   : > { %v1858_v61 = vpop.permute.xlu0 %1857  ;;  %v1317_v33 = vsel %vm339_vm2, %v10095_v12, %v1138_v62  ;;  %v1447_v62 = vsel %vm1439_vm6, %v1414_v59, %v10065_v39 }
 0x194   : > { %1869 = vrot.lane.b32.xlu1 %v1686_v63, %s9347_s22 }
 0x195   : > { %1197 = vrot.lane.b32.xlu0 %v1638_v53, %s9345_s20  ;;  %v1716_v53 = vld [vmem:[#allocation2 + $0x114] sm:$0xff] }
 0x196   : > { %v1810_v6 = vpop.permute.xlu1 %1809 }
 0x197   : > { %v1906_v5 = vpop.permute.xlu0 %1905  ;;  %v2034_v8 = vsel %vm1406_vm5, %v1810_v6, %v1858_v61  ;;  %v2286_v61 = vpop.f32.mrf.mxu1 }
 0x198   : > { %1917 = vrot.lane.b32.xlu1 %v1734_v7, %s9346_s21  ;;  %v2066_v10 = vsel %vm1439_vm6, %v2034_v8, %v1906_v5  ;;  %v10143_v2 = vadd.f32 %v2569_v31, %v2286_v61  ;;  %v1576_v31 = vld [vmem:[#allocation2 + $0x141] sm:$0xff] }
 0x199   : > { %1149 = vrot.lane.b32.xlu0 %v1590_v58, %s9344_s19  ;;  %8676 = vmatprep.mubr.msk.bf16.mxu1 %vm2216_vm8, %v2066_v10  ;;  %v1990_v58 = vsel %vm1357_vm7, %v1943_v32, %v10049_v27  ;;  %v1737_v27 = vpack.c.bf16 %v1716_v53, %v1715_v50  ;;  %v2288_v5 = vpop.f32.mrf.mxu1  ;;  %v1569_v10 = vld [vmem:[#allocation2 + $0xf1] sm:$0xff]  ;;  %v1595_v37 = vpack.c.bf16 %v1576_v31, %v1575_v30  ;;  %v1671_v50 = vld [vmem:[#allocation2 + $0x13b] sm:$0xff]  ;;  %v1672_v53 = vld [vmem:[#allocation2 + $0x143] sm:$0xff] }
 0x19a   : > { %v1762_v16 = vpop.permute.xlu1 %1761  ;;  %v1691_v61 = vpack.c.bf16 %v1672_v53, %v1671_v50  ;;  %v9136_v50 = vld [vmem:[%s14637_s5 + $0x190] sm:$0xff]  }
 0x19b   : > { %v1234_v15 = vpop.permute.xlu0 %1233  ;;  %v1940_v17 = vsel %vm339_vm2, %v10095_v12, %v1762_v16 }
 0x19c   : > { %1245 = vrot.lane.b32.xlu1 %v1686_v63, %s9347_s22  ;;  %v1987_v21 = vsel %vm1357_vm7, %v1940_v17, %v1810_v6  ;;  %v2576_v63 = vpop.f32.mrf.mxu0  ;;  %v1320_v6 = vsel %vm339_vm2, %v10111_v26, %v10067_v40  ;;  %v1665_v40 = vld [vmem:[#allocation2 + $0xf3] sm:$0xff]  ;;  %v1666_v17 = vld [vmem:[#allocation2 + $0xfb] sm:$0xff] }
 0x19d   : > { %1827 = vrot.lane.b32.xlu0 %v1641_v11, %s9345_s20  ;;  %2290 = vmatmul.mubr.bf16.gmra.mxu1 %v1987_v21  ;;  %v1368_v13 = vsel %vm1357_vm7, %v1320_v6, %v10061_v36  ;;  %v1688_v20 = vpack.c.bf16 %v1666_v17, %v1665_v40  ;;  %v1713_v21 = vld [vmem:[#allocation2 + $0xf4] sm:$0xff]  ;;  %v1539_v40 = vpack.c.bf16 %v1512_v3, %v1511_v35  ;;  %v9132_v17 = vld [vmem:[%s14637_s5 + $0x1a0] sm:$0xff]  }
 0x19e   : > { %8677 = vmatprep.mubr.msk.bf16.mxu1 %vm2216_vm8, %v2068_v23  ;;  %v1186_v28 = vpop.permute.xlu1 %1185  ;;  %v10146_v4 = vpop.f32.mrf.mxu0  ;;  %v1623_v36 = vld [vmem:[#allocation2 + $0x13a] sm:$0xff]  ;;  %v1624_v23 = vld [vmem:[#allocation2 + $0x142] sm:$0xff]  ;;  %4378 = vmatpush1.bf16.msra.mxu0 %v9132_v17 }
 0x19f   : > { %v10108_v44 = vpop.permute.xlu0 %2997  ;;  %v1412_v38 = vsel %vm1406_vm5, %v1186_v28, %v1234_v15  ;;  %v1365_v60 = vsel %vm1357_vm7, %v1317_v33, %v1186_v28  ;;  %v1643_v29 = vpack.c.bf16 %v1624_v23, %v1623_v36  ;;  %4379 = vmatprep.subr.bf16.mxu0 %v9348_v46 }
 0x1a0   : > { %1293 = vrot.lane.b32.xlu1 %v1734_v7, %s9346_s21  ;;  %v2579_v39 = vpop.f32.mrf.mxu0 }
 0x1a1   : > { %1779 = vrot.lane.b32.xlu0 %v1593_v22, %s9344_s19 }
 0x1a2   : > { %v1282_v42 = vpop.permute.xlu1 %1281 }
 0x1a3   : > { %v10119_v41 = vpop.permute.xlu0 %2949  ;;  %v1445_v49 = vsel %vm1439_vm6, %v1412_v38, %v1282_v42  ;;  %v1509_v38 = vld [vmem:[#allocation2 + $0x60] sm:$0xff]  ;;  %v1510_v42 = vld [vmem:[#allocation2 + $0x68] sm:$0xff] }
 0x1a4   : > { %1875 = vrot.lane.b32.xlu1 %v1689_v43, %s9347_s22  ;;  %8708 = vmatprep.mubr.msk.bf16.mxu0 %vm2216_vm8, %v1445_v49  ;;  %v10175_v54 = vpack.c.bf16 %v1510_v42, %v1509_v38 }
 0x1a5   : > { %1203 = vrot.lane.b32.xlu0 %v1641_v11, %s9345_s20  ;;  %2298 = vmatmul.mubr.bf16.gmra.mxu1 %v1990_v58  ;;  %v1570_v11 = vld [vmem:[#allocation2 + $0xf9] sm:$0xff] }
 0x1a6   : > { %2581 = vmatmul.mubr.bf16.gmra.mxu0 %v1365_v60  ;;  %v10141_v1 = vpop.permute.xlu1 %3045  ;;  %v1592_v16 = vpack.c.bf16 %v1570_v11, %v1569_v10 }
 0x1a7   : > { %v10139_v0 = vpop.permute.xlu0 %1815  ;;  %8709 = vmatprep.mubr.msk.bf16.mxu0 %vm2216_vm8, %v1447_v62  ;;  %v1719_v62 = vld [vmem:[#allocation2 + $0x13c] sm:$0xff] }
 0x1a8   : > { %1923 = vrot.lane.b32.xlu1 %v1737_v27, %s9346_s21 }
 0x1a9   : > { %1155 = vrot.lane.b32.xlu0 %v1593_v22, %s9344_s19  ;;  %v1714_v22 = vld [vmem:[#allocation2 + $0xfc] sm:$0xff] }
 0x1aa   : > { %v10155_v8 = vpop.permute.xlu1 %3093  ;;  %v1736_v28 = vpack.c.bf16 %v1714_v22, %v1713_v21 }
 0x1ab   : > { %v10153_v7 = vpop.permute.xlu0 %1767 }
 0x1ac   : > { %1251 = vrot.lane.b32.xlu1 %v1689_v43, %s9347_s22 }
 0x1ad   : > { %1825 = vrot.lane.b32.xlu0 %v1640_v9, %s9345_s20 }
 0x1ae   : > { %2589 = vmatmul.mubr.bf16.gmra.mxu0 %v1368_v13  ;;  %v1864_v15 = vpop.permute.xlu1 %1863  ;;  %v1621_v13 = vld [vmem:[#allocation2 + $0x122] sm:$0xff] }
 0x1af   : > { %v10161_v14 = vpop.permute.xlu0 %1191  ;;  %v2040_v5 = vsel %vm1406_vm5, %v10139_v0, %v1864_v15  ;;  %v9131_v15 = vld [vmem:[%s14637_s5 + $0x128] sm:$0xff]  }
 0x1b0   : > { %1299 = vrot.lane.b32.xlu1 %v1737_v27, %s9346_s21  ;;  %v1720_v27 = vld [vmem:[#allocation2 + $0x144] sm:$0xff]  ;;  %3439 = vmatpush1.bf16.msra.mxu1 %v9131_v15 }
 0x1b1   : > { %1777 = vrot.lane.b32.xlu0 %v1592_v16, %s9344_s19  ;;  %v1739_v11 = vpack.c.bf16 %v1720_v27, %v1719_v62  ;;  %3440 = vmatprep.subr.bf16.mxu1 %v9348_v46  ;;  %v1627_v62 = vld [vmem:[#allocation2 + $0x16a] sm:$0xff] }
 0x1b2   : > { %v1912_v19 = vpop.permute.xlu1 %1911 }
 0x1b3   : > { %v10165_v18 = vpop.permute.xlu0 %1143  ;;  %v2072_v6 = vsel %vm1439_vm6, %v2040_v5, %v1912_v19  ;;  %v9137_v5 = vld [vmem:[%s14637_s5 + $0x110] sm:$0xff]  }
 0x1b4   : > { %1873 = vrot.lane.b32.xlu1 %v1688_v20, %s9347_s22  ;;  %v1326_v53 = vsel %vm339_vm2, %v1539_v40, %v10165_v18  ;;  %v1628_v18 = vld [vmem:[#allocation2 + $0x172] sm:$0xff] }
 0x1b5   : > { %1201 = vrot.lane.b32.xlu0 %v1640_v9, %s9345_s20 }
 0x1b6   : > { %v10169_v25 = vpop.permute.xlu1 %1239 }
 0x1b7   : > { %v1814_v24 = vpop.permute.xlu0 %1813 }
 0x1b8   : > { %1921 = vrot.lane.b32.xlu1 %v1736_v28, %s9346_s21 }
 0x1b9   : > { %1153 = vrot.lane.b32.xlu0 %v1592_v16, %s9344_s19  ;;  %v1622_v16 = vld [vmem:[#allocation2 + $0x12a] sm:$0xff] }
 0x1ba   : > { %v1288_v34 = vpop.permute.xlu1 %1287  ;;  %v1642_v19 = vpack.c.bf16 %v1622_v16, %v1621_v13  ;;  %v9140_v13 = vld [vmem:[%s14637_s5 + $0x180] sm:$0xff]  }
 0x1bb   : > { %v1766_v32 = vpop.permute.xlu0 %1765 }
 0x1bc   : > { %1249 = vrot.lane.b32.xlu1 %v1688_v20, %s9347_s22  ;;  %v1946_v33 = vsel %vm339_vm2, %v10175_v54, %v1766_v32  ;;  %v1949_v20 = vsel %vm339_vm2, %v1539_v40, %v10153_v7  ;;  %v1418_v7 = vsel %vm1406_vm5, %v10161_v14, %v10169_v25  ;;  %v9133_v25 = vld [vmem:[%s14637_s5 + $0x120] sm:$0xff]  }
 0x1bd   : > { %1831 = vrot.lane.b32.xlu0 %v1643_v29, %s9345_s20  ;;  %v1993_v39 = vsel %vm1357_vm7, %v1946_v33, %v1814_v24  ;;  %v1996_v30 = vsel %vm1357_vm7, %v1949_v20, %v10139_v0  ;;  %v1451_v32 = vsel %vm1439_vm6, %v1418_v7, %v1288_v34  ;;  %v1669_v0 = vld [vmem:[#allocation2 + $0x123] sm:$0xff]  ;;  %3441 = vmatpush1.bf16.msra.mxu1 %v9133_v25  ;;  %v9135_v34 = vld [vmem:[%s14637_s5 + $0x118] sm:$0xff]  }
 0x1be   : > { %v1862_v49 = vpop.permute.xlu1 %1861  ;;  %3442 = vmatprep.subr.bf16.mxu1 %v9348_v46  ;;  %v9141_v20 = vld [vmem:[%s14637_s5 + $0x100] sm:$0xff]   ;;  %v9143_v7 = vld [vmem:[%s14637_s5 + $0xf8] sm:$0xff]  }
 0x1bf   : > { %v1190_v43 = vpop.permute.xlu0 %1189  ;;  %v2038_v58 = vsel %vm1406_vm5, %v1814_v24, %v1862_v49  ;;  %v9134_v49 = vld [vmem:[%s14637_s5 + $0x198] sm:$0xff]  }
 0x1c0   : > { %1297 = vrot.lane.b32.xlu1 %v1736_v28, %s9346_s21  ;;  %v1573_v28 = vld [vmem:[#allocation2 + $0x121] sm:$0xff]  ;;  %4380 = vmatpush1.bf16.msra.mxu0 %v9134_v49  ;;  %v1514_v25 = vld [vmem:[#allocation2 + $0x98] sm:$0xff] }
 0x1c1   : > { %1783 = vrot.lane.b32.xlu0 %v1595_v37, %s9344_s19  ;;  %4381 = vmatprep.subr.bf16.mxu0 %v9348_v46 }
 0x1c2   : > { %v1910_v60 = vpop.permute.xlu1 %1909  ;;  %3443 = vmatpush1.bf16.msra.mxu1 %v9135_v34  ;;  %v1625_v34 = vld [vmem:[#allocation2 + $0x152] sm:$0xff] }
 0x1c3   : > { %v1142_v59 = vpop.permute.xlu0 %1141  ;;  %v2070_v63 = vsel %vm1439_vm6, %v2038_v58, %v1910_v60  ;;  %v1717_v60 = vld [vmem:[#allocation2 + $0x124] sm:$0xff]  ;;  %3444 = vmatprep.subr.bf16.mxu1 %v9348_v46 }
 0x1c4   : > { %1879 = vrot.lane.b32.xlu1 %v1691_v61, %s9347_s22  ;;  %8678 = vmatprep.mubr.msk.bf16.mxu1 %vm2216_vm8, %v2070_v63  ;;  %v1323_v21 = vsel %vm339_vm2, %v10175_v54, %v1142_v59  ;;  %v1374_v63 = vsel %vm1357_vm7, %v1326_v53, %v10161_v14  ;;  %v9138_v14 = vld [vmem:[%s14637_s5 + $0x188] sm:$0xff]   ;;  %v9145_v53 = vld [vmem:[%s14637_s5 + $0xf0] sm:$0xff]  }
 0x1c5   : > { %1207 = vrot.lane.b32.xlu0 %v1643_v29, %s9345_s20  ;;  %2306 = vmatmul.mubr.bf16.gmra.mxu1 %v1993_v39  ;;  %v1574_v29 = vld [vmem:[#allocation2 + $0x129] sm:$0xff]  ;;  %v1371_v31 = vsel %vm1357_vm7, %v1323_v21, %v1190_v43  ;;  %v1645_v39 = vpack.c.bf16 %v1628_v18, %v1627_v62  ;;  %v9142_v21 = vld [vmem:[%s14637_s5 + $0x178] sm:$0xff]  }
 0x1c6   : > { %v1238_v10 = vpop.permute.xlu1 %1237  ;;  %8679 = vmatprep.mubr.msk.bf16.mxu1 %vm2216_vm8, %v2072_v6  ;;  %v1594_v42 = vpack.c.bf16 %v1574_v29, %v1573_v28  ;;  %4382 = vmatpush1.bf16.msra.mxu0 %v9136_v50  ;;  %v1579_v6 = vld [vmem:[#allocation2 + $0x169] sm:$0xff]  ;;  %v1626_v50 = vld [vmem:[#allocation2 + $0x15a] sm:$0xff] }
 0x1c7   : > { %v10190_v9 = vpop.permute.xlu0 %3938  ;;  %v1416_v22 = vsel %vm1406_vm5, %v1190_v43, %v1238_v10  ;;  %v1670_v43 = vld [vmem:[#allocation2 + $0x12b] sm:$0xff]  ;;  %4383 = vmatprep.subr.bf16.mxu0 %v9348_v46  ;;  %3445 = vmatpush1.bf16.msra.mxu1 %v9137_v5 }
 0x1c8   : > { %1927 = vrot.lane.b32.xlu1 %v1739_v11, %s9346_s21  ;;  %v1690_v59 = vpack.c.bf16 %v1670_v43, %v1669_v0  ;;  %v1580_v10 = vld [vmem:[#allocation2 + $0x171] sm:$0xff]  ;;  %3446 = vmatprep.subr.bf16.mxu1 %v9348_v46 }
 0x1c9   : > { %1159 = vrot.lane.b32.xlu0 %v1595_v37, %s9344_s19  ;;  %v1597_v15 = vpack.c.bf16 %v1580_v10, %v1579_v6  ;;  %v1577_v5 = vld [vmem:[#allocation2 + $0x151] sm:$0xff]  ;;  %v9147_v6 = vld [vmem:[%s14637_s5 + $0x160] sm:$0xff]  }
 0x1ca   : > { %v1286_v23 = vpop.permute.xlu1 %1285  ;;  %4384 = vmatpush1.bf16.msra.mxu0 %v9138_v14  ;;  %v9148_v10 = vld [vmem:[%s14637_s5 + $0x1d8] sm:$0xff]  }
 0x1cb   : > { %v10206_v36 = vpop.permute.xlu0 %3890  ;;  %v1449_v24 = vsel %vm1439_vm6, %v1416_v22, %v1286_v23  ;;  %4385 = vmatprep.subr.bf16.mxu0 %v9348_v46  ;;  %v1675_v22 = vld [vmem:[#allocation2 + $0x16b] sm:$0xff]  ;;  %v1676_v23 = vld [vmem:[#allocation2 + $0x173] sm:$0xff] }
 0x1cc   : > { %1255 = vrot.lane.b32.xlu1 %v1691_v61, %s9347_s22  ;;  %8710 = vmatprep.mubr.msk.bf16.mxu0 %vm2216_vm8, %v1449_v24  ;;  %v1718_v61 = vld [vmem:[#allocation2 + $0x12c] sm:$0xff]  ;;  %v1693_v29 = vpack.c.bf16 %v1676_v23, %v1675_v22 }
 0x1cd   : > { %1829 = vrot.lane.b32.xlu0 %v1642_v19, %s9345_s20  ;;  %2314 = vmatmul.mubr.bf16.gmra.mxu1 %v1996_v30  ;;  %v1738_v3 = vpack.c.bf16 %v1718_v61, %v1717_v60  ;;  %v9144_v30 = vld [vmem:[%s14637_s5 + $0x170] sm:$0xff]  }
 0x1ce   : > { %2597 = vmatmul.mubr.bf16.gmra.mxu0 %v1371_v31  ;;  %v10223_v38 = vpop.permute.xlu1 %3986  ;;  %v1723_v31 = vld [vmem:[#allocation2 + $0x16c] sm:$0xff] }
 0x1cf   : > { %v10221_v37 = vpop.permute.xlu0 %1819  ;;  %8711 = vmatprep.mubr.msk.bf16.mxu0 %vm2216_vm8, %v1451_v32  ;;  %4386 = vmatpush1.bf16.msra.mxu0 %v9140_v13  ;;  %v1724_v32 = vld [vmem:[#allocation2 + $0x174] sm:$0xff] }
 0x1d0   : > { %1303 = vrot.lane.b32.xlu1 %v1739_v11, %s9346_s21  ;;  %v9139_v11 = vld [vmem:[%s14637_s5 + $0x108] sm:$0xff]   ;;  %4387 = vmatprep.subr.bf16.mxu0 %v9348_v46  ;;  %v1741_v43 = vpack.c.bf16 %v1724_v32, %v1723_v31  ;;  %v1516_v13 = vld [vmem:[#allocation2 + $0xb0] sm:$0xff] }
 0x1d1   : > { %1781 = vrot.lane.b32.xlu0 %v1594_v42, %s9344_s19  ;;  %3447 = vmatpush1.bf16.msra.mxu1 %v9139_v11  ;;  %v1515_v11 = vld [vmem:[#allocation2 + $0xa8] sm:$0xff] }
 0x1d2   : > { %v10244_v58 = vpop.permute.xlu1 %4034  ;;  %3448 = vmatprep.subr.bf16.mxu1 %v9348_v46 }
 0x1d3   : > { %v10242_v33 = vpop.permute.xlu0 %1771  ;;  %4388 = vmatpush1.bf16.msra.mxu0 %v9142_v21  ;;  %v1673_v21 = vld [vmem:[#allocation2 + $0x153] sm:$0xff] }
 0x1d4   : > { %1877 = vrot.lane.b32.xlu1 %v1690_v59, %s9347_s22  ;;  %4389 = vmatprep.subr.bf16.mxu0 %v9348_v46 }
 0x1d5   : > { %1205 = vrot.lane.b32.xlu0 %v1642_v19, %s9345_s20  ;;  %3449 = vmatpush1.bf16.msra.mxu1 %v9141_v20 }
 0x1d6   : > { %2605 = vmatmul.mubr.bf16.gmra.mxu0 %v1374_v63  ;;  %v10254_v35 = vpop.permute.xlu1 %1867  ;;  %3450 = vmatprep.subr.bf16.mxu1 %v9348_v46 }
 0x1d7   : > { %v10252_v27 = vpop.permute.xlu0 %1195  ;;  %4390 = vmatpush1.bf16.msra.mxu0 %v9144_v30 }
 0x1d8   : > { %1925 = vrot.lane.b32.xlu1 %v1738_v3, %s9346_s21  ;;  %4391 = vmatprep.subr.bf16.mxu0 %v9348_v46 }
 0x1d9   : > { %1157 = vrot.lane.b32.xlu0 %v1594_v42, %s9344_s19  ;;  %v1513_v42 = vld [vmem:[#allocation2 + $0x90] sm:$0xff]  ;;  %3451 = vmatpush1.bf16.msra.mxu1 %v9143_v7  ;;  %v1674_v7 = vld [vmem:[#allocation2 + $0x15b] sm:$0xff] }
 0x1da   : > { %v10274_v40 = vpop.permute.xlu1 %1915  ;;  %3452 = vmatprep.subr.bf16.mxu1 %v9348_v46  ;;  %v1540_v60 = vpack.c.bf16 %v1514_v25, %v1513_v42  ;;  %v1692_v30 = vpack.c.bf16 %v1674_v7, %v1673_v21  ;;  %v1677_v7 = vld [vmem:[#allocation2 + $0x183] sm:$0xff] }
 0x1db   : > { %v10272_v16 = vpop.permute.xlu0 %1147 }
 0x1dc   : > { %1253 = vrot.lane.b32.xlu1 %v1690_v59, %s9347_s22  ;;  %v9146_v59 = vld [vmem:[%s14637_s5 + $0x168] sm:$0xff]  }
 0x1dd   : > { %1835 = vrot.lane.b32.xlu0 %v1645_v39, %s9345_s20  ;;  %3453 = vmatpush1.bf16.msra.mxu1 %v9145_v53  ;;  %v1722_v53 = vld [vmem:[#allocation2 + $0x15c] sm:$0xff] }
 0x1de   : > { %v10280_v19 = vpop.permute.xlu1 %1243  ;;  %4392 = vmatpush1.bf16.msra.mxu0 %v9146_v59  ;;  %3456 = vmatprep.subr.bf16.mxu1 %v9348_v46 }
 0x1df   : > { %v1818_v17 = vpop.permute.xlu0 %1817  ;;  %4395 = vmatprep.subr.bf16.mxu0 %v9348_v46  ;;  %v1422_v59 = vsel %vm1406_vm5, %v10252_v27, %v10280_v19 }
 0x1e0   : > { %1301 = vrot.lane.b32.xlu1 %v1738_v3, %s9346_s21  ;;  %v1644_v3 = vpack.c.bf16 %v1626_v50, %v1625_v34  ;;  %v1721_v50 = vld [vmem:[#allocation2 + $0x154] sm:$0xff] }
 0x1e1   : > { %1787 = vrot.lane.b32.xlu0 %v1597_v15, %s9344_s19  ;;  %3457 = vmatpush2.bf16.msra.mxu1 %v9147_v6  ;;  %v1740_v19 = vpack.c.bf16 %v1722_v53, %v1721_v50  ;;  %v1726_v50 = vld [vmem:[#allocation2 + $0x18c] sm:$0xff] }
 0x1e2   : > { %v10292_v28 = vpop.permute.xlu1 %1291  ;;  %4396 = vmatpush2.bf16.msra.mxu0 %v9148_v10  ;;  %3458 = vmatprep.subr.bf16.mxu1 %v9348_v46  ;;  %v9155_v10 = vld [vmem:[%s14637_s5 + $0x140] sm:$0xff]   ;;  %v9160_v53 = vld [vmem:[%s14637_s5 + $0x1a8] sm:$0xff]  }
 0x1e3   : > { %v1770_v24 = vpop.permute.xlu0 %1769  ;;  %4397 = vmatprep.subr.bf16.mxu0 %v9348_v46 }
 0x1e4   : > { %1883 = vrot.lane.b32.xlu1 %v1693_v29, %s9347_s22  ;;  %v1952_v61 = vsel %vm339_vm2, %v1540_v60, %v1770_v24 }
 0x1e5   : > { %1211 = vrot.lane.b32.xlu0 %v1645_v39, %s9345_s20  ;;  %v1578_v39 = vld [vmem:[#allocation2 + $0x159] sm:$0xff]  ;;  %v1999_v20 = vsel %vm1357_vm7, %v1952_v61, %v1818_v17 }
 0x1e6   : > { %v1866_v0 = vpop.permute.xlu1 %1865 }
 0x1e7   : > { %v10304_v49 = vpop.permute.xlu0 %1193  ;;  %v2042_v63 = vsel %vm1406_vm5, %v1818_v17, %v1866_v0  ;;  %v9150_v17 = vld [vmem:[%s14637_s5 + $0x1d0] sm:$0xff]  }
 0x1e8   : > { %1931 = vrot.lane.b32.xlu1 %v1741_v43, %s9346_s21  ;;  %4398 = vmatpush2.bf16.msra.mxu0 %v9150_v17  ;;  %v2743_v17 = vld [vmem:[#allocation2 + $0x49] sm:$0xff] }
 0x1e9   : > { %1163 = vrot.lane.b32.xlu0 %v1597_v15, %s9344_s19  ;;  %v2044_v15 = vsel %vm1406_vm5, %v10221_v37, %v10254_v35  ;;  %v9149_v35 = vld [vmem:[%s14637_s5 + $0x158] sm:$0xff]   ;;  %4399 = vmatprep.subr.bf16.mxu0 %v9348_v46 }
 0x1ea   : > { %v1914_v18 = vpop.permute.xlu1 %1913  ;;  %v2076_v22 = vsel %vm1439_vm6, %v2044_v15, %v10274_v40  ;;  %v1541_v40 = vpack.c.bf16 %v1516_v13, %v1515_v11  ;;  %3459 = vmatpush2.bf16.msra.mxu1 %v9149_v35  ;;  %v1581_v11 = vld [vmem:[#allocation2 + $0x181] sm:$0xff]  ;;  %v1582_v13 = vld [vmem:[#allocation2 + $0x189] sm:$0xff]  ;;  %v9156_v15 = vld [vmem:[%s14637_s5 + $0x1b8] sm:$0xff]  }
 0x1eb   : > { %v1146_v62 = vpop.permute.xlu0 %1145  ;;  %v2074_v14 = vsel %vm1439_vm6, %v2042_v63, %v1914_v18  ;;  %3460 = vmatprep.subr.bf16.mxu1 %v9348_v46  ;;  %v1629_v63 = vld [vmem:[#allocation2 + $0x182] sm:$0xff]  ;;  %v1455_v18 = vsel %vm1439_vm6, %v1422_v59, %v10292_v28  ;;  %v1678_v35 = vld [vmem:[#allocation2 + $0x18b] sm:$0xff] }
 0x1ec   : > { %1259 = vrot.lane.b32.xlu1 %v1693_v29, %s9347_s22  ;;  %8680 = vmatprep.mubr.msk.bf16.mxu1 %vm2216_vm8, %v2074_v14  ;;  %v1596_v29 = vpack.c.bf16 %v1578_v39, %v1577_v5  ;;  %v1955_v31 = vsel %vm339_vm2, %v1541_v40, %v10242_v33  ;;  %v1329_v32 = vsel %vm339_vm2, %v1540_v60, %v1146_v62  ;;  %v9152_v33 = vld [vmem:[%s14637_s5 + $0x1c8] sm:$0xff]  }
 0x1ed   : > { %1833 = vrot.lane.b32.xlu0 %v1644_v3, %s9345_s20  ;;  %2322 = vmatmul.mubr.bf16.gmra.mxu1 %v1999_v20  ;;  %v2002_v60 = vsel %vm1357_vm7, %v1955_v31, %v10221_v37  ;;  %v1377_v61 = vsel %vm1357_vm7, %v1329_v32, %v10304_v49  ;;  %v1630_v62 = vld [vmem:[#allocation2 + $0x18a] sm:$0xff]  ;;  %v1332_v14 = vsel %vm339_vm2, %v1541_v40, %v10272_v16 }
 0x1ee   : > { %v1242_v24 = vpop.permute.xlu1 %1241  ;;  %8681 = vmatprep.mubr.msk.bf16.mxu1 %vm2216_vm8, %v2076_v22  ;;  %v9153_v37 = vld [vmem:[%s14637_s5 + $0x148] sm:$0xff]   ;;  %4400 = vmatpush2.bf16.msra.mxu0 %v9152_v33  ;;  %v1646_v28 = vpack.c.bf16 %v1630_v62, %v1629_v63  ;;  %v1380_v16 = vsel %vm1357_vm7, %v1332_v14, %v10252_v27  ;;  %v1598_v22 = vpack.c.bf16 %v1582_v13, %v1581_v11  ;;  %v9158_v27 = vld [vmem:[%s14637_s5 + $0x1b0] sm:$0xff]   ;;  %v1517_v33 = vld [vmem:[#allocation2 + $0xc0] sm:$0xff] }
 0x1ef   : > { %v10336_v23 = vpop.permute.xlu0 %1823  ;;  %v1420_v42 = vsel %vm1406_vm5, %v10304_v49, %v1242_v24  ;;  %v9154_v49 = vld [vmem:[%s14637_s5 + $0x1c0] sm:$0xff]   ;;  %4401 = vmatprep.subr.bf16.mxu0 %v9348_v46  ;;  %v2744_v24 = vld [vmem:[#allocation2 + $0x51] sm:$0xff]  ;;  %v1694_v32 = vpack.c.bf16 %v1678_v35, %v1677_v7  ;;  %v1518_v59 = vld [vmem:[#allocation2 + $0xc8] sm:$0xff] }
 0x1f0   : > { %1307 = vrot.lane.b32.xlu1 %v1741_v43, %s9346_s21  ;;  %v9151_v43 = vld [vmem:[%s14637_s5 + $0x150] sm:$0xff]   ;;  %v2774_v31 = vpack.c.bf16 %v2744_v24, %v2743_v17  ;;  %v3780_v7 = vld [vmem:[#allocation2 + $0x7b] sm:$0xff]  ;;  %v3781_v35 = vld [vmem:[#allocation2 + $0x83] sm:$0xff] }
 0x1f1   : > { %1785 = vrot.lane.b32.xlu0 %v1596_v29, %s9344_s19  ;;  %3461 = vmatpush2.bf16.msra.mxu1 %v9151_v43  ;;  %v9159_v43 = vld [vmem:[%s14637_s5 + $0x130] sm:$0xff]   ;;  %v1520_v17 = vld [vmem:[#allocation2 + $0xe0] sm:$0xff] }
 0x1f2   : > { %v1290_v0 = vpop.permute.xlu1 %1289  ;;  %3462 = vmatprep.subr.bf16.mxu1 %v9348_v46  ;;  %4402 = vmatpush2.bf16.msra.mxu0 %v9154_v49  ;;  %v2888_v49 = vld [vmem:[#allocation2 + $0x54] sm:$0xff] }
 0x1f3   : > { %v10354_v25 = vpop.permute.xlu0 %1775  ;;  %v1453_v34 = vsel %vm1439_vm6, %v1420_v42, %v1290_v0  ;;  %4403 = vmatprep.subr.bf16.mxu0 %v9348_v46  ;;  %v3732_v42 = vld [vmem:[#allocation2 + $0x7a] sm:$0xff]  ;;  %v3733_v0 = vld [vmem:[#allocation2 + $0x82] sm:$0xff] }
 0x1f4   : > { %1881 = vrot.lane.b32.xlu1 %v1692_v30, %s9347_s22  ;;  %8712 = vmatprep.mubr.msk.bf16.mxu0 %vm2216_vm8, %v1453_v34  ;;  %v1725_v34 = vld [vmem:[#allocation2 + $0x184] sm:$0xff]  ;;  %v10438_v63 = vpack.c.bf16 %v3733_v0, %v3732_v42 }
 0x1f5   : > { %1209 = vrot.lane.b32.xlu0 %v1644_v3, %s9345_s20  ;;  %2330 = vmatmul.mubr.bf16.gmra.mxu1 %v2002_v60  ;;  %v1742_v62 = vpack.c.bf16 %v1726_v50, %v1725_v34  ;;  %v10464_v34 = vpack.c.bf16 %v3781_v35, %v3780_v7  ;;  %v2745_v50 = vld [vmem:[#allocation2 + $0x61] sm:$0xff] }
 0x1f6   : > { %2613 = vmatmul.mubr.bf16.gmra.mxu0 %v1377_v61  ;;  %v10379_v5 = vpop.permute.xlu1 %1871  ;;  %3463 = vmatpush2.bf16.msra.mxu1 %v9153_v37  ;;  %v2887_v37 = vld [vmem:[#allocation2 + $0x4c] sm:$0xff] }
 0x1f7   : > { %v10377_v3 = vpop.permute.xlu0 %1199  ;;  %8713 = vmatprep.mubr.msk.bf16.mxu0 %vm2216_vm8, %v1455_v18  ;;  %3464 = vmatprep.subr.bf16.mxu1 %v9348_v46  ;;  %v3684_v18 = vld [vmem:[#allocation2 + $0x79] sm:$0xff] }
 0x1f8   : > { %1929 = vrot.lane.b32.xlu1 %v1740_v19, %s9346_s21  ;;  %4404 = vmatpush2.bf16.msra.mxu0 %v9156_v15 }
 0x1f9   : > { %1161 = vrot.lane.b32.xlu0 %v1596_v29, %s9344_s19  ;;  %v9157_v29 = vld [vmem:[%s14637_s5 + $0x138] sm:$0xff]   ;;  %4405 = vmatprep.subr.bf16.mxu0 %v9348_v46 }
 0x1fa   : > { %v10396_v6 = vpop.permute.xlu1 %1919  ;;  %3465 = vmatpush2.bf16.msra.mxu1 %v9155_v10 }
 0x1fb   : > { %v10394_v39 = vpop.permute.xlu0 %1151  ;;  %3466 = vmatprep.subr.bf16.mxu1 %v9348_v46 }
 0x1fc   : > { %1257 = vrot.lane.b32.xlu1 %v1692_v30, %s9347_s22  ;;  %4406 = vmatpush2.bf16.msra.mxu0 %v9158_v27  ;;  %v1519_v27 = vld [vmem:[#allocation2 + $0xd8] sm:$0xff] }
 0x1fd   : > { %1837 = vrot.lane.b32.xlu0 %v1646_v28, %s9345_s20  ;;  %4407 = vmatprep.subr.bf16.mxu0 %v9348_v46  ;;  %v1542_v28 = vpack.c.bf16 %v1518_v59, %v1517_v33  ;;  %v3829_v33 = vld [vmem:[#allocation2 + $0x84] sm:$0xff]  ;;  %v1543_v59 = vpack.c.bf16 %v1520_v17, %v1519_v27  ;;  %v3687_v27 = vld [vmem:[#allocation2 + $0x99] sm:$0xff] }
 0x1fe   : > { %2621 = vmatmul.mubr.bf16.gmra.mxu0 %v1380_v16  ;;  %v10412_v21 = vpop.permute.xlu1 %1247  ;;  %3467 = vmatpush2.bf16.msra.mxu1 %v9157_v29  ;;  %v2918_v16 = vpack.c.bf16 %v2888_v49, %v2887_v37  ;;  %v2794_v29 = vld [vmem:[#allocation2 + $0x6a] sm:$0xff]  ;;  %v3734_v49 = vld [vmem:[#allocation2 + $0x92] sm:$0xff] }
 0x1ff   : > { %v10410_v20 = vpop.permute.xlu0 %1821  ;;  %3468 = vmatprep.subr.bf16.mxu1 %v9348_v46  ;;  %v2889_v17 = vld [vmem:[#allocation2 + $0x64] sm:$0xff] }
 0x200   : > { %1305 = vrot.lane.b32.xlu1 %v1740_v19, %s9346_s21  ;;  %v3685_v19 = vld [vmem:[#allocation2 + $0x81] sm:$0xff]  ;;  %4408 = vmatpush2.bf16.msra.mxu0 %v9160_v53  ;;  %v2746_v53 = vld [vmem:[#allocation2 + $0x69] sm:$0xff] }
 0x201   : > { %1789 = vrot.lane.b32.xlu0 %v1598_v22, %s9344_s19  ;;  %5316 = vmatprep.subr.bf16.mxu0 %v9348_v46  ;;  %v10448_v15 = vpack.c.bf16 %v3685_v19, %v3684_v18  ;;  %v2793_v22 = vld [vmem:[#allocation2 + $0x62] sm:$0xff] }
 0x202   : > { %v10424_v30 = vpop.permute.xlu1 %1295  ;;  %3469 = vmatpush2.bf16.msra.mxu1 %v9159_v43  ;;  %v2823_v43 = vpack.c.bf16 %v2794_v29, %v2793_v22 }
 0x203   : > { %v1774_v40 = vpop.permute.xlu0 %1773  ;;  %8994 = vmatprep.subr.bf16.mxu1 %v9348_v46 }
 0x204   : > { %1885 = vrot.lane.b32.xlu1 %v1694_v32, %s9347_s22  ;;  %v1958_v14 = vsel %vm339_vm2, %v1542_v28, %v1774_v40  ;;  %v2048_v40 = vsel %vm1406_vm5, %v10336_v23, %v10379_v5  ;;  %v3828_v5 = vld [vmem:[#allocation2 + $0x7c] sm:$0xff] }
 0x205   : > { %2951 = vrot.lane.b32.xlu0 %v2774_v31, %s9344_s19  ;;  %v2005_v31 = vsel %vm1357_vm7, %v1958_v14, %v10410_v20  ;;  %v2080_v32 = vsel %vm1439_vm6, %v2048_v40, %v10396_v6  ;;  %v2775_v6 = vpack.c.bf16 %v2746_v53, %v2745_v50  ;;  %v10477_v37 = vpack.c.bf16 %v3829_v33, %v3828_v5  ;;  %v3830_v33 = vld [vmem:[#allocation2 + $0x94] sm:$0xff] }
 0x206   : > { %v1870_v61 = vpop.permute.xlu1 %1869 }
 0x207   : > { %v10436_v60 = vpop.permute.xlu0 %1197  ;;  %v2046_v10 = vsel %vm1406_vm5, %v10410_v20, %v1870_v61  ;;  %v1961_v20 = vsel %vm339_vm2, %v1543_v59, %v10354_v25  ;;  %v1426_v25 = vsel %vm1406_vm5, %v10377_v3, %v10412_v21  ;;  %v3686_v21 = vld [vmem:[#allocation2 + $0x91] sm:$0xff] }
 0x208   : > { %1933 = vrot.lane.b32.xlu1 %v1742_v62, %s9346_s21  ;;  %v1459_v22 = vsel %vm1439_vm6, %v1426_v25, %v10424_v30  ;;  %v1338_v30 = vsel %vm339_vm2, %v1543_v59, %v10394_v39  ;;  %v3831_v59 = vld [vmem:[#allocation2 + $0x9c] sm:$0xff] }
 0x209   : > { %3940 = vrot.lane.b32.xlu0 %v10438_v63, %s9345_s20  ;;  %v1386_v50 = vsel %vm1357_vm7, %v1338_v30, %v10377_v3  ;;  %v1521_v3 = vld [vmem:[#allocation2 + $0xf0] sm:$0xff] }
 0x20a   : > { %v1918_v13 = vpop.permute.xlu1 %1917 }
 0x20b   : > { %v1150_v11 = vpop.permute.xlu0 %1149  ;;  %v2078_v24 = vsel %vm1439_vm6, %v2046_v10, %v1918_v13  ;;  %v3735_v10 = vld [vmem:[#allocation2 + $0x9a] sm:$0xff]  ;;  %v2841_v13 = vld [vmem:[#allocation2 + $0x63] sm:$0xff] }
 0x20c   : > { %3095 = vrot.lane.b32.xlu1 %v2918_v16, %s9346_s21  ;;  %8682 = vmatprep.mubr.msk.bf16.mxu1 %vm2216_vm8, %v2078_v24  ;;  %v1335_v61 = vsel %vm339_vm2, %v1542_v28, %v1150_v11  ;;  %v2842_v16 = vld [vmem:[#allocation2 + $0x6b] sm:$0xff]  ;;  %v2008_v28 = vsel %vm1357_vm7, %v1961_v20, %v10336_v23  ;;  %v10495_v7 = vpack.c.bf16 %v3735_v10, %v3734_v49  ;;  %v1522_v49 = vld [vmem:[#allocation2 + $0xf8] sm:$0xff] }
 0x20d   : > { %3892 = vrot.lane.b32.xlu0 %v10448_v15, %s9344_s19  ;;  %2338 = vmatmul.mubr.bf16.gmra.mxu1 %v2005_v31  ;;  %v1383_v11 = vsel %vm1357_vm7, %v1335_v61, %v10436_v60  ;;  %v2871_v35 = vpack.c.bf16 %v2842_v16, %v2841_v13  ;;  %v2890_v23 = vld [vmem:[#allocation2 + $0x6c] sm:$0xff]  ;;  %v10505_v31 = vpack.c.bf16 %v3687_v27, %v3686_v21 }
 0x20e   : > { %v1246_v0 = vpop.permute.xlu1 %1245  ;;  %8683 = vmatprep.mubr.msk.bf16.mxu1 %vm2216_vm8, %v2080_v32  ;;  %v2919_v32 = vpack.c.bf16 %v2890_v23, %v2889_v17  ;;  %v10518_v61 = vpack.c.bf16 %v3831_v59, %v3830_v33  ;;  %v3688_v13 = vld [vmem:[#allocation2 + $0xa9] sm:$0xff]  ;;  %v3689_v16 = vld [vmem:[#allocation2 + $0xb1] sm:$0xff]  ;;  %v1544_v25 = vpack.c.bf16 %v1522_v49, %v1521_v3 }
 0x20f   : > { %v10462_v42 = vpop.permute.xlu0 %1827  ;;  %v1424_v62 = vsel %vm1406_vm5, %v10436_v60, %v1246_v0  ;;  %v3782_v0 = vld [vmem:[#allocation2 + $0x93] sm:$0xff]  ;;  %v3784_v27 = vld [vmem:[#allocation2 + $0xab] sm:$0xff] }
 0x210   : > { %3988 = vrot.lane.b32.xlu1 %v10464_v34, %s9347_s22  ;;  %v3785_v17 = vld [vmem:[#allocation2 + $0xb3] sm:$0xff]  ;;  %v1523_v23 = vld [vmem:[#allocation2 + $0x108] sm:$0xff] }
 0x211   : > { %3001 = vrot.lane.b32.xlu0 %v2823_v43, %s9345_s20  ;;  %v3783_v43 = vld [vmem:[#allocation2 + $0x9b] sm:$0xff]  ;;  %v10546_v33 = vpack.c.bf16 %v3785_v17, %v3784_v27  ;;  %v3787_v27 = vld [vmem:[#allocation2 + $0xcb] sm:$0xff] }
 0x212   : > { %v1294_v19 = vpop.permute.xlu1 %1293  ;;  %v10512_v39 = vpack.c.bf16 %v3783_v43, %v3782_v0  ;;  %v3833_v59 = vld [vmem:[#allocation2 + $0xb4] sm:$0xff] }
 0x213   : > { %v10475_v18 = vpop.permute.xlu0 %1779  ;;  %v1457_v14 = vsel %vm1439_vm6, %v1424_v62, %v1294_v19  ;;  %v3736_v62 = vld [vmem:[#allocation2 + $0xaa] sm:$0xff]  ;;  %v3737_v19 = vld [vmem:[#allocation2 + $0xb2] sm:$0xff] }
 0x214   : > { %4036 = vrot.lane.b32.xlu1 %v10477_v37, %s9346_s21  ;;  %8714 = vmatprep.mubr.msk.bf16.mxu0 %vm2216_vm8, %v1457_v14 }
 0x215   : > { %2953 = vrot.lane.b32.xlu0 %v2775_v6, %s9344_s19  ;;  %2346 = vmatmul.mubr.bf16.gmra.mxu1 %v2008_v28 }
 0x216   : > { %2629 = vmatmul.mubr.bf16.gmra.mxu0 %v1383_v11  ;;  %v1876_v29 = vpop.permute.xlu1 %1875 }
 0x217   : > { %v10493_v24 = vpop.permute.xlu0 %1203  ;;  %8715 = vmatprep.mubr.msk.bf16.mxu0 %vm2216_vm8, %v1459_v22  ;;  %v2052_v30 = vsel %vm1406_vm5, %v10462_v42, %v1876_v29 }
 0x218   : > { %3049 = vrot.lane.b32.xlu1 %v2871_v35, %s9347_s22  ;;  %v10532_v35 = vpack.c.bf16 %v3689_v16, %v3688_v13  ;;  %v3739_v13 = vld [vmem:[#allocation2 + $0xca] sm:$0xff] }
 0x219   : > { %3942 = vrot.lane.b32.xlu0 %v10495_v7, %s9345_s20 }
 0x21a   : > { %v1924_v40 = vpop.permute.xlu1 %1923 }
 0x21b   : > { %v10503_v60 = vpop.permute.xlu0 %1155  ;;  %v2084_v0 = vsel %vm1439_vm6, %v2052_v30, %v1924_v40  ;;  %v3835_v30 = vld [vmem:[#allocation2 + $0xcc] sm:$0xff] }
 0x21c   : > { %3097 = vrot.lane.b32.xlu1 %v2919_v32, %s9346_s21 }
 0x21d   : > { %3894 = vrot.lane.b32.xlu0 %v10505_v31, %s9344_s19 }
 0x21e   : > { %2637 = vmatmul.mubr.bf16.gmra.mxu0 %v1386_v50  ;;  %v1252_v5 = vpop.permute.xlu1 %1251 }
 0x21f   : > { %v1826_v53 = vpop.permute.xlu0 %1825 }
 0x220   : > { %3990 = vrot.lane.b32.xlu1 %v10512_v39, %s9347_s22 }
 0x221   : > { %3003 = vrot.lane.b32.xlu0 %v10438_v63, %s9345_s20  ;;  %v10524_v63 = vpack.c.bf16 %v3737_v19, %v3736_v62 }
 0x222   : > { %v1300_v20 = vpop.permute.xlu1 %1299 }
 0x223   : > { %v1778_v6 = vpop.permute.xlu0 %1777 }
 0x224   : > { %4038 = vrot.lane.b32.xlu1 %v10518_v61, %s9346_s21 }
 0x225   : > { %2955 = vrot.lane.b32.xlu0 %v10448_v15, %s9344_s19  ;;  %v1964_v15 = vsel %vm339_vm2, %v1544_v25, %v1778_v6 }
 0x226   : > { %v1874_v10 = vpop.permute.xlu1 %1873  ;;  %v2011_v32 = vsel %vm1357_vm7, %v1964_v15, %v1826_v53 }
 0x227   : > { %v1202_v14 = vpop.permute.xlu0 %1201  ;;  %v2050_v28 = vsel %vm1406_vm5, %v1826_v53, %v1874_v10  ;;  %v3738_v10 = vld [vmem:[#allocation2 + $0xc2] sm:$0xff] }
 0x228   : > { %3051 = vrot.lane.b32.xlu1 %v10464_v34, %s9347_s22  ;;  %v1524_v34 = vld [vmem:[#allocation2 + $0x110] sm:$0xff] }
 0x229   : > { %3944 = vrot.lane.b32.xlu0 %v10524_v63, %s9345_s20  ;;  %v1545_v6 = vpack.c.bf16 %v1524_v34, %v1523_v23  ;;  %v3834_v34 = vld [vmem:[#allocation2 + $0xc4] sm:$0xff] }
 0x22a   : > { %v1922_v22 = vpop.permute.xlu1 %1921 }
 0x22b   : > { %v1154_v11 = vpop.permute.xlu0 %1153  ;;  %v2082_v21 = vsel %vm1439_vm6, %v2050_v28, %v1922_v22  ;;  %v1967_v29 = vsel %vm339_vm2, %v1545_v6, %v10475_v18  ;;  %v1430_v18 = vsel %vm1406_vm5, %v10493_v24, %v1252_v5  ;;  %v10575_v28 = vpack.c.bf16 %v3739_v13, %v3738_v10  ;;  %v3691_v5 = vld [vmem:[#allocation2 + $0xc9] sm:$0xff] }
 0x22c   : > { %3099 = vrot.lane.b32.xlu1 %v10477_v37, %s9346_s21  ;;  %8684 = vmatprep.mubr.msk.bf16.mxu1 %vm2216_vm8, %v2082_v21  ;;  %v3832_v37 = vld [vmem:[#allocation2 + $0xac] sm:$0xff]  ;;  %v1341_v40 = vsel %vm339_vm2, %v1544_v25, %v1154_v11  ;;  %v1463_v25 = vsel %vm1439_vm6, %v1430_v18, %v1300_v20  ;;  %v3690_v11 = vld [vmem:[#allocation2 + $0xc1] sm:$0xff] }
 0x22d   : > { %3896 = vrot.lane.b32.xlu0 %v10532_v35, %s9344_s19  ;;  %2354 = vmatmul.mubr.bf16.gmra.mxu1 %v2011_v32  ;;  %v10559_v3 = vpack.c.bf16 %v3833_v59, %v3832_v37  ;;  %v1389_v16 = vsel %vm1357_vm7, %v1341_v40, %v1202_v14  ;;  %v10586_v22 = vpack.c.bf16 %v3691_v5, %v3690_v11  ;;  %v3786_v21 = vld [vmem:[#allocation2 + $0xc3] sm:$0xff]  ;;  %v3692_v40 = vld [vmem:[#allocation2 + $0xd9] sm:$0xff] }
 0x22e   : > { %v1250_v50 = vpop.permute.xlu1 %1249  ;;  %8685 = vmatprep.mubr.msk.bf16.mxu1 %vm2216_vm8, %v2084_v0  ;;  %v3741_v37 = vld [vmem:[#allocation2 + $0xe2] sm:$0xff]  ;;  %v1527_v11 = vld [vmem:[#allocation2 + $0x138] sm:$0xff] }
 0x22f   : > { %v10544_v43 = vpop.permute.xlu0 %1831  ;;  %v1428_v53 = vsel %vm1406_vm5, %v1202_v14, %v1250_v50  ;;  %v10600_v50 = vpack.c.bf16 %v3835_v30, %v3834_v34  ;;  %v1526_v59 = vld [vmem:[#allocation2 + $0x128] sm:$0xff] }
 0x230   : > { %3992 = vrot.lane.b32.xlu1 %v10546_v33, %s9347_s22  ;;  %v3837_v30 = vld [vmem:[#allocation2 + $0xe4] sm:$0xff] }
 0x231   : > { %3005 = vrot.lane.b32.xlu0 %v10495_v7, %s9345_s20  ;;  %v2014_v7 = vsel %vm1357_vm7, %v1967_v29, %v10462_v42  ;;  %v1344_v42 = vsel %vm339_vm2, %v1545_v6, %v10503_v60  ;;  %v10594_v60 = vpack.c.bf16 %v3787_v27, %v3786_v21 }
 0x232   : > { %v1298_v19 = vpop.permute.xlu1 %1297  ;;  %v1392_v17 = vsel %vm1357_vm7, %v1344_v42, %v10493_v24  ;;  %v1525_v24 = vld [vmem:[#allocation2 + $0x120] sm:$0xff] }
 0x233   : > { %v10557_v62 = vpop.permute.xlu0 %1783  ;;  %v1461_v49 = vsel %vm1439_vm6, %v1428_v53, %v1298_v19  ;;  %v3693_v53 = vld [vmem:[#allocation2 + $0xe1] sm:$0xff]  ;;  %v1546_v19 = vpack.c.bf16 %v1526_v59, %v1525_v24 }
 0x234   : > { %4040 = vrot.lane.b32.xlu1 %v10559_v3, %s9346_s21  ;;  %8716 = vmatprep.mubr.msk.bf16.mxu0 %vm2216_vm8, %v1461_v49  ;;  %v10614_v18 = vpack.c.bf16 %v3693_v53, %v3692_v40  ;;  %v3743_v40 = vld [vmem:[#allocation2 + $0xfa] sm:$0xff] }
 0x235   : > { %2957 = vrot.lane.b32.xlu0 %v10505_v31, %s9344_s19  ;;  %2362 = vmatmul.mubr.bf16.gmra.mxu1 %v2014_v7 }
 0x236   : > { %2645 = vmatmul.mubr.bf16.gmra.mxu0 %v1389_v16  ;;  %v1880_v31 = vpop.permute.xlu1 %1879  ;;  %v3788_v16 = vld [vmem:[#allocation2 + $0xdb] sm:$0xff] }
 0x237   : > { %v10573_v15 = vpop.permute.xlu0 %1207  ;;  %8717 = vmatprep.mubr.msk.bf16.mxu0 %vm2216_vm8, %v1463_v25  ;;  %v3789_v25 = vld [vmem:[#allocation2 + $0xe3] sm:$0xff]  ;;  %v2056_v5 = vsel %vm1406_vm5, %v10544_v43, %v1880_v31 }
 0x238   : > { %3053 = vrot.lane.b32.xlu1 %v10512_v39, %s9347_s22  ;;  %v10628_v34 = vpack.c.bf16 %v3789_v25, %v3788_v16  ;;  %v3791_v16 = vld [vmem:[#allocation2 + $0xfb] sm:$0xff] }
 0x239   : > { %3946 = vrot.lane.b32.xlu0 %v10575_v28, %s9345_s20 }
 0x23a   : > { %v1928_v14 = vpop.permute.xlu1 %1927 }
 0x23b   : > { %v10584_v20 = vpop.permute.xlu0 %1159  ;;  %v2088_v21 = vsel %vm1439_vm6, %v2056_v5, %v1928_v14 }
 0x23c   : > { %3101 = vrot.lane.b32.xlu1 %v10518_v61, %s9346_s21  ;;  %v3740_v61 = vld [vmem:[#allocation2 + $0xda] sm:$0xff] }
 0x23d   : > { %3898 = vrot.lane.b32.xlu0 %v10586_v22, %s9344_s19 }
 0x23e   : > { %2653 = vmatmul.mubr.bf16.gmra.mxu0 %v1392_v17  ;;  %v1256_v23 = vpop.permute.xlu1 %1255 }
 0x23f   : > { %v1830_v39 = vpop.permute.xlu0 %1829 }
 0x240   : > { %3994 = vrot.lane.b32.xlu1 %v10594_v60, %s9347_s22 }
 0x241   : > { %3007 = vrot.lane.b32.xlu0 %v10524_v63, %s9345_s20  ;;  %v10606_v63 = vpack.c.bf16 %v3741_v37, %v3740_v61 }
 0x242   : > { %v1304_v0 = vpop.permute.xlu1 %1303 }
 0x243   : > { %v1782_v32 = vpop.permute.xlu0 %1781 }
 0x244   : > { %4042 = vrot.lane.b32.xlu1 %v10600_v50, %s9346_s21 }
 0x245   : > { %2959 = vrot.lane.b32.xlu0 %v10532_v35, %s9344_s19  ;;  %v1970_v35 = vsel %vm339_vm2, %v1546_v19, %v1782_v32 }
 0x246   : > { %v1878_v29 = vpop.permute.xlu1 %1877  ;;  %v2017_v42 = vsel %vm1357_vm7, %v1970_v35, %v1830_v39 }
 0x247   : > { %v1206_v6 = vpop.permute.xlu0 %1205  ;;  %v2054_v49 = vsel %vm1406_vm5, %v1830_v39, %v1878_v29  ;;  %v3742_v29 = vld [vmem:[#allocation2 + $0xf2] sm:$0xff] }
 0x248   : > { %3055 = vrot.lane.b32.xlu1 %v10546_v33, %s9347_s22  ;;  %v1528_v33 = vld [vmem:[#allocation2 + $0x140] sm:$0xff] }
 0x249   : > { %3948 = vrot.lane.b32.xlu0 %v10606_v63, %s9345_s20  ;;  %v1547_v32 = vpack.c.bf16 %v1528_v33, %v1527_v11 }
 0x24a   : > { %v1926_v13 = vpop.permute.xlu1 %1925 }
 0x24b   : > { %v1158_v10 = vpop.permute.xlu0 %1157  ;;  %v2086_v7 = vsel %vm1439_vm6, %v2054_v49, %v1926_v13  ;;  %v1973_v31 = vsel %vm339_vm2, %v1547_v32, %v10557_v62  ;;  %v1434_v62 = vsel %vm1406_vm5, %v10573_v15, %v1256_v23  ;;  %v10659_v49 = vpack.c.bf16 %v3743_v40, %v3742_v29  ;;  %v3694_v23 = vld [vmem:[#allocation2 + $0xf1] sm:$0xff] }
 0x24c   : > { %3103 = vrot.lane.b32.xlu1 %v10559_v3, %s9346_s21  ;;  %8686 = vmatprep.mubr.msk.bf16.mxu1 %vm2216_vm8, %v2086_v7  ;;  %v3836_v3 = vld [vmem:[#allocation2 + $0xdc] sm:$0xff]  ;;  %v1347_v14 = vsel %vm339_vm2, %v1546_v19, %v1158_v10  ;;  %v1467_v19 = vsel %vm1439_vm6, %v1434_v62, %v1304_v0  ;;  %v3790_v7 = vld [vmem:[#allocation2 + $0xf3] sm:$0xff] }
 0x24d   : > { %3900 = vrot.lane.b32.xlu0 %v10614_v18, %s9344_s19  ;;  %2370 = vmatmul.mubr.bf16.gmra.mxu1 %v2017_v42  ;;  %v10641_v24 = vpack.c.bf16 %v3837_v30, %v3836_v3  ;;  %v1395_v53 = vsel %vm1357_vm7, %v1347_v14, %v1206_v6  ;;  %v3695_v10 = vld [vmem:[#allocation2 + $0xf9] sm:$0xff]  ;;  %v10682_v33 = vpack.c.bf16 %v3791_v16, %v3790_v7 }
 0x24e   : > { %v1254_v17 = vpop.permute.xlu1 %1253  ;;  %8687 = vmatprep.mubr.msk.bf16.mxu1 %vm2216_vm8, %v2088_v21  ;;  %v10670_v13 = vpack.c.bf16 %v3695_v10, %v3694_v23  ;;  %v3838_v42 = vld [vmem:[#allocation2 + $0xf4] sm:$0xff]  ;;  %v3839_v21 = vld [vmem:[#allocation2 + $0xfc] sm:$0xff] }
 0x24f   : > { %v10626_v27 = vpop.permute.xlu0 %1835  ;;  %v1432_v39 = vsel %vm1406_vm5, %v1206_v6, %v1254_v17  ;;  %v1530_v14 = vld [vmem:[#allocation2 + $0x158] sm:$0xff] }
 0x250   : > { %3996 = vrot.lane.b32.xlu1 %v10628_v34, %s9347_s22 }
 0x251   : > { %3009 = vrot.lane.b32.xlu0 %v10575_v28, %s9345_s20  ;;  %v2020_v28 = vsel %vm1357_vm7, %v1973_v31, %v10544_v43  ;;  %v1350_v43 = vsel %vm339_vm2, %v1547_v32, %v10584_v20  ;;  %v3744_v32 = vld [vmem:[#allocation2 + $0x10a] sm:$0xff]  ;;  %v3745_v31 = vld [vmem:[#allocation2 + $0x112] sm:$0xff] }
 0x252   : > { %v1302_v37 = vpop.permute.xlu1 %1301  ;;  %v10700_v29 = vpack.c.bf16 %v3745_v31, %v3744_v32  ;;  %v3792_v32 = vld [vmem:[#allocation2 + $0x10b] sm:$0xff]  ;;  %v3793_v31 = vld [vmem:[#allocation2 + $0x113] sm:$0xff] }
 0x253   : > { %v10639_v61 = vpop.permute.xlu0 %1787  ;;  %v1465_v59 = vsel %vm1439_vm6, %v1432_v39, %v1302_v37 }
 0x254   : > { %4044 = vrot.lane.b32.xlu1 %v10641_v24, %s9346_s21  ;;  %8718 = vmatprep.mubr.msk.bf16.mxu0 %vm2216_vm8, %v1465_v59 }
 0x255   : > { %2961 = vrot.lane.b32.xlu0 %v10586_v22, %s9344_s19  ;;  %2378 = vmatmul.mubr.bf16.gmra.mxu1 %v2020_v28 }
 0x256   : > { %2661 = vmatmul.mubr.bf16.gmra.mxu0 %v1395_v53  ;;  %v10657_v22 = vpop.permute.xlu1 %1883  ;;  %v3696_v53 = vld [vmem:[#allocation2 + $0x109] sm:$0xff] }
 0x257   : > { %v10655_v35 = vpop.permute.xlu0 %1211  ;;  %8719 = vmatprep.mubr.msk.bf16.mxu0 %vm2216_vm8, %v1467_v19  ;;  %v3697_v19 = vld [vmem:[#allocation2 + $0x111] sm:$0xff] }
 0x258   : > { %3057 = vrot.lane.b32.xlu1 %v10594_v60, %s9347_s22  ;;  %v1398_v60 = vsel %vm1357_vm7, %v1350_v43, %v10573_v15  ;;  %v10692_v15 = vpack.c.bf16 %v3839_v21, %v3838_v42 }
 0x259   : > { %3950 = vrot.lane.b32.xlu0 %v10659_v49, %s9345_s20 }
 0x25a   : > { %v1932_v6 = vpop.permute.xlu1 %1931 }
 0x25b   : > { %v10668_v0 = vpop.permute.xlu0 %1163 }
 0x25c   : > { %3105 = vrot.lane.b32.xlu1 %v10600_v50, %s9346_s21 }
 0x25d   : > { %3902 = vrot.lane.b32.xlu0 %v10670_v13, %s9344_s19  ;;  %v10676_v25 = vpop.f32.mrf.mxu1 }
 0x25e   : > { %2669 = vmatmul.mubr.bf16.gmra.mxu0 %v1398_v60  ;;  %v10680_v11 = vpop.permute.xlu1 %1259  ;;  %v10709_v60 = vpack.c.bf16 %v3697_v19, %v3696_v53  ;;  %v10727_v19 = vpack.c.bf16 %v3793_v31, %v3792_v32  ;;  %v3746_v31 = vld [vmem:[#allocation2 + $0x122] sm:$0xff] }
 0x25f   : > { %v1834_v20 = vpop.permute.xlu0 %1833  ;;  %v2293_v5 = vpop.f32.mrf.mxu1 }
 0x260   : > { %3998 = vrot.lane.b32.xlu1 %v10682_v33, %s9347_s22 }
 0x261   : > { %3011 = vrot.lane.b32.xlu0 %v10606_v63, %s9345_s20  ;;  %v10688_v50 = vpop.f32.mrf.mxu1  ;;  %v1529_v63 = vld [vmem:[#allocation2 + $0x150] sm:$0xff] }
 0x262   : > { %v10690_v3 = vpop.permute.xlu1 %1307  ;;  %v1548_v23 = vpack.c.bf16 %v1530_v14, %v1529_v63 }
 0x263   : > { %v1786_v17 = vpop.permute.xlu0 %1785  ;;  %v2296_v30 = vpop.f32.mrf.mxu1 }
 0x264   : > { %4046 = vrot.lane.b32.xlu1 %v10692_v15, %s9346_s21  ;;  %v1976_v43 = vsel %vm339_vm2, %v1548_v23, %v1786_v17  ;;  %v1532_v17 = vld [vmem:[#allocation2 + $0x170] sm:$0xff] }
 0x265   : > { %2963 = vrot.lane.b32.xlu0 %v10614_v18, %s9344_s19  ;;  %v2299_v39 = vpop.f32.mrf.mxu1 }
 0x266   : > { %v2582_v37 = vpop.f32.mrf.mxu0  ;;  %v1882_v62 = vpop.permute.xlu1 %1881 }
 0x267   : > { %v10698_v59 = vpop.permute.xlu0 %1209  ;;  %v10702_v40 = vadd.f32 %v2582_v37, %v2299_v39  ;;  %v2301_v28 = vpop.f32.mrf.mxu1  ;;  %v2058_v5 = vsel %vm1406_vm5, %v1834_v20, %v1882_v62  ;;  %v2060_v39 = vsel %vm1406_vm5, %v10626_v27, %v10657_v22  ;;  %v2023_v37 = vsel %vm1357_vm7, %v1976_v43, %v1834_v20 }
 0x268   : > { %v2584_v10 = vpop.f32.mrf.mxu0  ;;  %3059 = vrot.lane.b32.xlu1 %v10628_v34, %s9347_s22  ;;  %v1531_v34 = vld [vmem:[#allocation2 + $0x168] sm:$0xff]  ;;  %v2092_v62 = vsel %vm1439_vm6, %v2060_v39, %v1932_v6 }
 0x269   : > { %3952 = vrot.lane.b32.xlu0 %v10700_v29, %s9345_s20  ;;  %v2302_v18 = vpop.f32.mrf.mxu1  ;;  %v3840_v10 = vld [vmem:[#allocation2 + $0x10c] sm:$0xff] }
 0x26a   : > { %v2585_v7 = vpop.f32.mrf.mxu0  ;;  %v1930_v21 = vpop.permute.xlu1 %1929 }
 0x26b   : > { %v1162_v16 = vpop.permute.xlu0 %1161  ;;  %v10712_v42 = vadd.f32 %v2585_v7, %v2302_v18  ;;  %v2304_v30 = vpop.f32.mrf.mxu1  ;;  %v2090_v63 = vsel %vm1439_vm6, %v2058_v5, %v1930_v21  ;;  %v3841_v18 = vld [vmem:[#allocation2 + $0x114] sm:$0xff]  ;;  %v1549_v7 = vpack.c.bf16 %v1532_v17, %v1531_v34 }
 0x26c   : > { %v2587_v14 = vpop.f32.mrf.mxu0  ;;  %3107 = vrot.lane.b32.xlu1 %v10641_v24, %s9346_s21  ;;  %8688 = vmatprep.mubr.msk.bf16.mxu1 %vm2216_vm8, %v2090_v63  ;;  %v1353_v6 = vsel %vm339_vm2, %v1548_v23, %v1162_v16  ;;  %v10739_v21 = vpack.c.bf16 %v3841_v18, %v3840_v10  ;;  %v3747_v63 = vld [vmem:[#allocation2 + $0x12a] sm:$0xff]  ;;  %v1533_v23 = vld [vmem:[#allocation2 + $0x180] sm:$0xff] }
 0x26d   : > { %3904 = vrot.lane.b32.xlu0 %v10709_v60, %s9344_s19  ;;  %2386 = vmatmul.mubr.bf16.gmra.mxu1 %v2023_v37  ;;  %v1979_v22 = vsel %vm339_vm2, %v1549_v7, %v10639_v61  ;;  %v1438_v61 = vsel %vm1406_vm5, %v10655_v35, %v10680_v11  ;;  %v1534_v16 = vld [vmem:[#allocation2 + $0x188] sm:$0xff]  ;;  %v1401_v17 = vsel %vm1357_vm7, %v1353_v6, %v10698_v59 }
 0x26e   : > { %v10725_v28 = vpop.f32.mrf.mxu0  ;;  %8689 = vmatprep.mubr.msk.bf16.mxu1 %vm2216_vm8, %v2092_v62  ;;  %v1258_v24 = vpop.permute.xlu1 %1257  ;;  %v2026_v34 = vsel %vm1357_vm7, %v1979_v22, %v10626_v27  ;;  %v10760_v37 = vpack.c.bf16 %v3747_v63, %v3746_v31  ;;  %v3698_v62 = vld [vmem:[#allocation2 + $0x121] sm:$0xff]  ;;  %v1550_v10 = vpack.c.bf16 %v1534_v16, %v1533_v23  ;;  %v1356_v27 = vsel %vm339_vm2, %v1549_v7, %v10668_v0 }
 0x26f   : > { %v1838_v53 = vpop.permute.xlu0 %1837  ;;  %v1436_v30 = vsel %vm1406_vm5, %v10698_v59, %v1258_v24  ;;  %v3699_v24 = vld [vmem:[#allocation2 + $0x129] sm:$0xff]  ;;  %v4161_v0 = vsel %vm1406_vm5, %v10073_v47, %v10071_v45  ;;  %v3748_v23 = vld [vmem:[#allocation2 + $0x13a] sm:$0xff] }
 0x270   : > { %v2592_v5 = vpop.f32.mrf.mxu0  ;;  %4000 = vrot.lane.b32.xlu1 %v10727_v19, %s9347_s22  ;;  %v10772_v18 = vpack.c.bf16 %v3699_v24, %v3698_v62  ;;  %v3794_v6 = vld [vmem:[#allocation2 + $0x123] sm:$0xff]  ;;  %v4193_v31 = vsel %vm1439_vm6, %v4161_v0, %v10077_v51  ;;  %v4066_v51 = vsel %vm339_vm2, %v10111_v26, %v10079_v52  ;;  %v3636_v0 = vld [vmem:[#allocation2 + $0x78] sm:$0xff] }
 0x271   : > { %3013 = vrot.lane.b32.xlu0 %v10659_v49, %s9345_s20  ;;  %v3749_v16 = vld [vmem:[#allocation2 + $0x142] sm:$0xff]  ;;  %v4113_v52 = vsel %vm1357_vm7, %v4066_v51, %v10073_v47 }
 0x272   : > { %v10737_v20 = vpop.f32.mrf.mxu0  ;;  %v1306_v32 = vpop.permute.xlu1 %1305  ;;  %v3701_v62 = vld [vmem:[#allocation2 + $0x141] sm:$0xff] }
 0x273   : > { %v1790_v43 = vpop.permute.xlu0 %1789  ;;  %v1469_v49 = vsel %vm1439_vm6, %v1436_v30, %v1306_v32  ;;  %v3795_v30 = vld [vmem:[#allocation2 + $0x12b] sm:$0xff] }
 0x274   : > { %v2595_v14 = vpop.f32.mrf.mxu0  ;;  %4048 = vrot.lane.b32.xlu1 %v10739_v21, %s9346_s21  ;;  %8720 = vmatprep.mubr.msk.bf16.mxu0 %vm2216_vm8, %v1469_v49  ;;  %v10796_v63 = vpack.c.bf16 %v3795_v30, %v3794_v6  ;;  %v3843_v49 = vld [vmem:[#allocation2 + $0x12c] sm:$0xff]  ;;  %v3796_v30 = vld [vmem:[#allocation2 + $0x13b] sm:$0xff] }
 0x275   : > { %2965 = vrot.lane.b32.xlu0 %v10670_v13, %s9344_s19  ;;  %v1471_v13 = vsel %vm1439_vm6, %v1438_v61, %v10690_v3  ;;  %2394 = vmatmul.mubr.bf16.gmra.mxu1 %v2026_v34  ;;  %v1982_v3 = vsel %vm339_vm2, %v1550_v10, %v1790_v43  ;;  %v1404_v43 = vsel %vm1357_vm7, %v1356_v27, %v10655_v35 }
 0x276   : > { %2677 = vmatmul.mubr.bf16.gmra.mxu0 %v1401_v17  ;;  %v1886_v11 = vpop.permute.xlu1 %1885  ;;  %v2029_v7 = vsel %vm1357_vm7, %v1982_v3, %v1838_v53 }
 0x277   : > { %v10758_v39 = vpop.permute.xlu0 %2951  ;;  %8721 = vmatprep.mubr.msk.bf16.mxu0 %vm2216_vm8, %v1471_v13  ;;  %v2062_v5 = vsel %vm1406_vm5, %v1838_v53, %v1886_v11  ;;  %v3842_v53 = vld [vmem:[#allocation2 + $0x124] sm:$0xff]  ;;  %v10831_v13 = vpack.c.bf16 %v3749_v16, %v3748_v23 }
 0x278   : > { %3061 = vrot.lane.b32.xlu1 %v10682_v33, %s9347_s22  ;;  %v3222_v33 = vsel %vm1406_vm5, %v10108_v44, %v10141_v1  ;;  %v10812_v14 = vpack.c.bf16 %v3843_v49, %v3842_v53 }
 0x279   : > { %3954 = vrot.lane.b32.xlu0 %v10760_v37, %s9345_s20 }
 0x27a   : > { %v1934_v22 = vpop.permute.xlu1 %1933 }
 0x27b   : > { %v10770_v59 = vpop.permute.xlu0 %3940  ;;  %v2094_v32 = vsel %vm1439_vm6, %v2062_v5, %v1934_v22 }
 0x27c   : > { %3109 = vrot.lane.b32.xlu1 %v10692_v15, %s9346_s21  ;;  %8690 = vmatprep.mubr.msk.bf16.mxu1 %vm2216_vm8, %v2094_v32  ;;  %v3254_v15 = vsel %vm1439_vm6, %v3222_v33, %v10155_v8  ;;  %v3127_v8 = vsel %vm339_vm2, %v10095_v12, %v10119_v41  ;;  %v3224_v12 = vsel %vm1406_vm5, %v10085_v57, %v10083_v56  ;;  %v2695_v56 = vld [vmem:[#allocation2 + $0x48] sm:$0xff] }
 0x27d   : > { %3906 = vrot.lane.b32.xlu0 %v10772_v18, %s9344_s19  ;;  %2402 = vmatmul.mubr.bf16.gmra.mxu1 %v2029_v7  ;;  %v3174_v26 = vsel %vm1357_vm7, %v3127_v8, %v10108_v44  ;;  %v4163_v41 = vsel %vm1406_vm5, %v10190_v9, %v10223_v38  ;;  %v3700_v38 = vld [vmem:[#allocation2 + $0x139] sm:$0xff]  ;;  %v3797_v32 = vld [vmem:[#allocation2 + $0x143] sm:$0xff] }
 0x27e   : > { %2685 = vmatmul.mubr.bf16.gmra.mxu0 %v1404_v43  ;;  %8767 = vmatprep.mubr.msk.bf16.mxu1 %vm2216_vm8, %v3254_v15  ;;  %v3096_v1 = vpop.permute.xlu1 %3095  ;;  %v10849_v5 = vpack.c.bf16 %v3701_v62, %v3700_v38  ;;  %v2698_v33 = vld [vmem:[#allocation2 + $0x68] sm:$0xff] }
 0x27f   : > { %v10794_v45 = vpop.permute.xlu0 %3892  ;;  %8828 = vmatprep.mubr.msk.bf16.mxu0 %vm2216_vm8, %v4193_v31  ;;  %v3256_v34 = vsel %vm1439_vm6, %v3224_v12, %v3096_v1  ;;  %v10865_v1 = vpack.c.bf16 %v3797_v32, %v3796_v30  ;;  %v3845_v8 = vld [vmem:[#allocation2 + $0x144] sm:$0xff]  ;;  %v3702_v30 = vld [vmem:[#allocation2 + $0x151] sm:$0xff]  ;;  %v3703_v32 = vld [vmem:[#allocation2 + $0x159] sm:$0xff] }
 0x280   : > { %4002 = vrot.lane.b32.xlu1 %v10796_v63, %s9347_s22 }
 0x281   : > { %3015 = vrot.lane.b32.xlu0 %v10700_v29, %s9345_s20  ;;  %v2696_v29 = vld [vmem:[#allocation2 + $0x50] sm:$0xff] }
 0x282   : > { %v3989_v61 = vpop.permute.xlu1 %3988 }
 0x283   : > { %v10810_v35 = vpop.permute.xlu0 %3001 }
 0x284   : > { %4050 = vrot.lane.b32.xlu1 %v10812_v14, %s9346_s21 }
 0x285   : > { %2967 = vrot.lane.b32.xlu0 %v10709_v60, %s9344_s19  ;;  %v4195_v60 = vsel %vm1439_vm6, %v4163_v41, %v10244_v58  ;;  %v2307_v17 = vpop.f32.mrf.mxu1  ;;  %3471 = vmatmul.mubr.bf16.vlgmr.msra.gmra.mxu1 %v3174_v26  ;;  %v2726_v58 = vpack.c.bf16 %v2696_v29, %v2695_v56 }
 0x286   : > { %4410 = vmatmul.mubr.bf16.vlgmr.msra.gmra.mxu0 %v4113_v52  ;;  %v10834_v11 = vadd.f32 %v10725_v28, %v2307_v17  ;;  %8768 = vmatprep.mubr.msk.bf16.mxu1 %vm2216_vm8, %v3256_v34  ;;  %v4037_v44 = vpop.permute.xlu1 %4036  ;;  %v4069_v28 = vsel %vm339_vm2, %v10175_v54, %v10206_v36  ;;  %v3637_v54 = vld [vmem:[#allocation2 + $0x80] sm:$0xff]  ;;  %v4165_v36 = vsel %vm1406_vm5, %v10770_v59, %v3989_v61 }
 0x287   : > { %v2954_v47 = vpop.permute.xlu0 %2953  ;;  %8829 = vmatprep.mubr.msk.bf16.mxu0 %vm2216_vm8, %v4195_v60  ;;  %v2309_v24 = vpop.f32.mrf.mxu1  ;;  %v3130_v10 = vsel %vm339_vm2, %v2726_v58, %v10758_v39  ;;  %v2697_v39 = vld [vmem:[#allocation2 + $0x60] sm:$0xff]  ;;  %v4116_v7 = vsel %vm1357_vm7, %v4069_v28, %v10190_v9  ;;  %v4197_v43 = vsel %vm1439_vm6, %v4165_v36, %v4037_v44  ;;  %v3666_v9 = vpack.c.bf16 %v3637_v54, %v3636_v0  ;;  %v3750_v44 = vld [vmem:[#allocation2 + $0x152] sm:$0xff] }
 0x288   : > { %3063 = vrot.lane.b32.xlu1 %v10727_v19, %s9347_s22  ;;  %v2727_v61 = vpack.c.bf16 %v2698_v33, %v2697_v39  ;;  %v10911_v36 = vpack.c.bf16 %v3703_v32, %v3702_v30 }
 0x289   : > { %3956 = vrot.lane.b32.xlu0 %v10831_v13, %s9345_s20  ;;  %v2310_v27 = vpop.f32.mrf.mxu1  ;;  %v4072_v12 = vsel %vm339_vm2, %v3666_v9, %v10794_v45  ;;  %v3638_v45 = vld [vmem:[#allocation2 + $0x90] sm:$0xff] }
 0x28a   : > { %v10852_v22 = vadd.f32 %v10737_v20, %v2310_v27  ;;  %v3050_v6 = vpop.permute.xlu1 %3049  ;;  %v3177_v20 = vsel %vm1357_vm7, %v3130_v10, %v10085_v57  ;;  %v3844_v57 = vld [vmem:[#allocation2 + $0x13c] sm:$0xff]  ;;  %v3133_v26 = vsel %vm339_vm2, %v2727_v61, %v2954_v47  ;;  %v4119_v24 = vsel %vm1357_vm7, %v4072_v12, %v10770_v59 }
 0x28b   : > { %v10847_v3 = vpop.permute.xlu0 %3942  ;;  %v2312_v19 = vpop.f32.mrf.mxu1  ;;  %v10881_v60 = vpack.c.bf16 %v3845_v8, %v3844_v57  ;;  %v3639_v47 = vld [vmem:[#allocation2 + $0x98] sm:$0xff]  ;;  %v3180_v58 = vsel %vm1357_vm7, %v3133_v26, %v10810_v35  ;;  %v3752_v26 = vld [vmem:[#allocation2 + $0x16a] sm:$0xff] }
 0x28c   : > { %3111 = vrot.lane.b32.xlu1 %v10739_v21, %s9346_s21  ;;  %v3226_v21 = vsel %vm1406_vm5, %v10810_v35, %v3050_v6  ;;  %v10899_v0 = vpack.c.bf16 %v3639_v47, %v3638_v45  ;;  %v3846_v8 = vld [vmem:[#allocation2 + $0x154] sm:$0xff]  ;;  %v3847_v61 = vld [vmem:[#allocation2 + $0x15c] sm:$0xff] }
 0x28d   : > { %3908 = vrot.lane.b32.xlu0 %v10849_v5, %s9344_s19  ;;  %v2315_v31 = vpop.f32.mrf.mxu1  ;;  %3479 = vmatmul.mubr.bf16.gmra.mxu1 %v3177_v20  ;;  %v3798_v20 = vld [vmem:[#allocation2 + $0x153] sm:$0xff] }
 0x28e   : > { %v2598_v15 = vpop.f32.mrf.mxu0  ;;  %4418 = vmatmul.mubr.bf16.gmra.mxu0 %v4116_v7  ;;  %v3098_v51 = vpop.permute.xlu1 %3097  ;;  %v3799_v7 = vld [vmem:[#allocation2 + $0x15b] sm:$0xff] }
 0x28f   : > { %v10869_v53 = vadd.f32 %v2598_v15, %v2315_v31  ;;  %v3895_v49 = vpop.permute.xlu0 %3894  ;;  %8830 = vmatprep.mubr.msk.bf16.mxu0 %vm2216_vm8, %v4197_v43  ;;  %v3258_v23 = vsel %vm1439_vm6, %v3226_v21, %v3098_v51  ;;  %v2317_v16 = vpop.f32.mrf.mxu1  ;;  %v9161_v43 = vld [vmem:[%s14637_s5 + $0x218] sm:$0xff]   ;;  %v10923_v21 = vpack.c.bf16 %v3799_v7, %v3798_v20 }
 0x290   : > { %v2600_v52 = vpop.f32.mrf.mxu0  ;;  %4004 = vrot.lane.b32.xlu1 %v10865_v1, %s9347_s22  ;;  %8769 = vmatprep.mubr.msk.bf16.mxu1 %vm2216_vm8, %v3258_v23  ;;  %v4075_v59 = vsel %vm339_vm2, %v10899_v0, %v3895_v49  ;;  %v10935_v16 = vpack.c.bf16 %v3847_v61, %v3846_v8  ;;  %v3849_v20 = vld [vmem:[#allocation2 + $0x174] sm:$0xff]  ;;  %v3755_v8 = vld [vmem:[#allocation2 + $0x18a] sm:$0xff] }
 0x291   : > { %3017 = vrot.lane.b32.xlu0 %v10760_v37, %s9345_s20  ;;  %v2318_v41 = vpop.f32.mrf.mxu1  ;;  %v3751_v37 = vld [vmem:[#allocation2 + $0x15a] sm:$0xff]  ;;  %5317 = vmatpush1.bf16.msra.mxu0 %v9161_v43 }
 0x292   : > { %v2601_v29 = vpop.f32.mrf.mxu0  ;;  %v3991_v56 = vpop.permute.xlu1 %3990  ;;  %v10895_v10 = vpack.c.bf16 %v3751_v37, %v3750_v44  ;;  %9009 = vmatpush1.bf16.msra.mxu1 %v9161_v43  ;;  %5318 = vmatprep.subr.bf16.mxu0 %v9348_v46  ;;  %v3642_v43 = vld [vmem:[#allocation2 + $0xc0] sm:$0xff] }
 0x293   : > { %v10883_v34 = vadd.f32 %v2601_v29, %v2318_v41  ;;  %v3004_v17 = vpop.permute.xlu0 %3003  ;;  %v2320_v38 = vpop.f32.mrf.mxu1  ;;  %8995 = vmatprep.subr.bf16.mxu1 %v9348_v46  ;;  %v3753_v41 = vld [vmem:[#allocation2 + $0x172] sm:$0xff] }
 0x294   : > { %v2603_v62 = vpop.f32.mrf.mxu0  ;;  %4052 = vrot.lane.b32.xlu1 %v10881_v60, %s9346_s21 }
 0x295   : > { %2969 = vrot.lane.b32.xlu0 %v10772_v18, %s9344_s19  ;;  %3487 = vmatmul.mubr.bf16.gmra.mxu1 %v3180_v58  ;;  %v4167_v18 = vsel %vm1406_vm5, %v10847_v3, %v3991_v56  ;;  %v10948_v56 = vpack.c.bf16 %v3753_v41, %v3752_v26  ;;  %v3704_v62 = vld [vmem:[#allocation2 + $0x169] sm:$0xff] }
 0x296   : > { %v10893_v28 = vpop.f32.mrf.mxu0  ;;  %4426 = vmatmul.mubr.bf16.gmra.mxu0 %v4119_v24  ;;  %v4039_v6 = vpop.permute.xlu1 %4038 }
 0x297   : > { %v2956_v27 = vpop.permute.xlu0 %2955  ;;  %v4199_v35 = vsel %vm1439_vm6, %v4167_v18, %v4039_v6  ;;  %v3801_v6 = vld [vmem:[#allocation2 + $0x173] sm:$0xff] }
 0x298   : > { %v2608_v19 = vpop.f32.mrf.mxu0  ;;  %3065 = vrot.lane.b32.xlu1 %v10796_v63, %s9347_s22  ;;  %8831 = vmatprep.mubr.msk.bf16.mxu0 %vm2216_vm8, %v4199_v35  ;;  %v4122_v63 = vsel %vm1357_vm7, %v4075_v59, %v10847_v3  ;;  %v3136_v15 = vsel %vm339_vm2, %v3666_v9, %v2956_v27  ;;  %v3640_v3 = vld [vmem:[#allocation2 + $0xa8] sm:$0xff]  ;;  %v3641_v9 = vld [vmem:[#allocation2 + $0xb0] sm:$0xff] }
 0x299   : > { %3958 = vrot.lane.b32.xlu0 %v10895_v10, %s9345_s20  ;;  %v3183_v23 = vsel %vm1357_vm7, %v3136_v15, %v3004_v17  ;;  %v10937_v29 = vpack.c.bf16 %v3641_v9, %v3640_v3  ;;  %v3800_v27 = vld [vmem:[#allocation2 + $0x16b] sm:$0xff]  ;;  %v9164_v3 = vld [vmem:[%s14637_s5 + $0x200] sm:$0xff]  }
 0x29a   : > { %v10909_v54 = vpop.f32.mrf.mxu0  ;;  %v3052_v33 = vpop.permute.xlu1 %3051  ;;  %v10971_v35 = vpack.c.bf16 %v3801_v6, %v3800_v27 }
 0x29b   : > { %v3945_v39 = vpop.permute.xlu0 %3944  ;;  %v3228_v49 = vsel %vm1406_vm5, %v3004_v17, %v3052_v33 }
 0x29c   : > { %v2611_v31 = vpop.f32.mrf.mxu0  ;;  %3113 = vrot.lane.b32.xlu1 %v10812_v14, %s9346_s21 }
 0x29d   : > { %3910 = vrot.lane.b32.xlu0 %v10911_v36, %s9344_s19 }
 0x29e   : > { %4434 = vmatmul.mubr.bf16.gmra.mxu0 %v4122_v63  ;;  %v3100_v57 = vpop.permute.xlu1 %3099 }
 0x29f   : > { %v3897_v51 = vpop.permute.xlu0 %3896  ;;  %v3260_v14 = vsel %vm1439_vm6, %v3228_v49, %v3100_v57 }
 0x2a0   : > { %4006 = vrot.lane.b32.xlu1 %v10923_v21, %s9347_s22  ;;  %8770 = vmatprep.mubr.msk.bf16.mxu1 %vm2216_vm8, %v3260_v14  ;;  %v4078_v17 = vsel %vm339_vm2, %v10937_v29, %v3897_v51 }
 0x2a1   : > { %3019 = vrot.lane.b32.xlu0 %v10831_v13, %s9345_s20  ;;  %3495 = vmatmul.mubr.bf16.gmra.mxu1 %v3183_v23  ;;  %v9162_v13 = vld [vmem:[%s14637_s5 + $0x210] sm:$0xff]   ;;  %v4125_v47 = vsel %vm1357_vm7, %v4078_v17, %v3945_v39 }
 0x2a2   : > { %v3993_v12 = vpop.permute.xlu1 %3992  ;;  %5319 = vmatpush1.bf16.msra.mxu0 %v9162_v13  ;;  %9010 = vmatpush1.bf16.msra.mxu1 %v9162_v13  ;;  %v3706_v13 = vld [vmem:[#allocation2 + $0x181] sm:$0xff]  ;;  %v3707_v17 = vld [vmem:[#allocation2 + $0x189] sm:$0xff] }
 0x2a3   : > { %v3006_v52 = vpop.permute.xlu0 %3005  ;;  %v4169_v44 = vsel %vm1406_vm5, %v3945_v39, %v3993_v12  ;;  %5320 = vmatprep.subr.bf16.mxu0 %v9348_v46  ;;  %8996 = vmatprep.subr.bf16.mxu1 %v9348_v46 }
 0x2a4   : > { %4054 = vrot.lane.b32.xlu1 %v10935_v16, %s9346_s21 }
 0x2a5   : > { %2971 = vrot.lane.b32.xlu0 %v10849_v5, %s9344_s19  ;;  %v3705_v5 = vld [vmem:[#allocation2 + $0x171] sm:$0xff] }
 0x2a6   : > { %v4041_v38 = vpop.permute.xlu1 %4040  ;;  %v10960_v58 = vpack.c.bf16 %v3705_v5, %v3704_v62 }
 0x2a7   : > { %v2958_v37 = vpop.permute.xlu0 %2957  ;;  %v4201_v45 = vsel %vm1439_vm6, %v4169_v44, %v4041_v38 }
 0x2a8   : > { %3067 = vrot.lane.b32.xlu1 %v10865_v1, %s9347_s22  ;;  %8832 = vmatprep.mubr.msk.bf16.mxu0 %vm2216_vm8, %v4201_v45  ;;  %v9163_v1 = vld [vmem:[%s14637_s5 + $0x208] sm:$0xff]   ;;  %v3139_v30 = vsel %vm339_vm2, %v10899_v0, %v2958_v37 }
 0x2a9   : > { %3960 = vrot.lane.b32.xlu0 %v10948_v56, %s9345_s20  ;;  %4442 = vmatmul.mubr.bf16.gmra.mxu0 %v4125_v47  ;;  %v3186_v31 = vsel %vm1357_vm7, %v3139_v30, %v3006_v52  ;;  %v11018_v47 = vpack.c.bf16 %v3707_v17, %v3706_v13  ;;  %v3803_v30 = vld [vmem:[#allocation2 + $0x18b] sm:$0xff]  ;;  %v3708_v17 = vld [vmem:[#allocation2 + $0x199] sm:$0xff] }
 0x2aa   : > { %v3054_v18 = vpop.permute.xlu1 %3053  ;;  %5321 = vmatpush1.bf16.msra.mxu0 %v9163_v1  ;;  %9011 = vmatpush1.bf16.msra.mxu1 %v9163_v1  ;;  %v3802_v1 = vld [vmem:[#allocation2 + $0x183] sm:$0xff] }
 0x2ab   : > { %v3947_v24 = vpop.permute.xlu0 %3946  ;;  %v3230_v19 = vsel %vm1406_vm5, %v3006_v52, %v3054_v18  ;;  %5322 = vmatprep.subr.bf16.mxu0 %v9348_v46  ;;  %8997 = vmatprep.subr.bf16.mxu1 %v9348_v46 }
 0x2ac   : > { %3115 = vrot.lane.b32.xlu1 %v10881_v60, %s9346_s21  ;;  %v3848_v60 = vld [vmem:[#allocation2 + $0x16c] sm:$0xff] }
 0x2ad   : > { %3912 = vrot.lane.b32.xlu0 %v10960_v58, %s9344_s19  ;;  %v2323_v32 = vpop.f32.mrf.mxu1  ;;  %v10986_v15 = vpack.c.bf16 %v3849_v20, %v3848_v60 }
 0x2ae   : > { %v10975_v59 = vadd.f32 %v10893_v28, %v2323_v32  ;;  %v3102_v33 = vpop.permute.xlu1 %3101  ;;  %v3643_v28 = vld [vmem:[#allocation2 + $0xc8] sm:$0xff]  ;;  %5323 = vmatpush1.bf16.msra.mxu0 %v9164_v3  ;;  %9012 = vmatpush1.bf16.msra.mxu1 %v9164_v3  ;;  %v3756_v3 = vld [vmem:[#allocation2 + $0x19a] sm:$0xff] }
 0x2af   : > { %v3899_v39 = vpop.permute.xlu0 %3898  ;;  %v3262_v0 = vsel %vm1439_vm6, %v3230_v19, %v3102_v33  ;;  %v2325_v7 = vpop.f32.mrf.mxu1  ;;  %v10993_v61 = vpack.c.bf16 %v3643_v28, %v3642_v43  ;;  %5324 = vmatprep.subr.bf16.mxu0 %v9348_v46  ;;  %8998 = vmatprep.subr.bf16.mxu1 %v9348_v46  ;;  %v11033_v33 = vpack.c.bf16 %v3803_v30, %v3802_v1  ;;  %v3644_v28 = vld [vmem:[#allocation2 + $0xd8] sm:$0xff]  ;;  %v3805_v1 = vld [vmem:[#allocation2 + $0x1a3] sm:$0xff] }
 0x2b0   : > { %4008 = vrot.lane.b32.xlu1 %v10971_v35, %s9347_s22  ;;  %8771 = vmatprep.mubr.msk.bf16.mxu1 %vm2216_vm8, %v3262_v0  ;;  %v3850_v7 = vld [vmem:[#allocation2 + $0x184] sm:$0xff] }
 0x2b1   : > { %3021 = vrot.lane.b32.xlu0 %v10895_v10, %s9345_s20  ;;  %v2326_v63 = vpop.f32.mrf.mxu1  ;;  %3503 = vmatmul.mubr.bf16.gmra.mxu1 %v3186_v31  ;;  %v3754_v10 = vld [vmem:[#allocation2 + $0x182] sm:$0xff] }
 0x2b2   : > { %v10989_v49 = vadd.f32 %v10909_v54, %v2326_v63  ;;  %v3995_v57 = vpop.permute.xlu1 %3994  ;;  %v4081_v54 = vsel %vm339_vm2, %v10993_v61, %v3899_v39  ;;  %v11004_v52 = vpack.c.bf16 %v3755_v8, %v3754_v10  ;;  %v3645_v31 = vld [vmem:[#allocation2 + $0xe0] sm:$0xff] }
 0x2b3   : > { %v10991_v51 = vpop.permute.xlu0 %3007  ;;  %v2328_v14 = vpop.f32.mrf.mxu1  ;;  %v4171_v12 = vsel %vm1406_vm5, %v3947_v24, %v3995_v57  ;;  %v4128_v62 = vsel %vm1357_vm7, %v4081_v54, %v3947_v24  ;;  %v3757_v54 = vld [vmem:[#allocation2 + $0x1a2] sm:$0xff] }
 0x2b4   : > { %4056 = vrot.lane.b32.xlu1 %v10986_v15, %s9346_s21 }
 0x2b5   : > { %2973 = vrot.lane.b32.xlu0 %v10911_v36, %s9344_s19  ;;  %v2331_v9 = vpop.f32.mrf.mxu1 }
 0x2b6   : > { %v2614_v23 = vpop.f32.mrf.mxu0  ;;  %v4043_v41 = vpop.permute.xlu1 %4042 }
 0x2b7   : > { %v11007_v26 = vadd.f32 %v2614_v23, %v2331_v9  ;;  %v2960_v36 = vpop.permute.xlu0 %2959  ;;  %v4203_v44 = vsel %vm1439_vm6, %v4171_v12, %v4043_v41  ;;  %v2333_v37 = vpop.f32.mrf.mxu1  ;;  %v11062_v12 = vpack.c.bf16 %v3757_v54, %v3756_v3 }
 0x2b8   : > { %v2616_v38 = vpop.f32.mrf.mxu0  ;;  %3069 = vrot.lane.b32.xlu1 %v10923_v21, %s9347_s22  ;;  %8833 = vmatprep.mubr.msk.bf16.mxu0 %vm2216_vm8, %v4203_v44  ;;  %v9165_v21 = vld [vmem:[%s14637_s5 + $0x1f8] sm:$0xff]   ;;  %v3142_v24 = vsel %vm339_vm2, %v10937_v29, %v2960_v36 }
 0x2b9   : > { %3962 = vrot.lane.b32.xlu0 %v11004_v52, %s9345_s20  ;;  %v2334_v5 = vpop.f32.mrf.mxu1  ;;  %4450 = vmatmul.mubr.bf16.gmra.mxu0 %v4128_v62  ;;  %v3189_v63 = vsel %vm1357_vm7, %v3142_v24, %v10991_v51  ;;  %v9167_v38 = vld [vmem:[%s14637_s5 + $0x1e8] sm:$0xff]  }
 0x2ba   : > { %v2617_v45 = vpop.f32.mrf.mxu0  ;;  %v3056_v6 = vpop.permute.xlu1 %3055  ;;  %5325 = vmatpush1.bf16.msra.mxu0 %v9165_v21  ;;  %9013 = vmatpush1.bf16.msra.mxu1 %v9165_v21 }
 0x2bb   : > { %v11020_v18 = vadd.f32 %v2617_v45, %v2334_v5  ;;  %v3949_v27 = vpop.permute.xlu0 %3948  ;;  %v2336_v32 = vpop.f32.mrf.mxu1  ;;  %v3232_v60 = vsel %vm1406_vm5, %v10991_v51, %v3056_v6  ;;  %5326 = vmatprep.subr.bf16.mxu0 %v9348_v46  ;;  %8999 = vmatprep.subr.bf16.mxu1 %v9348_v46  ;;  %v9166_v51 = vld [vmem:[%s14637_s5 + $0x1f0] sm:$0xff]   ;;  %v3804_v6 = vld [vmem:[#allocation2 + $0x19b] sm:$0xff] }
 0x2bc   : > { %v2619_v19 = vpop.f32.mrf.mxu0  ;;  %3117 = vrot.lane.b32.xlu1 %v10935_v16, %s9346_s21  ;;  %v3851_v16 = vld [vmem:[#allocation2 + $0x18c] sm:$0xff]  ;;  %v11092_v32 = vpack.c.bf16 %v3805_v1, %v3804_v6 }
 0x2bd   : > { %3914 = vrot.lane.b32.xlu0 %v11018_v47, %s9344_s19  ;;  %v11049_v10 = vpack.c.bf16 %v3851_v16, %v3850_v7  ;;  %v3647_v7 = vld [vmem:[#allocation2 + $0xf8] sm:$0xff] }
 0x2be   : > { %v11031_v39 = vpop.f32.mrf.mxu0  ;;  %v3104_v0 = vpop.permute.xlu1 %3103  ;;  %5327 = vmatpush1.bf16.msra.mxu0 %v9166_v51  ;;  %9014 = vmatpush1.bf16.msra.mxu1 %v9166_v51  ;;  %v3710_v51 = vld [vmem:[#allocation2 + $0x1b1] sm:$0xff] }
 0x2bf   : > { %v3901_v20 = vpop.permute.xlu0 %3900  ;;  %v3264_v43 = vsel %vm1439_vm6, %v3232_v60, %v3104_v0  ;;  %5328 = vmatprep.subr.bf16.mxu0 %v9348_v46  ;;  %9000 = vmatprep.subr.bf16.mxu1 %v9348_v46  ;;  %v3852_v60 = vld [vmem:[#allocation2 + $0x19c] sm:$0xff]  ;;  %v3646_v0 = vld [vmem:[#allocation2 + $0xf0] sm:$0xff] }
 0x2c0   : > { %v2624_v29 = vpop.f32.mrf.mxu0  ;;  %4010 = vrot.lane.b32.xlu1 %v11033_v33, %s9347_s22  ;;  %8772 = vmatprep.mubr.msk.bf16.mxu1 %vm2216_vm8, %v3264_v43  ;;  %v11117_v3 = vpack.c.bf16 %v3647_v7, %v3646_v0  ;;  %v3854_v7 = vld [vmem:[#allocation2 + $0x1b4] sm:$0xff] }
 0x2c1   : > { %3023 = vrot.lane.b32.xlu0 %v10948_v56, %s9345_s20  ;;  %3511 = vmatmul.mubr.bf16.gmra.mxu1 %v3189_v63  ;;  %v11051_v56 = vpack.c.bf16 %v3645_v31, %v3644_v28  ;;  %v3759_v29 = vld [vmem:[#allocation2 + $0x1ba] sm:$0xff]  ;;  %v9169_v28 = vld [vmem:[%s14637_s5 + $0x250] sm:$0xff]  }
 0x2c2   : > { %v11047_v57 = vpop.f32.mrf.mxu0  ;;  %v3997_v14 = vpop.permute.xlu1 %3996  ;;  %5329 = vmatpush1.bf16.msra.mxu0 %v9167_v38  ;;  %9015 = vmatpush1.bf16.msra.mxu1 %v9167_v38 }
 0x2c3   : > { %v3010_v8 = vpop.permute.xlu0 %3009  ;;  %v4084_v23 = vsel %vm339_vm2, %v11051_v56, %v3901_v20  ;;  %v4173_v36 = vsel %vm1406_vm5, %v3949_v27, %v3997_v14  ;;  %5330 = vmatprep.subr.bf16.mxu0 %v9348_v46  ;;  %9001 = vmatprep.subr.bf16.mxu1 %v9348_v46  ;;  %v3853_v20 = vld [vmem:[#allocation2 + $0x1a4] sm:$0xff] }
 0x2c4   : > { %v2627_v9 = vpop.f32.mrf.mxu0  ;;  %4058 = vrot.lane.b32.xlu1 %v11049_v10, %s9346_s21  ;;  %v4131_v37 = vsel %vm1357_vm7, %v4084_v23, %v3949_v27  ;;  %v11109_v63 = vpack.c.bf16 %v3853_v20, %v3852_v60  ;;  %v3711_v23 = vld [vmem:[#allocation2 + $0x1b9] sm:$0xff] }
 0x2c5   : > { %2975 = vrot.lane.b32.xlu0 %v10960_v58, %s9344_s19  ;;  %v3709_v58 = vld [vmem:[#allocation2 + $0x1a1] sm:$0xff]  ;;  %v3727_v6 = vpack.c.bf16 %v3711_v23, %v3710_v51  ;;  %v9173_v23 = vld [vmem:[%s14637_s5 + $0x230] sm:$0xff]  }
 0x2c6   : > { %v4045_v13 = vpop.permute.xlu1 %4044  ;;  %v11077_v62 = vpack.c.bf16 %v3709_v58, %v3708_v17 }
 0x2c7   : > { %v2962_v41 = vpop.permute.xlu0 %2961  ;;  %v4205_v44 = vsel %vm1439_vm6, %v4173_v36, %v4045_v13 }
 0x2c8   : > { %3071 = vrot.lane.b32.xlu1 %v10971_v35, %s9347_s22  ;;  %8834 = vmatprep.mubr.msk.bf16.mxu0 %vm2216_vm8, %v4205_v44  ;;  %v9168_v35 = vld [vmem:[%s14637_s5 + $0x1e0] sm:$0xff]   ;;  %v3145_v27 = vsel %vm339_vm2, %v10993_v61, %v2962_v41 }
 0x2c9   : > { %3964 = vrot.lane.b32.xlu0 %v11062_v12, %s9345_s20  ;;  %4458 = vmatmul.mubr.bf16.gmra.mxu0 %v4131_v37  ;;  %v3192_v61 = vsel %vm1357_vm7, %v3145_v27, %v3010_v8  ;;  %v3807_v27 = vld [vmem:[#allocation2 + $0x1bb] sm:$0xff] }
 0x2ca   : > { %v3058_v45 = vpop.permute.xlu1 %3057  ;;  %5331 = vmatpush1.bf16.msra.mxu0 %v9168_v35  ;;  %9016 = vmatpush1.bf16.msra.mxu1 %v9168_v35  ;;  %v3806_v35 = vld [vmem:[#allocation2 + $0x1b3] sm:$0xff] }
 0x2cb   : > { %v11079_v5 = vpop.permute.xlu0 %3950  ;;  %v3234_v19 = vsel %vm1406_vm5, %v3010_v8, %v3058_v45  ;;  %5334 = vmatprep.subr.bf16.mxu0 %v9348_v46  ;;  %9002 = vmatprep.subr.bf16.mxu1 %v9348_v46  ;;  %v3823_v0 = vpack.c.bf16 %v3807_v27, %v3806_v35 }
 0x2cc   : > { %3119 = vrot.lane.b32.xlu1 %v10986_v15, %s9346_s21 }
 0x2cd   : > { %3916 = vrot.lane.b32.xlu0 %v11077_v62, %s9344_s19  ;;  %v2339_v30 = vpop.f32.mrf.mxu1 }
 0x2ce   : > { %v11096_v21 = vadd.f32 %v11031_v39, %v2339_v30  ;;  %v3106_v24 = vpop.permute.xlu1 %3105  ;;  %v3758_v39 = vld [vmem:[#allocation2 + $0x1b2] sm:$0xff]  ;;  %5335 = vmatpush2.bf16.msra.mxu0 %v9169_v28  ;;  %9017 = vmatpush2.bf16.msra.mxu1 %v9169_v28  ;;  %v9171_v30 = vld [vmem:[%s14637_s5 + $0x240] sm:$0xff]  }
 0x2cf   : > { %v3903_v15 = vpop.permute.xlu0 %3902  ;;  %v3266_v16 = vsel %vm1439_vm6, %v3234_v19, %v3106_v24  ;;  %v2341_v43 = vpop.f32.mrf.mxu1  ;;  %v3775_v9 = vpack.c.bf16 %v3759_v29, %v3758_v39  ;;  %5336 = vmatprep.subr.bf16.mxu0 %v9348_v46  ;;  %9003 = vmatprep.subr.bf16.mxu1 %v9348_v46 }
 0x2d0   : > { %4012 = vrot.lane.b32.xlu1 %v11092_v32, %s9347_s22  ;;  %8773 = vmatprep.mubr.msk.bf16.mxu1 %vm2216_vm8, %v3266_v16  ;;  %v4087_v36 = vsel %vm339_vm2, %v11117_v3, %v3903_v15  ;;  %v3855_v16 = vld [vmem:[#allocation2 + $0x1bc] sm:$0xff] }
 0x2d1   : > { %3025 = vrot.lane.b32.xlu0 %v11004_v52, %s9345_s20  ;;  %v2342_v31 = vpop.f32.mrf.mxu1  ;;  %3519 = vmatmul.mubr.bf16.gmra.mxu1 %v3192_v61  ;;  %v4134_v1 = vsel %vm1357_vm7, %v4087_v36, %v11079_v5  ;;  %v9172_v43 = vld [vmem:[%s14637_s5 + $0x238] sm:$0xff]  }
 0x2d2   : > { %v11113_v52 = vadd.f32 %v11047_v57, %v2342_v31  ;;  %v3999_v8 = vpop.permute.xlu1 %3998  ;;  %v9170_v57 = vld [vmem:[%s14637_s5 + $0x248] sm:$0xff]  }
 0x2d3   : > { %v11115_v14 = vpop.permute.xlu0 %3011  ;;  %v2344_v54 = vpop.f32.mrf.mxu1  ;;  %5337 = vmatpush2.bf16.msra.mxu0 %v9170_v57  ;;  %9018 = vmatpush2.bf16.msra.mxu1 %v9170_v57 }
 0x2d4   : > { %4060 = vrot.lane.b32.xlu1 %v11109_v63, %s9346_s21  ;;  %5338 = vmatprep.subr.bf16.mxu0 %v9348_v46  ;;  %v3871_v54 = vpack.c.bf16 %v3855_v16, %v3854_v7 }
 0x2d5   : > { %2977 = vrot.lane.b32.xlu0 %v11018_v47, %s9344_s19  ;;  %v2347_v41 = vpop.f32.mrf.mxu1  ;;  %v4175_v47 = vsel %vm1406_vm5, %v11079_v5, %v3999_v8  ;;  %9004 = vmatprep.subr.bf16.mxu1 %v9348_v46 }
 0x2d6   : > { %v2630_v13 = vpop.f32.mrf.mxu0  ;;  %v4047_v44 = vpop.permute.xlu1 %4046 }
 0x2d7   : > { %v11132_v17 = vadd.f32 %v2630_v13, %v2347_v41  ;;  %v2964_v58 = vpop.permute.xlu0 %2963  ;;  %v4207_v37 = vsel %vm1439_vm6, %v4175_v47, %v4047_v44  ;;  %v2349_v38 = vpop.f32.mrf.mxu1  ;;  %5339 = vmatpush2.bf16.msra.mxu0 %v9171_v30  ;;  %9019 = vmatpush2.bf16.msra.mxu1 %v9171_v30  ;;  %v4667_v41 = vld [vmem:[#allocation2 + $0x62] sm:$0xff]  ;;  %v4668_v13 = vld [vmem:[#allocation2 + $0x6a] sm:$0xff] }
 0x2d8   : > { %v2632_v45 = vpop.f32.mrf.mxu0  ;;  %3073 = vrot.lane.b32.xlu1 %v11033_v33, %s9347_s22  ;;  %8835 = vmatprep.mubr.msk.bf16.mxu0 %vm2216_vm8, %v4207_v37  ;;  %v3148_v61 = vsel %vm339_vm2, %v11051_v56, %v2964_v58  ;;  %v3649_v56 = vld [vmem:[#allocation2 + $0x110] sm:$0xff]  ;;  %v9174_v58 = vld [vmem:[%s14637_s5 + $0x228] sm:$0xff]   ;;  %v4699_v37 = vpack.c.bf16 %v4668_v13, %v4667_v41  ;;  %v9175_v30 = vld [vmem:[%s14637_s5 + $0x220] sm:$0xff]  }
 0x2d9   : > { %3966 = vrot.lane.b32.xlu0 %v3775_v9, %s9345_s20  ;;  %v2350_v19 = vpop.f32.mrf.mxu1  ;;  %4466 = vmatmul.mubr.bf16.gmra.mxu0 %v4134_v1  ;;  %v3648_v9 = vld [vmem:[#allocation2 + $0x108] sm:$0xff]  ;;  %v3195_v51 = vsel %vm1357_vm7, %v3148_v61, %v11115_v14  ;;  %v4669_v41 = vld [vmem:[#allocation2 + $0x7a] sm:$0xff] }
 0x2da   : > { %v2633_v15 = vpop.f32.mrf.mxu0  ;;  %v3060_v60 = vpop.permute.xlu1 %3059  ;;  %5340 = vmatprep.subr.bf16.mxu0 %v9348_v46  ;;  %9005 = vmatprep.subr.bf16.mxu1 %v9348_v46  ;;  %v11176_v47 = vpack.c.bf16 %v3649_v56, %v3648_v9  ;;  %v4619_v1 = vld [vmem:[#allocation2 + $0x61] sm:$0xff] }
 0x2db   : > { %v11146_v33 = vadd.f32 %v2633_v15, %v2350_v19  ;;  %v3953_v24 = vpop.permute.xlu0 %3952  ;;  %v2352_v5 = vpop.f32.mrf.mxu1  ;;  %v3236_v29 = vsel %vm1406_vm5, %v11115_v14, %v3060_v60  ;;  %5341 = vmatpush2.bf16.msra.mxu0 %v9172_v43  ;;  %9020 = vmatpush2.bf16.msra.mxu1 %v9172_v43  ;;  %v4715_v15 = vld [vmem:[#allocation2 + $0x63] sm:$0xff] }
 0x2dc   : > { %v2635_v20 = vpop.f32.mrf.mxu0  ;;  %3121 = vrot.lane.b32.xlu1 %v11049_v10, %s9346_s21  ;;  %5342 = vmatprep.subr.bf16.mxu0 %v9348_v46  ;;  %v3651_v56 = vld [vmem:[#allocation2 + $0x128] sm:$0xff] }
 0x2dd   : > { %3918 = vrot.lane.b32.xlu0 %v3727_v6, %s9344_s19  ;;  %9006 = vmatprep.subr.bf16.mxu1 %v9348_v46  ;;  %v4681_v20 = vld [vmem:[#allocation2 + $0x10a] sm:$0xff] }
 0x2de   : > { %v11158_v39 = vpop.f32.mrf.mxu0  ;;  %v3108_v28 = vpop.permute.xlu1 %3107 }
 0x2df   : > { %v3905_v10 = vpop.permute.xlu0 %3904  ;;  %v3268_v31 = vsel %vm1439_vm6, %v3236_v29, %v3108_v28  ;;  %5343 = vmatpush2.bf16.msra.mxu0 %v9173_v23  ;;  %9021 = vmatpush2.bf16.msra.mxu1 %v9173_v23 }
 0x2e0   : > { %v2640_v8 = vpop.f32.mrf.mxu0  ;;  %4014 = vrot.lane.b32.xlu1 %v3823_v0, %s9347_s22  ;;  %8774 = vmatprep.mubr.msk.bf16.mxu1 %vm2216_vm8, %v3268_v31  ;;  %v4090_v44 = vsel %vm339_vm2, %v11176_v47, %v3905_v10  ;;  %v4716_v0 = vld [vmem:[#allocation2 + $0x6b] sm:$0xff] }
 0x2e1   : > { %3027 = vrot.lane.b32.xlu0 %v11062_v12, %s9345_s20  ;;  %3527 = vmatmul.mubr.bf16.gmra.mxu1 %v3195_v51  ;;  %v4137_v27 = vsel %vm1357_vm7, %v4090_v44, %v3953_v24  ;;  %v4747_v43 = vpack.c.bf16 %v4716_v0, %v4715_v15  ;;  %v4633_v31 = vld [vmem:[#allocation2 + $0x109] sm:$0xff]  ;;  %v4634_v8 = vld [vmem:[#allocation2 + $0x111] sm:$0xff] }
 0x2e2   : > { %v11173_v57 = vpop.f32.mrf.mxu0  ;;  %v4001_v36 = vpop.permute.xlu1 %4000  ;;  %5344 = vmatprep.subr.bf16.mxu0 %v9348_v46  ;;  %9007 = vmatprep.subr.bf16.mxu1 %v9348_v46  ;;  %v4658_v23 = vpack.c.bf16 %v4634_v8, %v4633_v31  ;;  %v4670_v44 = vld [vmem:[#allocation2 + $0x82] sm:$0xff]  ;;  %v4778_v0 = vld [vmem:[#allocation2 + $0x114] sm:$0xff] }
 0x2e3   : > { %v3014_v12 = vpop.permute.xlu0 %3013  ;;  %v4177_v38 = vsel %vm1406_vm5, %v3953_v24, %v4001_v36  ;;  %5345 = vmatpush2.bf16.msra.mxu0 %v9174_v58  ;;  %9022 = vmatpush2.bf16.msra.mxu1 %v9174_v58  ;;  %v4717_v31 = vld [vmem:[#allocation2 + $0x7b] sm:$0xff] }
 0x2e4   : > { %v2643_v14 = vpop.f32.mrf.mxu0  ;;  %4062 = vrot.lane.b32.xlu1 %v3871_v54, %s9346_s21  ;;  %5346 = vmatprep.subr.bf16.mxu0 %v9348_v46  ;;  %v4764_v54 = vld [vmem:[#allocation2 + $0x6c] sm:$0xff] }
 0x2e5   : > { %2979 = vrot.lane.b32.xlu0 %v11077_v62, %s9344_s19  ;;  %v4620_v62 = vld [vmem:[#allocation2 + $0x69] sm:$0xff]  ;;  %9008 = vmatprep.subr.bf16.mxu1 %v9348_v46 }
 0x2e6   : > { %v4049_v6 = vpop.permute.xlu1 %4048  ;;  %v4651_v19 = vpack.c.bf16 %v4620_v62, %v4619_v1  ;;  %v4763_v46 = vld [vmem:[#allocation2 + $0x64] sm:$0xff] }
 0x2e7   : > { %v2966_v45 = vpop.permute.xlu0 %2965  ;;  %v4209_v35 = vsel %vm1439_vm6, %v4177_v38, %v4049_v6  ;;  %5347 = vmatpush2.bf16.msra.mxu0 %v9175_v30  ;;  %9023 = vmatpush2.bf16.msra.mxu1 %v9175_v30  ;;  %v4795_v36 = vpack.c.bf16 %v4764_v54, %v4763_v46  ;;  %v4730_v38 = vld [vmem:[#allocation2 + $0x113] sm:$0xff] }
 0x2e8   : > { %3075 = vrot.lane.b32.xlu1 %v11092_v32, %s9347_s22  ;;  %8836 = vmatprep.mubr.msk.bf16.mxu0 %vm2216_vm8, %v4209_v35  ;;  %v4682_v32 = vld [vmem:[#allocation2 + $0x112] sm:$0xff]  ;;  %v3151_v24 = vsel %vm339_vm2, %v11117_v3, %v2966_v45  ;;  %v3650_v3 = vld [vmem:[#allocation2 + $0x120] sm:$0xff] }
 0x2e9   : > { %4875 = vrot.lane.b32.xlu0 %v4699_v37, %s9345_s20  ;;  %4474 = vmatmul.mubr.bf16.gmra.mxu0 %v4137_v27  ;;  %v4706_v16 = vpack.c.bf16 %v4682_v32, %v4681_v20  ;;  %v3198_v51 = vsel %vm1357_vm7, %v3151_v24, %v3014_v12  ;;  %v4729_v37 = vld [vmem:[#allocation2 + $0x10b] sm:$0xff]  ;;  %v11221_v45 = vpack.c.bf16 %v3651_v56, %v3650_v3  ;;  %v4621_v27 = vld [vmem:[#allocation2 + $0x79] sm:$0xff]  ;;  %v4622_v20 = vld [vmem:[#allocation2 + $0x81] sm:$0xff] }
 0x2ea   : > { %v3062_v5 = vpop.permute.xlu1 %3061  ;;  %v4754_v35 = vpack.c.bf16 %v4730_v38, %v4729_v37  ;;  %v4777_v32 = vld [vmem:[#allocation2 + $0x10c] sm:$0xff]  ;;  %v4718_v56 = vld [vmem:[#allocation2 + $0x83] sm:$0xff] }
 0x2eb   : > { %v11200_v60 = vpop.permute.xlu0 %3954  ;;  %v3238_v61 = vsel %vm1406_vm5, %v3014_v12, %v3062_v5  ;;  %v4684_v3 = vld [vmem:[#allocation2 + $0x12a] sm:$0xff] }
 0x2ec   : > { %3123 = vrot.lane.b32.xlu1 %v11109_v63, %s9346_s21 }
 0x2ed   : > { %4827 = vrot.lane.b32.xlu0 %v4651_v19, %s9344_s19  ;;  %v2355_v7 = vpop.f32.mrf.mxu1 }
 0x2ee   : > { %v11209_v29 = vadd.f32 %v11158_v39, %v2355_v7  ;;  %v3110_v28 = vpop.permute.xlu1 %3109 }
 0x2ef   : > { %v3907_v10 = vpop.permute.xlu0 %3906  ;;  %v3270_v9 = vsel %vm1439_vm6, %v3238_v61, %v3110_v28  ;;  %v2357_v63 = vpop.f32.mrf.mxu1  ;;  %v4802_v28 = vpack.c.bf16 %v4778_v0, %v4777_v32 }
 0x2f0   : > { %4923 = vrot.lane.b32.xlu1 %v4747_v43, %s9347_s22  ;;  %8775 = vmatprep.mubr.msk.bf16.mxu1 %vm2216_vm8, %v3270_v9  ;;  %v4093_v12 = vsel %vm339_vm2, %v11221_v45, %v3907_v10  ;;  %v4652_v10 = vpack.c.bf16 %v4622_v20, %v4621_v27  ;;  %v4683_v63 = vld [vmem:[#allocation2 + $0x122] sm:$0xff]  ;;  %v4671_v20 = vld [vmem:[#allocation2 + $0x92] sm:$0xff] }
 0x2f1   : > { %4889 = vrot.lane.b32.xlu0 %v4706_v16, %s9345_s20  ;;  %v2358_v39 = vpop.f32.mrf.mxu1  ;;  %3535 = vmatmul.mubr.bf16.gmra.mxu1 %v3198_v51  ;;  %v4140_v43 = vsel %vm1357_vm7, %v4093_v12, %v11200_v60  ;;  %v4636_v12 = vld [vmem:[#allocation2 + $0x129] sm:$0xff] }
 0x2f2   : > { %v11217_v13 = vadd.f32 %v11173_v57, %v2358_v39  ;;  %v4003_v58 = vpop.permute.xlu1 %4002  ;;  %v4700_v57 = vpack.c.bf16 %v4670_v44, %v4669_v41  ;;  %v4748_v41 = vpack.c.bf16 %v4718_v56, %v4717_v31  ;;  %v4779_v56 = vld [vmem:[#allocation2 + $0x124] sm:$0xff] }
 0x2f3   : > { %v11219_v14 = vpop.permute.xlu0 %3015  ;;  %v2360_v6 = vpop.f32.mrf.mxu1  ;;  %v4179_v30 = vsel %vm1406_vm5, %v11200_v60, %v4003_v58  ;;  %v4765_v58 = vld [vmem:[#allocation2 + $0x7c] sm:$0xff] }
 0x2f4   : > { %4971 = vrot.lane.b32.xlu1 %v4795_v36, %s9346_s21  ;;  %v4707_v36 = vpack.c.bf16 %v4684_v3, %v4683_v63  ;;  %v4635_v6 = vld [vmem:[#allocation2 + $0x121] sm:$0xff]  ;;  %v4624_v3 = vld [vmem:[#allocation2 + $0x99] sm:$0xff] }
 0x2f5   : > { %4841 = vrot.lane.b32.xlu0 %v4658_v23, %s9344_s19  ;;  %v2363_v1 = vpop.f32.mrf.mxu1 }
 0x2f6   : > { %v2646_v62 = vpop.f32.mrf.mxu0  ;;  %v4051_v5 = vpop.permute.xlu1 %4050 }
 0x2f7   : > { %v11229_v19 = vadd.f32 %v2646_v62, %v2363_v1  ;;  %v2968_v15 = vpop.permute.xlu0 %2967  ;;  %v4211_v24 = vsel %vm1439_vm6, %v4179_v30, %v4051_v5  ;;  %v2365_v7 = vpop.f32.mrf.mxu1  ;;  %v4766_v1 = vld [vmem:[#allocation2 + $0x84] sm:$0xff] }
 0x2f8   : > { %v2648_v16 = vpop.f32.mrf.mxu0  ;;  %4937 = vrot.lane.b32.xlu1 %v4754_v35, %s9347_s22  ;;  %8837 = vmatprep.mubr.msk.bf16.mxu0 %vm2216_vm8, %v4211_v24  ;;  %v3154_v60 = vsel %vm339_vm2, %v11176_v47, %v2968_v15  ;;  %v3652_v47 = vld [vmem:[#allocation2 + $0x138] sm:$0xff]  ;;  %v3653_v35 = vld [vmem:[#allocation2 + $0x140] sm:$0xff]  ;;  %v4659_v15 = vpack.c.bf16 %v4636_v12, %v4635_v6  ;;  %v4796_v5 = vpack.c.bf16 %v4766_v1, %v4765_v58 }
 0x2f9   : > { %4877 = vrot.lane.b32.xlu0 %v4700_v57, %s9345_s20  ;;  %v2366_v46 = vpop.f32.mrf.mxu1  ;;  %4482 = vmatmul.mubr.bf16.gmra.mxu0 %v4140_v43  ;;  %v3201_v27 = vsel %vm1357_vm7, %v3154_v60, %v11219_v14  ;;  %v4672_v24 = vld [vmem:[#allocation2 + $0x9a] sm:$0xff]  ;;  %v4731_v7 = vld [vmem:[#allocation2 + $0x123] sm:$0xff]  ;;  %v4732_v16 = vld [vmem:[#allocation2 + $0x12b] sm:$0xff]  ;;  %v11255_v43 = vpack.c.bf16 %v3653_v35, %v3652_v47 }
 0x2fa   : > { %v2649_v61 = vpop.f32.mrf.mxu0  ;;  %v3064_v9 = vpop.permute.xlu1 %3063  ;;  %v4719_v58 = vld [vmem:[#allocation2 + $0x93] sm:$0xff]  ;;  %v4686_v6 = vld [vmem:[#allocation2 + $0x142] sm:$0xff] }
 0x2fb   : > { %v11237_v8 = vadd.f32 %v2649_v61, %v2366_v46  ;;  %v3957_v54 = vpop.permute.xlu0 %3956  ;;  %v2368_v51 = vpop.f32.mrf.mxu1  ;;  %v3240_v44 = vsel %vm1406_vm5, %v11219_v14, %v3064_v9  ;;  %v4701_v61 = vpack.c.bf16 %v4672_v24, %v4671_v20  ;;  %v4720_v12 = vld [vmem:[#allocation2 + $0x9b] sm:$0xff] }
 0x2fc   : > { %v2651_v39 = vpop.f32.mrf.mxu0  ;;  %4985 = vrot.lane.b32.xlu1 %v4802_v28, %s9346_s21  ;;  %v4623_v28 = vld [vmem:[#allocation2 + $0x91] sm:$0xff]  ;;  %v4749_v47 = vpack.c.bf16 %v4720_v12, %v4719_v58  ;;  %v4637_v20 = vld [vmem:[#allocation2 + $0x139] sm:$0xff] }
 0x2fd   : > { %4829 = vrot.lane.b32.xlu0 %v4652_v10, %s9344_s19  ;;  %v4755_v10 = vpack.c.bf16 %v4732_v16, %v4731_v7  ;;  %v4780_v51 = vld [vmem:[#allocation2 + $0x12c] sm:$0xff]  ;;  %v4768_v24 = vld [vmem:[#allocation2 + $0x9c] sm:$0xff] }
 0x2fe   : > { %v11243_v23 = vpop.f32.mrf.mxu0  ;;  %v3112_v38 = vpop.permute.xlu1 %3111 }
 0x2ff   : > { %v3909_v37 = vpop.permute.xlu0 %3908  ;;  %v3272_v62 = vsel %vm1439_vm6, %v3240_v44, %v3112_v38  ;;  %v4685_v38 = vld [vmem:[#allocation2 + $0x13a] sm:$0xff] }
 0x300   : > { %v2656_v57 = vpop.f32.mrf.mxu0  ;;  %4925 = vrot.lane.b32.xlu1 %v4748_v41, %s9347_s22  ;;  %8776 = vmatprep.mubr.msk.bf16.mxu1 %vm2216_vm8, %v3272_v62  ;;  %v4096_v14 = vsel %vm339_vm2, %v11255_v43, %v3909_v37  ;;  %v4803_v41 = vpack.c.bf16 %v4780_v51, %v4779_v56  ;;  %v4733_v56 = vld [vmem:[#allocation2 + $0x13b] sm:$0xff]  ;;  %v4734_v51 = vld [vmem:[#allocation2 + $0x143] sm:$0xff] }
 0x301   : > { %4891 = vrot.lane.b32.xlu0 %v4707_v36, %s9345_s20  ;;  %3543 = vmatmul.mubr.bf16.gmra.mxu1 %v3201_v27  ;;  %v4143_v60 = vsel %vm1357_vm7, %v4096_v14, %v3957_v54  ;;  %v4653_v36 = vpack.c.bf16 %v4624_v3, %v4623_v28  ;;  %v4708_v57 = vpack.c.bf16 %v4686_v6, %v4685_v38  ;;  %v4673_v28 = vld [vmem:[#allocation2 + $0xaa] sm:$0xff]  ;;  %v4674_v3 = vld [vmem:[#allocation2 + $0xb2] sm:$0xff] }
 0x302   : > { %v11253_v30 = vpop.f32.mrf.mxu0  ;;  %v4005_v0 = vpop.permute.xlu1 %4004  ;;  %v4756_v58 = vpack.c.bf16 %v4734_v51, %v4733_v56 }
 0x303   : > { %v3018_v32 = vpop.permute.xlu0 %3017  ;;  %v4181_v31 = vsel %vm1406_vm5, %v3957_v54, %v4005_v0  ;;  %v4767_v54 = vld [vmem:[#allocation2 + $0x94] sm:$0xff]  ;;  %v4638_v0 = vld [vmem:[#allocation2 + $0x141] sm:$0xff] }
 0x304   : > { %v2659_v46 = vpop.f32.mrf.mxu0  ;;  %4973 = vrot.lane.b32.xlu1 %v4796_v5, %s9346_s21 }
 0x305   : > { %4843 = vrot.lane.b32.xlu0 %v4659_v15, %s9344_s19  ;;  %v3655_v46 = vld [vmem:[#allocation2 + $0x158] sm:$0xff] }
 0x306   : > { %v4053_v63 = vpop.permute.xlu1 %4052 }
 0x307   : > { %v2970_v9 = vpop.permute.xlu0 %2969  ;;  %v4213_v39 = vsel %vm1439_vm6, %v4181_v31, %v4053_v63 }
 0x308   : > { %4939 = vrot.lane.b32.xlu1 %v4755_v10, %s9347_s22  ;;  %8838 = vmatprep.mubr.msk.bf16.mxu0 %vm2216_vm8, %v4213_v39  ;;  %v3157_v1 = vsel %vm339_vm2, %v11221_v45, %v2970_v9  ;;  %v3654_v45 = vld [vmem:[#allocation2 + $0x150] sm:$0xff]  ;;  %v4797_v10 = vpack.c.bf16 %v4768_v24, %v4767_v54 }
 0x309   : > { %4879 = vrot.lane.b32.xlu0 %v4701_v61, %s9345_s20  ;;  %4490 = vmatmul.mubr.bf16.gmra.mxu0 %v4143_v60  ;;  %v3204_v14 = vsel %vm1357_vm7, %v3157_v1, %v3018_v32  ;;  %v4660_v61 = vpack.c.bf16 %v4638_v0, %v4637_v20  ;;  %v11285_v39 = vpack.c.bf16 %v3655_v46, %v3654_v45 }
 0x30a   : > { %v3066_v37 = vpop.permute.xlu1 %3065 }
 0x30b   : > { %v3959_v44 = vpop.permute.xlu0 %3958  ;;  %v3242_v35 = vsel %vm1406_vm5, %v3018_v32, %v3066_v37  ;;  %v4625_v37 = vld [vmem:[#allocation2 + $0xa9] sm:$0xff] }
 0x30c   : > { %4987 = vrot.lane.b32.xlu1 %v4803_v41, %s9346_s21 }
 0x30d   : > { %4831 = vrot.lane.b32.xlu0 %v4653_v36, %s9344_s19  ;;  %v2371_v62 = vpop.f32.mrf.mxu1 }
 0x30e   : > { %v11273_v27 = vadd.f32 %v11243_v23, %v2371_v62  ;;  %v3114_v5 = vpop.permute.xlu1 %3113  ;;  %v4626_v62 = vld [vmem:[#allocation2 + $0xb1] sm:$0xff] }
 0x30f   : > { %v3911_v15 = vpop.permute.xlu0 %3910  ;;  %v3274_v7 = vsel %vm1439_vm6, %v3242_v35, %v3114_v5  ;;  %v2373_v16 = vpop.f32.mrf.mxu1  ;;  %v4654_v24 = vpack.c.bf16 %v4626_v62, %v4625_v37  ;;  %v4770_v37 = vld [vmem:[#allocation2 + $0xb4] sm:$0xff] }
 0x310   : > { %4927 = vrot.lane.b32.xlu1 %v4749_v47, %s9347_s22  ;;  %8777 = vmatprep.mubr.msk.bf16.mxu1 %vm2216_vm8, %v3274_v7  ;;  %v4099_v32 = vsel %vm339_vm2, %v11285_v39, %v3911_v15  ;;  %v4782_v47 = vld [vmem:[#allocation2 + $0x144] sm:$0xff] }
 0x311   : > { %4893 = vrot.lane.b32.xlu0 %v4708_v57, %s9345_s20  ;;  %v2374_v23 = vpop.f32.mrf.mxu1  ;;  %3551 = vmatmul.mubr.bf16.gmra.mxu1 %v3204_v14  ;;  %v4781_v57 = vld [vmem:[#allocation2 + $0x13c] sm:$0xff]  ;;  %v4146_v15 = vsel %vm1357_vm7, %v4099_v32, %v3959_v44  ;;  %v4721_v16 = vld [vmem:[#allocation2 + $0xab] sm:$0xff] }
 0x312   : > { %v11281_v31 = vadd.f32 %v11253_v30, %v2374_v23  ;;  %v4007_v63 = vpop.permute.xlu1 %4006  ;;  %v4702_v30 = vpack.c.bf16 %v4674_v3, %v4673_v28  ;;  %v4804_v7 = vpack.c.bf16 %v4782_v47, %v4781_v57  ;;  %v4687_v23 = vld [vmem:[#allocation2 + $0x152] sm:$0xff] }
 0x313   : > { %v11283_v9 = vpop.permute.xlu0 %3019  ;;  %v2376_v60 = vpop.f32.mrf.mxu1  ;;  %v4183_v38 = vsel %vm1406_vm5, %v3959_v44, %v4007_v63 }
 0x314   : > { %4975 = vrot.lane.b32.xlu1 %v4797_v10, %s9346_s21  ;;  %v4722_v10 = vld [vmem:[#allocation2 + $0xb3] sm:$0xff] }
 0x315   : > { %4845 = vrot.lane.b32.xlu0 %v4660_v61, %s9344_s19  ;;  %v2379_v36 = vpop.f32.mrf.mxu1  ;;  %v4688_v61 = vld [vmem:[#allocation2 + $0x15a] sm:$0xff]  ;;  %v4750_v51 = vpack.c.bf16 %v4722_v10, %v4721_v16  ;;  %v4769_v60 = vld [vmem:[#allocation2 + $0xac] sm:$0xff] }
 0x316   : > { %v2662_v41 = vpop.f32.mrf.mxu0  ;;  %v4055_v1 = vpop.permute.xlu1 %4054  ;;  %v4709_v56 = vpack.c.bf16 %v4688_v61, %v4687_v23  ;;  %v4627_v61 = vld [vmem:[#allocation2 + $0xc1] sm:$0xff] }
 0x317   : > { %v11292_v6 = vadd.f32 %v2662_v41, %v2379_v36  ;;  %v2972_v12 = vpop.permute.xlu0 %2971  ;;  %v4215_v54 = vsel %vm1439_vm6, %v4183_v38, %v4055_v1  ;;  %v2381_v35 = vpop.f32.mrf.mxu1 }
 0x318   : > { %v2664_v5 = vpop.f32.mrf.mxu0  ;;  %4941 = vrot.lane.b32.xlu1 %v4756_v58, %s9347_s22  ;;  %8839 = vmatprep.mubr.msk.bf16.mxu0 %vm2216_vm8, %v4215_v54  ;;  %v3160_v44 = vsel %vm339_vm2, %v11255_v43, %v2972_v12  ;;  %v4640_v58 = vld [vmem:[#allocation2 + $0x159] sm:$0xff]  ;;  %v3656_v43 = vld [vmem:[#allocation2 + $0x168] sm:$0xff]  ;;  %v3657_v12 = vld [vmem:[#allocation2 + $0x170] sm:$0xff]  ;;  %v4798_v54 = vpack.c.bf16 %v4770_v37, %v4769_v60 }
 0x319   : > { %4881 = vrot.lane.b32.xlu0 %v4702_v30, %s9345_s20  ;;  %v2382_v20 = vpop.f32.mrf.mxu1  ;;  %4498 = vmatmul.mubr.bf16.gmra.mxu0 %v4146_v15  ;;  %v4639_v30 = vld [vmem:[#allocation2 + $0x151] sm:$0xff]  ;;  %v3207_v62 = vsel %vm1357_vm7, %v3160_v44, %v11283_v9  ;;  %v4675_v35 = vld [vmem:[#allocation2 + $0xc2] sm:$0xff] }
 0x31a   : > { %v2665_v0 = vpop.f32.mrf.mxu0  ;;  %v3068_v14 = vpop.permute.xlu1 %3067  ;;  %v4661_v47 = vpack.c.bf16 %v4640_v58, %v4639_v30  ;;  %v4628_v44 = vld [vmem:[#allocation2 + $0xc9] sm:$0xff] }
 0x31b   : > { %v11299_v45 = vadd.f32 %v2665_v0, %v2382_v20  ;;  %v3961_v46 = vpop.permute.xlu0 %3960  ;;  %v2384_v28 = vpop.f32.mrf.mxu1  ;;  %v3244_v32 = vsel %vm1406_vm5, %v11283_v9, %v3068_v14  ;;  %v4676_v20 = vld [vmem:[#allocation2 + $0xca] sm:$0xff]  ;;  %v4735_v0 = vld [vmem:[#allocation2 + $0x153] sm:$0xff] }
 0x31c   : > { %v2667_v63 = vpop.f32.mrf.mxu0  ;;  %4989 = vrot.lane.b32.xlu1 %v4804_v7, %s9346_s21  ;;  %v11317_v7 = vpack.c.bf16 %v3657_v12, %v3656_v43  ;;  %v4703_v14 = vpack.c.bf16 %v4676_v20, %v4675_v35  ;;  %v4723_v30 = vld [vmem:[#allocation2 + $0xc3] sm:$0xff]  ;;  %v4724_v43 = vld [vmem:[#allocation2 + $0xcb] sm:$0xff] }
 0x31d   : > { %4833 = vrot.lane.b32.xlu0 %v4654_v24, %s9344_s19  ;;  %v4736_v24 = vld [vmem:[#allocation2 + $0x15b] sm:$0xff] }
 0x31e   : > { %v11305_v3 = vpop.f32.mrf.mxu0  ;;  %v3116_v41 = vpop.permute.xlu1 %3115  ;;  %v4757_v23 = vpack.c.bf16 %v4736_v24, %v4735_v0  ;;  %v4641_v24 = vld [vmem:[#allocation2 + $0x169] sm:$0xff] }
 0x31f   : > { %v3913_v36 = vpop.permute.xlu0 %3912  ;;  %v3276_v38 = vsel %vm1439_vm6, %v3244_v32, %v3116_v41 }
 0x320   : > { %v2672_v1 = vpop.f32.mrf.mxu0  ;;  %4929 = vrot.lane.b32.xlu1 %v4750_v51, %s9347_s22  ;;  %8778 = vmatprep.mubr.msk.bf16.mxu1 %vm2216_vm8, %v3276_v38  ;;  %v4102_v9 = vsel %vm339_vm2, %v11317_v7, %v3913_v36  ;;  %v4784_v51 = vld [vmem:[#allocation2 + $0x15c] sm:$0xff]  ;;  %v4655_v36 = vpack.c.bf16 %v4628_v44, %v4627_v61  ;;  %v4689_v38 = vld [vmem:[#allocation2 + $0x16a] sm:$0xff] }
 0x321   : > { %4895 = vrot.lane.b32.xlu0 %v4709_v56, %s9345_s20  ;;  %3559 = vmatmul.mubr.bf16.gmra.mxu1 %v3207_v62  ;;  %v4783_v56 = vld [vmem:[#allocation2 + $0x154] sm:$0xff]  ;;  %v4149_v32 = vsel %vm1357_vm7, %v4102_v9, %v3961_v46  ;;  %v4772_v9 = vld [vmem:[#allocation2 + $0xcc] sm:$0xff] }
 0x322   : > { %v11315_v57 = vpop.f32.mrf.mxu0  ;;  %v4009_v15 = vpop.permute.xlu1 %4008  ;;  %v4805_v41 = vpack.c.bf16 %v4784_v51, %v4783_v56  ;;  %v4690_v1 = vld [vmem:[#allocation2 + $0x172] sm:$0xff]  ;;  %v3659_v61 = vld [vmem:[#allocation2 + $0x188] sm:$0xff]  ;;  %v4677_v44 = vld [vmem:[#allocation2 + $0xda] sm:$0xff] }
 0x323   : > { %v3022_v5 = vpop.permute.xlu0 %3021  ;;  %v4185_v10 = vsel %vm1406_vm5, %v3961_v46, %v4009_v15  ;;  %v4771_v46 = vld [vmem:[#allocation2 + $0xc4] sm:$0xff] }
 0x324   : > { %v2675_v16 = vpop.f32.mrf.mxu0  ;;  %4977 = vrot.lane.b32.xlu1 %v4798_v54, %s9346_s21  ;;  %v4751_v54 = vpack.c.bf16 %v4724_v43, %v4723_v30 }
 0x325   : > { %4847 = vrot.lane.b32.xlu0 %v4661_v47, %s9344_s19  ;;  %v4710_v47 = vpack.c.bf16 %v4690_v1, %v4689_v38  ;;  %v4642_v16 = vld [vmem:[#allocation2 + $0x171] sm:$0xff] }
 0x326   : > { %v4057_v63 = vpop.permute.xlu1 %4056 }
 0x327   : > { %v2974_v28 = vpop.permute.xlu0 %2973  ;;  %v4217_v60 = vsel %vm1439_vm6, %v4185_v10, %v4057_v63  ;;  %v4799_v63 = vpack.c.bf16 %v4772_v9, %v4771_v46 }
 0x328   : > { %4943 = vrot.lane.b32.xlu1 %v4757_v23, %s9347_s22  ;;  %8840 = vmatprep.mubr.msk.bf16.mxu0 %vm2216_vm8, %v4217_v60  ;;  %v3163_v12 = vsel %vm339_vm2, %v11285_v39, %v2974_v28  ;;  %v3658_v39 = vld [vmem:[#allocation2 + $0x180] sm:$0xff]  ;;  %v4662_v28 = vpack.c.bf16 %v4642_v16, %v4641_v24  ;;  %v4786_v24 = vld [vmem:[#allocation2 + $0x174] sm:$0xff] }
 0x329   : > { %4883 = vrot.lane.b32.xlu0 %v4703_v14, %s9345_s20  ;;  %4506 = vmatmul.mubr.bf16.gmra.mxu0 %v4149_v32  ;;  %v3210_v10 = vsel %vm1357_vm7, %v3163_v12, %v3022_v5  ;;  %v4678_v32 = vld [vmem:[#allocation2 + $0xe2] sm:$0xff]  ;;  %v11347_v30 = vpack.c.bf16 %v3659_v61, %v3658_v39  ;;  %v4629_v12 = vld [vmem:[#allocation2 + $0xd9] sm:$0xff] }
 0x32a   : > { %v3070_v37 = vpop.permute.xlu1 %3069 }
 0x32b   : > { %v3963_v58 = vpop.permute.xlu0 %3962  ;;  %v3246_v35 = vsel %vm1406_vm5, %v3022_v5, %v3070_v37 }
 0x32c   : > { %4991 = vrot.lane.b32.xlu1 %v4805_v41, %s9346_s21  ;;  %v4738_v41 = vld [vmem:[#allocation2 + $0x173] sm:$0xff] }
 0x32d   : > { %4835 = vrot.lane.b32.xlu0 %v4655_v36, %s9344_s19  ;;  %v2387_v62 = vpop.f32.mrf.mxu1  ;;  %v4737_v36 = vld [vmem:[#allocation2 + $0x16b] sm:$0xff] }
 0x32e   : > { %v11335_v15 = vadd.f32 %v11305_v3, %v2387_v62  ;;  %v3118_v0 = vpop.permute.xlu1 %3117  ;;  %v4758_v43 = vpack.c.bf16 %v4738_v41, %v4737_v36  ;;  %v4726_v36 = vld [vmem:[#allocation2 + $0xe3] sm:$0xff] }
 0x32f   : > { %v3915_v20 = vpop.permute.xlu0 %3914  ;;  %v3278_v14 = vsel %vm1439_vm6, %v3246_v35, %v3118_v0  ;;  %v2389_v23 = vpop.f32.mrf.mxu1  ;;  %v4630_v35 = vld [vmem:[#allocation2 + $0xe1] sm:$0xff]  ;;  %v4785_v0 = vld [vmem:[#allocation2 + $0x16c] sm:$0xff] }
 0x330   : > { %4931 = vrot.lane.b32.xlu1 %v4751_v54, %s9347_s22  ;;  %8779 = vmatprep.mubr.msk.bf16.mxu1 %vm2216_vm8, %v3278_v14  ;;  %v4105_v5 = vsel %vm339_vm2, %v11347_v30, %v3915_v20  ;;  %v4656_v61 = vpack.c.bf16 %v4630_v35, %v4629_v12 }
 0x331   : > { %4897 = vrot.lane.b32.xlu0 %v4710_v47, %s9345_s20  ;;  %v2390_v3 = vpop.f32.mrf.mxu1  ;;  %3567 = vmatmul.mubr.bf16.gmra.mxu1 %v3210_v10  ;;  %v4152_v20 = vsel %vm1357_vm7, %v4105_v5, %v3963_v58  ;;  %v4806_v10 = vpack.c.bf16 %v4786_v24, %v4785_v0  ;;  %v4643_v0 = vld [vmem:[#allocation2 + $0x181] sm:$0xff]  ;;  %v4644_v24 = vld [vmem:[#allocation2 + $0x189] sm:$0xff] }
 0x332   : > { %v11343_v56 = vadd.f32 %v11315_v57, %v2390_v3  ;;  %v4011_v60 = vpop.permute.xlu1 %4010  ;;  %v4704_v57 = vpack.c.bf16 %v4678_v32, %v4677_v44  ;;  %v4725_v3 = vld [vmem:[#allocation2 + $0xdb] sm:$0xff]  ;;  %v4692_v32 = vld [vmem:[#allocation2 + $0x18a] sm:$0xff] }
 0x333   : > { %v11345_v51 = vpop.permute.xlu0 %3023  ;;  %v2392_v37 = vpop.f32.mrf.mxu1  ;;  %v4187_v62 = vsel %vm1406_vm5, %v3963_v58, %v4011_v60  ;;  %v4691_v60 = vld [vmem:[#allocation2 + $0x182] sm:$0xff] }
 0x334   : > { %4979 = vrot.lane.b32.xlu1 %v4799_v63, %s9346_s21 }
 0x335   : > { %4849 = vrot.lane.b32.xlu0 %v4662_v28, %s9344_s19  ;;  %v2395_v38 = vpop.f32.mrf.mxu1 }
 0x336   : > { %v2678_v1 = vpop.f32.mrf.mxu0  ;;  %v4059_v46 = vpop.permute.xlu1 %4058 }
 0x337   : > { %v11354_v47 = vadd.f32 %v2678_v1, %v2395_v38  ;;  %v2976_v54 = vpop.permute.xlu0 %2975  ;;  %v4219_v16 = vsel %vm1439_vm6, %v4187_v62, %v4059_v46  ;;  %v2397_v9 = vpop.f32.mrf.mxu1  ;;  %v4711_v1 = vpack.c.bf16 %v4692_v32, %v4691_v60 }
 0x338   : > { %v2680_v14 = vpop.f32.mrf.mxu0  ;;  %4945 = vrot.lane.b32.xlu1 %v4758_v43, %s9347_s22  ;;  %8841 = vmatprep.mubr.msk.bf16.mxu0 %vm2216_vm8, %v4219_v16  ;;  %v3166_v58 = vsel %vm339_vm2, %v11317_v7, %v2976_v54  ;;  %v4773_v43 = vld [vmem:[#allocation2 + $0xdc] sm:$0xff]  ;;  %v4774_v16 = vld [vmem:[#allocation2 + $0xe4] sm:$0xff] }
 0x339   : > { %4885 = vrot.lane.b32.xlu0 %v4704_v57, %s9345_s20  ;;  %v2398_v23 = vpop.f32.mrf.mxu1  ;;  %4514 = vmatmul.mubr.bf16.gmra.mxu0 %v4152_v20  ;;  %v4752_v57 = vpack.c.bf16 %v4726_v36, %v4725_v3  ;;  %v3660_v7 = vld [vmem:[#allocation2 + $0x198] sm:$0xff]  ;;  %v3661_v54 = vld [vmem:[#allocation2 + $0x1a0] sm:$0xff]  ;;  %v4800_v3 = vpack.c.bf16 %v4774_v16, %v4773_v43 }
 0x33a   : > { %v2681_v39 = vpop.f32.mrf.mxu0  ;;  %v3072_v44 = vpop.permute.xlu1 %3071 }
 0x33b   : > { %v11361_v28 = vadd.f32 %v2681_v39, %v2398_v23  ;;  %v11363_v63 = vpop.permute.xlu0 %3964  ;;  %v2400_v41 = vpop.f32.mrf.mxu1  ;;  %v3248_v12 = vsel %vm1406_vm5, %v11345_v51, %v3072_v44  ;;  %v3213_v23 = vsel %vm1357_vm7, %v3166_v58, %v11345_v51  ;;  %v4679_v44 = vld [vmem:[#allocation2 + $0xf2] sm:$0xff] }
 0x33c   : > { %v2683_v37 = vpop.f32.mrf.mxu0  ;;  %4993 = vrot.lane.b32.xlu1 %v4806_v10, %s9346_s21  ;;  %v4663_v10 = vpack.c.bf16 %v4644_v24, %v4643_v0  ;;  %v4680_v41 = vld [vmem:[#allocation2 + $0xfa] sm:$0xff]  ;;  %v4631_v0 = vld [vmem:[#allocation2 + $0xf1] sm:$0xff] }
 0x33d   : > { %4837 = vrot.lane.b32.xlu0 %v4656_v61, %s9344_s19  ;;  %v2403_v5 = vpop.f32.mrf.mxu1  ;;  %v4739_v37 = vld [vmem:[#allocation2 + $0x183] sm:$0xff] }
 0x33e   : > { %v2686_v38 = vpop.f32.mrf.mxu0  ;;  %v3120_v35 = vpop.permute.xlu1 %3119 }
 0x33f   : > { %v11371_v62 = vadd.f32 %v2686_v38, %v2403_v5  ;;  %v3917_v46 = vpop.permute.xlu0 %3916  ;;  %v3280_v9 = vsel %vm1439_vm6, %v3248_v12, %v3120_v35  ;;  %v2405_v14 = vpop.f32.mrf.mxu1  ;;  %v4740_v5 = vld [vmem:[#allocation2 + $0x18b] sm:$0xff]  ;;  %v11383_v38 = vpack.c.bf16 %v3661_v54, %v3660_v7  ;;  %v4705_v12 = vpack.c.bf16 %v4680_v41, %v4679_v44  ;;  %v4727_v41 = vld [vmem:[#allocation2 + $0xf3] sm:$0xff] }
 0x340   : > { %v2688_v20 = vpop.f32.mrf.mxu0  ;;  %4933 = vrot.lane.b32.xlu1 %v4752_v57, %s9347_s22  ;;  %8780 = vmatprep.mubr.msk.bf16.mxu1 %vm2216_vm8, %v3280_v9  ;;  %v4759_v35 = vpack.c.bf16 %v4740_v5, %v4739_v37  ;;  %v4787_v7 = vld [vmem:[#allocation2 + $0x184] sm:$0xff]  ;;  %v4788_v54 = vld [vmem:[#allocation2 + $0x18c] sm:$0xff] }
 0x341   : > { %4899 = vrot.lane.b32.xlu0 %v4711_v1, %s9345_s20  ;;  %v2406_v39 = vpop.f32.mrf.mxu1  ;;  %3575 = vmatmul.mubr.bf16.gmra.mxu1 %v3213_v23  ;;  %v4108_v51 = vsel %vm339_vm2, %v11383_v38, %v3917_v46  ;;  %v4632_v20 = vld [vmem:[#allocation2 + $0xf9] sm:$0xff] }
 0x342   : > { %v2689_v61 = vpop.f32.mrf.mxu0  ;;  %v4013_v36 = vpop.permute.xlu1 %4012  ;;  %v4657_v44 = vpack.c.bf16 %v4632_v20, %v4631_v0  ;;  %v4645_v20 = vld [vmem:[#allocation2 + $0x199] sm:$0xff] }
 0x343   : > { %v11379_v60 = vadd.f32 %v2689_v61, %v2406_v39  ;;  %v11381_v32 = vpop.permute.xlu0 %3025  ;;  %v2408_v1 = vpop.f32.mrf.mxu1  ;;  %v4189_v24 = vsel %vm1406_vm5, %v11363_v63, %v4013_v36  ;;  %v4807_v36 = vpack.c.bf16 %v4788_v54, %v4787_v7  ;;  %v4775_v7 = vld [vmem:[#allocation2 + $0xf4] sm:$0xff]  ;;  %v4776_v54 = vld [vmem:[#allocation2 + $0xfc] sm:$0xff] }
 0x344   : > { %v2691_v57 = vpop.f32.mrf.mxu0  ;;  %4981 = vrot.lane.b32.xlu1 %v4800_v3, %s9346_s21 }
 0x345   : > { %4851 = vrot.lane.b32.xlu0 %v4663_v10, %s9344_s19  ;;  %v3472_v58 = vpop.f32.mrf.mxu1  ;;  %v4693_v57 = vld [vmem:[#allocation2 + $0x19a] sm:$0xff] }
 0x346   : > { %v4411_v43 = vpop.f32.mrf.mxu0  ;;  %v3599_v16 = vadd.f32 %v3472_v58, %v10121_v48  ;;  %v4061_v14 = vpop.permute.xlu1 %4060  ;;  %v4155_v48 = vsel %vm1357_vm7, %v4108_v51, %v11363_v63  ;;  %v4694_v58 = vld [vmem:[#allocation2 + $0x1a2] sm:$0xff]  ;;  %v2575_v63 = vadd.f32 %v10124_v55, %v10676_v25 }
 0x347   : > { %v2978_v9 = vpop.permute.xlu0 %2977  ;;  %v4221_v23 = vsel %vm1439_vm6, %v4189_v24, %v4061_v14  ;;  %v3474_v39 = vpop.f32.mrf.mxu1  ;;  %v4646_v25 = vld [vmem:[#allocation2 + $0x1a1] sm:$0xff] }
 0x348   : > { %v4413_v61 = vpop.f32.mrf.mxu0  ;;  %4947 = vrot.lane.b32.xlu1 %v4759_v35, %s9347_s22  ;;  %v11395_v46 = vadd.f32 %v4411_v43, %v3599_v16  ;;  %8842 = vmatprep.mubr.msk.bf16.mxu0 %vm2216_vm8, %v4221_v23  ;;  %v4728_v43 = vld [vmem:[#allocation2 + $0xfb] sm:$0xff]  ;;  %v4712_v16 = vpack.c.bf16 %v4694_v58, %v4693_v57 }
 0x349   : > { %4887 = vrot.lane.b32.xlu0 %v4705_v12, %s9345_s20  ;;  %v3475_v10 = vpop.f32.mrf.mxu1  ;;  %4522 = vmatmul.mubr.bf16.gmra.mxu0 %v4155_v48  ;;  %v4753_v14 = vpack.c.bf16 %v4728_v43, %v4727_v41  ;;  %v3662_v61 = vld [vmem:[#allocation2 + $0x1b0] sm:$0xff]  ;;  %v3663_v48 = vld [vmem:[#allocation2 + $0x1b8] sm:$0xff] }
 0x34a   : > { %v4414_v3 = vpop.f32.mrf.mxu0  ;;  %v3600_v37 = vadd.f32 %v3475_v10, %v10143_v2  ;;  %v3074_v1 = vpop.permute.xlu1 %3073  ;;  %v3169_v2 = vsel %vm339_vm2, %v11347_v30, %v2978_v9  ;;  %v2578_v9 = vadd.f32 %v10146_v4, %v10688_v50  ;;  %v11423_v57 = vpack.c.bf16 %v3663_v48, %v3662_v61  ;;  %v4741_v50 = vld [vmem:[#allocation2 + $0x19b] sm:$0xff] }
 0x34b   : > { %v11401_v5 = vpop.permute.xlu0 %3966  ;;  %v3477_v12 = vpop.f32.mrf.mxu1  ;;  %v3250_v23 = vsel %vm1406_vm5, %v11381_v32, %v3074_v1  ;;  %v3216_v41 = vsel %vm1357_vm7, %v3169_v2, %v11381_v32  ;;  %v4696_v1 = vld [vmem:[#allocation2 + $0x1ba] sm:$0xff] }
 0x34c   : > { %v4416_v35 = vpop.f32.mrf.mxu0  ;;  %4995 = vrot.lane.b32.xlu1 %v4807_v36, %s9346_s21  ;;  %v11407_v51 = vadd.f32 %v4414_v3, %v3600_v37  ;;  %v4695_v37 = vld [vmem:[#allocation2 + $0x1b2] sm:$0xff]  ;;  %v4664_v12 = vpack.c.bf16 %v4646_v25, %v4645_v20 }
 0x34d   : > { %4839 = vrot.lane.b32.xlu0 %v4657_v44, %s9344_s19  ;;  %v3480_v0 = vpop.f32.mrf.mxu1  ;;  %v4801_v35 = vpack.c.bf16 %v4776_v54, %v4775_v7  ;;  %v4713_v32 = vpack.c.bf16 %v4696_v1, %v4695_v37  ;;  %v4743_v1 = vld [vmem:[#allocation2 + $0x1b3] sm:$0xff] }
 0x34e   : > { %v4419_v24 = vpop.f32.mrf.mxu0  ;;  %v3601_v39 = vadd.f32 %v3480_v0, %v2575_v63  ;;  %v3122_v55 = vpop.permute.xlu1 %3121 }
 0x34f   : > { %v3919_v10 = vpop.permute.xlu0 %3918  ;;  %v3282_v3 = vsel %vm1439_vm6, %v3250_v23, %v3122_v55  ;;  %v3482_v44 = vpop.f32.mrf.mxu1  ;;  %v4647_v23 = vld [vmem:[#allocation2 + $0x1b1] sm:$0xff] }
 0x350   : > { %v4421_v30 = vpop.f32.mrf.mxu0  ;;  %4935 = vrot.lane.b32.xlu1 %v4753_v14, %s9347_s22  ;;  %v11418_v36 = vadd.f32 %v4419_v24, %v3601_v39  ;;  %8781 = vmatprep.mubr.msk.bf16.mxu1 %vm2216_vm8, %v3282_v3  ;;  %v4742_v24 = vld [vmem:[#allocation2 + $0x1a3] sm:$0xff]  ;;  %v4648_v39 = vld [vmem:[#allocation2 + $0x1b9] sm:$0xff]  ;;  %v4111_v20 = vsel %vm339_vm2, %v11423_v57, %v3919_v10 }
 0x351   : > { %4901 = vrot.lane.b32.xlu0 %v4712_v16, %s9345_s20  ;;  %v3483_v58 = vpop.f32.mrf.mxu1  ;;  %3583 = vmatmul.mubr.bf16.gmra.mxu1 %v3216_v41  ;;  %v4760_v61 = vpack.c.bf16 %v4742_v24, %v4741_v50  ;;  %v4789_v44 = vld [vmem:[#allocation2 + $0x19c] sm:$0xff]  ;;  %v4790_v30 = vld [vmem:[#allocation2 + $0x1a4] sm:$0xff]  ;;  %v4665_v10 = vpack.c.bf16 %v4648_v39, %v4647_v23 }
 0x352   : > { %v4422_v43 = vpop.f32.mrf.mxu0  ;;  %v3602_v63 = vadd.f32 %v3483_v58, %v2578_v9  ;;  %v4015_v4 = vpop.permute.xlu1 %4014  ;;  %v4808_v50 = vpack.c.bf16 %v4790_v30, %v4789_v44 }
 0x353   : > { %v11425_v0 = vpop.permute.xlu0 %3027  ;;  %v3485_v16 = vpop.f32.mrf.mxu1  ;;  %v4191_v48 = vsel %vm1406_vm5, %v11401_v5, %v4015_v4 }
 0x354   : > { %v4424_v14 = vpop.f32.mrf.mxu0  ;;  %4983 = vrot.lane.b32.xlu1 %v4801_v35, %s9346_s21  ;;  %v11429_v2 = vadd.f32 %v4422_v43, %v3602_v63  ;;  %v4744_v43 = vld [vmem:[#allocation2 + $0x1bb] sm:$0xff]  ;;  %v4698_v35 = vld [vmem:[#allocation2 + $0x1d2] sm:$0xff] }
 0x355   : > { %4853 = vrot.lane.b32.xlu0 %v4664_v12, %s9344_s19  ;;  %v3488_v7 = vpop.f32.mrf.mxu1  ;;  %v4697_v12 = vld [vmem:[#allocation2 + $0x1ca] sm:$0xff]  ;;  %v4761_v39 = vpack.c.bf16 %v4744_v43, %v4743_v1 }
 0x356   : > { %v4427_v54 = vpop.f32.mrf.mxu0  ;;  %v3603_v55 = vadd.f32 %v3488_v7, %v10702_v40  ;;  %v4063_v3 = vpop.permute.xlu1 %4062  ;;  %v4158_v40 = vsel %vm1357_vm7, %v4111_v20, %v11401_v5  ;;  %v4791_v7 = vld [vmem:[#allocation2 + $0x1b4] sm:$0xff]  ;;  %v4714_v5 = vpack.c.bf16 %v4698_v35, %v4697_v12  ;;  %v4745_v43 = vld [vmem:[#allocation2 + $0x1cb] sm:$0xff] }
 0x357   : > { %v2980_v25 = vpop.permute.xlu0 %2979  ;;  %v4223_v9 = vsel %vm1439_vm6, %v4191_v48, %v4063_v3  ;;  %v3490_v41 = vpop.f32.mrf.mxu1  ;;  %v4650_v48 = vld [vmem:[#allocation2 + $0x1d1] sm:$0xff] }
 0x358   : > { %v4429_v37 = vpop.f32.mrf.mxu0  ;;  %4949 = vrot.lane.b32.xlu1 %v4760_v61, %s9347_s22  ;;  %v11439_v58 = vadd.f32 %v4427_v54, %v3603_v55  ;;  %8843 = vmatprep.mubr.msk.bf16.mxu0 %vm2216_vm8, %v4223_v9  ;;  %v4792_v54 = vld [vmem:[#allocation2 + $0x1bc] sm:$0xff]  ;;  %v4649_v61 = vld [vmem:[#allocation2 + $0x1c9] sm:$0xff]  ;;  %v3172_v55 = vsel %vm339_vm2, %v11383_v38, %v2980_v25  ;;  %v4746_v12 = vld [vmem:[#allocation2 + $0x1d3] sm:$0xff] }
 0x359   : > { %4903 = vrot.lane.b32.xlu0 %v4713_v32, %s9345_s20  ;;  %v3491_v63 = vpop.f32.mrf.mxu1  ;;  %4530 = vmatmul.mubr.bf16.gmra.mxu0 %v4158_v40  ;;  %v4571_v9 = vld [vmem:[#allocation2 + $0x60] sm:$0xff]  ;;  %v4666_v1 = vpack.c.bf16 %v4650_v48, %v4649_v61  ;;  %v4572_v40 = vld [vmem:[#allocation2 + $0x68] sm:$0xff]  ;;  %v3219_v25 = vsel %vm1357_vm7, %v3172_v55, %v11425_v0 }
 0x35a   : > { %v4430_v4 = vpop.f32.mrf.mxu0  ;;  %v3604_v24 = vadd.f32 %v3491_v63, %v10712_v42  ;;  %v3076_v14 = vpop.permute.xlu1 %3075 }
 0x35b   : > { %v4876_v16 = vpop.permute.xlu0 %4875  ;;  %v3493_v32 = vpop.f32.mrf.mxu1  ;;  %v3252_v3 = vsel %vm1406_vm5, %v11425_v0, %v3076_v14  ;;  %v4603_v14 = vpack.c.bf16 %v4572_v40, %v4571_v9 }
 0x35c   : > { %v4432_v23 = vpop.f32.mrf.mxu0  ;;  %4997 = vrot.lane.b32.xlu1 %v4808_v50, %s9346_s21  ;;  %v11447_v20 = vadd.f32 %v4430_v4, %v3604_v24 }
 0x35d   : > { %4855 = vrot.lane.b32.xlu0 %v4665_v10, %s9344_s19  ;;  %v4809_v10 = vpack.c.bf16 %v4792_v54, %v4791_v7  ;;  %v4793_v7 = vld [vmem:[#allocation2 + $0x1cc] sm:$0xff] }
 0x35e   : > { %v4435_v42 = vpop.f32.mrf.mxu0  ;;  %v3124_v30 = vpop.permute.xlu1 %3123 }
 0x35f   : > { %v4828_v44 = vpop.permute.xlu0 %4827  ;;  %v3284_v41 = vsel %vm1439_vm6, %v3252_v3, %v3124_v30 }
 0x360   : > { %v4437_v37 = vpop.f32.mrf.mxu0  ;;  %4951 = vrot.lane.b32.xlu1 %v4761_v39, %s9347_s22  ;;  %8782 = vmatprep.mubr.msk.bf16.mxu1 %vm2216_vm8, %v3284_v41  ;;  %v4762_v39 = vpack.c.bf16 %v4746_v12, %v4745_v43  ;;  %v5005_v54 = vsel %vm339_vm2, %v4603_v14, %v4828_v44 }
 0x361   : > { %4905 = vrot.lane.b32.xlu0 %v4714_v5, %s9345_s20  ;;  %v3496_v35 = vpop.f32.mrf.mxu1  ;;  %3591 = vmatmul.mubr.bf16.gmra.mxu1 %v3219_v25  ;;  %v4794_v5 = vld [vmem:[#allocation2 + $0x1d4] sm:$0xff]  ;;  %v5052_v37 = vsel %vm1357_vm7, %v5005_v54, %v4876_v16  ;;  %s8498_s20 = sshll.u32 %s14535_s23, 4  ;;  %s14586_s20 = int_to_ptr.vmem [resolvable:$true] %s8498_s20 }
 0x362   : > { %v4438_v63 = vpop.f32.mrf.mxu0  ;;  %v3605_v4 = vadd.f32 %v3496_v35, %v10834_v11  ;;  %v4924_v24 = vpop.permute.xlu1 %4923  ;;  %v4810_v41 = vpack.c.bf16 %v4794_v5, %v4793_v7  ;;  %p9282_p13 = scmp.lt.s32.totalorder %s14586_s20, %s9280_s10 }
 0x363   : > { %v4890_v50 = vpop.permute.xlu0 %4889  ;;  %v3498_v32 = vpop.f32.mrf.mxu1  ;;  %v5100_v48 = vsel %vm1406_vm5, %v4876_v16, %v4924_v24 }
 0x364   : > { %v4440_v23 = vpop.f32.mrf.mxu0  ;;  %4999 = vrot.lane.b32.xlu1 %v4809_v10, %s9346_s21  ;;  %v11462_v0 = vadd.f32 %v4435_v42, %v3605_v4  ;;  %v4585_v10 = vld [vmem:[#allocation2 + $0x108] sm:$0xff]  ;;  %v4586_v42 = vld [vmem:[#allocation2 + $0x110] sm:$0xff] }
 0x365   : > { %4857 = vrot.lane.b32.xlu0 %v4666_v1, %s9344_s19  ;;  %v3499_v61 = vpop.f32.mrf.mxu1  ;;  %v4610_v25 = vpack.c.bf16 %v4586_v42, %v4585_v10  ;;  %v4573_v23 = vld [vmem:[#allocation2 + $0x78] sm:$0xff]  ;;  %s8939_s19 = sshll.u32 %s9418_s9, 8  ;;  %s14592_s9 = scalar_lea.sflag [#allocation5], %s325_s13 }
 0x366   : > { %v3606_v11 = vadd.f32 %v3499_v61, %v10852_v22  ;;  %v4972_v3 = vpop.permute.xlu1 %4971 }
 0x367   : > { %v4842_v55 = vpop.permute.xlu0 %4841  ;;  %v5132_v30 = vsel %vm1439_vm6, %v5100_v48, %v4972_v3  ;;  %v3501_v9 = vpop.f32.mrf.mxu1 }
 0x368   : > { %4953 = vrot.lane.b32.xlu1 %v4762_v39, %s9347_s22  ;;  %8889 = vmatprep.mubr.msk.bf16.mxu0 %vm2216_vm8, %v5132_v30  ;;  %v11471_v44 = vadd.f32 %v4438_v63, %v3606_v11  ;;  %v5026_v12 = vsel %vm339_vm2, %v4610_v25, %v4842_v55  ;;  %v4574_v39 = vld [vmem:[#allocation2 + $0x80] sm:$0xff] }
 0x369   : > { %v4443_v1 = vpop.f32.mrf.mxu0  ;;  %5349 = vmatmul.mubr.bf16.vlgmr.msra.gmra.mxu0 %v5052_v37  ;;  %v5073_v63 = vsel %vm1357_vm7, %v5026_v12, %v4890_v50  ;;  %v4604_v48 = vpack.c.bf16 %v4574_v39, %v4573_v23 }
 0x36a   : > { %v4938_v22 = vpop.permute.xlu1 %4937 }
 0x36b   : > { %v4878_v40 = vpop.permute.xlu0 %4877  ;;  %v4445_v43 = vpop.f32.mrf.mxu0  ;;  %v5114_v4 = vsel %vm1406_vm5, %v4890_v50, %v4938_v22  ;;  %v4587_v22 = vld [vmem:[#allocation2 + $0x120] sm:$0xff] }
 0x36c   : > { %5001 = vrot.lane.b32.xlu1 %v4810_v41, %s9346_s21 }
 0x36d   : > { %v4446_v35 = vpop.f32.mrf.mxu0 }
 0x36e   : > { %v4986_v24 = vpop.permute.xlu1 %4985 }
 0x36f   : > { %v4830_v16 = vpop.permute.xlu0 %4829  ;;  %v5146_v14 = vsel %vm1439_vm6, %v5114_v4, %v4986_v24  ;;  %v4448_v32 = vpop.f32.mrf.mxu0 }
 0x370   : > { %8896 = vmatprep.mubr.msk.bf16.mxu1 %vm2216_vm8, %v5146_v14  ;;  %v5008_v3 = vsel %vm339_vm2, %v4604_v48, %v4830_v16 }
 0x371   : > { %v3504_v7 = vpop.f32.mrf.mxu1  ;;  %5405 = vmatmul.mubr.bf16.vlgmr.msra.gmra.mxu1 %v5073_v63  ;;  %v5055_v25 = vsel %vm1357_vm7, %v5008_v3, %v4878_v40 }
 0x372   : > { %v3607_v5 = vadd.f32 %v3504_v7, %v10869_v53  ;;  %v4926_v61 = vpop.permute.xlu1 %4925  ;;  %v4588_v53 = vld [vmem:[#allocation2 + $0x128] sm:$0xff] }
 0x373   : > { %v4892_v54 = vpop.permute.xlu0 %4891  ;;  %v3506_v11 = vpop.f32.mrf.mxu1  ;;  %v5102_v9 = vsel %vm1406_vm5, %v4878_v40, %v4926_v61  ;;  %v4611_v16 = vpack.c.bf16 %v4588_v53, %v4587_v22  ;;  %v4576_v40 = vld [vmem:[#allocation2 + $0x98] sm:$0xff] }
 0x374   : > { %v11480_v55 = vadd.f32 %v4443_v1, %v3607_v5  ;;  %v4575_v5 = vld [vmem:[#allocation2 + $0x90] sm:$0xff] }
 0x375   : > { %v3507_v30 = vpop.f32.mrf.mxu1 }
 0x376   : > { %v3608_v50 = vadd.f32 %v3507_v30, %v10883_v34  ;;  %v4974_v37 = vpop.permute.xlu1 %4973  ;;  %v4605_v30 = vpack.c.bf16 %v4576_v40, %v4575_v5 }
 0x377   : > { %v4844_v41 = vpop.permute.xlu0 %4843  ;;  %v5134_v10 = vsel %vm1439_vm6, %v5102_v9, %v4974_v37  ;;  %v3509_v42 = vpop.f32.mrf.mxu1 }
 0x378   : > { %8890 = vmatprep.mubr.msk.bf16.mxu0 %vm2216_vm8, %v5134_v10  ;;  %v11488_v1 = vadd.f32 %v4446_v35, %v3608_v50  ;;  %v5029_v34 = vsel %vm339_vm2, %v4611_v16, %v4844_v41 }
 0x379   : > { %v4451_v43 = vpop.f32.mrf.mxu0  ;;  %5357 = vmatmul.mubr.bf16.gmra.mxu0 %v5055_v25  ;;  %v5076_v35 = vsel %vm1357_vm7, %v5029_v34, %v4892_v54 }
 0x37a   : > { %14844 = vst [vmem:[#allocation10_spill] sm:$0xff] %v11488_v1  ;;  %v4940_v4 = vpop.permute.xlu1 %4939 }
 0x37b   : > { %v4880_v12 = vpop.permute.xlu0 %4879  ;;  %v4453_v24 = vpop.f32.mrf.mxu0  ;;  %v5116_v32 = vsel %vm1406_vm5, %v4892_v54, %v4940_v4  ;;  %v4589_v4 = vld [vmem:[#allocation2 + $0x138] sm:$0xff] }
 0x37d   : > { %v4454_v14 = vpop.f32.mrf.mxu0 }
 0x37e   : > { %v4988_v23 = vpop.permute.xlu1 %4987 }
 0x37f   : > { %v4832_v63 = vpop.permute.xlu0 %4831  ;;  %v5148_v39 = vsel %vm1439_vm6, %v5116_v32, %v4988_v23  ;;  %v4456_v7 = vpop.f32.mrf.mxu0 }
 0x380   : > { %8897 = vmatprep.mubr.msk.bf16.mxu1 %vm2216_vm8, %v5148_v39  ;;  %v5011_v41 = vsel %vm339_vm2, %v4605_v30, %v4832_v63 }
 0x381   : > { %v3512_v61 = vpop.f32.mrf.mxu1  ;;  %5413 = vmatmul.mubr.bf16.gmra.mxu1 %v5076_v35  ;;  %v5058_v16 = vsel %vm1357_vm7, %v5011_v41, %v4880_v12 }
 0x382   : > { %v3609_v48 = vadd.f32 %v3512_v61, %v10975_v59  ;;  %v4928_v3 = vpop.permute.xlu1 %4927  ;;  %v4590_v59 = vld [vmem:[#allocation2 + $0x140] sm:$0xff] }
 0x383   : > { %v4894_v11 = vpop.permute.xlu0 %4893  ;;  %v3514_v9 = vpop.f32.mrf.mxu1  ;;  %v5104_v10 = vsel %vm1406_vm5, %v4880_v12, %v4928_v3  ;;  %v4612_v63 = vpack.c.bf16 %v4590_v59, %v4589_v4  ;;  %v4578_v12 = vld [vmem:[#allocation2 + $0xb0] sm:$0xff] }
 0x384   : > { %v11496_v50 = vadd.f32 %v4451_v43, %v3609_v48  ;;  %v4577_v48 = vld [vmem:[#allocation2 + $0xa8] sm:$0xff] }
 0x385   : > { %v3515_v37 = vpop.f32.mrf.mxu1 }
 0x386   : > { %14845 = vst [vmem:[#allocation11_spill] sm:$0xff] %v11496_v50  ;;  %v3610_v42 = vadd.f32 %v3515_v37, %v10989_v49  ;;  %v4976_v53 = vpop.permute.xlu1 %4975  ;;  %v4606_v37 = vpack.c.bf16 %v4578_v12, %v4577_v48 }
 0x387   : > { %v4846_v22 = vpop.permute.xlu0 %4845  ;;  %v5136_v54 = vsel %vm1439_vm6, %v5104_v10, %v4976_v53  ;;  %v3517_v25 = vpop.f32.mrf.mxu1 }
 0x388   : > { %8891 = vmatprep.mubr.msk.bf16.mxu0 %vm2216_vm8, %v5136_v54  ;;  %v11504_v43 = vadd.f32 %v4454_v14, %v3610_v42  ;;  %v5032_v49 = vsel %vm339_vm2, %v4612_v63, %v4846_v22 }
 0x389   : > { %v4459_v24 = vpop.f32.mrf.mxu0  ;;  %5365 = vmatmul.mubr.bf16.gmra.mxu0 %v5058_v16  ;;  %v5079_v14 = vsel %vm1357_vm7, %v5032_v49, %v4894_v11 }
 0x38a   : > { %14846 = vst [vmem:[#allocation12_spill] sm:$0xff] %v11504_v43  ;;  %v4942_v32 = vpop.permute.xlu1 %4941 }
 0x38b   : > { %v4882_v34 = vpop.permute.xlu0 %4881  ;;  %v4461_v23 = vpop.f32.mrf.mxu0  ;;  %v5118_v7 = vsel %vm1406_vm5, %v4894_v11, %v4942_v32  ;;  %v4591_v32 = vld [vmem:[#allocation2 + $0x150] sm:$0xff] }
 0x38d   : > { %v4462_v39 = vpop.f32.mrf.mxu0 }
 0x38e   : > { %v4990_v40 = vpop.permute.xlu1 %4989 }
 0x38f   : > { %v4834_v5 = vpop.permute.xlu0 %4833  ;;  %v5150_v35 = vsel %vm1439_vm6, %v5118_v7, %v4990_v40  ;;  %v4464_v61 = vpop.f32.mrf.mxu0 }
 0x390   : > { %8898 = vmatprep.mubr.msk.bf16.mxu1 %vm2216_vm8, %v5150_v35  ;;  %v5014_v22 = vsel %vm339_vm2, %v4606_v37, %v4834_v5 }
 0x391   : > { %v3520_v3 = vpop.f32.mrf.mxu1  ;;  %5421 = vmatmul.mubr.bf16.gmra.mxu1 %v5079_v14  ;;  %v5061_v63 = vsel %vm1357_vm7, %v5014_v22, %v4882_v34 }
 0x392   : > { %v3611_v30 = vadd.f32 %v3520_v3, %v11007_v26  ;;  %v4930_v41 = vpop.permute.xlu1 %4929  ;;  %v4592_v26 = vld [vmem:[#allocation2 + $0x158] sm:$0xff] }
 0x393   : > { %v4896_v9 = vpop.permute.xlu0 %4895  ;;  %v3522_v10 = vpop.f32.mrf.mxu1  ;;  %v5106_v54 = vsel %vm1406_vm5, %v4882_v34, %v4930_v41  ;;  %v4613_v5 = vpack.c.bf16 %v4592_v26, %v4591_v32  ;;  %v4580_v34 = vld [vmem:[#allocation2 + $0xc8] sm:$0xff] }
 0x394   : > { %v11512_v42 = vadd.f32 %v4459_v24, %v3611_v30  ;;  %v4579_v30 = vld [vmem:[#allocation2 + $0xc0] sm:$0xff] }
 0x395   : > { %v3523_v53 = vpop.f32.mrf.mxu1 }
 0x396   : > { %14847 = vst [vmem:[#allocation13_spill] sm:$0xff] %v11512_v42  ;;  %v3612_v25 = vadd.f32 %v3523_v53, %v11020_v18  ;;  %v4978_v59 = vpop.permute.xlu1 %4977  ;;  %v4607_v53 = vpack.c.bf16 %v4580_v34, %v4579_v30  ;;  %v11803_v42 = vld [vmem:[%s14639_s7 + $0xf] ss:$0 sm:$0xff] }
 0x397   : > { %v4848_v4 = vpop.permute.xlu0 %4847  ;;  %v5138_v11 = vsel %vm1439_vm6, %v5106_v54, %v4978_v59  ;;  %v3525_v16 = vpop.f32.mrf.mxu1 }
 0x398   : > { %8892 = vmatprep.mubr.msk.bf16.mxu0 %vm2216_vm8, %v5138_v11  ;;  %v11520_v24 = vadd.f32 %v4462_v39, %v3612_v25  ;;  %v5035_v18 = vsel %vm339_vm2, %v4613_v5, %v4848_v4 }
 0x399   : > { %v4467_v23 = vpop.f32.mrf.mxu0  ;;  %5373 = vmatmul.mubr.bf16.gmra.mxu0 %v5061_v63  ;;  %v5082_v39 = vsel %vm1357_vm7, %v5035_v18, %v4896_v9 }
 0x39a   : > { %14848 = vst [vmem:[#allocation14_spill] sm:$0xff] %v11520_v24  ;;  %v4944_v7 = vpop.permute.xlu1 %4943 }
 0x39b   : > { %v4884_v49 = vpop.permute.xlu0 %4883  ;;  %v4469_v40 = vpop.f32.mrf.mxu0  ;;  %v5120_v61 = vsel %vm1406_vm5, %v4896_v9, %v4944_v7  ;;  %v4593_v7 = vld [vmem:[#allocation2 + $0x168] sm:$0xff] }
 0x39d   : > { %v4470_v35 = vpop.f32.mrf.mxu0 }
 0x39e   : > { %v4992_v12 = vpop.permute.xlu1 %4991 }
 0x39f   : > { %v4836_v48 = vpop.permute.xlu0 %4835  ;;  %v5152_v14 = vsel %vm1439_vm6, %v5120_v61, %v4992_v12  ;;  %v4472_v3 = vpop.f32.mrf.mxu0 }
 0x3a0   : > { %8899 = vmatprep.mubr.msk.bf16.mxu1 %vm2216_vm8, %v5152_v14  ;;  %v5017_v4 = vsel %vm339_vm2, %v4607_v53, %v4836_v48 }
 0x3a1   : > { %v3528_v41 = vpop.f32.mrf.mxu1  ;;  %5429 = vmatmul.mubr.bf16.gmra.mxu1 %v5082_v39  ;;  %v5064_v5 = vsel %vm1357_vm7, %v5017_v4, %v4884_v49 }
 0x3a2   : > { %v3613_v37 = vadd.f32 %v3528_v41, %v11096_v21  ;;  %v4932_v22 = vpop.permute.xlu1 %4931  ;;  %v4594_v21 = vld [vmem:[#allocation2 + $0x170] sm:$0xff] }
 0x3a3   : > { %v4898_v10 = vpop.permute.xlu0 %4897  ;;  %v3530_v54 = vpop.f32.mrf.mxu1  ;;  %v5108_v11 = vsel %vm1406_vm5, %v4884_v49, %v4932_v22  ;;  %v4614_v48 = vpack.c.bf16 %v4594_v21, %v4593_v7  ;;  %v4582_v49 = vld [vmem:[#allocation2 + $0xe0] sm:$0xff] }
 0x3a4   : > { %v11528_v25 = vadd.f32 %v4467_v23, %v3613_v37  ;;  %v4581_v37 = vld [vmem:[#allocation2 + $0xd8] sm:$0xff] }
 0x3a5   : > { %v3531_v59 = vpop.f32.mrf.mxu1 }
 0x3a6   : > { %v3614_v16 = vadd.f32 %v3531_v59, %v11113_v52  ;;  %v4980_v26 = vpop.permute.xlu1 %4979  ;;  %v4608_v59 = vpack.c.bf16 %v4582_v49, %v4581_v37 }
 0x3a7   : > { %v4850_v32 = vpop.permute.xlu0 %4849  ;;  %v5140_v9 = vsel %vm1439_vm6, %v5108_v11, %v4980_v26  ;;  %v3533_v63 = vpop.f32.mrf.mxu1 }
 0x3a8   : > { %8893 = vmatprep.mubr.msk.bf16.mxu0 %vm2216_vm8, %v5140_v9  ;;  %v11536_v23 = vadd.f32 %v4470_v35, %v3614_v16  ;;  %v5038_v52 = vsel %vm339_vm2, %v4614_v48, %v4850_v32 }
 0x3a9   : > { %v4475_v40 = vpop.f32.mrf.mxu0  ;;  %5381 = vmatmul.mubr.bf16.gmra.mxu0 %v5064_v5  ;;  %v5085_v35 = vsel %vm1357_vm7, %v5038_v52, %v4898_v10 }
 0x3aa   : > { %v4946_v61 = vpop.permute.xlu1 %4945 }
 0x3ab   : > { %v4886_v18 = vpop.permute.xlu0 %4885  ;;  %v4477_v12 = vpop.f32.mrf.mxu0  ;;  %v5122_v3 = vsel %vm1406_vm5, %v4898_v10, %v4946_v61  ;;  %v4595_v61 = vld [vmem:[#allocation2 + $0x180] sm:$0xff] }
 0x3ad   : > { %v4478_v14 = vpop.f32.mrf.mxu0 }
 0x3ae   : > { %v4994_v34 = vpop.permute.xlu1 %4993 }
 0x3af   : > { %v4838_v30 = vpop.permute.xlu0 %4837  ;;  %v5154_v39 = vsel %vm1439_vm6, %v5122_v3, %v4994_v34  ;;  %v4480_v41 = vpop.f32.mrf.mxu0 }
 0x3b0   : > { %8900 = vmatprep.mubr.msk.bf16.mxu1 %vm2216_vm8, %v5154_v39  ;;  %v5020_v32 = vsel %vm339_vm2, %v4608_v59, %v4838_v30 }
 0x3b1   : > { %v3536_v22 = vpop.f32.mrf.mxu1  ;;  %5437 = vmatmul.mubr.bf16.gmra.mxu1 %v5085_v35  ;;  %v5067_v48 = vsel %vm1357_vm7, %v5020_v32, %v4886_v18 }
 0x3b2   : > { %v3615_v53 = vadd.f32 %v3536_v22, %v11132_v17  ;;  %v4934_v4 = vpop.permute.xlu1 %4933  ;;  %v4596_v17 = vld [vmem:[#allocation2 + $0x188] sm:$0xff] }
 0x3b3   : > { %v4900_v54 = vpop.permute.xlu0 %4899  ;;  %v3538_v11 = vpop.f32.mrf.mxu1  ;;  %v5110_v9 = vsel %vm1406_vm5, %v4886_v18, %v4934_v4  ;;  %v4615_v30 = vpack.c.bf16 %v4596_v17, %v4595_v61  ;;  %v4584_v18 = vld [vmem:[#allocation2 + $0xf8] sm:$0xff] }
 0x3b4   : > { %v11544_v16 = vadd.f32 %v4475_v40, %v3615_v53  ;;  %v4583_v53 = vld [vmem:[#allocation2 + $0xf0] sm:$0xff] }
 0x3b5   : > { %v3539_v26 = vpop.f32.mrf.mxu1 }
 0x3b6   : > { %v3616_v63 = vadd.f32 %v3539_v26, %v11146_v33  ;;  %v4982_v21 = vpop.permute.xlu1 %4981  ;;  %v4609_v26 = vpack.c.bf16 %v4584_v18, %v4583_v53 }
 0x3b7   : > { %v4852_v7 = vpop.permute.xlu0 %4851  ;;  %v5142_v10 = vsel %vm1439_vm6, %v5110_v9, %v4982_v21  ;;  %v3541_v5 = vpop.f32.mrf.mxu1 }
 0x3b8   : > { %8894 = vmatprep.mubr.msk.bf16.mxu0 %vm2216_vm8, %v5142_v10  ;;  %v11552_v40 = vadd.f32 %v4478_v14, %v3616_v63  ;;  %v5041_v33 = vsel %vm339_vm2, %v4615_v30, %v4852_v7 }
 0x3b9   : > { %v4483_v12 = vpop.f32.mrf.mxu0  ;;  %5389 = vmatmul.mubr.bf16.gmra.mxu0 %v5067_v48  ;;  %v5088_v14 = vsel %vm1357_vm7, %v5041_v33, %v4900_v54 }
 0x3ba   : > { %v4948_v3 = vpop.permute.xlu1 %4947 }
 0x3bb   : > { %v4888_v52 = vpop.permute.xlu0 %4887  ;;  %v4485_v34 = vpop.f32.mrf.mxu0  ;;  %v5124_v41 = vsel %vm1406_vm5, %v4900_v54, %v4948_v3 }
 0x3bd   : > { %v4486_v39 = vpop.f32.mrf.mxu0 }
 0x3be   : > { %v4996_v49 = vpop.permute.xlu1 %4995 }
 0x3bf   : > { %v4840_v37 = vpop.permute.xlu0 %4839  ;;  %v5156_v35 = vsel %vm1439_vm6, %v5124_v41, %v4996_v49  ;;  %v4488_v22 = vpop.f32.mrf.mxu0 }
 0x3c0   : > { %8901 = vmatprep.mubr.msk.bf16.mxu1 %vm2216_vm8, %v5156_v35  ;;  %v5023_v7 = vsel %vm339_vm2, %v4609_v26, %v4840_v37 }
 0x3c1   : > { %v3544_v4 = vpop.f32.mrf.mxu1  ;;  %5445 = vmatmul.mubr.bf16.gmra.mxu1 %v5088_v14 }
 0x3c2   : > { %v3617_v59 = vadd.f32 %v3544_v4, %v11209_v29  ;;  %v4936_v32 = vpop.permute.xlu1 %4935  ;;  %v5070_v29 = vsel %vm1357_vm7, %v5023_v7, %v4888_v52 }
 0x3c3   : > { %v4902_v11 = vpop.permute.xlu0 %4901  ;;  %v3546_v9 = vpop.f32.mrf.mxu1  ;;  %v5112_v10 = vsel %vm1406_vm5, %v4888_v52, %v4936_v32 }
 0x3c4   : > { %v11560_v63 = vadd.f32 %v4483_v12, %v3617_v59 }
 0x3c5   : > { %v3547_v21 = vpop.f32.mrf.mxu1 }
 0x3c6   : > { %v3618_v5 = vadd.f32 %v3547_v21, %v11217_v13  ;;  %v4984_v17 = vpop.permute.xlu1 %4983 }
 0x3c7   : > { %v4854_v61 = vpop.permute.xlu0 %4853  ;;  %v5144_v54 = vsel %vm1439_vm6, %v5112_v10, %v4984_v17  ;;  %v3549_v48 = vpop.f32.mrf.mxu1  ;;  %v4601_v10 = vld [vmem:[#allocation2 + $0x1c8] sm:$0xff] }
 0x3c8   : > { %8895 = vmatprep.mubr.msk.bf16.mxu0 %vm2216_vm8, %v5144_v54  ;;  %v11568_v3 = vadd.f32 %v4486_v39, %v3618_v5  ;;  %v5044_v41 = vsel %vm339_vm2, %v11383_v38, %v4854_v61 }
 0x3c9   : > { %v4491_v12 = vpop.f32.mrf.mxu0  ;;  %5397 = vmatmul.mubr.bf16.gmra.mxu0 %v5070_v29  ;;  %v5091_v39 = vsel %vm1357_vm7, %v5044_v41, %v4902_v11 }
 0x3ca   : > { %v4950_v30 = vpop.permute.xlu1 %4949 }
 0x3cb   : > { %v4904_v34 = vpop.permute.xlu0 %4903  ;;  %v4493_v33 = vpop.f32.mrf.mxu0  ;;  %v5126_v37 = vsel %vm1406_vm5, %v4902_v11, %v4950_v30  ;;  %v4602_v11 = vld [vmem:[#allocation2 + $0x1d0] sm:$0xff] }
 0x3cd   : > { %v4494_v13 = vpop.f32.mrf.mxu0 }
 0x3ce   : > { %v4998_v49 = vpop.permute.xlu1 %4997 }
 0x3cf   : > { %v5158_v35 = vsel %vm1439_vm6, %v5126_v37, %v4998_v49  ;;  %v4496_v22 = vpop.f32.mrf.mxu0  ;;  %v4856_v52 = vpop.permute.xlu0 %4855 }
 0x3d0   : > { %8902 = vmatprep.mubr.msk.bf16.mxu1 %vm2216_vm8, %v5158_v35  ;;  %v5047_v32 = vsel %vm339_vm2, %v11423_v57, %v4856_v52  ;;  %v4618_v57 = vpack.c.bf16 %v4602_v11, %v4601_v10 }
 0x3d1   : > { %v3552_v53 = vpop.f32.mrf.mxu1  ;;  %5453 = vmatmul.mubr.bf16.gmra.mxu1 %v5091_v39 }
 0x3d2   : > { %v3619_v18 = vadd.f32 %v3552_v53, %v11229_v19  ;;  %v4952_v14 = vpop.permute.xlu1 %4951  ;;  %v5094_v19 = vsel %vm1357_vm7, %v5047_v32, %v4904_v34 }
 0x3d3   : > { %v3554_v4 = vpop.f32.mrf.mxu1  ;;  %v4906_v59 = vpop.permute.xlu0 %4905  ;;  %v5128_v9 = vsel %vm1406_vm5, %v4904_v34, %v4952_v14 }
 0x3d4   : > { %v11577_v38 = vadd.f32 %v4491_v12, %v3619_v18 }
 0x3d5   : > { %v3555_v26 = vpop.f32.mrf.mxu1 }
 0x3d6   : > { %v3620_v7 = vadd.f32 %v3555_v26, %v11237_v8  ;;  %v5000_v21 = vpop.permute.xlu1 %4999 }
 0x3d7   : > { %v5160_v5 = vsel %vm1439_vm6, %v5128_v9, %v5000_v21  ;;  %v3557_v61 = vpop.f32.mrf.mxu1  ;;  %v4858_v29 = vpop.permute.xlu0 %4857 }
 0x3d8   : > { %8903 = vmatprep.mubr.msk.bf16.mxu1 %vm2216_vm8, %v5160_v5  ;;  %v11586_v17 = vadd.f32 %v4494_v13, %v3620_v7  ;;  %v5050_v30 = vsel %vm339_vm2, %v4618_v57, %v4858_v29 }
 0x3d9   : > { %v4499_v54 = vpop.f32.mrf.mxu0  ;;  %5461 = vmatmul.mubr.bf16.gmra.mxu1 %v5094_v19  ;;  %v5097_v34 = vsel %vm1357_vm7, %v5050_v30, %v4906_v59 }
 0x3da   : > { %v4954_v48 = vpop.permute.xlu1 %4953 }
 0x3db   : > { %v4501_v12 = vpop.f32.mrf.mxu0  ;;  %v5130_v8 = vsel %vm1406_vm5, %v4906_v59, %v4954_v48 }
 0x3dd   : > { %v4502_v33 = vpop.f32.mrf.mxu0 }
 0x3de   : > { %v5002_v41 = vpop.permute.xlu1 %5001 }
 0x3df   : > { %v5162_v37 = vsel %vm1439_vm6, %v5130_v8, %v5002_v41  ;;  %v4504_v49 = vpop.f32.mrf.mxu0 }
 0x3e0   : > { %8904 = vmatprep.mubr.msk.bf16.mxu1 %vm2216_vm8, %v5162_v37 }
 0x3e1   : > { %v3560_v13 = vpop.f32.mrf.mxu1  ;;  %5469 = vmatmul.mubr.bf16.gmra.mxu1 %v5097_v34 }
 0x3e2   : > { %v3621_v35 = vadd.f32 %v3560_v13, %v11273_v27  ;;  %v11614_v13 = vld [vmem:[%s14639_s7] ss:$0 sm:$0xff] }
 0x3e3   : > { %v3562_v22 = vpop.f32.mrf.mxu1  ;;  %14855 = vst [vmem:[#allocation21_spill] sm:$0xff] %v11614_v13 }
 0x3e4   : > { %v11594_v52 = vadd.f32 %v4499_v54, %v3621_v35  ;;  %v5613_v35 = vld [vmem:[#allocation3] sm:$0xff] }
 0x3e5   : > { %v3563_v39 = vpop.f32.mrf.mxu1  ;;  %v5714_v22 = vld [vmem:[#allocation3 + $0x1] sm:$0xff] }
 0x3e6   : > { %14849 = vst [vmem:[#allocation15_spill] sm:$0xff] %v11594_v52  ;;  %v3622_v53 = vadd.f32 %v3563_v39, %v11281_v31 }
 0x3e7   : > { %v3565_v18 = vpop.f32.mrf.mxu1 }
 0x3e8   : > { %v11597_v14 = vadd.f32 %v4502_v33, %v3622_v53  ;;  %v5650_v18 = vmul.f32 %v11614_v13, %v5613_v35  ;;  %v5917_v35 = vld [vmem:[#allocation3 + $0xb] sm:$0xff] }
 0x3e9   : > { %v4507_v4 = vpop.f32.mrf.mxu0 }
 0x3ea   : > { %14850 = vst [vmem:[#allocation16_spill] sm:$0xff] %v11597_v14 }
 0x3eb   : > { %v4509_v32 = vpop.f32.mrf.mxu0 }
 0x3ec   : > { %v11627_v32 = vld [vmem:[%s14639_s7 + $0x2] ss:$0 sm:$0xff] }
 0x3ed   : > { %v4510_v26 = vpop.f32.mrf.mxu0 }
 0x3ef   : > { %v4512_v9 = vpop.f32.mrf.mxu0 }
 0x3f1   : > { %v3568_v7 = vpop.f32.mrf.mxu1 }
 0x3f2   : > { %v3623_v59 = vadd.f32 %v3568_v7, %v11292_v6 }
 0x3f3   : > { %v3570_v21 = vpop.f32.mrf.mxu1 }
 0x3f4   : > { %v11600_v10 = vadd.f32 %v4507_v4, %v3623_v59  ;;  %v5614_v21 = vld [vmem:[#allocation3 + $0x8] sm:$0xff] }
 0x3f5   : > { %v3571_v27 = vpop.f32.mrf.mxu1 }
 0x3f6   : > { %14851 = vst [vmem:[#allocation17_spill] sm:$0xff] %v11600_v10  ;;  %v3624_v11 = vadd.f32 %v3571_v27, %v11299_v45  ;;  %v5715_v27 = vld [vmem:[#allocation3 + $0x9] sm:$0xff] }
 0x3f7   : > { %v3573_v5 = vpop.f32.mrf.mxu1 }
 0x3f8   : > { %v11603_v61 = vadd.f32 %v4510_v26, %v3624_v11  ;;  %v5815_v26 = vld [vmem:[#allocation3 + $0x2] sm:$0xff] }
 0x3f9   : > { %v4515_v31 = vpop.f32.mrf.mxu0  ;;  %v5852_v5 = vmul.f32 %v11627_v32, %v5815_v26 }
 0x3fa   : > { %14852 = vst [vmem:[#allocation18_spill] sm:$0xff] %v11603_v61 }
 0x3fb   : > { %v4517_v19 = vpop.f32.mrf.mxu0 }
 0x3fc   : > { %v5916_v19 = vld [vmem:[#allocation3 + $0x3] sm:$0xff] }
 0x3fd   : > { %v4518_v54 = vpop.f32.mrf.mxu0 }
 0x3ff   : > { %v4520_v57 = vpop.f32.mrf.mxu0 }
 0x401   : > { %v3576_v48 = vpop.f32.mrf.mxu1 }
 0x402   : > { %v3625_v29 = vadd.f32 %v3576_v48, %v11335_v15  ;;  %v11619_v15 = vld [vmem:[%s14639_s7 + $0x1] ss:$0 sm:$0xff]  ;;  %v5651_v48 = vmul.f32 %v11614_v13, %v5614_v21  ;;  %v6018_v21 = vld [vmem:[#allocation3 + $0xc] sm:$0xff] }
 0x403   : > { %v3578_v12 = vpop.f32.mrf.mxu1  ;;  %14856 = vst [vmem:[#allocation22_spill] sm:$0xff] %v11619_v15  ;;  %v5751_v4 = vmul.f32 %v11619_v15, %v5714_v22 }
 0x404   : > { %v11606_v8 = vadd.f32 %v4515_v31, %v3625_v29  ;;  %v11636_v31 = vld [vmem:[%s14639_s7 + $0x3] ss:$0 sm:$0xff]  ;;  %v5752_v29 = vmul.f32 %v11619_v15, %v5715_v27 }
 0x405   : > { %v3579_v6 = vpop.f32.mrf.mxu1  ;;  %14858 = vst [vmem:[#allocation24_spill] sm:$0xff] %v11636_v31 }
 0x406   : > { %14853 = vst [vmem:[#allocation19_spill] sm:$0xff] %v11606_v8  ;;  %v3626_v30 = vadd.f32 %v3579_v6, %v11343_v56 }
 0x407   : > { %v3581_v33 = vpop.f32.mrf.mxu1 }
 0x408   : > { %v11609_v41 = vadd.f32 %v4518_v54, %v3626_v30  ;;  %v5953_v30 = vmul.f32 %v11636_v31, %v5916_v19  ;;  %v11646_v33 = vld [vmem:[%s14639_s7 + $0x4] ss:$0 sm:$0xff]  ;;  %v11661_v19 = vld [vmem:[%s14639_s7 + $0x6] ss:$0 sm:$0xff] }
 0x409   : > { %v4523_v45 = vpop.f32.mrf.mxu0 }
 0x40a   : > { %14854 = vst [vmem:[#allocation20_spill] sm:$0xff] %v11609_v41 }
 0x40b   : > { %v4525_v37 = vpop.f32.mrf.mxu0 }
 0x40d   : > { %v4526_v49 = vpop.f32.mrf.mxu0 }
 0x40f   : > { %v4528_v34 = vpop.f32.mrf.mxu0 }
 0x410   : > { %v5784_v34 = vadd.f32 %v5752_v29, %v5651_v48 }
 0x411   : > { %v3584_v56 = vpop.f32.mrf.mxu1 }
 0x412   : > { %v3627_v39 = vadd.f32 %v3584_v56, %v11354_v47  ;;  %v5783_v47 = vadd.f32 %v5751_v4, %v5650_v18  ;;  %v11653_v18 = vld [vmem:[%s14639_s7 + $0x5] ss:$0 sm:$0xff] }
 0x413   : > { %v3586_v53 = vpop.f32.mrf.mxu1  ;;  %14860 = vst [vmem:[#allocation26_spill] sm:$0xff] %v11653_v18 }
 0x414   : > { %v11629_v9 = vadd.f32 %v4523_v45, %v3627_v39  ;;  %v5884_v6 = vadd.f32 %v5852_v5, %v5783_v47  ;;  %v6017_v45 = vld [vmem:[#allocation3 + $0x4] sm:$0xff]  ;;  %v6119_v53 = vld [vmem:[#allocation3 + $0x18] sm:$0xff] }
 0x415   : > { %v3587_v7 = vpop.f32.mrf.mxu1  ;;  %v6054_v39 = vmul.f32 %v11646_v33, %v6017_v45  ;;  %v6156_v47 = vmul.f32 %v11653_v18, %v6119_v53  ;;  %v6220_v5 = vld [vmem:[#allocation3 + $0x19] sm:$0xff] }
 0x416   : > { %14857 = vst [vmem:[#allocation23_spill] sm:$0xff] %v11629_v9  ;;  %v3628_v59 = vadd.f32 %v3587_v7, %v11361_v28  ;;  %v5816_v28 = vld [vmem:[#allocation3 + $0xa] sm:$0xff]  ;;  %v5985_v56 = vadd.f32 %v5953_v30, %v5884_v6  ;;  %v5954_v7 = vmul.f32 %v11636_v31, %v5917_v35  ;;  %v11671_v35 = vld [vmem:[%s14639_s7 + $0x7] ss:$0 sm:$0xff] }
 0x417   : > { %v3589_v11 = vpop.f32.mrf.mxu1 }
 0x418   : > { %v11638_v54 = vadd.f32 %v4526_v49, %v3628_v59  ;;  %v5853_v49 = vmul.f32 %v11627_v32, %v5816_v28  ;;  %v6086_v11 = vadd.f32 %v6054_v39, %v5985_v56  ;;  %v11678_v56 = vld [vmem:[%s14638_s6] ss:$0 sm:$0xff] }
 0x419   : > { %v4531_v57 = vpop.f32.mrf.mxu0 }
 0x41a   : > { %14859 = vst [vmem:[#allocation25_spill] sm:$0xff] %v11638_v54  ;;  %v5885_v26 = vadd.f32 %v5853_v49, %v5784_v34  ;;  %v6188_v45 = vadd.f32 %v6156_v47, %v6086_v11  ;;  %v6257_v34 = vmul.f32 %v11661_v19, %v6220_v5  ;;  %v6321_v49 = vld [vmem:[#allocation3 + $0x1a] sm:$0xff] }
 0x41b   : > { %v4533_v12 = vpop.f32.mrf.mxu0  ;;  %v6422_v47 = vld [vmem:[#allocation3 + $0x1b] sm:$0xff] }
 0x41c   : > { %v5986_v28 = vadd.f32 %v5954_v7, %v5885_v26  ;;  %v6055_v12 = vmul.f32 %v11646_v33, %v6018_v21  ;;  %v6221_v26 = vld [vmem:[#allocation3 + $0x21] sm:$0xff]  ;;  %v6358_v21 = vmul.f32 %v11671_v35, %v6321_v49 }
 0x41d   : > { %v4534_v37 = vpop.f32.mrf.mxu0 }
 0x41f   : > { %v4536_v22 = vpop.f32.mrf.mxu0 }
 0x421   : > { %v3592_v4 = vpop.f32.mrf.mxu1 }
 0x422   : > { %v3629_v59 = vadd.f32 %v3592_v4, %v11371_v62  ;;  %v6120_v62 = vld [vmem:[#allocation3 + $0x20] sm:$0xff] }
 0x423   : > { %v3594_v27 = vpop.f32.mrf.mxu1  ;;  %v6157_v39 = vmul.f32 %v11653_v18, %v6120_v62 }
 0x424   : > { %v11663_v48 = vadd.f32 %v4531_v57, %v3629_v59  ;;  %v6289_v59 = vadd.f32 %v6257_v34, %v6188_v45  ;;  %v5652_v27 = vmul.f32 %v11614_v13, %v6119_v53  ;;  %v6322_v45 = vld [vmem:[#allocation3 + $0x22] sm:$0xff] }
 0x425   : > { %v3595_v29 = vpop.f32.mrf.mxu1 }
 0x426   : > { %14861 = vst [vmem:[#allocation27_spill] sm:$0xff] %v11663_v48  ;;  %v3630_v6 = vadd.f32 %v3595_v29, %v11379_v60  ;;  %v6087_v60 = vadd.f32 %v6055_v12, %v5986_v28  ;;  %v11689_v29 = vld [vmem:[%s14639_s7 + $0x8] ss:$0 sm:$0xff]  ;;  %v6390_v53 = vadd.f32 %v6358_v21, %v6289_v59  ;;  %v5955_v48 = vmul.f32 %v11636_v31, %v6422_v47 }
 0x427   : > { %v3597_v30 = vpop.f32.mrf.mxu1 }
 0x428   : > { %v11673_v22 = vadd.f32 %v4534_v37, %v3630_v6  ;;  %v5753_v37 = vmul.f32 %v11619_v15, %v6220_v5  ;;  %v6189_v12 = vadd.f32 %v6157_v39, %v6087_v60  ;;  %v6459_v5 = vmul.f32 %v11689_v29, %v6422_v47  ;;  %v11700_v60 = vld [vmem:[%s14639_s7 + $0x9] ss:$0 sm:$0xff] }
 0x429   : > { %v5350_v57 = vpop.f32.mrf.mxu0  ;;  %v5754_v39 = vmul.f32 %v11619_v15, %v6221_v26  ;;  %v6524_v47 = vld [vmem:[#allocation3 + $0x24] sm:$0xff] }
 0x42a   : > { %14862 = vst [vmem:[#allocation28_spill] sm:$0xff] %v11673_v22  ;;  %v5477_v4 = vadd.f32 %v5350_v57, %v11395_v46  ;;  %v6258_v46 = vmul.f32 %v11661_v19, %v6221_v26  ;;  %v5785_v57 = vadd.f32 %v5753_v37, %v5652_v27  ;;  %v6523_v22 = vld [vmem:[#allocation3 + $0x1c] sm:$0xff]  ;;  %v6359_v27 = vmul.f32 %v11671_v35, %v6322_v45 }
 0x42b   : > { %v5352_v7 = vpop.f32.mrf.mxu0 }
 0x42c   : > { %v5516_v11 = vadd.f32 %v11678_v56, %v5477_v4  ;;  %v5854_v4 = vmul.f32 %v11627_v32, %v6321_v49  ;;  %v6290_v21 = vadd.f32 %v6258_v46, %v6189_v12  ;;  %v5855_v12 = vmul.f32 %v11627_v32, %v6322_v45 }
 0x42d   : > { %v5353_v28 = vpop.f32.mrf.mxu0 }
 0x42e   : > { %v5548_v6 = vmax.f32 %v5516_v11, 0.0  ;;  %v5478_v30 = vadd.f32 %v5353_v28, %v11407_v51  ;;  %v5653_v51 = vmul.f32 %v11614_v13, %v6120_v62  ;;  %v6423_v11 = vld [vmem:[#allocation3 + $0x23] sm:$0xff]  ;;  %v6391_v54 = vadd.f32 %v6359_v27, %v6290_v21 }
 0x42f   : > { %v5355_v34 = vpop.f32.mrf.mxu0 }
 0x430   : > { %5581 = vst.msk [vmem:[#allocation3 + $0x32] sm:$0xff] %vm339_vm2, %v5548_v6  ;;  %v5517_v7 = vadd.f32 %v11678_v56, %v5478_v30  ;;  %v6491_v6 = vadd.f32 %v6459_v5, %v6390_v53  ;;  %v6560_v30 = vmul.f32 %v11700_v60, %v6523_v22  ;;  %v5886_v34 = vadd.f32 %v5854_v4, %v5785_v57  ;;  %v11716_v53 = vld [vmem:[%s14639_s7 + $0xa] ss:$0 sm:$0xff] }
 0x431   : > { %v5406_v59 = vpop.f32.mrf.mxu1  ;;  %v5786_v26 = vadd.f32 %v5754_v39, %v5653_v51  ;;  %14863 = vst [vmem:[#allocation29_spill] sm:$0xff] %v11716_v53  ;;  %v6056_v51 = vmul.f32 %v11646_v33, %v6523_v22 }
 0x432   : > { %v5549_v37 = vmax.f32 %v5517_v7, 0.0  ;;  %v5491_v49 = vadd.f32 %v5406_v59, %v11528_v25  ;;  %v6460_v7 = vmul.f32 %v11689_v29, %v6423_v11  ;;  %v6592_v4 = vadd.f32 %v6560_v30, %v6491_v6 }
 0x433   : > { %v5408_v28 = vpop.f32.mrf.mxu1  ;;  %v5887_v21 = vadd.f32 %v5855_v12, %v5786_v26 }
 0x434   : > { %5582 = vst.msk [vmem:[#allocation3 + $0x3a] sm:$0xff] %vm339_vm2, %v5549_v37  ;;  %v5530_v62 = vadd.f32 %v11678_v56, %v5491_v49  ;;  %v5987_v37 = vadd.f32 %v5955_v48, %v5886_v34  ;;  %v11726_v28 = vld [vmem:[%s14639_s7 + $0xb] ss:$0 sm:$0xff]  ;;  %v6492_v6 = vadd.f32 %v6460_v7, %v6391_v54  ;;  %v6561_v48 = vmul.f32 %v11700_v60, %v6524_v47  ;;  %v11737_v54 = vld [vmem:[%s14639_s7 + $0xc] ss:$0 sm:$0xff] }
 0x435   : > { %v5409_v46 = vpop.f32.mrf.mxu1  ;;  %14864 = vst [vmem:[#allocation30_spill] sm:$0xff] %v11726_v28  ;;  %14865 = vst [vmem:[#allocation31_spill] sm:$0xff] %v11737_v54 }
 0x436   : > { %v5562_v25 = vmax.f32 %v5530_v62, 0.0  ;;  %v5492_v59 = vadd.f32 %v5409_v46, %v11536_v23  ;;  %v5956_v23 = vmul.f32 %v11636_v31, %v6423_v11  ;;  %v6088_v12 = vadd.f32 %v6056_v51, %v5987_v37 }
 0x437   : > { %v5617_v5 = vld [vmem:[#allocation3 + $0x30] sm:$0xff]  ;;  %v5411_v57 = vpop.f32.mrf.mxu1  ;;  %v6593_v37 = vadd.f32 %v6561_v48, %v6492_v6 }
 0x438   : > { %v5718_v45 = vld [vmem:[#allocation3 + $0x31] sm:$0xff]  ;;  %5595 = vst.msk [vmem:[#allocation3 + $0xda] sm:$0xff] %vm339_vm2, %v5562_v25  ;;  %v5531_v39 = vadd.f32 %v11678_v56, %v5492_v59  ;;  %v6661_v49 = vmul.f32 %v11716_v53, %v5617_v5  ;;  %v5654_v34 = vmul.f32 %v11614_v13, %v5617_v5  ;;  %v5988_v7 = vadd.f32 %v5956_v23, %v5887_v21  ;;  %v11752_v23 = vld [vmem:[%s14639_s7 + $0xd] ss:$0 sm:$0xff] }
 0x439   : > { %v5358_v27 = vpop.f32.mrf.mxu0  ;;  %v5755_v62 = vmul.f32 %v11619_v15, %v5718_v45  ;;  %v5819_v46 = vld [vmem:[#allocation3 + $0x32] sm:$0xff]  ;;  %v6762_v59 = vmul.f32 %v11726_v28, %v5718_v45  ;;  %v6057_v57 = vmul.f32 %v11646_v33, %v6524_v47  ;;  %14866 = vst [vmem:[#allocation32_spill] sm:$0xff] %v11752_v23 }
 0x43a   : > { %v5563_v22 = vmax.f32 %v5531_v39, 0.0  ;;  %v5479_v30 = vadd.f32 %v5358_v27, %v11418_v36  ;;  %v6693_v11 = vadd.f32 %v6661_v49, %v6592_v4  ;;  %v6158_v36 = vmul.f32 %v11653_v18, %v5617_v5 }
 0x43b   : > { %v5360_v26 = vpop.f32.mrf.mxu0  ;;  %v5618_v25 = vld [vmem:[#allocation3 + $0x38] sm:$0xff]  ;;  %v6863_v41 = vmul.f32 %v11737_v54, %v5819_v46  ;;  %v5856_v5 = vmul.f32 %v11627_v32, %v5819_v46 }
 0x43c   : > { %5596 = vst.msk [vmem:[#allocation3 + $0xe2] sm:$0xff] %vm339_vm2, %v5563_v22  ;;  %v5518_v39 = vadd.f32 %v11678_v56, %v5479_v30  ;;  %v11742_v51 = vld [vmem:[#allocation3 + $0x39] sm:$0xff]  ;;  %v6794_v49 = vadd.f32 %v6762_v59, %v6693_v11  ;;  %v5787_v22 = vadd.f32 %v5755_v62, %v5654_v34  ;;  %v6662_v8 = vmul.f32 %v11716_v53, %v5618_v25 }
 0x43d   : > { %v5361_v4 = vpop.f32.mrf.mxu0  ;;  %v5920_v21 = vld [vmem:[#allocation3 + $0x33] sm:$0xff]  ;;  %v6190_v6 = vadd.f32 %v6158_v36, %v6088_v12  ;;  %v6763_v62 = vmul.f32 %v11726_v28, %v11742_v51  ;;  %v6259_v11 = vmul.f32 %v11661_v19, %v5718_v45  ;;  %v5655_v59 = vmul.f32 %v11614_v13, %v5618_v25 }
 0x43e   : > { %v5480_v27 = vadd.f32 %v5361_v4, %v11429_v2  ;;  %v5550_v26 = vmax.f32 %v5518_v39, 0.0  ;;  %v6089_v2 = vadd.f32 %v6057_v57, %v5988_v7  ;;  %v11754_v48 = vld [vmem:[#allocation3 + $0x3a] sm:$0xff]  ;;  %v6895_v30 = vadd.f32 %v6863_v41, %v6794_v49 }
 0x43f   : > { %v5363_v9 = vpop.f32.mrf.mxu0  ;;  %v6694_v34 = vadd.f32 %v6662_v8, %v6593_v37  ;;  %v5756_v39 = vmul.f32 %v11619_v15, %v11742_v51  ;;  %v11763_v4 = vld [vmem:[#allocation3 + $0x3b] sm:$0xff]  ;;  %v11766_v57 = vadd.f32 %v5856_v5, %v5787_v22  ;;  %v6964_v8 = vmul.f32 %v11752_v23, %v5920_v21  ;;  %v11784_v22 = vld [vmem:[%s14639_s7 + $0xe] ss:$0 sm:$0xff] }
 0x440   : > { %v5519_v47 = vadd.f32 %v11678_v56, %v5480_v27  ;;  %5583 = vst.msk [vmem:[#allocation3 + $0x4a] sm:$0xff] %vm339_vm2, %v5550_v26  ;;  %v6021_v12 = vld [vmem:[#allocation3 + $0x34] sm:$0xff]  ;;  %v6360_v27 = vmul.f32 %v11671_v35, %v5819_v46  ;;  %v11772_v45 = vmul.f32 %v11627_v32, %v11754_v48  ;;  %v11775_v49 = vmul.f32 %v11636_v31, %v5920_v21  ;;  %v11777_v26 = vld [vmem:[#allocation3 + $0x3c] sm:$0xff] }
 0x441   : > { %v5414_v9 = vpop.f32.mrf.mxu1  ;;  %v6795_v37 = vadd.f32 %v6763_v62, %v6694_v34  ;;  %14867 = vst [vmem:[#allocation33_spill] sm:$0xff] %v11784_v22  ;;  %v6291_v5 = vadd.f32 %v6259_v11, %v6190_v6  ;;  %v11788_v46 = vmul.f32 %v11636_v31, %v11763_v4  ;;  %v6996_v34 = vadd.f32 %v6964_v8, %v6895_v30 }
 0x442   : > { %v5551_v36 = vmax.f32 %v5519_v47, 0.0  ;;  %v5493_v7 = vadd.f32 %v5414_v9, %v11544_v16  ;;  %v11791_v47 = vmul.f32 %v11646_v33, %v6021_v12  ;;  %v6864_v62 = vmul.f32 %v11737_v54, %v11754_v48 }
 0x443   : > { %v5416_v41 = vpop.f32.mrf.mxu1  ;;  %v6159_v24 = vmul.f32 %v11653_v18, %v5618_v25  ;;  %v7065_v11 = vmul.f32 %v11784_v22, %v6021_v12  ;;  %v6965_v30 = vmul.f32 %v11752_v23, %v11763_v4 }
 0x444   : > { %5584 = vst.msk [vmem:[#allocation3 + $0x52] sm:$0xff] %vm339_vm2, %v5551_v36  ;;  %v5532_v16 = vadd.f32 %v11678_v56, %v5493_v7  ;;  %v11795_v36 = vadd.f32 %v5756_v39, %v5655_v59  ;;  %v6896_v61 = vadd.f32 %v6864_v62, %v6795_v37  ;;  %v7066_v59 = vmul.f32 %v11784_v22, %v11777_v26 }
 0x445   : > { %v5417_v9 = vpop.f32.mrf.mxu1  ;;  %v6562_v37 = vmul.f32 %v11700_v60, %v6021_v12  ;;  %v7097_v10 = vadd.f32 %v7065_v11, %v6996_v34 }
 0x446   : > { %v5564_v7 = vmax.f32 %v5532_v16, 0.0  ;;  %v5494_v41 = vadd.f32 %v5417_v9, %v11552_v40  ;;  %v6392_v16 = vadd.f32 %v6360_v27, %v6291_v5  ;;  %v6461_v9 = vmul.f32 %v11689_v29, %v5920_v21 }
 0x447   : > { %v5419_v6 = vpop.f32.mrf.mxu1  ;;  %v11809_v39 = vld [vmem:[#allocation3 + $0x48] sm:$0xff]  ;;  %v6260_v21 = vmul.f32 %v11661_v19, %v11742_v51  ;;  %v6997_v1 = vadd.f32 %v6965_v30, %v6896_v61  ;;  %v11845_v51 = vld [vmem:[%s14639_s7 + $0x10] ss:$0 sm:$0xff] }
 0x448   : > { %v11811_v40 = vld [vmem:[#allocation3 + $0x49] sm:$0xff]  ;;  %5597 = vst.msk [vmem:[#allocation3 + $0xf2] sm:$0xff] %vm339_vm2, %v5564_v7  ;;  %v5533_v8 = vadd.f32 %v11678_v56, %v5494_v41  ;;  %v5656_v62 = vmul.f32 %v11614_v13, %v11809_v39  ;;  %v7167_v43 = vmul.f32 %v11803_v42, %v11809_v39  ;;  %v6191_v41 = vadd.f32 %v6159_v24, %v6089_v2 }
 0x449   : > { %v11813_v25 = vld [vmem:[#allocation3 + $0x4a] sm:$0xff]  ;;  %v5757_v6 = vmul.f32 %v11619_v15, %v11811_v40  ;;  %v5366_v31 = vpop.f32.mrf.mxu0  ;;  %v6493_v2 = vadd.f32 %v6461_v9, %v6392_v16  ;;  %v6663_v61 = vmul.f32 %v11716_v53, %v11809_v39 }
 0x44a   : > { %v5565_v50 = vmax.f32 %v5533_v8, 0.0  ;;  %v5481_v7 = vadd.f32 %v5366_v31, %v11439_v58  ;;  %v5858_v12 = vmul.f32 %v11627_v32, %v11813_v25  ;;  %v7199_v11 = vadd.f32 %v7167_v43, %v7097_v10  ;;  %v11863_v9 = vld [vmem:[%s14639_s7 + $0x11] ss:$0 sm:$0xff] }
 0x44b   : > { %v5789_v27 = vadd.f32 %v5757_v6, %v5656_v62  ;;  %v11830_v5 = vld [vmem:[#allocation3 + $0x50] sm:$0xff]  ;;  %v5368_v34 = vpop.f32.mrf.mxu0  ;;  %v7268_v10 = vmul.f32 %v11845_v51, %v11811_v40 }
 0x44c   : > { %14868 = vst [vmem:[#allocation34_spill] sm:$0xff] %v11830_v5  ;;  %v11832_v14 = vld [vmem:[#allocation3 + $0x51] sm:$0xff]  ;;  %v5657_v58 = vmul.f32 %v11614_v13, %v11830_v5  ;;  %5598 = vst.msk [vmem:[#allocation3 + $0xfa] sm:$0xff] %vm339_vm2, %v5565_v50  ;;  %v5520_v31 = vadd.f32 %v11678_v56, %v5481_v7  ;;  %v6361_v50 = vmul.f32 %v11671_v35, %v11754_v48 }
 0x44d   : > { %v11834_v52 = vld [vmem:[#allocation3 + $0x52] sm:$0xff]  ;;  %v5758_v24 = vmul.f32 %v11619_v15, %v11832_v14  ;;  %v11847_v8 = vadd.f32 %v5858_v12, %v5789_v27  ;;  %v5369_v43 = vpop.f32.mrf.mxu0  ;;  %v7300_v12 = vadd.f32 %v7268_v10, %v7199_v11  ;;  %v7369_v34 = vmul.f32 %v11863_v9, %v11813_v25 }
 0x44e   : > { %v5859_v62 = vmul.f32 %v11627_v32, %v11834_v52  ;;  %v11857_v6 = vld [vmem:[#allocation3 + $0x4b] sm:$0xff]  ;;  %v5552_v7 = vmax.f32 %v5520_v31, 0.0  ;;  %v5482_v16 = vadd.f32 %v5369_v43, %v11447_v20  ;;  %v7098_v48 = vadd.f32 %v7066_v59, %v6997_v1 }
 0x44f   : > { %14869 = vst [vmem:[#allocation35_spill] sm:$0xff] %v11847_v8  ;;  %v5790_v30 = vadd.f32 %v5758_v24, %v5657_v58  ;;  %v5371_v27 = vpop.f32.mrf.mxu0  ;;  %v7168_v58 = vmul.f32 %v11803_v42, %v11830_v5  ;;  %v11876_v24 = vld [vmem:[%s14639_s7 + $0x12] ss:$0 sm:$0xff]  ;;  %v6594_v31 = vadd.f32 %v6562_v37, %v6493_v2  ;;  %v6292_v11 = vadd.f32 %v6260_v21, %v6191_v41  ;;  %v11887_v37 = vld [vmem:[#allocation3 + $0x53] sm:$0xff] }
 0x450   : > { %5585 = vst.msk [vmem:[#allocation3 + $0x62] sm:$0xff] %vm339_vm2, %v5552_v7  ;;  %v5521_v20 = vadd.f32 %v11678_v56, %v5482_v16  ;;  %v7401_v10 = vadd.f32 %v7369_v34, %v7300_v12  ;;  %v7470_v1 = vmul.f32 %v11876_v24, %v11857_v6  ;;  %14871 = vst [vmem:[#allocation37_spill] sm:$0xff] %v11887_v37 }
 0x451   : > { %v11869_v32 = vadd.f32 %v5859_v62, %v5790_v30  ;;  %v5422_v43 = vpop.f32.mrf.mxu1  ;;  %v7200_v59 = vadd.f32 %v7168_v58, %v7098_v48  ;;  %v7269_v30 = vmul.f32 %v11845_v51, %v11832_v14  ;;  %v11882_v62 = vld [vmem:[#allocation3 + $0x4c] sm:$0xff]  ;;  %v6695_v27 = vadd.f32 %v6663_v61, %v6594_v31  ;;  %v11893_v48 = vld [vmem:[#allocation3 + $0x54] sm:$0xff] }
 0x452   : > { %v5553_v7 = vmax.f32 %v5521_v20, 0.0  ;;  %v5495_v16 = vadd.f32 %v5422_v43, %v11560_v63  ;;  %v7502_v21 = vadd.f32 %v7470_v1, %v7401_v10  ;;  %v7370_v12 = vmul.f32 %v11863_v9, %v11834_v52  ;;  %14872 = vst [vmem:[#allocation38_spill] sm:$0xff] %v11893_v48  ;;  %v11900_v61 = vld [vmem:[%s14639_s7 + $0x13] ss:$0 sm:$0xff] }
 0x453   : > { %14870 = vst [vmem:[#allocation36_spill] sm:$0xff] %v11869_v32  ;;  %v6764_v32 = vmul.f32 %v11726_v28, %v11811_v40  ;;  %v5424_v41 = vpop.f32.mrf.mxu1  ;;  %v7301_v2 = vadd.f32 %v7269_v30, %v7200_v59  ;;  %v6462_v34 = vmul.f32 %v11689_v29, %v11763_v4  ;;  %v6865_v20 = vmul.f32 %v11737_v54, %v11813_v25 }
 0x454   : > { %5586 = vst.msk [vmem:[#allocation3 + $0x6a] sm:$0xff] %vm339_vm2, %v5553_v7  ;;  %v5534_v63 = vadd.f32 %v11678_v56, %v5495_v16  ;;  %v6563_v31 = vmul.f32 %v11700_v60, %v11777_v26  ;;  %v7571_v4 = vmul.f32 %v11900_v61, %v11882_v62  ;;  %v6393_v1 = vadd.f32 %v6361_v50, %v6292_v11 }
 0x455   : > { %v6796_v58 = vadd.f32 %v6764_v32, %v6695_v27  ;;  %v5425_v43 = vpop.f32.mrf.mxu1  ;;  %v7402_v10 = vadd.f32 %v7370_v12, %v7301_v2  ;;  %v11910_v59 = vadd.f32 %v11775_v49, %v11766_v57  ;;  %v7471_v32 = vmul.f32 %v11876_v24, %v11887_v37  ;;  %v11920_v2 = vld [vmem:[%s14639_s7 + $0x14] ss:$0 sm:$0xff] }
 0x456   : > { %v5566_v30 = vmax.f32 %v5534_v63, 0.0  ;;  %v5496_v7 = vadd.f32 %v5425_v43, %v11568_v3  ;;  %v7603_v41 = vadd.f32 %v7571_v4, %v7502_v21  ;;  %v7572_v57 = vmul.f32 %v11900_v61, %v11893_v48  ;;  %v11941_v43 = vld [vmem:[%s14639_s7 + $0x15] ss:$0 sm:$0xff] }
 0x457   : > { %v6897_v16 = vadd.f32 %v6865_v20, %v6796_v58  ;;  %v5427_v27 = vpop.f32.mrf.mxu1  ;;  %v11915_v8 = vld [vmem:[#allocation3 + $0x60] sm:$0xff]  ;;  %v6966_v3 = vmul.f32 %v11752_v23, %v11857_v6  ;;  %v7067_v49 = vmul.f32 %v11784_v22, %v11882_v62  ;;  %v7503_v63 = vadd.f32 %v7471_v32, %v7402_v10 }
 0x458   : > { %v11922_v50 = vld [vmem:[#allocation3 + $0x61] sm:$0xff]  ;;  %5599 = vst.msk [vmem:[#allocation3 + $0x10a] sm:$0xff] %vm339_vm2, %v5566_v30  ;;  %v5535_v11 = vadd.f32 %v11678_v56, %v5496_v7  ;;  %v7673_v21 = vmul.f32 %v11920_v2, %v11915_v8  ;;  %v6664_v58 = vmul.f32 %v11716_v53, %v11830_v5  ;;  %v6494_v27 = vadd.f32 %v6462_v34, %v6393_v1  ;;  %v11953_v5 = vld [vmem:[%s14639_s7 + $0x16] ss:$0 sm:$0xff]  ;;  %v11994_v53 = vld [vmem:[%s14639_s7 + $0x18] ss:$0 sm:$0xff] }
 0x459   : > { %14873 = vst [vmem:[#allocation39_spill] sm:$0xff] %v11922_v50  ;;  %v11934_v12 = vld [vmem:[#allocation3 + $0x62] sm:$0xff]  ;;  %v5374_v20 = vpop.f32.mrf.mxu0  ;;  %v6998_v4 = vadd.f32 %v6966_v3, %v6897_v16  ;;  %v6765_v30 = vmul.f32 %v11726_v28, %v11832_v14  ;;  %v6866_v7 = vmul.f32 %v11737_v54, %v11834_v52  ;;  %v7774_v13 = vmul.f32 %v11941_v43, %v11922_v50 }
 0x45a   : > { %14874 = vst [vmem:[#allocation40_spill] sm:$0xff] %v11934_v12  ;;  %v5567_v15 = vmax.f32 %v5535_v11, 0.0  ;;  %v5483_v10 = vadd.f32 %v5374_v20, %v11462_v0  ;;  %v7705_v32 = vadd.f32 %v7673_v21, %v7603_v41  ;;  %v7875_v34 = vmul.f32 %v11953_v5, %v11934_v12 }
 0x45b   : > { %v5376_v16 = vpop.f32.mrf.mxu0  ;;  %v11957_v14 = vld [vmem:[#allocation3 + $0x63] sm:$0xff]  ;;  %v7169_v0 = vmul.f32 %v11803_v42, %v11915_v8  ;;  %v6967_v52 = vmul.f32 %v11752_v23, %v11887_v37  ;;  %v11967_v41 = vmul.f32 %v11784_v22, %v11893_v48  ;;  %v7604_v21 = vadd.f32 %v7572_v57, %v7503_v63  ;;  %v11978_v37 = vld [vmem:[%s14639_s7 + $0x17] ss:$0 sm:$0xff] }
 0x45c   : > { %v11959_v1 = vld [vmem:[#allocation3 + $0x68] sm:$0xff]  ;;  %5600 = vst.msk [vmem:[#allocation3 + $0x112] sm:$0xff] %vm339_vm2, %v5567_v15  ;;  %v5522_v3 = vadd.f32 %v11678_v56, %v5483_v10  ;;  %v7806_v11 = vadd.f32 %v7774_v13, %v7705_v32  ;;  %v7270_v16 = vmul.f32 %v11845_v51, %v11922_v50  ;;  %v7099_v48 = vadd.f32 %v7067_v49, %v6998_v4 }
 0x45d   : > { %v11971_v20 = vld [vmem:[#allocation3 + $0x69] sm:$0xff]  ;;  %v5377_v54 = vpop.f32.mrf.mxu0  ;;  %v7674_v15 = vmul.f32 %v11920_v2, %v11959_v1  ;;  %v7371_v13 = vmul.f32 %v11863_v9, %v11934_v12  ;;  %v6595_v57 = vadd.f32 %v6563_v31, %v6494_v27  ;;  %v7976_v22 = vmul.f32 %v11978_v37, %v11957_v14 }
 0x45e   : > { %v11980_v23 = vld [vmem:[#allocation3 + $0x64] sm:$0xff]  ;;  %v5554_v63 = vmax.f32 %v5522_v3, 0.0  ;;  %v5484_v10 = vadd.f32 %v5377_v54, %v11471_v44  ;;  %v7907_v32 = vadd.f32 %v7875_v34, %v7806_v11  ;;  %v7775_v4 = vmul.f32 %v11941_v43, %v11971_v20 }
 0x45f   : > { %v11989_v28 = vld [vmem:[#allocation3 + $0x6a] sm:$0xff]  ;;  %v5379_v50 = vpop.f32.mrf.mxu0  ;;  %v7706_v49 = vadd.f32 %v7674_v15, %v7604_v21  ;;  %v7201_v31 = vadd.f32 %v7169_v0, %v7099_v48  ;;  %v6160_v44 = vmul.f32 %v11653_v18, %v11809_v39  ;;  %v6696_v3 = vadd.f32 %v6664_v58, %v6595_v57 }
 0x460   : > { %5587 = vst.msk [vmem:[#allocation3 + $0x7a] sm:$0xff] %vm339_vm2, %v5554_v63  ;;  %v5523_v54 = vadd.f32 %v11678_v56, %v5484_v10  ;;  %v8008_v27 = vadd.f32 %v7976_v22, %v7907_v32  ;;  %v8077_v50 = vmul.f32 %v11994_v53, %v11980_v23  ;;  %v12004_v34 = vld [vmem:[#allocation3 + $0x6b] sm:$0xff]  ;;  %v7876_v15 = vmul.f32 %v11953_v5, %v11989_v28 }
 0x461   : > { %v5430_v11 = vpop.f32.mrf.mxu1  ;;  %v7807_v21 = vadd.f32 %v7775_v4, %v7706_v49  ;;  %v7302_v48 = vadd.f32 %v7270_v16, %v7201_v31  ;;  %v6090_v39 = vadd.f32 %v11791_v47, %v11910_v59  ;;  %v12011_v22 = vld [vmem:[#allocation3 + $0x6c] sm:$0xff]  ;;  %v6797_v32 = vadd.f32 %v6765_v30, %v6696_v3 }
 0x462   : > { %v5555_v0 = vmax.f32 %v5523_v54, 0.0  ;;  %v5497_v63 = vadd.f32 %v5430_v11, %v11577_v38  ;;  %v8109_v10 = vadd.f32 %v8077_v50, %v8008_v27  ;;  %v7977_v58 = vmul.f32 %v11978_v37, %v12004_v34 }
 0x463   : > { %v5432_v18 = vpop.f32.mrf.mxu1  ;;  %v7908_v12 = vadd.f32 %v7876_v15, %v7807_v21  ;;  %v7403_v57 = vadd.f32 %v7371_v13, %v7302_v48  ;;  %v7472_v49 = vmul.f32 %v11876_v24, %v11957_v14  ;;  %v6898_v38 = vadd.f32 %v6866_v7, %v6797_v32 }
 0x464   : > { %5588 = vst.msk [vmem:[#allocation3 + $0x82] sm:$0xff] %vm339_vm2, %v5555_v0  ;;  %v5536_v47 = vadd.f32 %v11678_v56, %v5497_v63  ;;  %v8143_v59 = vsel %vm339_vm2, %v8109_v10, 0.0  ;;  %v6192_v16 = vadd.f32 %v6160_v44, %v6090_v39  ;;  %v8078_v18 = vmul.f32 %v11994_v53, %v12011_v22 }
 0x465   : > { %v5433_v4 = vpop.f32.mrf.mxu1  ;;  %8144 = vadd.xlane.f32.xlu0 %v8143_v59  ;;  %v8009_v30 = vadd.f32 %v7977_v58, %v7908_v12  ;;  %v7504_v31 = vadd.f32 %v7472_v49, %v7403_v57  ;;  %v6261_v13 = vmul.f32 %v11661_v19, %v11811_v40  ;;  %v7573_v50 = vmul.f32 %v11900_v61, %v11980_v23 }
 0x466   : > { %v5568_v54 = vmax.f32 %v5536_v47, 0.0  ;;  %v5498_v27 = vadd.f32 %v5433_v4, %v11586_v17  ;;  %v6999_v3 = vadd.f32 %v6967_v52, %v6898_v38  ;;  %v7170_v12 = vmul.f32 %v11803_v42, %v11959_v1 }
 0x467   : > { %v5435_v11 = vpop.f32.mrf.mxu1  ;;  %v8110_v7 = vadd.f32 %v8078_v18, %v8009_v30  ;;  %v12027_v44 = vld [vmem:[#allocation3 + $0x78] sm:$0xff]  ;;  %v6293_v15 = vadd.f32 %v6261_v13, %v6192_v16  ;;  %v6362_v40 = vmul.f32 %v11671_v35, %v11813_v25  ;;  %v5889_v17 = vadd.f32 %v11772_v45, %v11795_v36 }
 0x468   : > { %v12029_v21 = vld [vmem:[#allocation3 + $0x79] sm:$0xff]  ;;  %5601 = vst.msk [vmem:[#allocation3 + $0x122] sm:$0xff] %vm339_vm2, %v5568_v54  ;;  %v5537_v52 = vadd.f32 %v11678_v56, %v5498_v27  ;;  %v7605_v48 = vadd.f32 %v7573_v50, %v7504_v31  ;;  %v7675_v39 = vmul.f32 %v11920_v2, %v12027_v44  ;;  %v7100_v32 = vadd.f32 %v11967_v41, %v6999_v3 }
 0x469   : > { %v5382_v0 = vpop.f32.mrf.mxu0  ;;  %v8146_v63 = vsel %vm339_vm2, %v8110_v7, 0.0  ;;  %v12042_v10 = vld [vmem:[#allocation3 + $0x7a] sm:$0xff]  ;;  %v6394_v58 = vadd.f32 %v6362_v40, %v6293_v15  ;;  %v6463_v25 = vmul.f32 %v11689_v29, %v11857_v6  ;;  %v7776_v49 = vmul.f32 %v11941_v43, %v12029_v21 }
 0x46a   : > { %v5569_v45 = vmax.f32 %v5537_v52, 0.0  ;;  %v5485_v36 = vadd.f32 %v5382_v0, %v11480_v55  ;;  %8147 = vadd.xlane.f32.xlu1 %v8146_v63  ;;  %v7707_v57 = vadd.f32 %v7675_v39, %v7605_v48  ;;  %v6059_v47 = vmul.f32 %v11646_v33, %v11777_v26  ;;  %v14875_v50 = vld [vmem:[#allocation29_spill] sm:$0xff]  ;;  %v14876_v7 = vld [vmem:[#allocation10_spill] sm:$0xff] }
 0x46b   : > { %v5384_v59 = vpop.f32.mrf.mxu0  ;;  %v12052_v38 = vld [vmem:[#allocation3 + $0x7b] sm:$0xff]  ;;  %v7202_v16 = vadd.f32 %v7170_v12, %v7100_v32  ;;  %v7271_v41 = vmul.f32 %v11845_v51, %v11971_v20  ;;  %v6495_v4 = vadd.f32 %v6463_v25, %v6394_v58  ;;  %v7877_v18 = vmul.f32 %v11953_v5, %v12042_v10  ;;  %v14877_v58 = vld [vmem:[#allocation39_spill] sm:$0xff] }
 0x46c   : > { %5602 = vst.msk [vmem:[#allocation3 + $0x12a] sm:$0xff] %vm339_vm2, %v5569_v45  ;;  %v5524_v55 = vadd.f32 %v11678_v56, %v5485_v36  ;;  %v7808_v30 = vadd.f32 %v7776_v49, %v7707_v57  ;;  %v5990_v31 = vadd.f32 %v11788_v46, %v5889_v17  ;;  %v12061_v33 = vld [vmem:[#allocation3 + $0x7c] sm:$0xff]  ;;  %v7372_v54 = vmul.f32 %v11863_v9, %v11989_v28 }
 0x46d   : > { %v5385_v13 = vpop.f32.mrf.mxu0  ;;  %v7303_v26 = vadd.f32 %v7271_v41, %v7202_v16  ;;  %v6564_v27 = vmul.f32 %v11700_v60, %v11882_v62  ;;  %v6665_v3 = vmul.f32 %v14875_v50, %v11915_v8  ;;  %v7978_v46 = vmul.f32 %v11978_v37, %v12052_v38  ;;  %v12072_v40 = vld [vmem:[#allocation3 + $0x80] sm:$0xff] }
 0x46e   : > { %v5556_v11 = vmax.f32 %v5524_v55, 0.0  ;;  %v5486_v12 = vadd.f32 %v5385_v13, %v14876_v7  ;;  %v7909_v15 = vadd.f32 %v7877_v18, %v7808_v30  ;;  %v7473_v48 = vmul.f32 %v11876_v24, %v12004_v34  ;;  %v14878_v25 = vld [vmem:[#allocation30_spill] sm:$0xff]  ;;  %v14882_v55 = vld [vmem:[#allocation31_spill] sm:$0xff]  ;;  %v6225_v7 = vld [vmem:[#allocation3 + $0x51] sm:$0xff] }
 0x46f   : > { %v5387_v17 = vpop.f32.mrf.mxu0  ;;  %v7404_v52 = vadd.f32 %v7372_v54, %v7303_v26  ;;  %v7574_v39 = vmul.f32 %v11900_v61, %v12011_v22  ;;  %v6596_v0 = vadd.f32 %v6564_v27, %v6495_v4  ;;  %v8079_v32 = vmul.f32 %v11994_v53, %v12061_v33  ;;  %v12086_v59 = vld [vmem:[#allocation3 + $0x81] sm:$0xff]  ;;  %v14881_v4 = vld [vmem:[#allocation40_spill] sm:$0xff] }
 0x470   : > { %5589 = vst.msk [vmem:[#allocation3 + $0x92] sm:$0xff] %vm339_vm2, %v5556_v11  ;;  %v5525_v8 = vadd.f32 %v11678_v56, %v5486_v12  ;;  %v8010_v63 = vadd.f32 %v7978_v46, %v7909_v15  ;;  %v6766_v45 = vmul.f32 %v14878_v25, %v14877_v58  ;;  %v7676_v49 = vmul.f32 %v11920_v2, %v12072_v40  ;;  %v12088_v16 = vld [vmem:[#allocation3 + $0x82] sm:$0xff]  ;;  %v14884_v27 = vld [vmem:[#allocation32_spill] sm:$0xff] }
 0x471   : > { %v5438_v36 = vpop.f32.mrf.mxu1  ;;  %v7505_v57 = vadd.f32 %v7473_v48, %v7404_v52  ;;  %14879 = vst [vmem:[#allocation29_spill] sm:$0xff] %v12086_v59  ;;  %14880 = vst [vmem:[#allocation10_spill] sm:$0xff] %v12088_v16  ;;  %v6697_v41 = vadd.f32 %v6665_v3, %v6596_v0  ;;  %v6867_v30 = vmul.f32 %v14882_v55, %v14881_v4  ;;  %v14883_v13 = vld [vmem:[#allocation15_spill] sm:$0xff]  ;;  %v14885_v52 = vld [vmem:[#allocation34_spill] sm:$0xff] }
 0x472   : > { %v5557_v18 = vmax.f32 %v5525_v8, 0.0  ;;  %v5499_v26 = vadd.f32 %v5438_v36, %v14883_v13  ;;  %v8111_v54 = vadd.f32 %v8079_v32, %v8010_v63  ;;  %v6968_v11 = vmul.f32 %v14884_v27, %v11957_v14  ;;  %v14886_v48 = vld [vmem:[#allocation26_spill] sm:$0xff]  ;;  %v6326_v63 = vld [vmem:[#allocation3 + $0x52] sm:$0xff] }
 0x473   : > { %v5440_v12 = vpop.f32.mrf.mxu1  ;;  %v7606_v15 = vadd.f32 %v7574_v39, %v7505_v57  ;;  %v6798_v46 = vadd.f32 %v6766_v45, %v6697_v41  ;;  %v6091_v17 = vadd.f32 %v6059_v47, %v5990_v31  ;;  %v6161_v58 = vmul.f32 %v14886_v48, %v14885_v52  ;;  %v12104_v47 = vld [vmem:[#allocation3 + $0x83] sm:$0xff]  ;;  %v14889_v4 = vld [vmem:[#allocation16_spill] sm:$0xff]  ;;  %v14890_v13 = vld [vmem:[#allocation33_spill] sm:$0xff] }
 0x474   : > { %5590 = vst.msk [vmem:[#allocation3 + $0x9a] sm:$0xff] %vm339_vm2, %v5557_v18  ;;  %v5538_v3 = vadd.f32 %v11678_v56, %v5499_v26  ;;  %v8149_v0 = vsel %vm339_vm2, %v8111_v54, 0.0  ;;  %v7777_v8 = vmul.f32 %v11941_v43, %v12086_v59  ;;  %v7878_v14 = vmul.f32 %v11953_v5, %v12088_v16  ;;  %14887 = vst [vmem:[#allocation39_spill] sm:$0xff] %v12104_v47  ;;  %v12106_v31 = vld [vmem:[#allocation3 + $0x84] sm:$0xff]  ;;  %v6427_v12 = vld [vmem:[#allocation3 + $0x53] sm:$0xff] }
 0x475   : > { %v5441_v32 = vpop.f32.mrf.mxu1  ;;  %8150 = vadd.xlane.f32.xlu0 %v8149_v0  ;;  %v7708_v39 = vadd.f32 %v7676_v49, %v7606_v15  ;;  %14888 = vst [vmem:[#allocation30_spill] sm:$0xff] %v12106_v31  ;;  %v6899_v45 = vadd.f32 %v6867_v30, %v6798_v46  ;;  %v6193_v36 = vadd.f32 %v6161_v58, %v6091_v17  ;;  %v6528_v30 = vld [vmem:[#allocation3 + $0x54] sm:$0xff] }
 0x476   : > { %v6262_v57 = vmul.f32 %v11661_v19, %v6225_v7  ;;  %v5570_v41 = vmax.f32 %v5538_v3, 0.0  ;;  %v5500_v18 = vadd.f32 %v5441_v32, %v14889_v4  ;;  %v7069_v26 = vmul.f32 %v14890_v13, %v11980_v23  ;;  %v5732_v32 = vld [vmem:[#allocation3 + $0xd9] sm:$0xff] }
 0x477   : > { %v7171_v54 = vmul.f32 %v11803_v42, %v12027_v44  ;;  %v5443_v52 = vpop.f32.mrf.mxu1  ;;  %v7809_v49 = vadd.f32 %v7777_v8, %v7708_v39  ;;  %v7000_v15 = vadd.f32 %v6968_v11, %v6899_v45  ;;  %v6363_v0 = vmul.f32 %v11671_v35, %v6326_v63  ;;  %v5631_v8 = vld [vmem:[#allocation3 + $0xd8] sm:$0xff]  ;;  %v14891_v63 = vld [vmem:[#allocation11_spill] sm:$0xff] }
 0x478   : > { %v6294_v48 = vadd.f32 %v6262_v57, %v6193_v36  ;;  %5603 = vst.msk [vmem:[#allocation3 + $0x13a] sm:$0xff] %vm339_vm2, %v5570_v41  ;;  %v5539_v19 = vadd.f32 %v11678_v56, %v5500_v18  ;;  %v7979_v7 = vmul.f32 %v11978_v37, %v12104_v47  ;;  %v8080_v23 = vmul.f32 %v11994_v53, %v12106_v31  ;;  %v14893_v52 = vld [vmem:[#allocation22_spill] sm:$0xff] }
 0x479   : > { %v5390_v46 = vpop.f32.mrf.mxu0  ;;  %v7910_v17 = vadd.f32 %v7878_v14, %v7809_v49  ;;  %v7101_v58 = vadd.f32 %v7069_v26, %v7000_v15  ;;  %v6464_v11 = vmul.f32 %v11689_v29, %v6427_v12  ;;  %v7272_v45 = vmul.f32 %v11845_v51, %v12029_v21  ;;  %v14892_v26 = vld [vmem:[#allocation21_spill] sm:$0xff] }
 0x47a   : > { %v6395_v3 = vadd.f32 %v6363_v0, %v6294_v48  ;;  %v5571_v35 = vmax.f32 %v5539_v19, 0.0  ;;  %v5487_v39 = vadd.f32 %v5390_v46, %v14891_v63  ;;  %v6565_v36 = vmul.f32 %v11700_v60, %v6528_v30  ;;  %v12134_v30 = vld [vmem:[#allocation3 + $0x90] sm:$0xff] }
 0x47b   : > { %v8011_v57 = vadd.f32 %v7979_v7, %v7910_v17  ;;  %v5392_v41 = vpop.f32.mrf.mxu0  ;;  %v7203_v4 = vadd.f32 %v7171_v54, %v7101_v58  ;;  %v6666_v14 = vmul.f32 %v14875_v50, %v11959_v1  ;;  %v5668_v12 = vmul.f32 %v14892_v26, %v5631_v8  ;;  %v14894_v7 = vld [vmem:[#allocation12_spill] sm:$0xff]  ;;  %v5833_v8 = vld [vmem:[#allocation3 + $0xda] sm:$0xff]  ;;  %v12156_v26 = vld [vmem:[%s14639_s7 + $0x2] ss:$0 sm:$0xff] }
 0x47c   : > { %v6496_v18 = vadd.f32 %v6464_v11, %v6395_v3  ;;  %5604 = vst.msk [vmem:[#allocation3 + $0x142] sm:$0xff] %vm339_vm2, %v5571_v35  ;;  %v5526_v29 = vadd.f32 %v11678_v56, %v5487_v39  ;;  %v5769_v49 = vmul.f32 %v14893_v52, %v5732_v32  ;;  %v7373_v60 = vmul.f32 %v11863_v9, %v12042_v10  ;;  %v5934_v32 = vld [vmem:[#allocation3 + $0xdb] sm:$0xff] }
 0x47d   : > { %v8112_v15 = vadd.f32 %v8080_v23, %v8011_v57  ;;  %v5393_v48 = vpop.f32.mrf.mxu0  ;;  %v7304_v0 = vadd.f32 %v7272_v45, %v7203_v4  ;;  %v7474_v46 = vmul.f32 %v11876_v24, %v12052_v38  ;;  %v6767_v23 = vmul.f32 %v14878_v25, %v11971_v20  ;;  %v12148_v57 = vld [vmem:[#allocation3 + $0x91] sm:$0xff]  ;;  %14896 = vst [vmem:[#allocation40_spill] sm:$0xff] %v12156_v26 }
 0x47e   : > { %v6597_v54 = vadd.f32 %v6565_v36, %v6496_v18  ;;  %v5558_v19 = vmax.f32 %v5526_v29, 0.0  ;;  %v5488_v1 = vadd.f32 %v5393_v48, %v14894_v7  ;;  %v7575_v63 = vmul.f32 %v11900_v61, %v12061_v33 }
 0x47f   : > { %v8152_v17 = vsel %vm339_vm2, %v8112_v15, 0.0  ;;  %v5395_v58 = vpop.f32.mrf.mxu0  ;;  %v7405_v3 = vadd.f32 %v7373_v60, %v7304_v0  ;;  %v7677_v39 = vmul.f32 %v11920_v2, %v12134_v30  ;;  %v6868_v20 = vmul.f32 %v14882_v55, %v11989_v28  ;;  %v14897_v15 = vld [vmem:[#allocation24_spill] sm:$0xff]  ;;  %v6035_v0 = vld [vmem:[#allocation3 + $0xdc] sm:$0xff] }
 0x480   : > { %v6698_v11 = vadd.f32 %v6666_v14, %v6597_v54  ;;  %5591 = vst.msk [vmem:[#allocation3 + $0xaa] sm:$0xff] %vm339_vm2, %v5558_v19  ;;  %8153 = vadd.xlane.f32.xlu0 %v8152_v17  ;;  %v5527_v35 = vadd.f32 %v11678_v56, %v5488_v1  ;;  %v5801_v4 = vadd.f32 %v5769_v49, %v5668_v12  ;;  %v14895_v14 = vld [vmem:[#allocation17_spill] sm:$0xff]  ;;  %v12162_v12 = vld [vmem:[#allocation3 + $0xf0] sm:$0xff] }
 0x481   : > { %v5446_v45 = vpop.f32.mrf.mxu1  ;;  %v7506_v36 = vadd.f32 %v7474_v46, %v7405_v3  ;;  %v5870_v52 = vmul.f32 %v12156_v26, %v5833_v8  ;;  %v5971_v48 = vmul.f32 %v14897_v15, %v5934_v32  ;;  %v6969_v28 = vmul.f32 %v14884_v27, %v12004_v34  ;;  %14898 = vst [vmem:[#allocation31_spill] sm:$0xff] %v12162_v12  ;;  %v12168_v1 = vld [vmem:[#allocation3 + $0x92] sm:$0xff] }
 0x482   : > { %v6799_v41 = vadd.f32 %v6767_v23, %v6698_v11  ;;  %v5559_v18 = vmax.f32 %v5527_v35, 0.0  ;;  %v5501_v29 = vadd.f32 %v5446_v45, %v14895_v14  ;;  %v7778_v7 = vmul.f32 %v11941_v43, %v12148_v57  ;;  %14899 = vst [vmem:[#allocation15_spill] sm:$0xff] %v12168_v1  ;;  %v12177_v23 = vld [vmem:[%s14639_s7 + $0x4] ss:$0 sm:$0xff]  ;;  %v12181_v45 = vld [vmem:[#allocation3 + $0x93] sm:$0xff] }
 0x483   : > { %v5448_v60 = vpop.f32.mrf.mxu1  ;;  %v7607_v54 = vadd.f32 %v7575_v63, %v7506_v36  ;;  %v7070_v46 = vmul.f32 %v14890_v13, %v12011_v22  ;;  %v5902_v17 = vadd.f32 %v5870_v52, %v5801_v4  ;;  %v7172_v34 = vmul.f32 %v11803_v42, %v12072_v40  ;;  %14900 = vst [vmem:[#allocation32_spill] sm:$0xff] %v12177_v23  ;;  %v14901_v35 = vld [vmem:[#allocation18_spill] sm:$0xff]  ;;  %v12192_v14 = vld [vmem:[#allocation3 + $0xf1] sm:$0xff] }
 0x484   : > { %v6900_v19 = vadd.f32 %v6868_v20, %v6799_v41  ;;  %5592 = vst.msk [vmem:[#allocation3 + $0xb2] sm:$0xff] %vm339_vm2, %v5559_v18  ;;  %v5540_v49 = vadd.f32 %v11678_v56, %v5501_v29  ;;  %v6072_v8 = vmul.f32 %v12177_v23, %v6035_v0  ;;  %14902 = vst [vmem:[#allocation34_spill] sm:$0xff] %v12181_v45  ;;  %v12197_v29 = vld [vmem:[%s14639_s7 + $0x3] ss:$0 sm:$0xff]  ;;  %v14905_v15 = vld [vmem:[#allocation37_spill] sm:$0xff] }
 0x485   : > { %v5449_v58 = vpop.f32.mrf.mxu1  ;;  %v7709_v3 = vadd.f32 %v7677_v39, %v7607_v54  ;;  %v6003_v22 = vadd.f32 %v5971_v48, %v5902_v17  ;;  %v12186_v39 = vld [vmem:[%s14639_s7 + $0x5] ss:$0 sm:$0xff]  ;;  %v7879_v20 = vmul.f32 %v11953_v5, %v12168_v1  ;;  %14903 = vst [vmem:[#allocation26_spill] sm:$0xff] %v12192_v14  ;;  %14904 = vst [vmem:[#allocation16_spill] sm:$0xff] %v12197_v29  ;;  %v12209_v60 = vld [vmem:[#allocation3 + $0x94] sm:$0xff] }
 0x486   : > { %v7001_v11 = vadd.f32 %v6969_v28, %v6900_v19  ;;  %v5572_v32 = vmax.f32 %v5540_v49, 0.0  ;;  %v5502_v63 = vadd.f32 %v5449_v58, %v14901_v35  ;;  %v6174_v36 = vmul.f32 %v12186_v39, %v12162_v12  ;;  %14906 = vst [vmem:[#allocation33_spill] sm:$0xff] %v12209_v60  ;;  %v14908_v58 = vld [vmem:[#allocation13_spill] sm:$0xff]  ;;  %v12513_v12 = vld [vmem:[#allocation3 + $0x12c] sm:$0xff] }
 0x487   : > { %v7810_v41 = vadd.f32 %v7778_v7, %v7709_v3  ;;  %v5451_v4 = vpop.f32.mrf.mxu1  ;;  %v12201_v52 = vmul.f32 %v12197_v29, %v11857_v6  ;;  %v12205_v48 = vmul.f32 %v12197_v29, %v14905_v15  ;;  %v6104_v54 = vadd.f32 %v6072_v8, %v6003_v22  ;;  %v12223_v8 = vld [vmem:[%s14639_s7 + $0x6] ss:$0 sm:$0xff] }
 0x488   : > { %v7102_v18 = vadd.f32 %v7070_v46, %v7001_v11  ;;  %5605 = vst.msk [vmem:[#allocation3 + $0x152] sm:$0xff] %vm339_vm2, %v5572_v32  ;;  %v5541_v0 = vadd.f32 %v11678_v56, %v5502_v63  ;;  %v7980_v28 = vmul.f32 %v11978_v37, %v12181_v45  ;;  %v7273_v6 = vmul.f32 %v11845_v51, %v12086_v59  ;;  %v12215_v46 = vld [vmem:[#allocation3 + $0xf2] sm:$0xff]  ;;  %v12295_v45 = vld [vmem:[#allocation3 + $0x9a] sm:$0xff] }
 0x489   : > { %v7911_v19 = vadd.f32 %v7879_v20, %v7810_v41  ;;  %v5398_v49 = vpop.f32.mrf.mxu0  ;;  %14907 = vst [vmem:[#allocation11_spill] sm:$0xff] %v12215_v46  ;;  %v12218_v11 = vld [vmem:[#allocation3 + $0x98] sm:$0xff]  ;;  %v6206_v56 = vadd.f32 %v6174_v36, %v6104_v54  ;;  %v6275_v32 = vmul.f32 %v12223_v8, %v12192_v14  ;;  %v8081_v35 = vmul.f32 %v11994_v53, %v12209_v60  ;;  %v12237_v36 = vld [vmem:[%s14638_s6] ss:$0 sm:$0xff] }
 0x48a   : > { %v7204_v7 = vadd.f32 %v7172_v34, %v7102_v18  ;;  %v5573_v17 = vmax.f32 %v5541_v0, 0.0  ;;  %v5489_v3 = vadd.f32 %v5398_v49, %v14908_v58  ;;  %14909 = vst [vmem:[#allocation21_spill] sm:$0xff] %v12218_v11  ;;  %v7374_v22 = vmul.f32 %v11863_v9, %v12088_v16  ;;  %v12231_v20 = vld [vmem:[#allocation3 + $0xf3] sm:$0xff]  ;;  %v12245_v0 = vld [vmem:[%s14639_s7 + $0x7] ss:$0 sm:$0xff]  ;;  %14917 = vst [vmem:[#allocation13_spill] sm:$0xff] %v12295_v45 }
 0x48b   : > { %v8012_v34 = vadd.f32 %v7980_v28, %v7911_v19  ;;  %v5400_v41 = vpop.f32.mrf.mxu0  ;;  %14910 = vst [vmem:[#allocation22_spill] sm:$0xff] %v12231_v20  ;;  %v7475_v18 = vmul.f32 %v11876_v24, %v12104_v47  ;;  %v6307_v15 = vadd.f32 %v6275_v32, %v6206_v56  ;;  %v6376_v54 = vmul.f32 %v12245_v0, %v12215_v46  ;;  %v5632_v19 = vld [vmem:[#allocation3 + $0xe0] sm:$0xff]  ;;  %v12255_v56 = vld [vmem:[#allocation3 + $0x108] sm:$0xff] }
 0x48c   : > { %v7305_v63 = vadd.f32 %v7273_v6, %v7204_v7  ;;  %5606 = vst.msk [vmem:[#allocation3 + $0x15a] sm:$0xff] %vm339_vm2, %v5573_v17  ;;  %v5528_v4 = vadd.f32 %v12237_v36, %v5489_v3  ;;  %v5733_v28 = vld [vmem:[#allocation3 + $0xe1] sm:$0xff]  ;;  %v7576_v6 = vmul.f32 %v11900_v61, %v12106_v31  ;;  %v7678_v17 = vmul.f32 %v11920_v2, %v12218_v11  ;;  %v12253_v3 = vld [vmem:[#allocation3 + $0xf4] sm:$0xff] }
 0x48d   : > { %v8113_v49 = vadd.f32 %v8081_v35, %v8012_v34  ;;  %v5401_v58 = vpop.f32.mrf.mxu0  ;;  %14911 = vst [vmem:[#allocation12_spill] sm:$0xff] %v12253_v3  ;;  %14912 = vst [vmem:[#allocation17_spill] sm:$0xff] %v12255_v56  ;;  %v14913_v41 = vld [vmem:[#allocation14_spill] sm:$0xff]  ;;  %v6408_v60 = vadd.f32 %v6376_v54, %v6307_v15  ;;  %v12261_v34 = vld [vmem:[%s14639_s7 + $0x8] ss:$0 sm:$0xff] }
 0x48e   : > { %v7406_v7 = vadd.f32 %v7374_v22, %v7305_v63  ;;  %v5560_v32 = vmax.f32 %v5528_v4, 0.0  ;;  %v5490_v47 = vadd.f32 %v5401_v58, %v14913_v41  ;;  %v6477_v35 = vmul.f32 %v12261_v34, %v12231_v20  ;;  %v5834_v63 = vld [vmem:[#allocation3 + $0xe2] sm:$0xff]  ;;  %v12269_v4 = vld [vmem:[%s14639_s7] ss:$0 sm:$0xff]  ;;  %v12275_v54 = vld [vmem:[%s14639_s7 + $0x1] ss:$0 sm:$0xff] }
 0x48f   : > { %v8155_v22 = vsel %vm339_vm2, %v8113_v49, 0.0  ;;  %v5403_v31 = vpop.f32.mrf.mxu0  ;;  %14914 = vst [vmem:[#allocation24_spill] sm:$0xff] %v12269_v4  ;;  %v5669_v15 = vmul.f32 %v12269_v4, %v5632_v19  ;;  %14915 = vst [vmem:[#allocation18_spill] sm:$0xff] %v12275_v54  ;;  %v5770_v58 = vmul.f32 %v12275_v54, %v5733_v28  ;;  %v12279_v49 = vld [vmem:[#allocation3 + $0x99] sm:$0xff]  ;;  %v6679_v41 = vmul.f32 %v14875_v50, %v12255_v56  ;;  %v5935_v28 = vld [vmem:[#allocation3 + $0xe3] sm:$0xff] }
 0x490   : > { %v7507_v11 = vadd.f32 %v7475_v18, %v7406_v7  ;;  %8156 = vadd.xlane.f32.xlu1 %v8155_v22  ;;  %5593 = vst.msk [vmem:[#allocation3 + $0xc2] sm:$0xff] %vm339_vm2, %v5560_v32  ;;  %14916 = vst [vmem:[#allocation37_spill] sm:$0xff] %v12279_v49  ;;  %v5529_v31 = vadd.f32 %v12237_v36, %v5490_v47  ;;  %v6509_v18 = vadd.f32 %v6477_v35, %v6408_v60  ;;  %v12285_v7 = vld [vmem:[%s14639_s7 + $0x9] ss:$0 sm:$0xff]  ;;  %v14919_v20 = vld [vmem:[#allocation38_spill] sm:$0xff] }
 0x491   : > { %v6578_v19 = vmul.f32 %v12285_v7, %v12253_v3  ;;  %v12293_v32 = vmul.f32 %v12177_v23, %v11882_v62  ;;  %v12297_v47 = vld [vmem:[#allocation3 + $0x109] sm:$0xff]  ;;  %v5454_v60 = vpop.f32.mrf.mxu1  ;;  %v5802_v35 = vadd.f32 %v5770_v58, %v5669_v15  ;;  %v5871_v16 = vmul.f32 %v12156_v26, %v5834_v63  ;;  %v12305_v62 = vld [vmem:[#allocation3 + $0xf8] sm:$0xff] }
 0x492   : > { %v7608_v22 = vadd.f32 %v7576_v6, %v7507_v11  ;;  %14918 = vst [vmem:[#allocation14_spill] sm:$0xff] %v12297_v47  ;;  %v12302_v3 = vmul.f32 %v12177_v23, %v14919_v20  ;;  %v5561_v46 = vmax.f32 %v5529_v31, 0.0  ;;  %v14920_v56 = vld [vmem:[#allocation19_spill] sm:$0xff]  ;;  %14921 = vst [vmem:[#allocation38_spill] sm:$0xff] %v12305_v62  ;;  %v7779_v6 = vmul.f32 %v11941_v43, %v12279_v49  ;;  %v12309_v14 = vld [vmem:[#allocation3 + $0x9b] sm:$0xff] }
 0x493   : > { %v6610_v50 = vadd.f32 %v6578_v19, %v6509_v18  ;;  %v5503_v59 = vadd.f32 %v5454_v60, %v14920_v56  ;;  %v6036_v54 = vld [vmem:[#allocation3 + $0xe4] sm:$0xff]  ;;  %14922 = vst [vmem:[#allocation19_spill] sm:$0xff] %v12309_v14  ;;  %v5903_v63 = vadd.f32 %v5871_v16, %v5802_v35  ;;  %v5972_v58 = vmul.f32 %v12197_v29, %v5935_v28  ;;  %v5456_v20 = vpop.f32.mrf.mxu1  ;;  %v12316_v18 = vld [vmem:[#allocation3 + $0x9c] sm:$0xff]  ;;  %v12324_v16 = vld [vmem:[#allocation3 + $0x10c] sm:$0xff] }
 0x494   : > { %v7710_v11 = vadd.f32 %v7678_v17, %v7608_v22  ;;  %v12311_v15 = vld [vmem:[#allocation3 + $0x10a] sm:$0xff]  ;;  %v7880_v31 = vmul.f32 %v11953_v5, %v12295_v45  ;;  %14924 = vst [vmem:[#allocation42_spill] sm:$0xff] %v12316_v18  ;;  %5594 = vst.msk [vmem:[#allocation3 + $0xca] sm:$0xff] %vm339_vm2, %v5561_v46  ;;  %v6780_v17 = vmul.f32 %v14878_v25, %v12297_v47  ;;  %v12326_v28 = vld [vmem:[#allocation3 + $0x120] sm:$0xff] }
 0x495   : > { %14923 = vst [vmem:[#allocation41_spill] sm:$0xff] %v12311_v15  ;;  %v6711_v56 = vadd.f32 %v6679_v41, %v6610_v50  ;;  %v12321_v19 = vld [vmem:[#allocation3 + $0x10b] sm:$0xff]  ;;  %v5542_v22 = vadd.f32 %v12237_v36, %v5503_v59  ;;  %14926 = vst [vmem:[#allocation44_spill] sm:$0xff] %v12324_v16  ;;  %v12328_v35 = vld [vmem:[#allocation3 + $0x121] sm:$0xff]  ;;  %v6004_v20 = vadd.f32 %v5972_v58, %v5903_v63  ;;  %v5457_v41 = vpop.f32.mrf.mxu1 }
 0x496   : > { %14925 = vst [vmem:[#allocation43_spill] sm:$0xff] %v12321_v19  ;;  %v7811_v60 = vadd.f32 %v7779_v6, %v7710_v11  ;;  %14927 = vst [vmem:[#allocation45_spill] sm:$0xff] %v12326_v28  ;;  %v6073_v45 = vmul.f32 %v12177_v23, %v6036_v54  ;;  %v6175_v46 = vmul.f32 %v12186_v39, %v12305_v62  ;;  %v12337_v11 = vld [vmem:[#allocation3 + $0x122] sm:$0xff]  ;;  %v12339_v47 = vld [vmem:[#allocation3 + $0xf9] sm:$0xff] }
 0x497   : > { %14928 = vst [vmem:[#allocation46_spill] sm:$0xff] %v12328_v35  ;;  %v7981_v25 = vmul.f32 %v11978_v37, %v12309_v14  ;;  %v6812_v50 = vadd.f32 %v6780_v17, %v6711_v56  ;;  %v6881_v59 = vmul.f32 %v14882_v55, %v12311_v15  ;;  %14929 = vst [vmem:[#allocation47_spill] sm:$0xff] %v12337_v11  ;;  %v5574_v6 = vmax.f32 %v5542_v22, 0.0  ;;  %v12345_v58 = vld [vmem:[#allocation3 + $0x123] sm:$0xff]  ;;  %v12349_v17 = vld [vmem:[#allocation3 + $0xfa] sm:$0xff]  ;;  %v5459_v55 = vpop.f32.mrf.mxu1 }
 0x498   : > { %14930 = vst [vmem:[#allocation48_spill] sm:$0xff] %v12339_v47  ;;  %v7912_v49 = vadd.f32 %v7880_v31, %v7811_v60  ;;  %v8082_v54 = vmul.f32 %v11994_v53, %v12316_v18  ;;  %v6982_v63 = vmul.f32 %v14884_v27, %v12321_v19  ;;  %14931 = vst [vmem:[#allocation49_spill] sm:$0xff] %v12345_v58  ;;  %v12347_v62 = vld [vmem:[#allocation3 + $0x124] sm:$0xff] }
 0x499   : > { %14932 = vst [vmem:[#allocation50_spill] sm:$0xff] %v12347_v62  ;;  %v6105_v56 = vadd.f32 %v6073_v45, %v6004_v20  ;;  %14933 = vst [vmem:[#allocation51_spill] sm:$0xff] %v12349_v17  ;;  %v6913_v15 = vadd.f32 %v6881_v59, %v6812_v50  ;;  %v7083_v22 = vmul.f32 %v14890_v13, %v12324_v16  ;;  %v12362_v45 = vld [vmem:[#allocation3 + $0x138] sm:$0xff]  ;;  %v12368_v59 = vld [vmem:[#allocation3 + $0x60] sm:$0xff] }
 0x49a   : > { %v7185_v31 = vmul.f32 %v11803_v42, %v12326_v28  ;;  %v7286_v60 = vmul.f32 %v11845_v51, %v12328_v35  ;;  %5607 = vst.msk [vmem:[#allocation3 + $0x16a] sm:$0xff] %vm339_vm2, %v5574_v6  ;;  %v8013_v27 = vadd.f32 %v7981_v25, %v7912_v49  ;;  %v12360_v18 = vmul.f32 %v11863_v9, %v12337_v11  ;;  %v12366_v13 = vld [vmem:[#allocation3 + $0xfb] sm:$0xff]  ;;  %v12370_v42 = vpop.f32.mrf.mxu1  ;;  %v12386_v28 = vld [vmem:[#allocation3 + $0x110] sm:$0xff]  ;;  %v12449_v23 = vld [vmem:[#allocation3 + $0x128] sm:$0xff] }
 0x49b   : > { %14934 = vst [vmem:[#allocation52_spill] sm:$0xff] %v12362_v45  ;;  %v6207_v20 = vadd.f32 %v6175_v46, %v6105_v56  ;;  %v6276_v50 = vmul.f32 %v12223_v8, %v12339_v47  ;;  %14935 = vst [vmem:[#allocation53_spill] sm:$0xff] %v12366_v13  ;;  %v7014_v55 = vadd.f32 %v6982_v63, %v6913_v15  ;;  %v12382_v56 = vld [vmem:[#allocation3 + $0x139] sm:$0xff]  ;;  %v14940_v15 = vld [vmem:[#allocation20_spill] sm:$0xff] }
 0x49c   : > { %14936 = vst [vmem:[#allocation54_spill] sm:$0xff] %v12368_v59  ;;  %v12374_v49 = vmul.f32 %v11876_v24, %v12345_v58  ;;  %v12378_v25 = vmul.f32 %v11900_v61, %v12347_v62  ;;  %v6377_v46 = vmul.f32 %v12245_v0, %v12349_v17  ;;  %v8114_v6 = vadd.f32 %v8082_v54, %v8013_v27  ;;  %v12384_v35 = vld [vmem:[#allocation3 + $0xfc] sm:$0xff]  ;;  %v14941_v47 = vld [vmem:[#allocation35_spill] sm:$0xff]  ;;  %v5464_v16 = vpop.f32.mrf.mxu1 }
 0x49d   : > { %14937 = vst [vmem:[#allocation55_spill] sm:$0xff] %v12382_v56  ;;  %v6308_v11 = vadd.f32 %v6276_v50, %v6207_v20  ;;  %14938 = vst [vmem:[#allocation56_spill] sm:$0xff] %v12384_v35  ;;  %v5504_v63 = vadd.f32 %v5457_v41, %v14940_v15  ;;  %v5991_v58 = vadd.f32 %v12201_v52, %v14941_v47  ;;  %v12399_v20 = vld [vmem:[#allocation3 + $0x61] sm:$0xff] }
 0x49e   : > { %14939 = vst [vmem:[#allocation57_spill] sm:$0xff] %v12386_v28  ;;  %v7115_v19 = vadd.f32 %v7083_v22, %v7014_v55  ;;  %v12393_v62 = vmul.f32 %v11920_v2, %v12362_v45  ;;  %v6478_v54 = vmul.f32 %v12261_v34, %v12366_v13  ;;  %v6162_v27 = vmul.f32 %v12186_v39, %v12368_v59  ;;  %v12402_v41 = vld [vmem:[#allocation3 + $0x13a] sm:$0xff]  ;;  %v12410_v55 = vpop.f32.mrf.mxu1  ;;  %v12421_v13 = vld [vmem:[%s14639_s7 + $0xa] ss:$0 sm:$0xff] }
 0x49f   : > { %14942 = vst [vmem:[#allocation20_spill] sm:$0xff] %v12399_v20  ;;  %v8158_v50 = vsel %vm339_vm2, %v8114_v6, 0.0  ;;  %14943 = vst [vmem:[#allocation35_spill] sm:$0xff] %v12402_v41  ;;  %v12404_v15 = vld [vmem:[#allocation3 + $0x13b] sm:$0xff]  ;;  %v6409_v47 = vadd.f32 %v6377_v46, %v6308_v11  ;;  %v5543_v16 = vadd.f32 %v12237_v36, %v5504_v63  ;;  %v6092_v22 = vadd.f32 %v12293_v32, %v5991_v58  ;;  %v12425_v32 = vld [vmem:[#allocation3 + $0x111] sm:$0xff] }
 0x4a0   : > { %14944 = vst [vmem:[#allocation58_spill] sm:$0xff] %v12404_v15  ;;  %v12406_v52 = vld [vmem:[#allocation3 + $0x13c] sm:$0xff]  ;;  %14946 = vst [vmem:[#allocation60_spill] sm:$0xff] %v12410_v55  ;;  %8159 = vadd.xlane.f32.xlu0 %v8158_v50  ;;  %v7217_v45 = vadd.f32 %v7185_v31, %v7115_v19  ;;  %v12414_v59 = vmul.f32 %v11941_v43, %v12382_v56  ;;  %v6579_v6 = vmul.f32 %v12285_v7, %v12384_v35  ;;  %v12429_v31 = vld [vmem:[#allocation3 + $0x112] sm:$0xff]  ;;  %v5467_v17 = vpop.f32.mrf.mxu1 }
 0x4a1   : > { %14945 = vst [vmem:[#allocation59_spill] sm:$0xff] %v12406_v52  ;;  %v6680_v11 = vmul.f32 %v12421_v13, %v12386_v28  ;;  %14947 = vst [vmem:[#allocation61_spill] sm:$0xff] %v12425_v32  ;;  %v12427_v58 = vld [vmem:[#allocation3 + $0x62] sm:$0xff]  ;;  %v6510_v19 = vadd.f32 %v6478_v54, %v6409_v47  ;;  %v12431_v46 = vld [vmem:[#allocation3 + $0x113] sm:$0xff]  ;;  %v5575_v50 = vmax.f32 %v5543_v16, 0.0  ;;  %v6194_v56 = vadd.f32 %v6162_v27, %v6092_v22 }
 0x4a2   : > { %14948 = vst [vmem:[#allocation62_spill] sm:$0xff] %v12427_v58  ;;  %14949 = vst [vmem:[#allocation63_spill] sm:$0xff] %v12429_v31  ;;  %v12433_v63 = vld [vmem:[#allocation3 + $0x114] sm:$0xff]  ;;  %v6263_v35 = vmul.f32 %v12223_v8, %v12399_v20  ;;  %v7318_v14 = vadd.f32 %v7286_v60, %v7217_v45  ;;  %v12439_v28 = vmul.f32 %v11953_v5, %v12402_v41  ;;  %v12451_v27 = vld [vmem:[#allocation3 + $0x63] sm:$0xff]  ;;  %v12467_v41 = vpop.f32.mrf.mxu1 }
 0x4a3   : > { %14950 = vst [vmem:[#allocation64_spill] sm:$0xff] %v12431_v46  ;;  %14951 = vst [vmem:[#allocation65_spill] sm:$0xff] %v12433_v63  ;;  %v12443_v54 = vmul.f32 %v11978_v37, %v12404_v15  ;;  %v12447_v47 = vmul.f32 %v11994_v53, %v12406_v52  ;;  %v6611_v16 = vadd.f32 %v6579_v6, %v6510_v19  ;;  %v12456_v17 = vld [vmem:[%s14639_s7 + $0xb] ss:$0 sm:$0xff]  ;;  %v12473_v19 = vld [vmem:[%s14639_s7 + $0xc] ss:$0 sm:$0xff] }
 0x4a4   : > { %14952 = vst [vmem:[#allocation66_spill] sm:$0xff] %v12449_v23  ;;  %14953 = vst [vmem:[#allocation67_spill] sm:$0xff] %v12451_v27  ;;  %v6781_v60 = vmul.f32 %v12456_v17, %v12425_v32  ;;  %v12460_v45 = vld [vmem:[#allocation3 + $0x129] sm:$0xff]  ;;  %v6295_v22 = vadd.f32 %v6263_v35, %v6194_v56  ;;  %v6364_v52 = vmul.f32 %v12245_v0, %v12427_v58 }
 0x4a5   : > { %14954 = vst [vmem:[#allocation68_spill] sm:$0xff] %v12460_v45  ;;  %5608 = vst.msk [vmem:[#allocation3 + $0x172] sm:$0xff] %vm339_vm2, %v5575_v50  ;;  %v12465_v15 = vld [vmem:[#allocation3 + $0x64] sm:$0xff]  ;;  %v7419_v6 = vadd.f32 %v12360_v18, %v7318_v14  ;;  %v6882_v20 = vmul.f32 %v12473_v19, %v12429_v31  ;;  %v12480_v35 = vld [vmem:[%s14639_s7 + $0xd] ss:$0 sm:$0xff]  ;;  %v6712_v50 = vadd.f32 %v6680_v11, %v6611_v16 }
 0x4a6   : > { %14955 = vst [vmem:[#allocation69_spill] sm:$0xff] %v12467_v41  ;;  %v6983_v56 = vmul.f32 %v12480_v35, %v12431_v46  ;;  %v12487_v14 = vld [vmem:[%s14639_s7 + $0xe] ss:$0 sm:$0xff]  ;;  %v12494_v58 = vld [vmem:[%s14639_s7 + $0xf] ss:$0 sm:$0xff]  ;;  %v6396_v41 = vadd.f32 %v6364_v52, %v6295_v22  ;;  %v6465_v29 = vmul.f32 %v12261_v34, %v12451_v27  ;;  %v7287_v16 = vmul.f32 %v11845_v51, %v12460_v45  ;;  %v14957_v55 = vld [vmem:[#allocation36_spill] sm:$0xff] }
 0x4a7   : > { %v7084_v18 = vmul.f32 %v12487_v14, %v12433_v63  ;;  %v7186_v31 = vmul.f32 %v12494_v58, %v12449_v23  ;;  %v12498_v32 = vld [vmem:[#allocation3 + $0x12a] sm:$0xff]  ;;  %v5472_v63 = vpop.f32.mrf.mxu1  ;;  %v7520_v11 = vadd.f32 %v12374_v49, %v7419_v6  ;;  %v6566_v1 = vmul.f32 %v12285_v7, %v12465_v15 }
 0x4a8   : > { %v12500_v46 = vld [vmem:[#allocation3 + $0x12b] sm:$0xff]  ;;  %v6667_v23 = vmul.f32 %v12421_v13, %v12027_v44  ;;  %v6813_v4 = vadd.f32 %v6781_v60, %v6712_v50  ;;  %v6497_v52 = vadd.f32 %v6465_v29, %v6396_v41  ;;  %v5992_v63 = vadd.f32 %v12205_v48, %v14957_v55  ;;  %v12532_v41 = vld [vmem:[#allocation3 + $0x140] sm:$0xff] }
 0x4a9   : > { %v12504_v26 = vld [vmem:[#allocation3 + $0x68] sm:$0xff]  ;;  %v12521_v6 = vpop.f32.mrf.mxu1  ;;  %v7621_v51 = vadd.f32 %v12378_v25, %v7520_v11  ;;  %v7388_v45 = vmul.f32 %v11863_v9, %v12498_v32  ;;  %v12528_v44 = vmul.f32 %v11876_v24, %v12500_v46  ;;  %v7590_v24 = vmul.f32 %v11900_v61, %v12513_v12 }
 0x4aa   : > { %v14956_v22 = vld [vmem:[#allocation23_spill] sm:$0xff]  ;;  %v6163_v29 = vmul.f32 %v12186_v39, %v12504_v26  ;;  %v6598_v55 = vadd.f32 %v6566_v1, %v6497_v52  ;;  %v6093_v25 = vadd.f32 %v12302_v3, %v5992_v63  ;;  %v6768_v11 = vmul.f32 %v12456_v17, %v12029_v21 }
 0x4ab   : > { %v5505_v27 = vadd.f32 %v12370_v42, %v14956_v22  ;;  %v12519_v49 = vld [vmem:[#allocation3 + $0x69] sm:$0xff]  ;;  %v6914_v42 = vadd.f32 %v6882_v20, %v6813_v4  ;;  %14958 = vst [vmem:[#allocation23_spill] sm:$0xff] %v12532_v41  ;;  %v12534_v48 = vld [vmem:[#allocation3 + $0x141] sm:$0xff]  ;;  %v5475_v50 = vpop.f32.mrf.mxu1  ;;  %v7723_v9 = vadd.f32 %v12393_v62, %v7621_v51  ;;  %v12554_v61 = vmul.f32 %v11920_v2, %v12532_v41 }
 0x4ac   : > { %14959 = vst [vmem:[#allocation36_spill] sm:$0xff] %v12534_v48  ;;  %v6264_v4 = vmul.f32 %v12223_v8, %v12519_v49  ;;  %v12545_v20 = vld [vmem:[#allocation3 + $0x6a] sm:$0xff]  ;;  %v12547_v1 = vld [vmem:[#allocation3 + $0x142] sm:$0xff]  ;;  %v6699_v3 = vadd.f32 %v6667_v23, %v6598_v55  ;;  %v6195_v63 = vadd.f32 %v6163_v29, %v6093_v25  ;;  %v12558_v21 = vmul.f32 %v11941_v43, %v12534_v48 }
 0x4ad   : > { %v5544_v60 = vadd.f32 %v12237_v36, %v5505_v27  ;;  %14960 = vst [vmem:[#allocation70_spill] sm:$0xff] %v12545_v20  ;;  %v7015_v22 = vadd.f32 %v6983_v56, %v6914_v42  ;;  %14961 = vst [vmem:[#allocation71_spill] sm:$0xff] %v12547_v1  ;;  %v12549_v27 = vld [vmem:[#allocation3 + $0x143] sm:$0xff]  ;;  %v7824_v62 = vadd.f32 %v12414_v59, %v7723_v9  ;;  %v12562_v51 = vld [vmem:[#allocation3 + $0x6b] sm:$0xff] }
 0x4ae   : > { %14962 = vst [vmem:[#allocation72_spill] sm:$0xff] %v12549_v27  ;;  %v6869_v56 = vmul.f32 %v12473_v19, %v12042_v10  ;;  %14963 = vst [vmem:[#allocation73_spill] sm:$0xff] %v12562_v51  ;;  %v6800_v50 = vadd.f32 %v6768_v11, %v6699_v3  ;;  %v6296_v23 = vadd.f32 %v6264_v4, %v6195_v63  ;;  %v12567_v29 = vld [vmem:[#allocation3 + $0x6c] sm:$0xff] }
 0x4af   : > { %v5576_v52 = vmax.f32 %v5544_v60, 0.0  ;;  %v7116_v42 = vadd.f32 %v7084_v18, %v7015_v22  ;;  %v6365_v59 = vmul.f32 %v12245_v0, %v12545_v20  ;;  %14964 = vst [vmem:[#allocation74_spill] sm:$0xff] %v12567_v29  ;;  %v7925_v2 = vadd.f32 %v12439_v28, %v7824_v62  ;;  %v12580_v60 = vld [vmem:[#allocation3 + $0x144] sm:$0xff]  ;;  %v14967_v63 = vld [vmem:[#allocation60_spill] sm:$0xff] }
 0x4b0   : > { %v12572_v43 = vmul.f32 %v11953_v5, %v12547_v1  ;;  %v12576_v10 = vmul.f32 %v11978_v37, %v12549_v27  ;;  %v6970_v18 = vmul.f32 %v12480_v35, %v12052_v38  ;;  %14965 = vst [vmem:[#allocation75_spill] sm:$0xff] %v12580_v60  ;;  %v6901_v25 = vadd.f32 %v6869_v56, %v6800_v50  ;;  %v14968_v50 = vld [vmem:[#allocation31_spill] sm:$0xff]  ;;  %v14979_v27 = vld [vmem:[#allocation10_spill] sm:$0xff] }
 0x4b1   : > { %5609 = vst.msk [vmem:[#allocation3 + $0x182] sm:$0xff] %vm339_vm2, %v5576_v52  ;;  %v7218_v55 = vadd.f32 %v7186_v31, %v7116_v42  ;;  %v6397_v9 = vadd.f32 %v6365_v59, %v6296_v23  ;;  %v6466_v11 = vmul.f32 %v12261_v34, %v12562_v51  ;;  %v8026_v28 = vadd.f32 %v12443_v54, %v7925_v2  ;;  %v12613_v59 = vld [vmem:[%s14639_s7 + $0x11] ss:$0 sm:$0xff]  ;;  %v14970_v2 = vld [vmem:[#allocation15_spill] sm:$0xff] }
 0x4b2   : > { %v7071_v5 = vmul.f32 %v12487_v14, %v12061_v33  ;;  %v7173_v37 = vmul.f32 %v12494_v58, %v12134_v30  ;;  %v6567_v4 = vmul.f32 %v12285_v7, %v12567_v29  ;;  %v7002_v31 = vadd.f32 %v6970_v18, %v6901_v25  ;;  %v12601_v33 = vld [vmem:[%s14639_s7 + $0x10] ss:$0 sm:$0xff]  ;;  %v14972_v25 = vld [vmem:[#allocation18_spill] sm:$0xff]  ;;  %v14998_v20 = vld [vmem:[#allocation27_spill] sm:$0xff] }
 0x4b3   : > { %v7319_v38 = vadd.f32 %v7287_v16, %v7218_v55  ;;  %v6498_v22 = vadd.f32 %v6466_v11, %v6397_v9  ;;  %v6668_v3 = vmul.f32 %v12421_v13, %v12072_v40  ;;  %v8127_v52 = vadd.f32 %v12447_v47, %v8026_v28  ;;  %v14966_v16 = vld [vmem:[#allocation25_spill] sm:$0xff]  ;;  %v14969_v47 = vld [vmem:[#allocation24_spill] sm:$0xff]  ;;  %v14971_v55 = vld [vmem:[#allocation26_spill] sm:$0xff] }
 0x4b4   : > { %v12596_v54 = vmul.f32 %v11994_v53, %v12580_v60  ;;  %v7274_v30 = vmul.f32 %v12601_v33, %v12148_v57  ;;  %v5506_v62 = vadd.f32 %v14967_v63, %v14966_v16  ;;  %v7103_v42 = vadd.f32 %v7071_v5, %v7002_v31  ;;  %v12621_v28 = vld [vmem:[#allocation3 + $0xa8] sm:$0xff]  ;;  %v14976_v16 = vld [vmem:[#allocation40_spill] sm:$0xff] }
 0x4b5   : > { %v7420_v56 = vadd.f32 %v7388_v45, %v7319_v38  ;;  %v6599_v40 = vadd.f32 %v6567_v4, %v6498_v22  ;;  %v5670_v23 = vmul.f32 %v14969_v47, %v14968_v50  ;;  %v8197_v53 = vsel %vm339_vm2, %v8127_v52, 0.0  ;;  %14973 = vst [vmem:[#allocation25_spill] sm:$0xff] %v12621_v28  ;;  %v14974_v4 = vld [vmem:[#allocation29_spill] sm:$0xff]  ;;  %v14975_v52 = vld [vmem:[#allocation11_spill] sm:$0xff]  ;;  %v14977_v50 = vld [vmem:[#allocation22_spill] sm:$0xff] }
 0x4b6   : > { %v7375_v18 = vmul.f32 %v12613_v59, %v14970_v2  ;;  %v5545_v57 = vadd.f32 %v12237_v36, %v5506_v62  ;;  %v5771_v45 = vmul.f32 %v14972_v25, %v14971_v55  ;;  %8198 = vadd.xlane.f32.xlu1 %v8197_v53  ;;  %v7205_v11 = vadd.f32 %v7173_v37, %v7103_v42  ;;  %v14978_v62 = vld [vmem:[#allocation16_spill] sm:$0xff] }
 0x4b7   : > { %v7521_v9 = vadd.f32 %v12528_v44, %v7420_v56  ;;  %v6700_v5 = vadd.f32 %v6668_v3, %v6599_v40  ;;  %v6769_v38 = vmul.f32 %v12456_v17, %v14974_v4  ;;  %v5872_v63 = vmul.f32 %v14976_v16, %v14975_v52  ;;  %v12634_v37 = vld [vmem:[%s14639_s7 + $0x12] ss:$0 sm:$0xff]  ;;  %v14980_v3 = vld [vmem:[#allocation34_spill] sm:$0xff]  ;;  %v12641_v42 = vld [vmem:[%s14639_s7 + $0x13] ss:$0 sm:$0xff] }
 0x4b8   : > { %v5577_v31 = vmax.f32 %v5545_v57, 0.0  ;;  %v5803_v22 = vadd.f32 %v5771_v45, %v5670_v23  ;;  %v5973_v2 = vmul.f32 %v14978_v62, %v14977_v50  ;;  %v7306_v55 = vadd.f32 %v7274_v30, %v7205_v11  ;;  %v14981_v40 = vld [vmem:[#allocation33_spill] sm:$0xff]  ;;  %v12656_v11 = vld [vmem:[#allocation3 + $0xaa] sm:$0xff] }
 0x4b9   : > { %v7622_v60 = vadd.f32 %v7590_v24, %v7521_v9  ;;  %v6801_v53 = vadd.f32 %v6769_v38, %v6700_v5  ;;  %v6870_v44 = vmul.f32 %v12473_v19, %v14979_v27  ;;  %v7476_v56 = vmul.f32 %v12634_v37, %v14980_v3  ;;  %v12648_v27 = vld [vmem:[%s14639_s7 + $0x14] ss:$0 sm:$0xff]  ;;  %v12654_v9 = vld [vmem:[#allocation3 + $0xa9] sm:$0xff]  ;;  %14983 = vst [vmem:[#allocation31_spill] sm:$0xff] %v12656_v11  ;;  %v14987_v3 = vld [vmem:[#allocation30_spill] sm:$0xff] }
 0x4ba   : > { %v7577_v24 = vmul.f32 %v12641_v42, %v14981_v40  ;;  %v7679_v30 = vmul.f32 %v12648_v27, %v12621_v28  ;;  %5610 = vst.msk [vmem:[#allocation3 + $0x18a] sm:$0xff] %vm339_vm2, %v5577_v31  ;;  %v5904_v23 = vadd.f32 %v5872_v63, %v5803_v22  ;;  %v7407_v45 = vadd.f32 %v7375_v18, %v7306_v55  ;;  %v12658_v5 = vld [vmem:[#allocation3 + $0xab] sm:$0xff] }
 0x4bb   : > { %v7724_v57 = vadd.f32 %v12554_v61, %v7622_v60  ;;  %14982 = vst [vmem:[#allocation60_spill] sm:$0xff] %v12654_v9  ;;  %14984 = vst [vmem:[#allocation24_spill] sm:$0xff] %v12658_v5  ;;  %v6902_v4 = vadd.f32 %v6870_v44, %v6801_v53  ;;  %v14985_v38 = vld [vmem:[#allocation39_spill] sm:$0xff]  ;;  %v7072_v40 = vmul.f32 %v12487_v14, %v14987_v3  ;;  %v14988_v22 = vld [vmem:[#allocation12_spill] sm:$0xff] }
 0x4bc   : > { %v6971_v52 = vmul.f32 %v12480_v35, %v14985_v38  ;;  %v12662_v50 = vld [vmem:[#allocation3 + $0xac] sm:$0xff]  ;;  %v6005_v31 = vadd.f32 %v5973_v2, %v5904_v23  ;;  %v14990_v60 = vld [vmem:[#allocation17_spill] sm:$0xff]  ;;  %v7508_v28 = vadd.f32 %v7476_v56, %v7407_v45  ;;  %v12676_v38 = vld [vmem:[%s14639_s7 + $0x15] ss:$0 sm:$0xff] }
 0x4bd   : > { %14986 = vst [vmem:[#allocation15_spill] sm:$0xff] %v12662_v50  ;;  %v14989_v63 = vld [vmem:[#allocation32_spill] sm:$0xff]  ;;  %v6176_v18 = vmul.f32 %v12186_v39, %v14990_v60  ;;  %v7825_v55 = vadd.f32 %v12558_v21, %v7724_v57  ;;  %v14991_v53 = vld [vmem:[#allocation21_spill] sm:$0xff]  ;;  %v7780_v2 = vmul.f32 %v12676_v38, %v12654_v9 }
 0x4be   : > { %v6074_v61 = vmul.f32 %v14989_v63, %v14988_v22  ;;  %v7003_v1 = vadd.f32 %v6971_v52, %v6902_v4  ;;  %v7174_v44 = vmul.f32 %v12494_v58, %v14991_v53  ;;  %v12683_v23 = vld [vmem:[%s14639_s7 + $0x16] ss:$0 sm:$0xff]  ;;  %v12690_v56 = vld [vmem:[%s14639_s7 + $0x17] ss:$0 sm:$0xff]  ;;  %v7609_v52 = vadd.f32 %v7577_v24, %v7508_v28  ;;  %v12698_v3 = vld [vmem:[%s14639_s7 + $0x18] ss:$0 sm:$0xff] }
 0x4bf   : > { %v7881_v21 = vmul.f32 %v12683_v23, %v12656_v11  ;;  %v7982_v57 = vmul.f32 %v12690_v56, %v12658_v5  ;;  %v7926_v4 = vadd.f32 %v12572_v43, %v7825_v55  ;;  %v8083_v22 = vmul.f32 %v12698_v3, %v12662_v50  ;;  %v14992_v53 = vld [vmem:[#allocation37_spill] sm:$0xff]  ;;  %v14995_v55 = vld [vmem:[#allocation19_spill] sm:$0xff] }
 0x4c0   : > { %v6106_v45 = vadd.f32 %v6074_v61, %v6005_v31  ;;  %v7104_v60 = vadd.f32 %v7072_v40, %v7003_v1  ;;  %v7275_v11 = vmul.f32 %v12601_v33, %v14992_v53  ;;  %v14993_v9 = vld [vmem:[#allocation13_spill] sm:$0xff]  ;;  %v14994_v31 = vld [vmem:[#allocation14_spill] sm:$0xff]  ;;  %v7711_v24 = vadd.f32 %v7679_v30, %v7609_v52  ;;  %v14997_v40 = vld [vmem:[#allocation43_spill] sm:$0xff] }
 0x4c1   : > { %v7376_v29 = vmul.f32 %v12613_v59, %v14993_v9  ;;  %v6277_v43 = vmul.f32 %v12223_v8, %v14994_v31  ;;  %v8027_v28 = vadd.f32 %v12576_v10, %v7926_v4  ;;  %v7477_v51 = vmul.f32 %v12634_v37, %v14995_v55  ;;  %v14996_v50 = vld [vmem:[#allocation41_spill] sm:$0xff]  ;;  %v15000_v10 = vld [vmem:[#allocation38_spill] sm:$0xff] }
 0x4c2   : > { %v6208_v5 = vadd.f32 %v6176_v18, %v6106_v45  ;;  %v7206_v61 = vadd.f32 %v7174_v44, %v7104_v60  ;;  %v6378_v1 = vmul.f32 %v12245_v0, %v14996_v50  ;;  %v6479_v53 = vmul.f32 %v12261_v34, %v14997_v40  ;;  %v14999_v9 = vld [vmem:[#allocation69_spill] sm:$0xff]  ;;  %v12720_v44 = vld [vmem:[#allocation3 + $0xb0] sm:$0xff] }
 0x4c3   : > { %v5507_v18 = vadd.f32 %v14999_v9, %v14998_v20  ;;  %v8128_v45 = vadd.f32 %v12596_v54, %v8027_v28  ;;  %v7812_v31 = vadd.f32 %v7780_v2, %v7711_v24  ;;  %v5671_v30 = vmul.f32 %v14969_v47, %v15000_v10  ;;  %v15002_v60 = vld [vmem:[#allocation48_spill] sm:$0xff]  ;;  %v15003_v2 = vld [vmem:[#allocation45_spill] sm:$0xff] }
 0x4c4   : > { %v6309_v48 = vadd.f32 %v6277_v43, %v6208_v5  ;;  %v7307_v41 = vadd.f32 %v7275_v11, %v7206_v61  ;;  %v15001_v5 = vld [vmem:[#allocation44_spill] sm:$0xff]  ;;  %v5772_v43 = vmul.f32 %v14972_v25, %v15002_v60  ;;  %v6681_v11 = vmul.f32 %v12421_v13, %v15003_v2 }
 0x4c5   : > { %v6580_v52 = vmul.f32 %v12285_v7, %v15001_v5  ;;  %v5546_v50 = vadd.f32 %v12237_v36, %v5507_v18  ;;  %v8200_v20 = vsel %vm339_vm2, %v8128_v45, 0.0  ;;  %v7913_v55 = vadd.f32 %v7881_v21, %v7812_v31  ;;  %v15005_v18 = vld [vmem:[#allocation42_spill] sm:$0xff]  ;;  %v12736_v21 = vld [vmem:[#allocation3 + $0xb1] sm:$0xff] }
 0x4c6   : > { %v6410_v4 = vadd.f32 %v6378_v1, %v6309_v48  ;;  %v7408_v54 = vadd.f32 %v7376_v29, %v7307_v41  ;;  %8201 = vadd.xlane.f32.xlu0 %v8200_v20  ;;  %v5804_v61 = vadd.f32 %v5772_v43, %v5671_v30  ;;  %v15004_v48 = vld [vmem:[#allocation51_spill] sm:$0xff]  ;;  %v7578_v10 = vmul.f32 %v12641_v42, %v15005_v18  ;;  %v15007_v5 = vld [vmem:[#allocation46_spill] sm:$0xff]  ;;  %v12747_v60 = vld [vmem:[#allocation3 + $0xb4] sm:$0xff] }
 0x4c7   : > { %v5578_v24 = vmax.f32 %v5546_v50, 0.0  ;;  %v5873_v1 = vmul.f32 %v14976_v16, %v15004_v48  ;;  %v8014_v40 = vadd.f32 %v7982_v57, %v7913_v55  ;;  %v7680_v45 = vmul.f32 %v12648_v27, %v12720_v44  ;;  %v12743_v57 = vld [vmem:[#allocation3 + $0xb2] sm:$0xff]  ;;  %v15010_v48 = vld [vmem:[#allocation47_spill] sm:$0xff] }
 0x4c8   : > { %v6511_v28 = vadd.f32 %v6479_v53, %v6410_v4  ;;  %v7509_v9 = vadd.f32 %v7477_v51, %v7408_v54  ;;  %v15006_v53 = vld [vmem:[#allocation53_spill] sm:$0xff]  ;;  %v6782_v51 = vmul.f32 %v12456_v17, %v15007_v5  ;;  %v15013_v5 = vld [vmem:[#allocation50_spill] sm:$0xff] }
 0x4c9   : > { %5611 = vst.msk [vmem:[#allocation3 + $0x19a] sm:$0xff] %vm339_vm2, %v5578_v24  ;;  %v5905_v29 = vadd.f32 %v5873_v1, %v5804_v61  ;;  %v5974_v31 = vmul.f32 %v14978_v62, %v15006_v53  ;;  %v8115_v30 = vadd.f32 %v8083_v22, %v8014_v40  ;;  %v12745_v50 = vld [vmem:[#allocation3 + $0xb3] sm:$0xff]  ;;  %v7781_v24 = vmul.f32 %v12676_v38, %v12736_v21 }
 0x4ca   : > { %v6612_v41 = vadd.f32 %v6580_v52, %v6511_v28  ;;  %v7610_v4 = vadd.f32 %v7578_v10, %v7509_v9  ;;  %v15008_v52 = vld [vmem:[#allocation56_spill] sm:$0xff]  ;;  %v15009_v54 = vld [vmem:[#allocation57_spill] sm:$0xff]  ;;  %v6883_v1 = vmul.f32 %v12473_v19, %v15010_v48  ;;  %v7882_v9 = vmul.f32 %v12683_v23, %v12743_v57 }
 0x4cb   : > { %v6006_v20 = vadd.f32 %v5974_v31, %v5905_v29  ;;  %v6075_v55 = vmul.f32 %v14989_v63, %v15008_v52  ;;  %v6177_v2 = vmul.f32 %v12186_v39, %v15009_v54  ;;  %v8161_v22 = vsel %vm339_vm2, %v8115_v30, 0.0  ;;  %v15012_v31 = vld [vmem:[#allocation61_spill] sm:$0xff]  ;;  %v15015_v52 = vld [vmem:[#allocation63_spill] sm:$0xff] }
 0x4cc   : > { %v6713_v43 = vadd.f32 %v6681_v11, %v6612_v41  ;;  %v7712_v28 = vadd.f32 %v7680_v45, %v7610_v4  ;;  %8162 = vadd.xlane.f32.xlu1 %v8161_v22  ;;  %v7983_v18 = vmul.f32 %v12690_v56, %v12745_v50  ;;  %v8084_v10 = vmul.f32 %v12698_v3, %v12747_v60  ;;  %v15011_v41 = vld [vmem:[#allocation49_spill] sm:$0xff] }
 0x4cd   : > { %v6107_v40 = vadd.f32 %v6075_v55, %v6006_v20  ;;  %v6984_v29 = vmul.f32 %v12480_v35, %v15011_v41  ;;  %v6278_v30 = vmul.f32 %v12223_v8, %v15012_v31  ;;  %v6379_v55 = vmul.f32 %v12245_v0, %v15015_v52  ;;  %v15020_v41 = vld [vmem:[#allocation20_spill] sm:$0xff]  ;;  %v15022_v52 = vld [vmem:[#allocation62_spill] sm:$0xff] }
 0x4ce   : > { %v6814_v61 = vadd.f32 %v6782_v51, %v6713_v43  ;;  %v7813_v11 = vadd.f32 %v7781_v24, %v7712_v28  ;;  %v7085_v51 = vmul.f32 %v12487_v14, %v15013_v5  ;;  %v15014_v43 = vld [vmem:[#allocation52_spill] sm:$0xff]  ;;  %v5759_v31 = vmul.f32 %v14972_v25, %v15020_v41 }
 0x4cf   : > { %v6209_v53 = vadd.f32 %v6177_v2, %v6107_v40  ;;  %v7187_v20 = vmul.f32 %v12494_v58, %v15014_v43  ;;  %v15016_v28 = vld [vmem:[#allocation28_spill] sm:$0xff] }
 0x4d0   : > { %v6915_v45 = vadd.f32 %v6883_v1, %v6814_v61  ;;  %v7914_v4 = vadd.f32 %v7882_v9, %v7813_v11  ;;  %v5508_v24 = vadd.f32 %v12521_v6, %v15016_v28  ;;  %v15017_v61 = vld [vmem:[#allocation54_spill] sm:$0xff]  ;;  %v15018_v1 = vld [vmem:[#allocation55_spill] sm:$0xff]  ;;  %v15019_v11 = vld [vmem:[#allocation64_spill] sm:$0xff] }
 0x4d1   : > { %v6310_v22 = vadd.f32 %v6278_v30, %v6209_v53  ;;  %v5658_v2 = vmul.f32 %v14969_v47, %v15017_v61  ;;  %v7288_v40 = vmul.f32 %v12601_v33, %v15018_v1  ;;  %v6480_v9 = vmul.f32 %v12261_v34, %v15019_v11  ;;  %v15024_v11 = vld [vmem:[#allocation66_spill] sm:$0xff] }
 0x4d2   : > { %v7016_v54 = vadd.f32 %v6984_v29, %v6915_v45  ;;  %v8015_v48 = vadd.f32 %v7983_v18, %v7914_v4  ;;  %v15021_v45 = vld [vmem:[#allocation65_spill] sm:$0xff]  ;;  %v5547_v6 = vadd.f32 %v12237_v36, %v5508_v24  ;;  %v5860_v18 = vmul.f32 %v14976_v16, %v15022_v52  ;;  %v15023_v4 = vld [vmem:[#allocation67_spill] sm:$0xff] }
 0x4d3   : > { %v6411_v43 = vadd.f32 %v6379_v55, %v6310_v22  ;;  %v6581_v29 = vmul.f32 %v12285_v7, %v15021_v45  ;;  %v5791_v30 = vadd.f32 %v5759_v31, %v5658_v2  ;;  %v5961_v28 = vmul.f32 %v14978_v62, %v15023_v4  ;;  %v12793_v55 = vld [vmem:[#allocation3 + $0x78] sm:$0xff]  ;;  %v12798_v2 = vld [vmem:[#allocation3 + $0x150] sm:$0xff]  ;;  %v15026_v45 = vld [vmem:[#allocation58_spill] sm:$0xff] }
 0x4d4   : > { %v7117_v5 = vadd.f32 %v7085_v51, %v7016_v54  ;;  %v8116_v53 = vadd.f32 %v8084_v10, %v8015_v48  ;;  %v6682_v41 = vmul.f32 %v12421_v13, %v15024_v11  ;;  %v5579_v51 = vmax.f32 %v5547_v6, 0.0  ;;  %v15025_v10 = vld [vmem:[#allocation35_spill] sm:$0xff]  ;;  %v12809_v6 = vld [vmem:[#allocation3 + $0x152] sm:$0xff] }
 0x4d5   : > { %v6512_v1 = vadd.f32 %v6480_v9, %v6411_v43  ;;  %v5892_v22 = vadd.f32 %v5860_v18, %v5791_v30  ;;  %v7389_v24 = vmul.f32 %v12613_v59, %v15025_v10  ;;  %v6062_v31 = vmul.f32 %v14989_v63, %v12465_v15  ;;  %15027 = vst [vmem:[#allocation26_spill] sm:$0xff] %v12809_v6  ;;  %v15028_v30 = vld [vmem:[#allocation68_spill] sm:$0xff]  ;;  %v12813_v52 = vld [vmem:[#allocation3 + $0x79] sm:$0xff]  ;;  %v15029_v18 = vld [vmem:[#allocation59_spill] sm:$0xff] }
 0x4d6   : > { %v7219_v61 = vadd.f32 %v7187_v20, %v7117_v5  ;;  %v8164_v54 = vsel %vm339_vm2, %v8116_v53, 0.0  ;;  %5612 = vst.msk [vmem:[#allocation3 + $0x1a2] sm:$0xff] %vm339_vm2, %v5579_v51  ;;  %v12801_v20 = vld [vmem:[#allocation3 + $0x151] sm:$0xff]  ;;  %v6164_v5 = vmul.f32 %v12186_v39, %v12793_v55  ;;  %v7591_v4 = vmul.f32 %v12641_v42, %v15029_v18  ;;  %v12823_v51 = vld [vmem:[#allocation3 + $0x7a] sm:$0xff] }
 0x4d7   : > { %8165 = vadd.xlane.f32.xlu0 %v8164_v54  ;;  %v6613_v48 = vadd.f32 %v6581_v29, %v6512_v1  ;;  %v5993_v9 = vadd.f32 %v5961_v28, %v5892_v22  ;;  %v6783_v29 = vmul.f32 %v12456_v17, %v15028_v30  ;;  %v7693_v15 = vmul.f32 %v12648_v27, %v12798_v2  ;;  %v12845_v18 = vld [vmem:[#allocation3 + $0x7c] sm:$0xff] }
 0x4d8   : > { %v7320_v36 = vadd.f32 %v7288_v40, %v7219_v61  ;;  %v7490_v40 = vmul.f32 %v12634_v37, %v15026_v45  ;;  %v7794_v1 = vmul.f32 %v12676_v38, %v12801_v20  ;;  %v7895_v54 = vmul.f32 %v12683_v23, %v12809_v6  ;;  %v5736_v6 = vld [vmem:[#allocation3 + $0x109] sm:$0xff] }
 0x4d9   : > { %v6714_v53 = vadd.f32 %v6682_v41, %v6613_v48  ;;  %v6094_v28 = vadd.f32 %v6062_v31, %v5993_v9  ;;  %v6884_v41 = vmul.f32 %v12473_v19, %v12498_v32  ;;  %v6985_v22 = vmul.f32 %v12480_v35, %v12500_v46  ;;  %v12831_v48 = vld [vmem:[#allocation3 + $0x153] sm:$0xff]  ;;  %v12833_v31 = vld [vmem:[#allocation3 + $0x7b] sm:$0xff]  ;;  %v15031_v46 = vld [vmem:[#allocation23_spill] sm:$0xff] }
 0x4da   : > { %v7421_v43 = vadd.f32 %v7389_v24, %v7320_v36  ;;  %v6265_v10 = vmul.f32 %v12223_v8, %v12813_v52  ;;  %15030 = vst [vmem:[#allocation18_spill] sm:$0xff] %v12831_v48  ;;  %v5659_v32 = vmul.f32 %v14969_v47, %v12504_v26  ;;  %v7086_v45 = vmul.f32 %v12487_v14, %v12513_v12 }
 0x4db   : > { %v6815_v11 = vadd.f32 %v6783_v29, %v6714_v53  ;;  %v6196_v36 = vadd.f32 %v6164_v5, %v6094_v28  ;;  %v7188_v5 = vmul.f32 %v12494_v58, %v15031_v46  ;;  %v6366_v53 = vmul.f32 %v12245_v0, %v12823_v51  ;;  %v15032_v28 = vld [vmem:[#allocation70_spill] sm:$0xff] }
 0x4dc   : > { %v7522_v61 = vadd.f32 %v7490_v40, %v7421_v43  ;;  %v5760_v43 = vmul.f32 %v14972_v25, %v12519_v49  ;;  %v5861_v49 = vmul.f32 %v14976_v16, %v15032_v28  ;;  %v7996_v12 = vmul.f32 %v12690_v56, %v12831_v48 }
 0x4dd   : > { %v6916_v9 = vadd.f32 %v6884_v41, %v6815_v11  ;;  %v6297_v40 = vadd.f32 %v6265_v10, %v6196_v36  ;;  %v6467_v36 = vmul.f32 %v12261_v34, %v12833_v31  ;;  %v12859_v10 = vld [vmem:[#allocation3 + $0x154] sm:$0xff]  ;;  %v6568_v46 = vmul.f32 %v12285_v7, %v12845_v18 }
 0x4de   : > { %v7623_v24 = vadd.f32 %v7591_v4, %v7522_v61  ;;  %v12847_v4 = vld [vmem:[#allocation3 + $0x90] sm:$0xff]  ;;  %v5792_v26 = vadd.f32 %v5760_v43, %v5659_v32  ;;  %15035 = vst [vmem:[#allocation11_spill] sm:$0xff] %v12859_v10  ;;  %v15036_v32 = vld [vmem:[#allocation73_spill] sm:$0xff] }
 0x4df   : > { %v7017_v29 = vadd.f32 %v6985_v22, %v6916_v9  ;;  %v15033_v61 = vld [vmem:[#allocation36_spill] sm:$0xff]  ;;  %v6398_v41 = vadd.f32 %v6366_v53, %v6297_v40  ;;  %v5962_v16 = vmul.f32 %v14978_v62, %v15036_v32  ;;  %v6669_v40 = vmul.f32 %v12421_v13, %v12847_v4  ;;  %v15037_v53 = vld [vmem:[#allocation74_spill] sm:$0xff] }
 0x4e0   : > { %v7725_v30 = vadd.f32 %v7693_v15, %v7623_v24  ;;  %v7289_v11 = vmul.f32 %v12601_v33, %v15033_v61  ;;  %v12857_v15 = vld [vmem:[#allocation3 + $0x80] sm:$0xff]  ;;  %v5893_v9 = vadd.f32 %v5861_v49, %v5792_v26  ;;  %v6063_v28 = vmul.f32 %v14989_v63, %v15037_v53  ;;  %v15041_v32 = vld [vmem:[#allocation72_spill] sm:$0xff]  ;;  %v15043_v53 = vld [vmem:[#allocation75_spill] sm:$0xff] }
 0x4e1   : > { %15034 = vst [vmem:[#allocation29_spill] sm:$0xff] %v12857_v15  ;;  %v7118_v24 = vadd.f32 %v7086_v45, %v7017_v29  ;;  %v6499_v43 = vadd.f32 %v6467_v36, %v6398_v41  ;;  %v12873_v45 = vld [vmem:[#allocation3 + $0x91] sm:$0xff]  ;;  %v6165_v26 = vmul.f32 %v12186_v39, %v12857_v15  ;;  %v8097_v49 = vmul.f32 %v12698_v3, %v12859_v10  ;;  %v15040_v41 = vld [vmem:[#allocation71_spill] sm:$0xff] }
 0x4e2   : > { %v7826_v22 = vadd.f32 %v7794_v1, %v7725_v30  ;;  %v12869_v1 = vld [vmem:[#allocation3 + $0x158] sm:$0xff]  ;;  %v5994_v29 = vadd.f32 %v5962_v16, %v5893_v9  ;;  %v7390_v36 = vmul.f32 %v12613_v59, %v15040_v41  ;;  %v7491_v63 = vmul.f32 %v12634_v37, %v15041_v32  ;;  %v12891_v10 = vld [vmem:[#allocation3 + $0x82] sm:$0xff] }
 0x4e3   : > { %v7220_v48 = vadd.f32 %v7188_v5, %v7118_v24  ;;  %15038 = vst [vmem:[#allocation40_spill] sm:$0xff] %v12869_v1  ;;  %v12871_v30 = vld [vmem:[#allocation3 + $0x159] sm:$0xff]  ;;  %v12883_v5 = vld [vmem:[#allocation3 + $0x81] sm:$0xff]  ;;  %v7592_v9 = vmul.f32 %v12641_v42, %v15043_v53  ;;  %15045 = vst [vmem:[#allocation34_spill] sm:$0xff] %v12891_v10  ;;  %v7694_v41 = vmul.f32 %v12648_v27, %v12869_v1 }
 0x4e4   : > { %v7927_v61 = vadd.f32 %v7895_v54, %v7826_v22  ;;  %15039 = vst [vmem:[#allocation22_spill] sm:$0xff] %v12871_v30  ;;  %v6600_v54 = vadd.f32 %v6568_v46, %v6499_v43  ;;  %15042 = vst [vmem:[#allocation16_spill] sm:$0xff] %v12883_v5  ;;  %v12887_v16 = vld [vmem:[#allocation3 + $0x15a] sm:$0xff]  ;;  %v12889_v39 = vld [vmem:[#allocation3 + $0x92] sm:$0xff]  ;;  %v6095_v15 = vadd.f32 %v6063_v28, %v5994_v29 }
 0x4e5   : > { %v7321_v24 = vadd.f32 %v7289_v11, %v7220_v48  ;;  %15044 = vst [vmem:[#allocation10_spill] sm:$0xff] %v12887_v16  ;;  %v7795_v43 = vmul.f32 %v12676_v38, %v12871_v30  ;;  %v6770_v48 = vmul.f32 %v12456_v17, %v12873_v45  ;;  %v12899_v32 = vld [vmem:[#allocation3 + $0x93] sm:$0xff]  ;;  %v6266_v29 = vmul.f32 %v12223_v8, %v12883_v5  ;;  %v5837_v8 = vld [vmem:[#allocation3 + $0x10a] sm:$0xff] }
 0x4e6   : > { %v8028_v22 = vadd.f32 %v7996_v12, %v7927_v61  ;;  %v6701_v46 = vadd.f32 %v6669_v40, %v6600_v54  ;;  %v5635_v12 = vld [vmem:[#allocation3 + $0x108] sm:$0xff]  ;;  %15046 = vst [vmem:[#allocation33_spill] sm:$0xff] %v12899_v32  ;;  %v12901_v53 = vld [vmem:[#allocation3 + $0x94] sm:$0xff]  ;;  %v6197_v28 = vadd.f32 %v6165_v26, %v6095_v15  ;;  %v7896_v1 = vmul.f32 %v12683_v23, %v12887_v16 }
 0x4e7   : > { %v7422_v61 = vadd.f32 %v7390_v36, %v7321_v24  ;;  %15047 = vst [vmem:[#allocation39_spill] sm:$0xff] %v12901_v53  ;;  %v6871_v40 = vmul.f32 %v12473_v19, %v12889_v39  ;;  %v12911_v36 = vld [vmem:[#allocation3 + $0x83] sm:$0xff]  ;;  %v5672_v26 = vmul.f32 %v14969_v47, %v5635_v12  ;;  %v5938_v24 = vld [vmem:[#allocation3 + $0x10b] sm:$0xff] }
 0x4e8   : > { %v8129_v11 = vadd.f32 %v8097_v49, %v8028_v22  ;;  %v6802_v30 = vadd.f32 %v6770_v48, %v6701_v46  ;;  %v6367_v49 = vmul.f32 %v12245_v0, %v12891_v10  ;;  %15048 = vst [vmem:[#allocation30_spill] sm:$0xff] %v12911_v36  ;;  %v6298_v15 = vadd.f32 %v6266_v29, %v6197_v28  ;;  %v12919_v16 = vld [vmem:[#allocation3 + $0x84] sm:$0xff]  ;;  %v12921_v0 = vld [vmem:[#allocation3 + $0x98] sm:$0xff]  ;;  %v12935_v10 = vld [vmem:[%s14639_s7 + $0x2] ss:$0 sm:$0xff] }
 0x4e9   : > { %v7523_v22 = vadd.f32 %v7491_v63, %v7422_v61  ;;  %v6972_v46 = vmul.f32 %v12480_v35, %v12899_v32  ;;  %v7073_v48 = vmul.f32 %v12487_v14, %v12901_v53  ;;  %15049 = vst [vmem:[#allocation12_spill] sm:$0xff] %v12919_v16  ;;  %15050 = vst [vmem:[#allocation32_spill] sm:$0xff] %v12921_v0  ;;  %v12924_v61 = vld [vmem:[#allocation3 + $0x15b] sm:$0xff]  ;;  %v13045_v32 = vld [vmem:[%s14639_s7 + $0x9] ss:$0 sm:$0xff] }
 0x4ea   : > { %v8203_v54 = vsel %vm339_vm2, %v8129_v11, 0.0  ;;  %v6903_v5 = vadd.f32 %v6871_v40, %v6802_v30  ;;  %v5773_v11 = vmul.f32 %v14972_v25, %v5736_v6  ;;  %15051 = vst [vmem:[#allocation17_spill] sm:$0xff] %v12924_v61  ;;  %v12926_v12 = vld [vmem:[#allocation3 + $0x15c] sm:$0xff]  ;;  %v6399_v29 = vadd.f32 %v6367_v49, %v6298_v15 }
 0x4eb   : > { %8204 = vadd.xlane.f32.xlu1 %v8203_v54  ;;  %v7624_v63 = vadd.f32 %v7592_v9, %v7523_v22  ;;  %15052 = vst [vmem:[#allocation21_spill] sm:$0xff] %v12926_v12  ;;  %v15053_v28 = vld [vmem:[#allocation25_spill] sm:$0xff]  ;;  %v6468_v40 = vmul.f32 %v12261_v34, %v12911_v36  ;;  %v5874_v25 = vmul.f32 %v12935_v10, %v5837_v8  ;;  %v6039_v34 = vld [vmem:[#allocation3 + $0x10c] sm:$0xff]  ;;  %v12992_v36 = vld [vmem:[#allocation3 + $0x122] sm:$0xff] }
 0x4ec   : > { %v7175_v30 = vmul.f32 %v12494_v58, %v15053_v28  ;;  %v7004_v54 = vadd.f32 %v6972_v46, %v6903_v5  ;;  %v5805_v53 = vadd.f32 %v5773_v11, %v5672_v26  ;;  %v5975_v6 = vmul.f32 %v14978_v62, %v5938_v24  ;;  %v12943_v5 = vld [vmem:[#allocation3 + $0x120] sm:$0xff]  ;;  %v15056_v24 = vld [vmem:[#allocation60_spill] sm:$0xff]  ;;  %v15057_v11 = vld [vmem:[#allocation31_spill] sm:$0xff]  ;;  %15066 = vst [vmem:[#allocation38_spill] sm:$0xff] %v12992_v36 }
 0x4ed   : > { %v7726_v9 = vadd.f32 %v7694_v41, %v7624_v63  ;;  %v6500_v22 = vadd.f32 %v6468_v40, %v6399_v29  ;;  %v6569_v28 = vmul.f32 %v12285_v7, %v12919_v16  ;;  %v6670_v49 = vmul.f32 %v12421_v13, %v12921_v0  ;;  %15054 = vst [vmem:[#allocation37_spill] sm:$0xff] %v12943_v5  ;;  %v12949_v46 = vld [vmem:[#allocation3 + $0x99] sm:$0xff]  ;;  %v12957_v16 = vld [vmem:[#allocation3 + $0xc1] sm:$0xff] }
 0x4ee   : > { %v7997_v15 = vmul.f32 %v12690_v56, %v12924_v61  ;;  %v8098_v26 = vmul.f32 %v12698_v3, %v12926_v12  ;;  %v7105_v8 = vadd.f32 %v7073_v48, %v7004_v54  ;;  %15055 = vst [vmem:[#allocation13_spill] sm:$0xff] %v12949_v46  ;;  %v5906_v62 = vadd.f32 %v5874_v25, %v5805_v53  ;;  %v12955_v29 = vld [vmem:[#allocation3 + $0xc0] sm:$0xff]  ;;  %v15061_v25 = vld [vmem:[#allocation24_spill] sm:$0xff] }
 0x4ef   : > { %v7827_v41 = vadd.f32 %v7795_v43, %v7726_v9  ;;  %v7276_v7 = vmul.f32 %v12601_v33, %v15056_v24  ;;  %v7377_v63 = vmul.f32 %v12613_v59, %v15057_v11  ;;  %15058 = vst [vmem:[#allocation14_spill] sm:$0xff] %v12955_v29  ;;  %v6601_v40 = vadd.f32 %v6569_v28, %v6500_v22  ;;  %v12959_v61 = vld [vmem:[#allocation3 + $0x9a] sm:$0xff]  ;;  %v12964_v53 = vld [vmem:[%s14639_s7 + $0x4] ss:$0 sm:$0xff]  ;;  %v12970_v48 = vld [vmem:[%s14639_s7 + $0x5] ss:$0 sm:$0xff] }
 0x4f0   : > { %v7207_v0 = vadd.f32 %v7175_v30, %v7105_v8  ;;  %15059 = vst [vmem:[#allocation19_spill] sm:$0xff] %v12957_v16  ;;  %15060 = vst [vmem:[#allocation41_spill] sm:$0xff] %v12959_v61  ;;  %v6007_v12 = vadd.f32 %v5975_v6, %v5906_v62  ;;  %v6076_v43 = vmul.f32 %v12964_v53, %v6039_v34  ;;  %v12978_v28 = vld [vmem:[#allocation3 + $0x9b] sm:$0xff]  ;;  %v15064_v62 = vld [vmem:[#allocation15_spill] sm:$0xff] }
 0x4f1   : > { %v6178_v30 = vmul.f32 %v12970_v48, %v12943_v5  ;;  %v7928_v54 = vadd.f32 %v7896_v1, %v7827_v41  ;;  %v7478_v9 = vmul.f32 %v12634_v37, %v15061_v25  ;;  %v6702_v6 = vadd.f32 %v6670_v49, %v6601_v40  ;;  %15062 = vst [vmem:[#allocation43_spill] sm:$0xff] %v12978_v28  ;;  %v12980_v8 = vld [vmem:[#allocation3 + $0x121] sm:$0xff]  ;;  %v5636_v41 = vld [vmem:[#allocation3 + $0x110] sm:$0xff] }
 0x4f2   : > { %v6771_v22 = vmul.f32 %v12456_v17, %v12949_v46  ;;  %15063 = vst [vmem:[#allocation27_spill] sm:$0xff] %v12980_v8  ;;  %v7308_v34 = vadd.f32 %v7276_v7, %v7207_v0  ;;  %v7579_v24 = vmul.f32 %v12641_v42, %v15064_v62  ;;  %v7681_v11 = vmul.f32 %v12648_v27, %v12955_v29  ;;  %v12986_v5 = vld [vmem:[#allocation3 + $0x9c] sm:$0xff]  ;;  %v5737_v0 = vld [vmem:[#allocation3 + $0x111] sm:$0xff] }
 0x4f3   : > { %15065 = vst [vmem:[#allocation69_spill] sm:$0xff] %v12986_v5  ;;  %v6108_v1 = vadd.f32 %v6076_v43, %v6007_v12  ;;  %v8029_v25 = vadd.f32 %v7997_v15, %v7928_v54  ;;  %v7782_v49 = vmul.f32 %v12676_v38, %v12957_v16  ;;  %v6872_v46 = vmul.f32 %v12473_v19, %v12959_v61  ;;  %v12999_v12 = vld [vmem:[%s14639_s7 + $0x6] ss:$0 sm:$0xff] }
 0x4f4   : > { %v6803_v40 = vadd.f32 %v6771_v22, %v6702_v6  ;;  %v7409_v7 = vadd.f32 %v7377_v63, %v7308_v34  ;;  %v6973_v62 = vmul.f32 %v12480_v35, %v12978_v28  ;;  %v6279_v15 = vmul.f32 %v12999_v12, %v12980_v8  ;;  %v13003_v43 = vld [vmem:[#allocation3 + $0x123] sm:$0xff]  ;;  %v5838_v34 = vld [vmem:[#allocation3 + $0x112] sm:$0xff] }
 0x4f5   : > { %v6210_v29 = vadd.f32 %v6178_v30, %v6108_v1  ;;  %v8130_v54 = vadd.f32 %v8098_v26, %v8029_v25  ;;  %v7074_v22 = vmul.f32 %v12487_v14, %v12986_v5  ;;  %v5673_v63 = vmul.f32 %v14969_v47, %v5636_v41  ;;  %v13008_v30 = vld [vmem:[#allocation3 + $0xc2] sm:$0xff]  ;;  %v13024_v47 = vld [vmem:[%s14639_s7 + $0x1] ss:$0 sm:$0xff] }
 0x4f6   : > { %v6904_v6 = vadd.f32 %v6872_v46, %v6803_v40  ;;  %v7510_v16 = vadd.f32 %v7478_v9, %v7409_v7  ;;  %15067 = vst [vmem:[#allocation44_spill] sm:$0xff] %v13008_v30  ;;  %v13013_v28 = vld [vmem:[%s14639_s7 + $0x7] ss:$0 sm:$0xff]  ;;  %v13019_v46 = vld [vmem:[#allocation3 + $0x138] sm:$0xff]  ;;  %v5774_v9 = vmul.f32 %v13024_v47, %v5737_v0  ;;  %v7176_v25 = vmul.f32 %v12494_v58, %v12720_v44  ;;  %v13033_v40 = vld [vmem:[%s14639_s7 + $0x8] ss:$0 sm:$0xff] }
 0x4f7   : > { %v6311_v1 = vadd.f32 %v6279_v15, %v6210_v29  ;;  %v6380_v8 = vmul.f32 %v13013_v28, %v12992_v36  ;;  %v13017_v26 = vld [vmem:[#allocation3 + $0x124] sm:$0xff]  ;;  %15069 = vst [vmem:[#allocation45_spill] sm:$0xff] %v13019_v46  ;;  %v8206_v29 = vsel %vm339_vm2, %v8130_v54, 0.0  ;;  %v6481_v7 = vmul.f32 %v13033_v40, %v13003_v43  ;;  %v5939_v15 = vld [vmem:[#allocation3 + $0x113] sm:$0xff] }
 0x4f8   : > { %15068 = vst [vmem:[#allocation48_spill] sm:$0xff] %v13017_v26  ;;  %v7005_v41 = vadd.f32 %v6973_v62, %v6904_v6  ;;  %8207 = vadd.xlane.f32.xlu0 %v8206_v29  ;;  %v7611_v5 = vadd.f32 %v7579_v24, %v7510_v16  ;;  %v13037_v36 = vld [vmem:[#allocation3 + $0xc3] sm:$0xff]  ;;  %v5806_v61 = vadd.f32 %v5774_v9, %v5673_v63  ;;  %v6040_v54 = vld [vmem:[#allocation3 + $0x114] sm:$0xff] }
 0x4f9   : > { %v6412_v0 = vadd.f32 %v6380_v8, %v6311_v1  ;;  %v5875_v62 = vmul.f32 %v12935_v10, %v5838_v34  ;;  %v7883_v44 = vmul.f32 %v12683_v23, %v13008_v30  ;;  %v6582_v29 = vmul.f32 %v13045_v32, %v13017_v26  ;;  %v13051_v8 = vld [vmem:[#allocation3 + $0x128] sm:$0xff]  ;;  %v13065_v26 = vld [vmem:[#allocation3 + $0x139] sm:$0xff] }
 0x4fa   : > { %v7106_v6 = vadd.f32 %v7074_v22, %v7005_v41  ;;  %v6683_v16 = vmul.f32 %v12421_v13, %v13019_v46  ;;  %15070 = vst [vmem:[#allocation51_spill] sm:$0xff] %v13051_v8  ;;  %v7713_v24 = vadd.f32 %v7681_v11, %v7611_v5  ;;  %v13053_v63 = vld [vmem:[#allocation3 + $0xc4] sm:$0xff]  ;;  %v13058_v22 = vld [vmem:[%s14639_s7 + $0x3] ss:$0 sm:$0xff]  ;;  %v7984_v41 = vmul.f32 %v12690_v56, %v13037_v36 }
 0x4fb   : > { %15071 = vst [vmem:[#allocation42_spill] sm:$0xff] %v13053_v63  ;;  %v6513_v34 = vadd.f32 %v6481_v7, %v6412_v0  ;;  %v5907_v1 = vadd.f32 %v5875_v62, %v5806_v61  ;;  %v5976_v9 = vmul.f32 %v13058_v22, %v5939_v15  ;;  %v7277_v46 = vmul.f32 %v12601_v33, %v12736_v21  ;;  %v13068_v61 = vld [vmem:[#allocation3 + $0xc8] sm:$0xff]  ;;  %v13070_v0 = vld [vmem:[#allocation3 + $0x13a] sm:$0xff] }
 0x4fc   : > { %v7208_v30 = vadd.f32 %v7176_v25, %v7106_v6  ;;  %v6077_v5 = vmul.f32 %v12964_v53, %v6040_v54  ;;  %v7814_v11 = vadd.f32 %v7782_v49, %v7713_v24  ;;  %15072 = vst [vmem:[#allocation53_spill] sm:$0xff] %v13068_v61  ;;  %v6179_v15 = vmul.f32 %v12970_v48, %v13051_v8  ;;  %v13080_v49 = vld [vmem:[#allocation3 + $0x129] sm:$0xff] }
 0x4fd   : > { %v6614_v7 = vadd.f32 %v6582_v29, %v6513_v34  ;;  %v6008_v62 = vadd.f32 %v5976_v9, %v5907_v1  ;;  %v8085_v25 = vmul.f32 %v12698_v3, %v13053_v63  ;;  %v7378_v21 = vmul.f32 %v12613_v59, %v12743_v57  ;;  %v13082_v29 = vld [vmem:[#allocation3 + $0xc9] sm:$0xff]  ;;  %v13086_v9 = vld [vmem:[#allocation3 + $0x13b] sm:$0xff] }
 0x4fe   : > { %v7309_v6 = vadd.f32 %v7277_v46, %v7208_v30  ;;  %v7479_v54 = vmul.f32 %v12634_v37, %v12745_v50  ;;  %v7915_v24 = vadd.f32 %v7883_v44, %v7814_v11  ;;  %15073 = vst [vmem:[#allocation46_spill] sm:$0xff] %v13082_v29  ;;  %v6784_v1 = vmul.f32 %v12456_v17, %v13065_v26  ;;  %v13088_v63 = vld [vmem:[#allocation3 + $0x12a] sm:$0xff]  ;;  %v13096_v11 = vld [vmem:[#allocation3 + $0x13c] sm:$0xff] }
 0x4ff   : > { %v6715_v34 = vadd.f32 %v6683_v16, %v6614_v7  ;;  %v6109_v8 = vadd.f32 %v6077_v5, %v6008_v62  ;;  %v7580_v57 = vmul.f32 %v12641_v42, %v12747_v60  ;;  %v7682_v50 = vmul.f32 %v12648_v27, %v13068_v61  ;;  %v13106_v61 = vld [vmem:[#allocation3 + $0x12b] sm:$0xff] }
 0x500   : > { %v7410_v30 = vadd.f32 %v7378_v21, %v7309_v6  ;;  %v6885_v46 = vmul.f32 %v12473_v19, %v13070_v0  ;;  %v8016_v44 = vadd.f32 %v7984_v41, %v7915_v24  ;;  %v6280_v5 = vmul.f32 %v12999_v12, %v13080_v49 }
 0x501   : > { %v6816_v16 = vadd.f32 %v6784_v1, %v6715_v34  ;;  %v6211_v7 = vadd.f32 %v6179_v15, %v6109_v8  ;;  %v7783_v6 = vmul.f32 %v12676_v38, %v13082_v29  ;;  %v6986_v60 = vmul.f32 %v12480_v35, %v13086_v9  ;;  %v13111_v8 = vld [vmem:[%s14639_s7] ss:$0 sm:$0xff] }
 0x502   : > { %v7511_v62 = vadd.f32 %v7479_v54, %v7410_v30  ;;  %v6381_v21 = vmul.f32 %v13013_v28, %v13088_v63  ;;  %v8117_v41 = vadd.f32 %v8085_v25, %v8016_v44  ;;  %v5660_v15 = vmul.f32 %v13111_v8, %v12793_v55  ;;  %v13119_v30 = vld [vmem:[#allocation3 + $0x12c] sm:$0xff]  ;;  %v13121_v25 = vld [vmem:[#allocation3 + $0x140] sm:$0xff] }
 0x503   : > { %v6917_v24 = vadd.f32 %v6885_v46, %v6816_v16  ;;  %v6312_v34 = vadd.f32 %v6280_v5, %v6211_v7  ;;  %v7087_v35 = vmul.f32 %v12487_v14, %v13096_v11  ;;  %v7189_v1 = vmul.f32 %v12494_v58, %v12798_v2  ;;  %v13126_v16 = vld [vmem:[#allocation3 + $0xca] sm:$0xff] }
 0x504   : > { %v7612_v54 = vadd.f32 %v7580_v57, %v7511_v62  ;;  %v5761_v46 = vmul.f32 %v13024_v47, %v12813_v52  ;;  %v8167_v44 = vsel %vm339_vm2, %v8117_v41, 0.0  ;;  %v13128_v7 = vld [vmem:[#allocation3 + $0xcb] sm:$0xff]  ;;  %v6482_v14 = vmul.f32 %v13033_v40, %v13106_v61 }
 0x505   : > { %v7018_v55 = vadd.f32 %v6986_v60, %v6917_v24  ;;  %v6413_v57 = vadd.f32 %v6381_v21, %v6312_v34  ;;  %8168 = vadd.xlane.f32.xlu1 %v8167_v44  ;;  %v13132_v2 = vld [vmem:[#allocation3 + $0xcc] sm:$0xff]  ;;  %v5862_v62 = vmul.f32 %v12935_v10, %v12823_v51  ;;  %v5963_v52 = vmul.f32 %v13058_v22, %v12833_v31 }
 0x506   : > { %v7714_v58 = vadd.f32 %v7682_v50, %v7612_v54  ;;  %v5793_v5 = vadd.f32 %v5761_v46, %v5660_v15  ;;  %v6583_v60 = vmul.f32 %v13045_v32, %v13119_v30  ;;  %v6684_v21 = vmul.f32 %v12421_v13, %v13121_v25  ;;  %v13146_v15 = vld [vmem:[#allocation3 + $0x141] sm:$0xff] }
 0x507   : > { %v7119_v41 = vadd.f32 %v7087_v35, %v7018_v55  ;;  %v6514_v29 = vadd.f32 %v6482_v14, %v6413_v57  ;;  %v7884_v50 = vmul.f32 %v12683_v23, %v13126_v16  ;;  %v7985_v34 = vmul.f32 %v12690_v56, %v13128_v7  ;;  %v13152_v13 = vld [vmem:[#allocation3 + $0x168] sm:$0xff] }
 0x508   : > { %v7815_v24 = vadd.f32 %v7783_v6, %v7714_v58  ;;  %v5894_v51 = vadd.f32 %v5862_v62, %v5793_v5  ;;  %v8086_v31 = vmul.f32 %v12698_v3, %v13132_v2  ;;  %v7290_v35 = vmul.f32 %v12601_v33, %v12801_v20  ;;  %15074 = vst [vmem:[#allocation56_spill] sm:$0xff] %v13152_v13  ;;  %v13154_v6 = vld [vmem:[#allocation3 + $0x142] sm:$0xff] }
 0x509   : > { %v7221_v54 = vadd.f32 %v7189_v1, %v7119_v41  ;;  %v6615_v46 = vadd.f32 %v6583_v60, %v6514_v29  ;;  %15075 = vst [vmem:[#allocation57_spill] sm:$0xff] %v13154_v6  ;;  %v6064_v57 = vmul.f32 %v12964_v53, %v12845_v18  ;;  %v6166_v14 = vmul.f32 %v12970_v48, %v12847_v4  ;;  %v15076_v5 = vld [vmem:[#allocation26_spill] sm:$0xff]  ;;  %v13162_v62 = vld [vmem:[#allocation3 + $0x169] sm:$0xff] }
 0x50a   : > { %v7916_v44 = vadd.f32 %v7884_v50, %v7815_v24  ;;  %v5995_v55 = vadd.f32 %v5963_v52, %v5894_v51  ;;  %v7391_v1 = vmul.f32 %v12613_v59, %v15076_v5  ;;  %15077 = vst [vmem:[#allocation47_spill] sm:$0xff] %v13162_v62  ;;  %v6785_v29 = vmul.f32 %v12456_v17, %v13146_v15  ;;  %v15078_v60 = vld [vmem:[#allocation18_spill] sm:$0xff]  ;;  %v15079_v24 = vld [vmem:[#allocation11_spill] sm:$0xff] }
 0x50b   : > { %v7322_v58 = vadd.f32 %v7290_v35, %v7221_v54  ;;  %v6716_v20 = vadd.f32 %v6684_v21, %v6615_v46  ;;  %v7492_v52 = vmul.f32 %v12634_v37, %v15078_v60  ;;  %v7593_v18 = vmul.f32 %v12641_v42, %v15079_v24  ;;  %v13170_v50 = vld [vmem:[#allocation3 + $0x143] sm:$0xff] }
 0x50c   : > { %v8017_v41 = vadd.f32 %v7985_v34, %v7916_v44  ;;  %15080 = vst [vmem:[#allocation49_spill] sm:$0xff] %v13170_v50  ;;  %v6096_v4 = vadd.f32 %v6064_v57, %v5995_v55  ;;  %v7695_v54 = vmul.f32 %v12648_v27, %v13152_v13  ;;  %v6886_v21 = vmul.f32 %v12473_v19, %v13154_v6  ;;  %v13178_v34 = vld [vmem:[#allocation3 + $0x144] sm:$0xff]  ;;  %v13185_v57 = vld [vmem:[%s14639_s7 + $0xd] ss:$0 sm:$0xff]  ;;  %v15094_v6 = vld [vmem:[#allocation12_spill] sm:$0xff] }
 0x50d   : > { %v7423_v51 = vadd.f32 %v7391_v1, %v7322_v58  ;;  %v6817_v35 = vadd.f32 %v6785_v29, %v6716_v20  ;;  %v7796_v17 = vmul.f32 %v12676_v38, %v13162_v62  ;;  %15081 = vst [vmem:[#allocation61_spill] sm:$0xff] %v13178_v34  ;;  %v6267_v5 = vmul.f32 %v12999_v12, %v12873_v45  ;;  %v13192_v1 = vld [vmem:[#allocation3 + $0x16a] sm:$0xff]  ;;  %v15083_v20 = vld [vmem:[#allocation29_spill] sm:$0xff] }
 0x50e   : > { %v8118_v46 = vadd.f32 %v8086_v31, %v8017_v41  ;;  %v6198_v44 = vadd.f32 %v6166_v14, %v6096_v4  ;;  %v6987_v19 = vmul.f32 %v13185_v57, %v13170_v50  ;;  %v6368_v31 = vmul.f32 %v13013_v28, %v12889_v39  ;;  %15082 = vst [vmem:[#allocation50_spill] sm:$0xff] %v13192_v1  ;;  %v15084_v29 = vld [vmem:[#allocation16_spill] sm:$0xff]  ;;  %v13201_v4 = vld [vmem:[%s14639_s7 + $0xe] ss:$0 sm:$0xff] }
 0x50f   : > { %v7524_v60 = vadd.f32 %v7492_v52, %v7423_v51  ;;  %v6918_v55 = vadd.f32 %v6886_v21, %v6817_v35  ;;  %v5661_v45 = vmul.f32 %v13111_v8, %v15083_v20  ;;  %v5762_v41 = vmul.f32 %v13024_v47, %v15084_v29  ;;  %v13208_v51 = vld [vmem:[%s14639_s7 + $0xf] ss:$0 sm:$0xff]  ;;  %v15085_v35 = vld [vmem:[#allocation40_spill] sm:$0xff] }
 0x510   : > { %v8170_v58 = vsel %vm339_vm2, %v8118_v46, 0.0  ;;  %v6299_v14 = vadd.f32 %v6267_v5, %v6198_v44  ;;  %v7088_v39 = vmul.f32 %v13201_v4, %v13178_v34  ;;  %v7190_v21 = vmul.f32 %v13208_v51, %v15085_v35  ;;  %v13212_v46 = vld [vmem:[#allocation3 + $0xa8] sm:$0xff]  ;;  %v15087_v5 = vld [vmem:[#allocation33_spill] sm:$0xff] }
 0x511   : > { %8171 = vadd.xlane.f32.xlu0 %v8170_v58  ;;  %v7625_v52 = vadd.f32 %v7593_v18, %v7524_v60  ;;  %v7019_v24 = vadd.f32 %v6987_v19, %v6918_v55  ;;  %v13214_v18 = vld [vmem:[#allocation3 + $0x16b] sm:$0xff]  ;;  %v6469_v60 = vmul.f32 %v13033_v40, %v15087_v5  ;;  %v5794_v55 = vadd.f32 %v5762_v41, %v5661_v45  ;;  %v15088_v19 = vld [vmem:[#allocation34_spill] sm:$0xff] }
 0x512   : > { %15086 = vst [vmem:[#allocation52_spill] sm:$0xff] %v13214_v18  ;;  %v6400_v44 = vadd.f32 %v6368_v31, %v6299_v14  ;;  %v5863_v58 = vmul.f32 %v12935_v10, %v15088_v19  ;;  %v7897_v29 = vmul.f32 %v12683_v23, %v13192_v1  ;;  %v15089_v34 = vld [vmem:[#allocation39_spill] sm:$0xff] }
 0x513   : > { %v7727_v20 = vadd.f32 %v7695_v54, %v7625_v52  ;;  %v7120_v62 = vadd.f32 %v7088_v39, %v7019_v24  ;;  %v6570_v35 = vmul.f32 %v13045_v32, %v15089_v34  ;;  %v13224_v50 = vld [vmem:[#allocation3 + $0x16c] sm:$0xff]  ;;  %v13229_v31 = vld [vmem:[%s14639_s7 + $0xa] ss:$0 sm:$0xff]  ;;  %v15090_v54 = vld [vmem:[#allocation30_spill] sm:$0xff]  ;;  %v7998_v24 = vmul.f32 %v12690_v56, %v13214_v18 }
 0x514   : > { %v6501_v13 = vadd.f32 %v6469_v60, %v6400_v44  ;;  %v6671_v14 = vmul.f32 %v13229_v31, %v13212_v46  ;;  %v5895_v45 = vadd.f32 %v5863_v58, %v5794_v55  ;;  %v5964_v41 = vmul.f32 %v13058_v22, %v15090_v54  ;;  %v15091_v39 = vld [vmem:[#allocation22_spill] sm:$0xff]  ;;  %v13239_v5 = vld [vmem:[#allocation3 + $0xa9] sm:$0xff]  ;;  %v15098_v18 = vld [vmem:[#allocation17_spill] sm:$0xff] }
 0x515   : > { %v7828_v52 = vadd.f32 %v7796_v17, %v7727_v20  ;;  %v7222_v34 = vadd.f32 %v7190_v21, %v7120_v62  ;;  %v7291_v44 = vmul.f32 %v12601_v33, %v15091_v39  ;;  %15092 = vst [vmem:[#allocation63_spill] sm:$0xff] %v13239_v5  ;;  %v13241_v60 = vld [vmem:[#allocation3 + $0x170] sm:$0xff]  ;;  %v6065_v55 = vmul.f32 %v12964_v53, %v15094_v6  ;;  %v15096_v21 = vld [vmem:[#allocation10_spill] sm:$0xff]  ;;  %v13260_v6 = vld [vmem:[%s14639_s7 + $0xb] ss:$0 sm:$0xff] }
 0x516   : > { %15093 = vst [vmem:[#allocation28_spill] sm:$0xff] %v13241_v60  ;;  %v6602_v19 = vadd.f32 %v6570_v35, %v6501_v13  ;;  %v5996_v1 = vadd.f32 %v5964_v41, %v5895_v45  ;;  %v15095_v58 = vld [vmem:[#allocation32_spill] sm:$0xff]  ;;  %v8099_v20 = vmul.f32 %v12698_v3, %v13224_v50  ;;  %v7392_v33 = vmul.f32 %v12613_v59, %v15096_v21 }
 0x517   : > { %v6167_v54 = vmul.f32 %v12970_v48, %v15095_v58  ;;  %v7929_v17 = vadd.f32 %v7897_v29, %v7828_v52  ;;  %v7323_v62 = vadd.f32 %v7291_v44, %v7222_v34  ;;  %v13251_v39 = vld [vmem:[#allocation3 + $0xaa] sm:$0xff]  ;;  %v7493_v13 = vmul.f32 %v12634_v37, %v15098_v18  ;;  %v15101_v44 = vld [vmem:[#allocation21_spill] sm:$0xff] }
 0x518   : > { %15097 = vst [vmem:[#allocation54_spill] sm:$0xff] %v13251_v39  ;;  %v13255_v35 = vld [vmem:[#allocation3 + $0x171] sm:$0xff]  ;;  %v6703_v45 = vadd.f32 %v6671_v14, %v6602_v19  ;;  %v6772_v29 = vmul.f32 %v13260_v6, %v13239_v5  ;;  %v6097_v52 = vadd.f32 %v6065_v55, %v5996_v1  ;;  %v7594_v58 = vmul.f32 %v12641_v42, %v15101_v44  ;;  %v13273_v14 = vld [vmem:[%s14639_s7 + $0xc] ss:$0 sm:$0xff] }
 0x519   : > { %15099 = vst [vmem:[#allocation55_spill] sm:$0xff] %v13255_v35  ;;  %v13264_v41 = vld [vmem:[#allocation3 + $0xab] sm:$0xff]  ;;  %v8030_v59 = vadd.f32 %v7998_v24, %v7929_v17  ;;  %v7424_v34 = vadd.f32 %v7392_v33, %v7323_v62  ;;  %v7696_v37 = vmul.f32 %v12648_v27, %v13241_v60  ;;  %v6873_v19 = vmul.f32 %v13273_v14, %v13251_v39  ;;  %v15103_v24 = vld [vmem:[#allocation13_spill] sm:$0xff] }
 0x51a   : > { %15100 = vst [vmem:[#allocation64_spill] sm:$0xff] %v13264_v41  ;;  %v6804_v18 = vadd.f32 %v6772_v29, %v6703_v45  ;;  %v13277_v21 = vld [vmem:[#allocation3 + $0xac] sm:$0xff]  ;;  %v6199_v1 = vadd.f32 %v6167_v54, %v6097_v52  ;;  %v6268_v55 = vmul.f32 %v12999_v12, %v15103_v24  ;;  %v7797_v27 = vmul.f32 %v12676_v38, %v13255_v35  ;;  %v15104_v29 = vld [vmem:[#allocation41_spill] sm:$0xff]  ;;  %v15107_v24 = vld [vmem:[#allocation14_spill] sm:$0xff] }
 0x51b   : > { %15102 = vst [vmem:[#allocation20_spill] sm:$0xff] %v13277_v21  ;;  %v8131_v17 = vadd.f32 %v8099_v20, %v8030_v59  ;;  %v7525_v42 = vadd.f32 %v7493_v13, %v7424_v34  ;;  %v6974_v62 = vmul.f32 %v13185_v57, %v13264_v41  ;;  %v6369_v44 = vmul.f32 %v13013_v28, %v15104_v29  ;;  %v15105_v60 = vld [vmem:[#allocation37_spill] sm:$0xff]  ;;  %v13292_v13 = vld [vmem:[#allocation3 + $0xb0] sm:$0xff]  ;;  %v15106_v59 = vld [vmem:[#allocation27_spill] sm:$0xff] }
 0x51c   : > { %v6905_v33 = vadd.f32 %v6873_v19, %v6804_v18  ;;  %v6300_v45 = vadd.f32 %v6268_v55, %v6199_v1  ;;  %v5674_v39 = vmul.f32 %v13111_v8, %v15105_v60  ;;  %v7075_v20 = vmul.f32 %v13201_v4, %v13277_v21  ;;  %v13296_v18 = vld [vmem:[#allocation3 + $0x172] sm:$0xff]  ;;  %v15110_v21 = vld [vmem:[#allocation38_spill] sm:$0xff] }
 0x51d   : > { %v8209_v54 = vsel %vm339_vm2, %v8131_v17, 0.0  ;;  %v7626_v52 = vadd.f32 %v7594_v58, %v7525_v42  ;;  %v5775_v34 = vmul.f32 %v13024_v47, %v15106_v59  ;;  %v13298_v19 = vld [vmem:[#allocation3 + $0x173] sm:$0xff]  ;;  %v7177_v60 = vmul.f32 %v13208_v51, %v15107_v24  ;;  %v15108_v17 = vld [vmem:[#allocation43_spill] sm:$0xff] }
 0x51e   : > { %8210 = vadd.xlane.f32.xlu1 %v8209_v54  ;;  %v7006_v1 = vadd.f32 %v6974_v62, %v6905_v33  ;;  %v6401_v55 = vadd.f32 %v6369_v44, %v6300_v45  ;;  %v6470_v58 = vmul.f32 %v13033_v40, %v15108_v17  ;;  %v13304_v29 = vld [vmem:[#allocation3 + $0x174] sm:$0xff]  ;;  %v5876_v59 = vmul.f32 %v12935_v10, %v15110_v21 }
 0x51f   : > { %v7728_v42 = vadd.f32 %v7696_v37, %v7626_v52  ;;  %15109 = vst [vmem:[#allocation65_spill] sm:$0xff] %v13304_v29  ;;  %v5807_v35 = vadd.f32 %v5775_v34, %v5674_v39  ;;  %v5977_v54 = vmul.f32 %v13058_v22, %v13003_v43  ;;  %v15111_v62 = vld [vmem:[#allocation69_spill] sm:$0xff]  ;;  %v6672_v45 = vmul.f32 %v13229_v31, %v13292_v13  ;;  %v13325_v34 = vld [vmem:[%s14639_s7 + $0x10] ss:$0 sm:$0xff] }
 0x520   : > { %v7107_v41 = vadd.f32 %v7075_v20, %v7006_v1  ;;  %v6502_v5 = vadd.f32 %v6470_v58, %v6401_v55  ;;  %v6571_v33 = vmul.f32 %v13045_v32, %v15111_v62  ;;  %v7898_v37 = vmul.f32 %v12683_v23, %v13296_v18  ;;  %v13318_v52 = vld [vmem:[#allocation3 + $0xb1] sm:$0xff]  ;;  %v15113_v1 = vld [vmem:[#allocation19_spill] sm:$0xff]  ;;  %v13344_v62 = vld [vmem:[#allocation3 + $0xd9] sm:$0xff] }
 0x521   : > { %v7829_v44 = vadd.f32 %v7797_v27, %v7728_v42  ;;  %v7999_v39 = vmul.f32 %v12690_v56, %v13298_v19  ;;  %15112 = vst [vmem:[#allocation62_spill] sm:$0xff] %v13318_v52  ;;  %v5908_v21 = vadd.f32 %v5876_v59, %v5807_v35  ;;  %v8100_v43 = vmul.f32 %v12698_v3, %v13304_v29  ;;  %v13329_v55 = vld [vmem:[#allocation3 + $0xd8] sm:$0xff]  ;;  %v15114_v35 = vld [vmem:[#allocation48_spill] sm:$0xff] }
 0x522   : > { %v7209_v20 = vadd.f32 %v7177_v60, %v7107_v41  ;;  %v7278_v27 = vmul.f32 %v13325_v34, %v15113_v1  ;;  %v6603_v24 = vadd.f32 %v6571_v33, %v6502_v5  ;;  %v13331_v56 = vld [vmem:[#allocation3 + $0xb2] sm:$0xff]  ;;  %v6078_v58 = vmul.f32 %v12964_v53, %v15114_v35  ;;  %v13340_v42 = vld [vmem:[%s14639_s7 + $0x11] ss:$0 sm:$0xff]  ;;  %15117 = vst [vmem:[#allocation67_spill] sm:$0xff] %v13344_v62  ;;  %v15118_v1 = vld [vmem:[#allocation42_spill] sm:$0xff] }
 0x523   : > { %v7930_v23 = vadd.f32 %v7898_v37, %v7829_v44  ;;  %v6009_v17 = vadd.f32 %v5977_v54, %v5908_v21  ;;  %v15115_v3 = vld [vmem:[#allocation45_spill] sm:$0xff]  ;;  %v15116_v59 = vld [vmem:[#allocation44_spill] sm:$0xff]  ;;  %v6773_v54 = vmul.f32 %v13260_v6, %v13318_v52 }
 0x524   : > { %v6180_v41 = vmul.f32 %v12970_v48, %v15115_v3  ;;  %v7310_v60 = vadd.f32 %v7278_v27, %v7209_v20  ;;  %v7379_v5 = vmul.f32 %v13340_v42, %v15116_v59  ;;  %v6704_v33 = vadd.f32 %v6672_v45, %v6603_v24  ;;  %v13351_v37 = vld [vmem:[%s14639_s7 + $0x12] ss:$0 sm:$0xff]  ;;  %v13358_v20 = vld [vmem:[%s14639_s7 + $0x13] ss:$0 sm:$0xff]  ;;  %v13375_v52 = vld [vmem:[#allocation3 + $0xb4] sm:$0xff] }
 0x525   : > { %v8031_v44 = vadd.f32 %v7999_v39, %v7930_v23  ;;  %v7480_v21 = vmul.f32 %v13351_v37, %v13037_v36  ;;  %v7581_v45 = vmul.f32 %v13358_v20, %v15118_v1  ;;  %v13362_v27 = vld [vmem:[#allocation3 + $0xb3] sm:$0xff]  ;;  %v6110_v24 = vadd.f32 %v6078_v58, %v6009_v17 }
 0x526   : > { %v7411_v39 = vadd.f32 %v7379_v5, %v7310_v60  ;;  %v13367_v23 = vld [vmem:[%s14639_s7 + $0x14] ss:$0 sm:$0xff]  ;;  %v6805_v35 = vadd.f32 %v6773_v54, %v6704_v33  ;;  %v6874_v3 = vmul.f32 %v13273_v14, %v13331_v56  ;;  %v7784_v1 = vmul.f32 %v12676_v38, %v13344_v62  ;;  %v15120_v38 = vld [vmem:[#allocation51_spill] sm:$0xff] }
 0x527   : > { %v7683_v36 = vmul.f32 %v13367_v23, %v13329_v55  ;;  %v8132_v59 = vadd.f32 %v8100_v43, %v8031_v44  ;;  %v6212_v17 = vadd.f32 %v6180_v41, %v6110_v24  ;;  %v6281_v58 = vmul.f32 %v12999_v12, %v13065_v26  ;;  %v13384_v43 = vld [vmem:[#allocation3 + $0xda] sm:$0xff] }
 0x528   : > { %v7512_v60 = vadd.f32 %v7480_v21, %v7411_v39  ;;  %v6906_v5 = vadd.f32 %v6874_v3, %v6805_v35  ;;  %v6975_v29 = vmul.f32 %v13185_v57, %v13362_v27  ;;  %v6382_v33 = vmul.f32 %v13013_v28, %v13070_v0  ;;  %15119 = vst [vmem:[#allocation66_spill] sm:$0xff] %v13384_v43  ;;  %v15121_v39 = vld [vmem:[#allocation53_spill] sm:$0xff]  ;;  %v13394_v35 = vld [vmem:[#allocation3 + $0x150] sm:$0xff] }
 0x529   : > { %v8212_v54 = vsel %vm339_vm2, %v8132_v59, 0.0  ;;  %v6313_v44 = vadd.f32 %v6281_v58, %v6212_v17  ;;  %v5675_v62 = vmul.f32 %v13111_v8, %v15120_v38  ;;  %v5776_v41 = vmul.f32 %v13024_v47, %v13080_v49  ;;  %v13396_v3 = vld [vmem:[#allocation3 + $0xdb] sm:$0xff]  ;;  %v13420_v38 = vld [vmem:[%s14639_s7 + $0x17] ss:$0 sm:$0xff] }
 0x52a   : > { %8213 = vadd.xlane.f32.xlu0 %v8212_v54  ;;  %v7613_v26 = vadd.f32 %v7581_v45, %v7512_v60  ;;  %v7007_v21 = vadd.f32 %v6975_v29, %v6906_v5  ;;  %v7076_v24 = vmul.f32 %v13201_v4, %v13375_v52  ;;  %v7178_v0 = vmul.f32 %v13208_v51, %v15121_v39  ;;  %v13405_v29 = vld [vmem:[%s14639_s7 + $0x16] ss:$0 sm:$0xff]  ;;  %v13411_v54 = vld [vmem:[#allocation3 + $0xdc] sm:$0xff] }
 0x52b   : > { %15122 = vst [vmem:[#allocation35_spill] sm:$0xff] %v13396_v3  ;;  %v6414_v59 = vadd.f32 %v6382_v33, %v6313_v44  ;;  %v6483_v17 = vmul.f32 %v13033_v40, %v13086_v9  ;;  %v5808_v58 = vadd.f32 %v5776_v41, %v5675_v62  ;;  %v5877_v49 = vmul.f32 %v12935_v10, %v13088_v63  ;;  %v13428_v39 = vld [vmem:[#allocation3 + $0xe0] sm:$0xff] }
 0x52c   : > { %v7715_v45 = vadd.f32 %v7683_v36, %v7613_v26  ;;  %v7885_v60 = vmul.f32 %v13405_v29, %v13384_v43  ;;  %v7108_v5 = vadd.f32 %v7076_v24, %v7007_v21  ;;  %v6584_v33 = vmul.f32 %v13045_v32, %v13096_v11  ;;  %15123 = vst [vmem:[#allocation58_spill] sm:$0xff] %v13411_v54  ;;  %v15124_v26 = vld [vmem:[#allocation46_spill] sm:$0xff]  ;;  %v13426_v24 = vld [vmem:[#allocation3 + $0x151] sm:$0xff] }
 0x52d   : > { %v6515_v9 = vadd.f32 %v6483_v17, %v6414_v59  ;;  %v6685_v62 = vmul.f32 %v13229_v31, %v13394_v35  ;;  %v5909_v63 = vadd.f32 %v5877_v49, %v5808_v58  ;;  %v5978_v36 = vmul.f32 %v13058_v22, %v13106_v61  ;;  %15125 = vst [vmem:[#allocation68_spill] sm:$0xff] %v13426_v24  ;;  %v15135_v43 = vld [vmem:[#allocation61_spill] sm:$0xff] }
 0x52e   : > { %v7816_v44 = vadd.f32 %v7784_v1, %v7715_v45  ;;  %v7986_v41 = vmul.f32 %v13420_v38, %v13396_v3  ;;  %v7210_v11 = vadd.f32 %v7178_v0, %v7108_v5  ;;  %v7279_v21 = vmul.f32 %v13325_v34, %v15124_v26  ;;  %15126 = vst [vmem:[#allocation59_spill] sm:$0xff] %v13428_v39  ;;  %v13437_v0 = vld [vmem:[%s14639_s7 + $0x18] ss:$0 sm:$0xff] }
 0x52f   : > { %v6616_v59 = vadd.f32 %v6584_v33, %v6515_v9  ;;  %v6010_v17 = vadd.f32 %v5978_v36, %v5909_v63  ;;  %v6079_v61 = vmul.f32 %v12964_v53, %v13119_v30  ;;  %v6181_v1 = vmul.f32 %v12970_v48, %v13121_v25  ;;  %v13443_v33 = vld [vmem:[#allocation3 + $0x152] sm:$0xff]  ;;  %v13447_v9 = vld [vmem:[#allocation3 + $0xe1] sm:$0xff] }
 0x530   : > { %v7917_v58 = vadd.f32 %v7885_v60, %v7816_v44  ;;  %v8087_v49 = vmul.f32 %v13437_v0, %v13411_v54  ;;  %v7311_v45 = vadd.f32 %v7279_v21, %v7210_v11  ;;  %v7380_v5 = vmul.f32 %v13340_v42, %v13126_v16  ;;  %15127 = vst [vmem:[#allocation23_spill] sm:$0xff] %v13443_v33  ;;  %v13451_v63 = vld [vmem:[#allocation3 + $0x153] sm:$0xff] }
 0x531   : > { %v7481_v30 = vmul.f32 %v13351_v37, %v13128_v7  ;;  %15128 = vst [vmem:[#allocation70_spill] sm:$0xff] %v13447_v9  ;;  %v6717_v25 = vadd.f32 %v6685_v62, %v6616_v59  ;;  %v6786_v60 = vmul.f32 %v13260_v6, %v13426_v24  ;;  %15129 = vst [vmem:[#allocation36_spill] sm:$0xff] %v13451_v63  ;;  %v5625_v21 = vld [vmem:[#allocation3 + $0x90] sm:$0xff] }
 0x532   : > { %v6111_v36 = vadd.f32 %v6079_v61, %v6010_v17  ;;  %v8018_v44 = vadd.f32 %v7986_v41, %v7917_v58  ;;  %v7412_v26 = vadd.f32 %v7380_v5, %v7311_v45  ;;  %v7582_v11 = vmul.f32 %v13358_v20, %v13132_v2  ;;  %v13459_v62 = vld [vmem:[#allocation3 + $0x154] sm:$0xff] }
 0x533   : > { %v7684_v16 = vmul.f32 %v13367_v23, %v13428_v39  ;;  %v6818_v54 = vadd.f32 %v6786_v60, %v6717_v25  ;;  %v6887_v7 = vmul.f32 %v13273_v14, %v13443_v33  ;;  %15130 = vst [vmem:[#allocation73_spill] sm:$0xff] %v13459_v62  ;;  %v6282_v24 = vmul.f32 %v12999_v12, %v13146_v15  ;;  %v5726_v17 = vld [vmem:[#allocation3 + $0x91] sm:$0xff] }
 0x534   : > { %v6213_v59 = vadd.f32 %v6181_v1, %v6111_v36  ;;  %v8119_v41 = vadd.f32 %v8087_v49, %v8018_v44  ;;  %v7513_v61 = vadd.f32 %v7481_v30, %v7412_v26  ;;  %v13466_v2 = vld [vmem:[%s14639_s7 + $0x15] ss:$0 sm:$0xff]  ;;  %v6988_v45 = vmul.f32 %v13185_v57, %v13451_v63  ;;  %v15131_v1 = vld [vmem:[#allocation57_spill] sm:$0xff] }
 0x535   : > { %v7785_v58 = vmul.f32 %v13466_v2, %v13447_v9  ;;  %v6919_v5 = vadd.f32 %v6887_v7, %v6818_v54  ;;  %v6383_v60 = vmul.f32 %v13013_v28, %v15131_v1  ;;  %v5662_v15 = vmul.f32 %v13111_v8, %v5625_v21  ;;  %v5827_v49 = vld [vmem:[#allocation3 + $0x92] sm:$0xff]  ;;  %v13481_v54 = vld [vmem:[#allocation3 + $0xe2] sm:$0xff] }
 0x536   : > { %v6314_v25 = vadd.f32 %v6282_v24, %v6213_v59  ;;  %v5928_v30 = vld [vmem:[#allocation3 + $0x93] sm:$0xff]  ;;  %v8173_v36 = vsel %vm339_vm2, %v8119_v41, 0.0  ;;  %v7614_v44 = vadd.f32 %v7582_v11, %v7513_v61  ;;  %v7089_v26 = vmul.f32 %v13201_v4, %v13459_v62  ;;  %v13483_v24 = vld [vmem:[#allocation3 + $0xe3] sm:$0xff] }
 0x537   : > { %v13478_v39 = vld [vmem:[#allocation3 + $0x158] sm:$0xff]  ;;  %v5763_v9 = vmul.f32 %v13024_v47, %v5726_v17  ;;  %8174 = vadd.xlane.f32.xlu1 %v8173_v36  ;;  %v7020_v7 = vadd.f32 %v6988_v45, %v6919_v5  ;;  %v15132_v59 = vld [vmem:[#allocation56_spill] sm:$0xff]  ;;  %v13489_v61 = vld [vmem:[#allocation3 + $0xe4] sm:$0xff]  ;;  %v5864_v33 = vmul.f32 %v12935_v10, %v5827_v49  ;;  %v5965_v17 = vmul.f32 %v13058_v22, %v5928_v30 }
 0x538   : > { %v7191_v21 = vmul.f32 %v13208_v51, %v15132_v59  ;;  %v6415_v1 = vadd.f32 %v6383_v60, %v6314_v25  ;;  %v15133_v63 = vld [vmem:[#allocation49_spill] sm:$0xff]  ;;  %v7716_v41 = vadd.f32 %v7684_v16, %v7614_v44  ;;  %15134 = vst [vmem:[#allocation74_spill] sm:$0xff] %v13489_v61  ;;  %v6585_v45 = vmul.f32 %v13045_v32, %v15135_v43  ;;  %v15137_v44 = vld [vmem:[#allocation47_spill] sm:$0xff]  ;;  %v13507_v59 = vld [vmem:[#allocation3 + $0x180] sm:$0xff] }
 0x539   : > { %v6484_v11 = vmul.f32 %v13033_v40, %v15133_v63  ;;  %v5795_v62 = vadd.f32 %v5763_v9, %v5662_v15  ;;  %v7121_v36 = vadd.f32 %v7089_v26, %v7020_v7  ;;  %v6686_v5 = vmul.f32 %v13229_v31, %v13478_v39  ;;  %v6029_v25 = vld [vmem:[#allocation3 + $0x94] sm:$0xff]  ;;  %15138 = vst [vmem:[#allocation72_spill] sm:$0xff] %v13507_v59 }
 0x53a   : > { %v7817_v60 = vadd.f32 %v7785_v58, %v7716_v41  ;;  %v7886_v63 = vmul.f32 %v13405_v29, %v13481_v54  ;;  %v7987_v9 = vmul.f32 %v13420_v38, %v13483_v24  ;;  %v13501_v16 = vld [vmem:[#allocation3 + $0x159] sm:$0xff]  ;;  %v8088_v49 = vmul.f32 %v13437_v0, %v13489_v61 }
 0x53b   : > { %v6516_v3 = vadd.f32 %v6484_v11, %v6415_v1  ;;  %15136 = vst [vmem:[#allocation71_spill] sm:$0xff] %v13501_v16  ;;  %v5896_v15 = vadd.f32 %v5864_v33, %v5795_v62  ;;  %v7223_v30 = vadd.f32 %v7191_v21, %v7121_v36  ;;  %v7292_v43 = vmul.f32 %v13325_v34, %v15137_v44  ;;  %v13509_v58 = vld [vmem:[#allocation3 + $0x15a] sm:$0xff] }
 0x53c   : > { %v7918_v7 = vadd.f32 %v7886_v63, %v7817_v60  ;;  %15139 = vst [vmem:[#allocation75_spill] sm:$0xff] %v13509_v58  ;;  %v6066_v11 = vmul.f32 %v12964_v53, %v6029_v25  ;;  %v6168_v41 = vmul.f32 %v12970_v48, %v13212_v46  ;;  %v15140_v62 = vld [vmem:[#allocation50_spill] sm:$0xff]  ;;  %v15142_v60 = vld [vmem:[#allocation52_spill] sm:$0xff] }
 0x53d   : > { %v6617_v26 = vadd.f32 %v6585_v45, %v6516_v3  ;;  %v5997_v1 = vadd.f32 %v5965_v17, %v5896_v15  ;;  %v7324_v33 = vadd.f32 %v7292_v43, %v7223_v30  ;;  %v7393_v61 = vmul.f32 %v13340_v42, %v15140_v62  ;;  %v13516_v21 = vld [vmem:[#allocation3 + $0x181] sm:$0xff]  ;;  %v5626_v43 = vld [vmem:[#allocation3 + $0x98] sm:$0xff] }
 0x53e   : > { %15141 = vst [vmem:[#allocation25_spill] sm:$0xff] %v13516_v21  ;;  %v6787_v3 = vmul.f32 %v13260_v6, %v13501_v16  ;;  %v8019_v45 = vadd.f32 %v7987_v9, %v7918_v7  ;;  %v7494_v63 = vmul.f32 %v13351_v37, %v15142_v60  ;;  %v7595_v17 = vmul.f32 %v13358_v20, %v13224_v50  ;;  %v13524_v25 = vld [vmem:[#allocation3 + $0x15b] sm:$0xff]  ;;  %v15145_v60 = vld [vmem:[#allocation63_spill] sm:$0xff] }
 0x53f   : > { %v6718_v36 = vadd.f32 %v6686_v5, %v6617_v26  ;;  %15143 = vst [vmem:[#allocation60_spill] sm:$0xff] %v13524_v25  ;;  %v6098_v46 = vadd.f32 %v6066_v11, %v5997_v1  ;;  %v7425_v15 = vadd.f32 %v7393_v61, %v7324_v33  ;;  %v7697_v30 = vmul.f32 %v13367_v23, %v13507_v59  ;;  %v5727_v26 = vld [vmem:[#allocation3 + $0x99] sm:$0xff] }
 0x540   : > { %v6888_v5 = vmul.f32 %v13273_v14, %v13509_v58  ;;  %v8120_v9 = vadd.f32 %v8088_v49, %v8019_v45  ;;  %v7798_v7 = vmul.f32 %v13466_v2, %v13516_v21  ;;  %v13532_v62 = vld [vmem:[#allocation3 + $0x15c] sm:$0xff]  ;;  %v6269_v1 = vmul.f32 %v12999_v12, %v15145_v60 }
 0x541   : > { %v6819_v44 = vadd.f32 %v6787_v3, %v6718_v36  ;;  %15144 = vst [vmem:[#allocation31_spill] sm:$0xff] %v13532_v62  ;;  %v6200_v50 = vadd.f32 %v6168_v41, %v6098_v46  ;;  %v7526_v61 = vadd.f32 %v7494_v63, %v7425_v15  ;;  %v6989_v33 = vmul.f32 %v13185_v57, %v13524_v25  ;;  %v15146_v36 = vld [vmem:[#allocation54_spill] sm:$0xff] }
 0x542   : > { %v6370_v3 = vmul.f32 %v13013_v28, %v15146_v36  ;;  %v5828_v59 = vld [vmem:[#allocation3 + $0x9a] sm:$0xff]  ;;  %v8176_v49 = vsel %vm339_vm2, %v8120_v9, 0.0  ;;  %v13541_v45 = vld [vmem:[#allocation3 + $0x182] sm:$0xff]  ;;  %v5663_v58 = vmul.f32 %v13111_v8, %v5626_v43  ;;  %v5764_v41 = vmul.f32 %v13024_v47, %v5727_v26 }
 0x543   : > { %v6920_v11 = vadd.f32 %v6888_v5, %v6819_v44  ;;  %v6301_v21 = vadd.f32 %v6269_v1, %v6200_v50  ;;  %8177 = vadd.xlane.f32.xlu0 %v8176_v49  ;;  %v7627_v46 = vadd.f32 %v7595_v17, %v7526_v61  ;;  %v7090_v15 = vmul.f32 %v13201_v4, %v13532_v62  ;;  %v15147_v44 = vld [vmem:[#allocation28_spill] sm:$0xff]  ;;  %v13549_v60 = vld [vmem:[#allocation3 + $0xc0] sm:$0xff] }
 0x544   : > { %v7192_v5 = vmul.f32 %v13208_v51, %v15147_v44  ;;  %v5929_v36 = vld [vmem:[#allocation3 + $0x9b] sm:$0xff]  ;;  %v13551_v9 = vld [vmem:[#allocation3 + $0x183] sm:$0xff]  ;;  %v15148_v50 = vld [vmem:[#allocation64_spill] sm:$0xff]  ;;  %v5796_v1 = vadd.f32 %v5764_v41, %v5663_v58  ;;  %v5865_v26 = vmul.f32 %v12935_v10, %v5828_v59  ;;  %v7899_v61 = vmul.f32 %v13405_v29, %v13541_v45 }
 0x545   : > { %v7021_v63 = vadd.f32 %v6989_v33, %v6920_v11  ;;  %v6402_v25 = vadd.f32 %v6370_v3, %v6301_v21  ;;  %v6471_v43 = vmul.f32 %v13033_v40, %v15148_v50  ;;  %v7729_v17 = vadd.f32 %v7697_v30, %v7627_v46  ;;  %v15149_v33 = vld [vmem:[#allocation20_spill] sm:$0xff]  ;;  %v6030_v44 = vld [vmem:[#allocation3 + $0x9c] sm:$0xff]  ;;  %v13560_v62 = vld [vmem:[#allocation3 + $0x184] sm:$0xff] }
 0x546   : > { %v6572_v49 = vmul.f32 %v13045_v32, %v15149_v33  ;;  %v6673_v21 = vmul.f32 %v13229_v31, %v13549_v60  ;;  %v5897_v3 = vadd.f32 %v5865_v26, %v5796_v1  ;;  %v5966_v58 = vmul.f32 %v13058_v22, %v5929_v36  ;;  %v15150_v30 = vld [vmem:[#allocation55_spill] sm:$0xff] }
 0x547   : > { %v7122_v11 = vadd.f32 %v7090_v15, %v7021_v63  ;;  %v6503_v16 = vadd.f32 %v6471_v43, %v6402_v25  ;;  %v7830_v41 = vadd.f32 %v7798_v7, %v7729_v17  ;;  %v8000_v10 = vmul.f32 %v13420_v38, %v13551_v9  ;;  %v13569_v63 = vld [vmem:[#allocation3 + $0xc1] sm:$0xff] }
 0x548   : > { %v7293_v46 = vmul.f32 %v13325_v34, %v15150_v30  ;;  %v13571_v15 = vld [vmem:[#allocation3 + $0x188] sm:$0xff]  ;;  %v5998_v25 = vadd.f32 %v5966_v58, %v5897_v3  ;;  %v6067_v43 = vmul.f32 %v12964_v53, %v6030_v44  ;;  %v6169_v1 = vmul.f32 %v12970_v48, %v13292_v13  ;;  %v15151_v44 = vld [vmem:[#allocation65_spill] sm:$0xff]  ;;  %v15152_v30 = vld [vmem:[#allocation62_spill] sm:$0xff] }
 0x549   : > { %v7224_v59 = vadd.f32 %v7192_v5, %v7122_v11  ;;  %v6604_v50 = vadd.f32 %v6572_v49, %v6503_v16  ;;  %v7931_v36 = vadd.f32 %v7899_v61, %v7830_v41  ;;  %v8101_v7 = vmul.f32 %v13437_v0, %v13560_v62  ;;  %v13580_v17 = vld [vmem:[#allocation3 + $0xc2] sm:$0xff]  ;;  %v5639_v58 = vld [vmem:[#allocation3 + $0x138] sm:$0xff] }
 0x54a   : > { %v7394_v5 = vmul.f32 %v13340_v42, %v13296_v18  ;;  %v7495_v11 = vmul.f32 %v13351_v37, %v13298_v19  ;;  %v13584_v16 = vld [vmem:[#allocation3 + $0x189] sm:$0xff]  ;;  %v6774_v53 = vmul.f32 %v13260_v6, %v13569_v63  ;;  %v6099_v13 = vadd.f32 %v6067_v43, %v5998_v25 }
 0x54b   : > { %v7325_v26 = vadd.f32 %v7293_v46, %v7224_v59  ;;  %v6705_v33 = vadd.f32 %v6673_v21, %v6604_v50  ;;  %v13588_v48 = vld [vmem:[#allocation3 + $0xc3] sm:$0xff]  ;;  %v8032_v61 = vadd.f32 %v8000_v10, %v7931_v36  ;;  %v7596_v3 = vmul.f32 %v13358_v20, %v15151_v44  ;;  %v5740_v50 = vld [vmem:[#allocation3 + $0x139] sm:$0xff] }
 0x54c   : > { %v7698_v18 = vmul.f32 %v13367_v23, %v13571_v15  ;;  %v6875_v19 = vmul.f32 %v13273_v14, %v13580_v17  ;;  %v13596_v21 = vld [vmem:[#allocation3 + $0xc4] sm:$0xff]  ;;  %v6201_v59 = vadd.f32 %v6169_v1, %v6099_v13  ;;  %v6270_v46 = vmul.f32 %v12999_v12, %v15152_v30  ;;  %v5841_v1 = vld [vmem:[#allocation3 + $0x13a] sm:$0xff]  ;;  %v13621_v30 = vld [vmem:[#allocation3 + $0x18c] sm:$0xff] }
 0x54d   : > { %v7426_v49 = vadd.f32 %v7394_v5, %v7325_v26  ;;  %v6806_v41 = vadd.f32 %v6774_v53, %v6705_v33  ;;  %v8133_v10 = vadd.f32 %v8101_v7, %v8032_v61  ;;  %v7799_v43 = vmul.f32 %v13466_v2, %v13584_v16  ;;  %v5942_v13 = vld [vmem:[#allocation3 + $0x13b] sm:$0xff]  ;;  %15154 = vst [vmem:[#allocation15_spill] sm:$0xff] %v13621_v30 }
 0x54e   : > { %v6976_v36 = vmul.f32 %v13185_v57, %v13588_v48  ;;  %v6302_v5 = vadd.f32 %v6270_v46, %v6201_v59  ;;  %v6371_v33 = vmul.f32 %v13013_v28, %v13331_v56  ;;  %v5676_v53 = vmul.f32 %v13111_v8, %v5639_v58 }
 0x54f   : > { %v7527_v25 = vadd.f32 %v7495_v11, %v7426_v49  ;;  %v6907_v26 = vadd.f32 %v6875_v19, %v6806_v41  ;;  %v8215_v12 = vsel %vm339_vm2, %v8133_v10, 0.0  ;;  %v7077_v7 = vmul.f32 %v13201_v4, %v13596_v21  ;;  %v13610_v11 = vld [vmem:[#allocation3 + $0xc8] sm:$0xff] }
 0x550   : > { %v5777_v61 = vmul.f32 %v13024_v47, %v5740_v50  ;;  %8216 = vadd.xlane.f32.xlu1 %v8215_v12  ;;  %v13613_v49 = vld [vmem:[#allocation3 + $0x18a] sm:$0xff]  ;;  %v7179_v58 = vmul.f32 %v13208_v51, %v13329_v55  ;;  %v6403_v19 = vadd.f32 %v6371_v33, %v6302_v5  ;;  %v13626_v47 = vld [vmem:[%s14639_s7 + $0x2] ss:$0 sm:$0xff]  ;;  %v5979_v10 = vmul.f32 %v13058_v22, %v5942_v13 }
 0x551   : > { %v7628_v44 = vadd.f32 %v7596_v3, %v7527_v25  ;;  %v13615_v41 = vld [vmem:[#allocation3 + $0x18b] sm:$0xff]  ;;  %v7008_v56 = vadd.f32 %v6976_v36, %v6907_v26  ;;  %v6472_v3 = vmul.f32 %v13033_v40, %v13362_v27  ;;  %v5878_v50 = vmul.f32 %v13626_v47, %v5841_v1  ;;  %v6043_v27 = vld [vmem:[#allocation3 + $0x13c] sm:$0xff] }
 0x552   : > { %15153 = vst [vmem:[#allocation24_spill] sm:$0xff] %v13615_v41  ;;  %v5809_v46 = vadd.f32 %v5777_v61, %v5676_v53  ;;  %v6573_v55 = vmul.f32 %v13045_v32, %v13375_v52  ;;  %v6674_v40 = vmul.f32 %v13229_v31, %v13610_v11  ;;  %v7900_v26 = vmul.f32 %v13405_v29, %v13613_v49  ;;  %v13638_v33 = vld [vmem:[#allocation3 + $0xc9] sm:$0xff]  ;;  %v13651_v61 = vld [vmem:[%s14639_s7 + $0x4] ss:$0 sm:$0xff] }
 0x553   : > { %v7730_v59 = vadd.f32 %v7698_v18, %v7628_v44  ;;  %v7109_v25 = vadd.f32 %v7077_v7, %v7008_v56  ;;  %v6504_v36 = vadd.f32 %v6472_v3, %v6403_v19  ;;  %v8001_v5 = vmul.f32 %v13420_v38, %v13615_v41  ;;  %15155 = vst [vmem:[#allocation26_spill] sm:$0xff] %v13638_v33  ;;  %v15156_v13 = vld [vmem:[#allocation67_spill] sm:$0xff]  ;;  %v13644_v44 = vld [vmem:[#allocation3 + $0xf0] sm:$0xff] }
 0x554   : > { %v5910_v53 = vadd.f32 %v5878_v50, %v5809_v46  ;;  %v8102_v22 = vmul.f32 %v13437_v0, %v13621_v30  ;;  %v7280_v32 = vmul.f32 %v13325_v34, %v15156_v13  ;;  %15157 = vst [vmem:[#allocation18_spill] sm:$0xff] %v13644_v44  ;;  %v6080_v56 = vmul.f32 %v13651_v61, %v6043_v27  ;;  %v13663_v50 = vld [vmem:[#allocation3 + $0xf1] sm:$0xff] }
 0x555   : > { %v7831_v18 = vadd.f32 %v7799_v43, %v7730_v59  ;;  %v7211_v1 = vadd.f32 %v7179_v58, %v7109_v25  ;;  %v6605_v52 = vadd.f32 %v6573_v55, %v6504_v36  ;;  %v13646_v43 = vld [vmem:[#allocation3 + $0xca] sm:$0xff]  ;;  %v13657_v58 = vld [vmem:[%s14639_s7 + $0x5] ss:$0 sm:$0xff]  ;;  %15160 = vst [vmem:[#allocation29_spill] sm:$0xff] %v13663_v50  ;;  %v6775_v25 = vmul.f32 %v13260_v6, %v13638_v33  ;;  %v13727_v30 = vld [vmem:[#allocation3 + $0xf4] sm:$0xff] }
 0x556   : > { %15158 = vst [vmem:[#allocation11_spill] sm:$0xff] %v13646_v43  ;;  %v6011_v7 = vadd.f32 %v5979_v10, %v5910_v53  ;;  %v6182_v19 = vmul.f32 %v13657_v58, %v13394_v35  ;;  %v15159_v59 = vld [vmem:[#allocation66_spill] sm:$0xff]  ;;  %v15161_v55 = vld [vmem:[#allocation35_spill] sm:$0xff]  ;;  %v7685_v13 = vmul.f32 %v13367_v23, %v13644_v44  ;;  %15173 = vst [vmem:[#allocation30_spill] sm:$0xff] %v13727_v30 }
 0x557   : > { %v7932_v12 = vadd.f32 %v7900_v26, %v7831_v18  ;;  %v7312_v3 = vadd.f32 %v7280_v32, %v7211_v1  ;;  %v7381_v46 = vmul.f32 %v13340_v42, %v15159_v59  ;;  %v6706_v10 = vadd.f32 %v6674_v40, %v6605_v52  ;;  %v15162_v18 = vld [vmem:[#allocation58_spill] sm:$0xff]  ;;  %v13671_v53 = vld [vmem:[#allocation3 + $0xcb] sm:$0xff] }
 0x558   : > { %v7482_v27 = vmul.f32 %v13351_v37, %v15161_v55  ;;  %v7583_v26 = vmul.f32 %v13358_v20, %v15162_v18  ;;  %15163 = vst [vmem:[#allocation16_spill] sm:$0xff] %v13671_v53  ;;  %v6112_v35 = vadd.f32 %v6080_v56, %v6011_v7  ;;  %v6876_v40 = vmul.f32 %v13273_v14, %v13646_v43  ;;  %v5640_v52 = vld [vmem:[#allocation3 + $0x140] sm:$0xff]  ;;  %v13679_v55 = vld [vmem:[#allocation3 + $0xf2] sm:$0xff] }
 0x559   : > { %v8033_v36 = vadd.f32 %v8001_v5, %v7932_v12  ;;  %v7413_v1 = vadd.f32 %v7381_v46, %v7312_v3  ;;  %v6807_v32 = vadd.f32 %v6775_v25, %v6706_v10  ;;  %v5741_v59 = vld [vmem:[#allocation3 + $0x141] sm:$0xff]  ;;  %v7786_v12 = vmul.f32 %v13466_v2, %v13663_v50  ;;  %15164 = vst [vmem:[#allocation40_spill] sm:$0xff] %v13679_v55  ;;  %v13681_v18 = vld [vmem:[#allocation3 + $0xcc] sm:$0xff] }
 0x55a   : > { %15165 = vst [vmem:[#allocation33_spill] sm:$0xff] %v13681_v18  ;;  %v6214_v33 = vadd.f32 %v6182_v19, %v6112_v35  ;;  %v13686_v7 = vld [vmem:[%s14639_s7 + $0x6] ss:$0 sm:$0xff]  ;;  %v15166_v56 = vld [vmem:[#allocation68_spill] sm:$0xff]  ;;  %v15167_v25 = vld [vmem:[#allocation23_spill] sm:$0xff]  ;;  %v5677_v35 = vmul.f32 %v13111_v8, %v5640_v52  ;;  %v6183_v41 = vmul.f32 %v13657_v58, %v13478_v39 }
 0x55b   : > { %v8134_v5 = vadd.f32 %v8102_v22, %v8033_v36  ;;  %v6283_v3 = vmul.f32 %v13686_v7, %v15166_v56  ;;  %v7514_v46 = vadd.f32 %v7482_v27, %v7413_v1  ;;  %v6908_v10 = vadd.f32 %v6876_v40, %v6807_v32  ;;  %v5842_v50 = vld [vmem:[#allocation3 + $0x142] sm:$0xff]  ;;  %v13699_v43 = vld [vmem:[%s14639_s7 + $0x1] ss:$0 sm:$0xff]  ;;  %v13708_v52 = vld [vmem:[#allocation3 + $0xf3] sm:$0xff] }
 0x55c   : > { %v6977_v22 = vmul.f32 %v13185_v57, %v13671_v53  ;;  %v6384_v36 = vmul.f32 %v13013_v28, %v15167_v25  ;;  %v5778_v27 = vmul.f32 %v13699_v43, %v5741_v59  ;;  %v7887_v32 = vmul.f32 %v13405_v29, %v13679_v55  ;;  %15169 = vst [vmem:[#allocation39_spill] sm:$0xff] %v13708_v52  ;;  %v15171_v25 = vld [vmem:[#allocation59_spill] sm:$0xff] }
 0x55d   : > { %v8218_v44 = vsel %vm339_vm2, %v8134_v5, 0.0  ;;  %v6315_v19 = vadd.f32 %v6283_v3, %v6214_v33  ;;  %v7615_v1 = vadd.f32 %v7583_v26, %v7514_v46  ;;  %v7078_v28 = vmul.f32 %v13201_v4, %v13681_v18  ;;  %v13706_v5 = vld [vmem:[#allocation3 + $0x168] sm:$0xff] }
 0x55e   : > { %8219 = vadd.xlane.f32.xlu0 %v8218_v44  ;;  %v7009_v40 = vadd.f32 %v6977_v22, %v6908_v10  ;;  %15168 = vst [vmem:[#allocation34_spill] sm:$0xff] %v13706_v5  ;;  %v5943_v33 = vld [vmem:[#allocation3 + $0x143] sm:$0xff]  ;;  %v15170_v44 = vld [vmem:[#allocation36_spill] sm:$0xff]  ;;  %v5810_v59 = vadd.f32 %v5778_v27, %v5677_v35  ;;  %v5879_v46 = vmul.f32 %v13626_v47, %v5842_v50 }
 0x55f   : > { %v6416_v56 = vadd.f32 %v6384_v36, %v6315_v19  ;;  %v13713_v3 = vld [vmem:[%s14639_s7 + $0x8] ss:$0 sm:$0xff]  ;;  %v7717_v10 = vadd.f32 %v7685_v13, %v7615_v1  ;;  %v7180_v55 = vmul.f32 %v13208_v51, %v15171_v25  ;;  %v13723_v36 = vld [vmem:[%s14639_s7 + $0x9] ss:$0 sm:$0xff]  ;;  %v15172_v19 = vld [vmem:[#allocation73_spill] sm:$0xff]  ;;  %v6687_v50 = vmul.f32 %v13229_v31, %v13706_v5 }
 0x560   : > { %v6485_v26 = vmul.f32 %v13713_v3, %v15170_v44  ;;  %v7110_v22 = vadd.f32 %v7078_v28, %v7009_v40  ;;  %v6586_v18 = vmul.f32 %v13723_v36, %v15172_v19  ;;  %v6044_v53 = vld [vmem:[#allocation3 + $0x144] sm:$0xff]  ;;  %v5911_v13 = vadd.f32 %v5879_v46, %v5810_v59  ;;  %v13734_v35 = vld [vmem:[%s14639_s7 + $0x3] ss:$0 sm:$0xff] }
 0x561   : > { %v5980_v27 = vmul.f32 %v13734_v35, %v5943_v33  ;;  %v7818_v1 = vadd.f32 %v7786_v12, %v7717_v10  ;;  %v7988_v40 = vmul.f32 %v13420_v38, %v13708_v52  ;;  %v15174_v25 = vld [vmem:[#allocation70_spill] sm:$0xff]  ;;  %v6081_v5 = vmul.f32 %v13651_v61, %v6044_v53  ;;  %v13760_v39 = vld [vmem:[#allocation3 + $0x16b] sm:$0xff] }
 0x562   : > { %v6517_v44 = vadd.f32 %v6485_v26, %v6416_v56  ;;  %v7212_v28 = vadd.f32 %v7180_v55, %v7110_v22  ;;  %v7281_v19 = vmul.f32 %v13325_v34, %v15174_v25  ;;  %v13741_v56 = vld [vmem:[#allocation3 + $0x169] sm:$0xff]  ;;  %v13743_v26 = vld [vmem:[#allocation3 + $0xf8] sm:$0xff]  ;;  %v8089_v12 = vmul.f32 %v13437_v0, %v13727_v30  ;;  %15178 = vst [vmem:[#allocation10_spill] sm:$0xff] %v13760_v39 }
 0x563   : > { %15175 = vst [vmem:[#allocation22_spill] sm:$0xff] %v13741_v56  ;;  %v6012_v46 = vadd.f32 %v5980_v27, %v5911_v13  ;;  %v7919_v33 = vadd.f32 %v7887_v32, %v7818_v1  ;;  %v7382_v55 = vmul.f32 %v13340_v42, %v13481_v54  ;;  %v13752_v22 = vld [vmem:[#allocation3 + $0x16a] sm:$0xff]  ;;  %v7483_v25 = vmul.f32 %v13351_v37, %v13483_v24  ;;  %v15179_v1 = vld [vmem:[#allocation74_spill] sm:$0xff] }
 0x564   : > { %v6618_v59 = vadd.f32 %v6586_v18, %v6517_v44  ;;  %v7313_v10 = vadd.f32 %v7281_v19, %v7212_v28  ;;  %15176 = vst [vmem:[#allocation12_spill] sm:$0xff] %v13752_v22  ;;  %v13756_v18 = vld [vmem:[#allocation3 + $0xf9] sm:$0xff]  ;;  %v6788_v53 = vmul.f32 %v13260_v6, %v13741_v56  ;;  %v7584_v28 = vmul.f32 %v13358_v20, %v15179_v1  ;;  %v5627_v19 = vld [vmem:[#allocation3 + $0xa8] sm:$0xff] }
 0x565   : > { %15177 = vst [vmem:[#allocation32_spill] sm:$0xff] %v13756_v18  ;;  %v6113_v32 = vadd.f32 %v6081_v5, %v6012_v46  ;;  %v8020_v13 = vadd.f32 %v7988_v40, %v7919_v33  ;;  %v7686_v54 = vmul.f32 %v13367_v23, %v13743_v26  ;;  %v6889_v24 = vmul.f32 %v13273_v14, %v13752_v22  ;;  %v15181_v56 = vld [vmem:[#allocation71_spill] sm:$0xff]  ;;  %v13790_v1 = vld [vmem:[#allocation3 + $0xfa] sm:$0xff] }
 0x566   : > { %v6719_v44 = vadd.f32 %v6687_v50, %v6618_v59  ;;  %v7414_v27 = vadd.f32 %v7382_v55, %v7313_v10  ;;  %v13768_v50 = vld [vmem:[#allocation3 + $0x16c] sm:$0xff]  ;;  %v6284_v52 = vmul.f32 %v13686_v7, %v15181_v56  ;;  %v7787_v33 = vmul.f32 %v13466_v2, %v13756_v18 }
 0x567   : > { %15180 = vst [vmem:[#allocation17_spill] sm:$0xff] %v13768_v50  ;;  %v6215_v59 = vadd.f32 %v6183_v41, %v6113_v32  ;;  %v5728_v5 = vld [vmem:[#allocation3 + $0xa9] sm:$0xff]  ;;  %v8121_v40 = vadd.f32 %v8089_v12, %v8020_v13  ;;  %v6990_v10 = vmul.f32 %v13185_v57, %v13760_v39  ;;  %v5664_v56 = vmul.f32 %v13111_v8, %v5627_v19 }
 0x568   : > { %v6820_v30 = vadd.f32 %v6788_v53, %v6719_v44  ;;  %v7515_v46 = vadd.f32 %v7483_v25, %v7414_v27  ;;  %v13779_v53 = vld [vmem:[%s14639_s7 + $0x7] ss:$0 sm:$0xff]  ;;  %v15182_v41 = vld [vmem:[#allocation75_spill] sm:$0xff]  ;;  %v7091_v57 = vmul.f32 %v13201_v4, %v13768_v50  ;;  %v15185_v39 = vld [vmem:[#allocation60_spill] sm:$0xff] }
 0x569   : > { %v6316_v44 = vadd.f32 %v6284_v52, %v6215_v59  ;;  %v6385_v32 = vmul.f32 %v13779_v53, %v15182_v41  ;;  %v5829_v12 = vld [vmem:[#allocation3 + $0xaa] sm:$0xff]  ;;  %v8179_v13 = vsel %vm339_vm2, %v8121_v40, 0.0  ;;  %v5765_v52 = vmul.f32 %v13699_v43, %v5728_v5 }
 0x56a   : > { %v6921_v55 = vadd.f32 %v6889_v24, %v6820_v30  ;;  %v5930_v25 = vld [vmem:[#allocation3 + $0xab] sm:$0xff]  ;;  %v7616_v27 = vadd.f32 %v7584_v28, %v7515_v46  ;;  %8180 = vadd.xlane.f32.xlu1 %v8179_v13  ;;  %v13792_v24 = vld [vmem:[#allocation3 + $0xfb] sm:$0xff]  ;;  %v6486_v28 = vmul.f32 %v13713_v3, %v15185_v39  ;;  %v5866_v50 = vmul.f32 %v13626_v47, %v5829_v12 }
 0x56b   : > { %v13787_v30 = vld [vmem:[#allocation3 + $0x170] sm:$0xff]  ;;  %v6417_v19 = vadd.f32 %v6385_v32, %v6316_v44  ;;  %v13798_v46 = vld [vmem:[#allocation3 + $0xfc] sm:$0xff]  ;;  %v5797_v4 = vadd.f32 %v5765_v52, %v5664_v56  ;;  %v5967_v5 = vmul.f32 %v13734_v35, %v5930_v25  ;;  %v15186_v18 = vld [vmem:[#allocation31_spill] sm:$0xff]  ;;  %v7888_v39 = vmul.f32 %v13405_v29, %v13790_v1 }
 0x56c   : > { %15183 = vst [vmem:[#allocation21_spill] sm:$0xff] %v13787_v30  ;;  %v7022_v59 = vadd.f32 %v6990_v10, %v6921_v55  ;;  %v15184_v41 = vld [vmem:[#allocation72_spill] sm:$0xff]  ;;  %v7718_v40 = vadd.f32 %v7686_v54, %v7616_v27  ;;  %v6587_v10 = vmul.f32 %v13723_v36, %v15186_v18  ;;  %v7989_v54 = vmul.f32 %v13420_v38, %v13792_v24  ;;  %v15188_v27 = vld [vmem:[#allocation25_spill] sm:$0xff] }
 0x56d   : > { %v7193_v8 = vmul.f32 %v13208_v51, %v15184_v41  ;;  %v6518_v22 = vadd.f32 %v6486_v28, %v6417_v19  ;;  %v6688_v51 = vmul.f32 %v13229_v31, %v13787_v30  ;;  %v6031_v55 = vld [vmem:[#allocation3 + $0xac] sm:$0xff]  ;;  %v5898_v56 = vadd.f32 %v5866_v50, %v5797_v4  ;;  %v13816_v52 = vld [vmem:[#allocation3 + $0x198] sm:$0xff] }
 0x56e   : > { %v7123_v13 = vadd.f32 %v7091_v57, %v7022_v59  ;;  %v7819_v44 = vadd.f32 %v7787_v33, %v7718_v40  ;;  %v13810_v32 = vld [vmem:[#allocation3 + $0x171] sm:$0xff]  ;;  %v8090_v12 = vmul.f32 %v13437_v0, %v13798_v46  ;;  %v7294_v18 = vmul.f32 %v13325_v34, %v15188_v27  ;;  %15189 = vst [vmem:[#allocation41_spill] sm:$0xff] %v13816_v52 }
 0x56f   : > { %15187 = vst [vmem:[#allocation13_spill] sm:$0xff] %v13810_v32  ;;  %v6619_v57 = vadd.f32 %v6587_v10, %v6518_v22  ;;  %v13818_v33 = vld [vmem:[#allocation3 + $0x172] sm:$0xff]  ;;  %v5999_v59 = vadd.f32 %v5967_v5, %v5898_v56  ;;  %v6068_v41 = vmul.f32 %v13651_v61, %v6031_v55  ;;  %v6170_v19 = vmul.f32 %v13657_v58, %v13549_v60 }
 0x570   : > { %v7225_v25 = vadd.f32 %v7193_v8, %v7123_v13  ;;  %v7920_v31 = vadd.f32 %v7888_v39, %v7819_v44  ;;  %15190 = vst [vmem:[#allocation37_spill] sm:$0xff] %v13818_v33  ;;  %v7395_v28 = vmul.f32 %v13340_v42, %v13541_v45  ;;  %v13825_v8 = vld [vmem:[#allocation3 + $0x199] sm:$0xff]  ;;  %v6789_v22 = vmul.f32 %v13260_v6, %v13810_v32  ;;  %v5628_v56 = vld [vmem:[#allocation3 + $0xb0] sm:$0xff] }
 0x571   : > { %15191 = vst [vmem:[#allocation27_spill] sm:$0xff] %v13825_v8  ;;  %v6720_v40 = vadd.f32 %v6688_v51, %v6619_v57  ;;  %v7496_v13 = vmul.f32 %v13351_v37, %v13551_v9  ;;  %v7597_v5 = vmul.f32 %v13358_v20, %v13560_v62  ;;  %v13833_v10 = vld [vmem:[#allocation3 + $0x173] sm:$0xff]  ;;  %v6100_v55 = vadd.f32 %v6068_v41, %v5999_v59 }
 0x572   : > { %v7326_v50 = vadd.f32 %v7294_v18, %v7225_v25  ;;  %v8021_v4 = vadd.f32 %v7989_v54, %v7920_v31  ;;  %15192 = vst [vmem:[#allocation14_spill] sm:$0xff] %v13833_v10  ;;  %v7699_v45 = vmul.f32 %v13367_v23, %v13816_v52  ;;  %v6890_v51 = vmul.f32 %v13273_v14, %v13818_v33  ;;  %v5729_v6 = vld [vmem:[#allocation3 + $0xb1] sm:$0xff]  ;;  %v13841_v25 = vld [vmem:[#allocation3 + $0x19a] sm:$0xff]  ;;  %v13850_v14 = vld [vmem:[%s14639_s7 + $0xd] ss:$0 sm:$0xff] }
 0x573   : > { %v6821_v39 = vadd.f32 %v6789_v22, %v6720_v40  ;;  %v7800_v9 = vmul.f32 %v13466_v2, %v13825_v8  ;;  %15193 = vst [vmem:[#allocation43_spill] sm:$0xff] %v13841_v25  ;;  %v13843_v62 = vld [vmem:[#allocation3 + $0x174] sm:$0xff]  ;;  %v6202_v27 = vadd.f32 %v6170_v19, %v6100_v55  ;;  %v6271_v18 = vmul.f32 %v13686_v7, %v13569_v63  ;;  %v13862_v40 = vld [vmem:[%s14639_s7] ss:$0 sm:$0xff] }
 0x574   : > { %v7427_v44 = vadd.f32 %v7395_v28, %v7326_v50  ;;  %v8122_v54 = vadd.f32 %v8090_v12, %v8021_v4  ;;  %15194 = vst [vmem:[#allocation38_spill] sm:$0xff] %v13843_v62  ;;  %v6991_v12 = vmul.f32 %v13850_v14, %v13833_v10  ;;  %v6372_v59 = vmul.f32 %v13779_v53, %v13580_v17  ;;  %v5830_v41 = vld [vmem:[#allocation3 + $0xb2] sm:$0xff]  ;;  %v13857_v19 = vld [vmem:[#allocation3 + $0x19b] sm:$0xff]  ;;  %v14012_v10 = vld [vmem:[#allocation3 + $0x109] sm:$0xff] }
 0x575   : > { %v6922_v31 = vadd.f32 %v6890_v51, %v6821_v39  ;;  %15195 = vst [vmem:[#allocation69_spill] sm:$0xff] %v13857_v19  ;;  %v6303_v28 = vadd.f32 %v6271_v18, %v6202_v27  ;;  %v5665_v22 = vmul.f32 %v13862_v40, %v5628_v56  ;;  %v5766_v4 = vmul.f32 %v13699_v43, %v5729_v6  ;;  %v13871_v39 = vld [vmem:[%s14639_s7 + $0xe] ss:$0 sm:$0xff]  ;;  %v13877_v6 = vld [vmem:[#allocation3 + $0xd8] sm:$0xff] }
 0x576   : > { %v7528_v57 = vadd.f32 %v7496_v13, %v7427_v44  ;;  %v8182_v50 = vsel %vm339_vm2, %v8122_v54, 0.0  ;;  %v7901_v55 = vmul.f32 %v13405_v29, %v13841_v25  ;;  %v7092_v51 = vmul.f32 %v13871_v39, %v13843_v62  ;;  %v5931_v54 = vld [vmem:[#allocation3 + $0xb3] sm:$0xff]  ;;  %v13889_v25 = vld [vmem:[#allocation3 + $0x19c] sm:$0xff]  ;;  %15213 = vst [vmem:[#allocation46_spill] sm:$0xff] %v14012_v10 }
 0x577   : > { %8183 = vadd.xlane.f32.xlu0 %v8182_v50  ;;  %v7023_v44 = vadd.f32 %v6991_v12, %v6922_v31  ;;  %v6404_v27 = vadd.f32 %v6372_v59, %v6303_v28  ;;  %v6473_v56 = vmul.f32 %v13713_v3, %v13588_v48  ;;  %v5867_v18 = vmul.f32 %v13626_v47, %v5830_v41  ;;  %v13885_v50 = vld [vmem:[%s14639_s7 + $0xf] ss:$0 sm:$0xff]  ;;  %v6032_v28 = vld [vmem:[#allocation3 + $0xb4] sm:$0xff] }
 0x578   : > { %v7629_v13 = vadd.f32 %v7597_v5, %v7528_v57  ;;  %v5798_v5 = vadd.f32 %v5766_v4, %v5665_v22  ;;  %v8002_v31 = vmul.f32 %v13420_v38, %v13857_v19  ;;  %v7194_v59 = vmul.f32 %v13885_v50, %v13571_v15  ;;  %15196 = vst [vmem:[#allocation19_spill] sm:$0xff] %v13889_v25  ;;  %v15198_v19 = vld [vmem:[#allocation24_spill] sm:$0xff]  ;;  %v15208_v52 = vld [vmem:[#allocation33_spill] sm:$0xff] }
 0x579   : > { %v7124_v12 = vadd.f32 %v7092_v51, %v7023_v44  ;;  %v6505_v8 = vadd.f32 %v6473_v56, %v6404_v27  ;;  %v6574_v41 = vmul.f32 %v13723_v36, %v13596_v21  ;;  %v5968_v22 = vmul.f32 %v13734_v35, %v5931_v54  ;;  %v13899_v51 = vld [vmem:[%s14639_s7 + $0xa] ss:$0 sm:$0xff]  ;;  %v13903_v27 = vld [vmem:[#allocation3 + $0xd9] sm:$0xff] }
 0x57a   : > { %v7731_v57 = vadd.f32 %v7699_v45, %v7629_v13  ;;  %v5899_v45 = vadd.f32 %v5867_v18, %v5798_v5  ;;  %v7295_v44 = vmul.f32 %v13325_v34, %v13584_v16  ;;  %v6675_v15 = vmul.f32 %v13899_v51, %v13877_v6  ;;  %v13905_v56 = vld [vmem:[#allocation3 + $0x1a0] sm:$0xff] }
 0x57b   : > { %v7226_v13 = vadd.f32 %v7194_v59, %v7124_v12  ;;  %15197 = vst [vmem:[#allocation48_spill] sm:$0xff] %v13905_v56  ;;  %v6606_v5 = vadd.f32 %v6574_v41, %v6505_v8  ;;  %v6171_v54 = vmul.f32 %v13657_v58, %v13610_v11  ;;  %v8103_v16 = vmul.f32 %v13437_v0, %v13889_v25  ;;  %v13914_v59 = vld [vmem:[#allocation3 + $0xda] sm:$0xff] }
 0x57c   : > { %v7832_v4 = vadd.f32 %v7800_v9, %v7731_v57  ;;  %v6000_v18 = vadd.f32 %v5968_v22, %v5899_v45  ;;  %v6069_v9 = vmul.f32 %v13651_v61, %v6032_v28  ;;  %v7396_v12 = vmul.f32 %v13340_v42, %v13613_v49  ;;  %v13918_v8 = vld [vmem:[#allocation3 + $0x1a1] sm:$0xff]  ;;  %v13923_v28 = vld [vmem:[%s14639_s7 + $0xb] ss:$0 sm:$0xff] }
 0x57d   : > { %v7327_v57 = vadd.f32 %v7295_v44, %v7226_v13  ;;  %v7497_v62 = vmul.f32 %v13351_v37, %v15198_v19  ;;  %15199 = vst [vmem:[#allocation45_spill] sm:$0xff] %v13918_v8  ;;  %v6707_v41 = vadd.f32 %v6675_v15, %v6606_v5  ;;  %v13927_v45 = vld [vmem:[#allocation3 + $0xdb] sm:$0xff]  ;;  %v7700_v37 = vmul.f32 %v13367_v23, %v13905_v56  ;;  %v13938_v15 = vld [vmem:[%s14639_s7 + $0xc] ss:$0 sm:$0xff] }
 0x57e   : > { %v7933_v34 = vadd.f32 %v7901_v55, %v7832_v4  ;;  %v6776_v55 = vmul.f32 %v13923_v28, %v13903_v27  ;;  %v6101_v22 = vadd.f32 %v6069_v9, %v6000_v18  ;;  %v15200_v4 = vld [vmem:[#allocation15_spill] sm:$0xff]  ;;  %v6877_v5 = vmul.f32 %v13938_v15, %v13914_v59  ;;  %v15207_v25 = vld [vmem:[#allocation18_spill] sm:$0xff] }
 0x57f   : > { %v7428_v49 = vadd.f32 %v7396_v12, %v7327_v57  ;;  %v7598_v13 = vmul.f32 %v13358_v20, %v15200_v4  ;;  %v13933_v19 = vld [vmem:[#allocation3 + $0x1a2] sm:$0xff]  ;;  %v7801_v23 = vmul.f32 %v13466_v2, %v13918_v8  ;;  %v6978_v57 = vmul.f32 %v13850_v14, %v13927_v45 }
 0x580   : > { %v8034_v42 = vadd.f32 %v8002_v31, %v7933_v34  ;;  %15201 = vst [vmem:[#allocation44_spill] sm:$0xff] %v13933_v19  ;;  %v6808_v44 = vadd.f32 %v6776_v55, %v6707_v41  ;;  %v6203_v18 = vadd.f32 %v6171_v54, %v6101_v22  ;;  %v15202_v31 = vld [vmem:[#allocation26_spill] sm:$0xff]  ;;  %v15203_v4 = vld [vmem:[#allocation11_spill] sm:$0xff]  ;;  %v5666_v54 = vmul.f32 %v13862_v40, %v13549_v60  ;;  %v15206_v60 = vld [vmem:[#allocation16_spill] sm:$0xff] }
 0x581   : > { %v6272_v9 = vmul.f32 %v13686_v7, %v15202_v31  ;;  %v7529_v20 = vadd.f32 %v7497_v62, %v7428_v49  ;;  %v13948_v12 = vld [vmem:[#allocation3 + $0xdc] sm:$0xff]  ;;  %v6373_v56 = vmul.f32 %v13779_v53, %v15203_v4  ;;  %v7902_v62 = vmul.f32 %v13405_v29, %v13933_v19 }
 0x582   : > { %v8135_v34 = vadd.f32 %v8103_v16, %v8034_v42  ;;  %v6909_v41 = vadd.f32 %v6877_v5, %v6808_v44  ;;  %v5767_v42 = vmul.f32 %v13699_v43, %v13569_v63  ;;  %v13959_v49 = vld [vmem:[#allocation3 + $0x1a3] sm:$0xff]  ;;  %v5868_v63 = vmul.f32 %v13626_v47, %v13580_v17 }
 0x583   : > { %v6304_v55 = vadd.f32 %v6272_v9, %v6203_v18  ;;  %v7630_v16 = vadd.f32 %v7598_v13, %v7529_v20  ;;  %15204 = vst [vmem:[#allocation42_spill] sm:$0xff] %v13959_v49  ;;  %v13961_v44 = vld [vmem:[#allocation3 + $0x1a4] sm:$0xff]  ;;  %v7079_v18 = vmul.f32 %v13871_v39, %v13948_v12 }
 0x584   : > { %v8221_v22 = vsel %vm339_vm2, %v8135_v34, 0.0  ;;  %15205 = vst [vmem:[#allocation51_spill] sm:$0xff] %v13961_v44  ;;  %v7010_v5 = vadd.f32 %v6978_v57, %v6909_v41  ;;  %v6474_v34 = vmul.f32 %v13713_v3, %v15206_v60  ;;  %v13967_v20 = vld [vmem:[#allocation3 + $0xe0] sm:$0xff]  ;;  %v5799_v19 = vadd.f32 %v5767_v42, %v5666_v54 }
 0x585   : > { %8222 = vadd.xlane.f32.xlu1 %v8221_v22  ;;  %v6405_v9 = vadd.f32 %v6373_v56, %v6304_v55  ;;  %v7732_v13 = vadd.f32 %v7700_v37, %v7630_v16  ;;  %v5969_v22 = vmul.f32 %v13734_v35, %v13588_v48  ;;  %v7181_v57 = vmul.f32 %v13885_v50, %v15207_v25  ;;  %v13981_v16 = vld [vmem:[#allocation3 + $0xe1] sm:$0xff]  ;;  %v13986_v48 = vld [vmem:[%s14639_s7 + $0x10] ss:$0 sm:$0xff] }
 0x586   : > { %v7111_v8 = vadd.f32 %v7079_v18, %v7010_v5  ;;  %v6575_v56 = vmul.f32 %v13723_v36, %v15208_v52  ;;  %v8003_v37 = vmul.f32 %v13420_v38, %v13959_v49  ;;  %v8104_v54 = vmul.f32 %v13437_v0, %v13961_v44  ;;  %15209 = vst [vmem:[#allocation53_spill] sm:$0xff] %v13981_v16  ;;  %v15210_v5 = vld [vmem:[#allocation29_spill] sm:$0xff] }
 0x587   : > { %v6506_v41 = vadd.f32 %v6474_v34, %v6405_v9  ;;  %v7833_v55 = vadd.f32 %v7801_v23, %v7732_v13  ;;  %v5900_v17 = vadd.f32 %v5868_v63, %v5799_v19  ;;  %v7282_v18 = vmul.f32 %v13986_v48, %v15210_v5  ;;  %v13995_v13 = vld [vmem:[%s14639_s7 + $0x11] ss:$0 sm:$0xff]  ;;  %v13999_v63 = vld [vmem:[#allocation3 + $0x108] sm:$0xff] }
 0x588   : > { %v7213_v42 = vadd.f32 %v7181_v57, %v7111_v8  ;;  %v6676_v23 = vmul.f32 %v13899_v51, %v13967_v20  ;;  %v15211_v19 = vld [vmem:[#allocation40_spill] sm:$0xff]  ;;  %v14001_v57 = vld [vmem:[#allocation3 + $0xe2] sm:$0xff]  ;;  %v6777_v32 = vmul.f32 %v13923_v28, %v13981_v16 }
 0x589   : > { %v6607_v9 = vadd.f32 %v6575_v56, %v6506_v41  ;;  %v7934_v34 = vadd.f32 %v7902_v62, %v7833_v55  ;;  %v7383_v8 = vmul.f32 %v13995_v13, %v15211_v19  ;;  %v6001_v44 = vadd.f32 %v5969_v22, %v5900_v17  ;;  %v14008_v62 = vld [vmem:[%s14639_s7 + $0x12] ss:$0 sm:$0xff]  ;;  %v15212_v55 = vld [vmem:[#allocation39_spill] sm:$0xff]  ;;  %v15215_v22 = vld [vmem:[#allocation30_spill] sm:$0xff] }
 0x58a   : > { %v6070_v41 = vmul.f32 %v13651_v61, %v13596_v21  ;;  %v7314_v56 = vadd.f32 %v7282_v18, %v7213_v42  ;;  %v7484_v49 = vmul.f32 %v14008_v62, %v15212_v55  ;;  %v14019_v21 = vld [vmem:[%s14639_s7 + $0x13] ss:$0 sm:$0xff]  ;;  %v14023_v42 = vld [vmem:[#allocation3 + $0xe3] sm:$0xff]  ;;  %v6172_v55 = vmul.f32 %v13657_v58, %v13877_v6 }
 0x58b   : > { %v6708_v33 = vadd.f32 %v6676_v23, %v6607_v9  ;;  %v8035_v30 = vadd.f32 %v8003_v37, %v7934_v34  ;;  %15214 = vst [vmem:[#allocation57_spill] sm:$0xff] %v14019_v21  ;;  %v7585_v17 = vmul.f32 %v14019_v21, %v15215_v22  ;;  %v14030_v9 = vld [vmem:[%s14639_s7 + $0x14] ss:$0 sm:$0xff]  ;;  %v6878_v34 = vmul.f32 %v13938_v15, %v14001_v57  ;;  %v14040_v6 = vld [vmem:[#allocation3 + $0xe4] sm:$0xff] }
 0x58c   : > { %v6102_v18 = vadd.f32 %v6070_v41, %v6001_v44  ;;  %v7415_v19 = vadd.f32 %v7383_v8, %v7314_v56  ;;  %v7687_v37 = vmul.f32 %v14030_v9, %v13999_v63  ;;  %v7788_v44 = vmul.f32 %v13466_v2, %v14012_v10  ;;  %v14038_v41 = vld [vmem:[#allocation3 + $0x10a] sm:$0xff] }
 0x58d   : > { %v6809_v23 = vadd.f32 %v6777_v32, %v6708_v33  ;;  %v8136_v22 = vadd.f32 %v8104_v54, %v8035_v30  ;;  %v6273_v56 = vmul.f32 %v13686_v7, %v13903_v27  ;;  %v6979_v32 = vmul.f32 %v13850_v14, %v14023_v42  ;;  %v14049_v54 = vld [vmem:[#allocation3 + $0x10b] sm:$0xff] }
 0x58e   : > { %v6204_v8 = vadd.f32 %v6172_v55, %v6102_v18  ;;  %v7516_v16 = vadd.f32 %v7484_v49, %v7415_v19  ;;  %v6374_v33 = vmul.f32 %v13779_v53, %v13914_v59  ;;  %v5667_v10 = vmul.f32 %v13862_v40, %v13610_v11  ;;  %v14059_v18 = vld [vmem:[#allocation3 + $0x10c] sm:$0xff] }
 0x58f   : > { %v6910_v21 = vadd.f32 %v6878_v34, %v6809_v23  ;;  %v8224_v30 = vsel %vm339_vm2, %v8136_v22, 0.0  ;;  %v5768_v55 = vmul.f32 %v13699_v43, %v15202_v31  ;;  %v7889_v49 = vmul.f32 %v13405_v29, %v14038_v41 }
 0x590   : > { %v6305_v2 = vadd.f32 %v6273_v56, %v6204_v8  ;;  %8225 = vadd.xlane.f32.xlu0 %v8224_v30  ;;  %v7617_v27 = vadd.f32 %v7585_v17, %v7516_v16  ;;  %v7080_v59 = vmul.f32 %v13871_v39, %v14040_v6  ;;  %v6475_v23 = vmul.f32 %v13713_v3, %v13927_v45 }
 0x591   : > { %v7011_v19 = vadd.f32 %v6979_v32, %v6910_v21  ;;  %v5800_v34 = vadd.f32 %v5768_v55, %v5667_v10  ;;  %v5869_v11 = vmul.f32 %v13626_v47, %v15203_v4  ;;  %v7990_v16 = vmul.f32 %v13420_v38, %v14049_v54  ;;  %v15216_v32 = vld [vmem:[#allocation32_spill] sm:$0xff] }
 0x592   : > { %v6406_v22 = vadd.f32 %v6374_v33, %v6305_v2  ;;  %v7719_v31 = vadd.f32 %v7687_v37, %v7617_v27  ;;  %v7182_v29 = vmul.f32 %v13885_v50, %v13743_v26  ;;  %v6576_v8 = vmul.f32 %v13723_v36, %v13948_v12  ;;  %v14077_v33 = vld [vmem:[#allocation3 + $0x110] sm:$0xff] }
 0x593   : > { %v7112_v17 = vadd.f32 %v7080_v59, %v7011_v19  ;;  %v5901_v56 = vadd.f32 %v5869_v11, %v5800_v34  ;;  %v5970_v45 = vmul.f32 %v13734_v35, %v15206_v60  ;;  %v8091_v4 = vmul.f32 %v13437_v0, %v14059_v18  ;;  %v14087_v19 = vld [vmem:[#allocation3 + $0x111] sm:$0xff] }
 0x594   : > { %v6507_v21 = vadd.f32 %v6475_v23, %v6406_v22  ;;  %v7820_v10 = vadd.f32 %v7788_v44, %v7719_v31  ;;  %v7283_v38 = vmul.f32 %v13986_v48, %v15216_v32  ;;  %v6677_v2 = vmul.f32 %v13899_v51, %v15207_v25 }
 0x595   : > { %v7214_v37 = vadd.f32 %v7182_v29, %v7112_v17  ;;  %v6002_v55 = vadd.f32 %v5970_v45, %v5901_v56  ;;  %v6071_v12 = vmul.f32 %v13651_v61, %v15208_v52  ;;  %v7384_v44 = vmul.f32 %v13995_v13, %v13790_v1  ;;  %v5641_v17 = vld [vmem:[#allocation3 + $0x150] sm:$0xff]  ;;  %v15219_v45 = vld [vmem:[#allocation53_spill] sm:$0xff] }
 0x596   : > { %v6608_v30 = vadd.f32 %v6576_v8, %v6507_v21  ;;  %v7921_v27 = vadd.f32 %v7889_v49, %v7820_v10  ;;  %v7485_v0 = vmul.f32 %v14008_v62, %v13792_v24  ;;  %v6778_v22 = vmul.f32 %v13923_v28, %v15210_v5  ;;  %v15217_v49 = vld [vmem:[#allocation57_spill] sm:$0xff]  ;;  %v15218_v8 = vld [vmem:[#allocation40_spill] sm:$0xff] }
 0x597   : > { %v7315_v60 = vadd.f32 %v7283_v38, %v7214_v37  ;;  %v6103_v23 = vadd.f32 %v6071_v12, %v6002_v55  ;;  %v6173_v25 = vmul.f32 %v13657_v58, %v13967_v20  ;;  %v7586_v11 = vmul.f32 %v15217_v49, %v13798_v46  ;;  %v14097_v29 = vld [vmem:[#allocation3 + $0x112] sm:$0xff] }
 0x598   : > { %v6709_v59 = vadd.f32 %v6677_v2, %v6608_v30  ;;  %v8022_v34 = vadd.f32 %v7990_v16, %v7921_v27  ;;  %v7688_v31 = vmul.f32 %v14030_v9, %v14077_v33  ;;  %v6879_v56 = vmul.f32 %v13938_v15, %v15218_v8  ;;  %v5742_v20 = vld [vmem:[#allocation3 + $0x151] sm:$0xff]  ;;  %v15220_v2 = vld [vmem:[#allocation39_spill] sm:$0xff] }
 0x599   : > { %v7416_v52 = vadd.f32 %v7384_v44, %v7315_v60  ;;  %v6205_v5 = vadd.f32 %v6173_v25, %v6103_v23  ;;  %v6274_v10 = vmul.f32 %v13686_v7, %v15219_v45  ;;  %v14106_v38 = vld [vmem:[%s14639_s7 + $0x15] ss:$0 sm:$0xff]  ;;  %v6980_v55 = vmul.f32 %v13850_v14, %v15220_v2  ;;  %v14119_v23 = vld [vmem:[%s14639_s7 + $0x16] ss:$0 sm:$0xff] }
 0x59a   : > { %v6810_v21 = vadd.f32 %v6778_v22, %v6709_v59  ;;  %v8123_v16 = vadd.f32 %v8091_v4, %v8022_v34  ;;  %v7789_v30 = vmul.f32 %v14106_v38, %v14087_v19  ;;  %v6375_v60 = vmul.f32 %v13779_v53, %v14001_v57  ;;  %v5843_v4 = vld [vmem:[#allocation3 + $0x152] sm:$0xff] }
 0x59b   : > { %v7517_v37 = vadd.f32 %v7485_v0, %v7416_v52  ;;  %v6306_v27 = vadd.f32 %v6274_v10, %v6205_v5  ;;  %v5678_v44 = vmul.f32 %v13862_v40, %v5641_v17  ;;  %v5944_v0 = vld [vmem:[#allocation3 + $0x153] sm:$0xff]  ;;  %v7890_v25 = vmul.f32 %v14119_v23, %v14097_v29 }
 0x59c   : > { %v6911_v12 = vadd.f32 %v6879_v56, %v6810_v21  ;;  %v8185_v59 = vsel %vm339_vm2, %v8123_v16, 0.0  ;;  %v5779_v34 = vmul.f32 %v13699_v43, %v5742_v20  ;;  %v14124_v52 = vld [vmem:[#allocation3 + $0x113] sm:$0xff]  ;;  %v15221_v21 = vld [vmem:[#allocation30_spill] sm:$0xff]  ;;  %v6476_v56 = vmul.f32 %v13713_v3, %v14023_v42 }
 0x59d   : > { %v7618_v22 = vadd.f32 %v7586_v11, %v7517_v37  ;;  %8186 = vadd.xlane.f32.xlu1 %v8185_v59  ;;  %v14126_v57 = vld [vmem:[#allocation3 + $0x114] sm:$0xff]  ;;  %v7081_v8 = vmul.f32 %v13871_v39, %v15221_v21  ;;  %v6407_v11 = vadd.f32 %v6375_v60, %v6306_v27  ;;  %v5880_v10 = vmul.f32 %v13626_v47, %v5843_v4 }
 0x59e   : > { %v7012_v17 = vadd.f32 %v6980_v55, %v6911_v12  ;;  %v5811_v45 = vadd.f32 %v5779_v34, %v5678_v44  ;;  %v5981_v16 = vmul.f32 %v13734_v35, %v5944_v0  ;;  %v7183_v37 = vmul.f32 %v13885_v50, %v13999_v63  ;;  %v6045_v12 = vld [vmem:[#allocation3 + $0x154] sm:$0xff]  ;;  %v15222_v44 = vld [vmem:[#allocation46_spill] sm:$0xff] }
 0x59f   : > { %v7720_v5 = vadd.f32 %v7688_v31, %v7618_v22  ;;  %v6508_v2 = vadd.f32 %v6476_v56, %v6407_v11  ;;  %v6577_v55 = vmul.f32 %v13723_v36, %v14040_v6  ;;  %v14141_v42 = vld [vmem:[%s14639_s7 + $0x17] ss:$0 sm:$0xff]  ;;  %v14148_v27 = vld [vmem:[%s14639_s7 + $0x18] ss:$0 sm:$0xff]  ;;  %v6678_v0 = vmul.f32 %v13899_v51, %v13743_v26  ;;  %v7652_v34 = vld [vmem:[#allocation3 + $0x120] sm:$0xff] }
 0x5a0   : > { %v7113_v20 = vadd.f32 %v7081_v8, %v7012_v17  ;;  %v7991_v31 = vmul.f32 %v14141_v42, %v14124_v52  ;;  %v8092_v63 = vmul.f32 %v14148_v27, %v14126_v57  ;;  %v5912_v60 = vadd.f32 %v5880_v10, %v5811_v45  ;;  %v15223_v8 = vld [vmem:[#allocation34_spill] sm:$0xff] }
 0x5a1   : > { %v7821_v59 = vadd.f32 %v7789_v30, %v7720_v5  ;;  %v7284_v30 = vmul.f32 %v13986_v48, %v15222_v44  ;;  %v6609_v4 = vadd.f32 %v6577_v55, %v6508_v2  ;;  %v6082_v21 = vmul.f32 %v13651_v61, %v6045_v12  ;;  %v7753_v45 = vld [vmem:[#allocation3 + $0x121] sm:$0xff] }
 0x5a2   : > { %v7215_v6 = vadd.f32 %v7183_v37, %v7113_v20  ;;  %v6013_v17 = vadd.f32 %v5981_v16, %v5912_v60  ;;  %v6184_v11 = vmul.f32 %v13657_v58, %v15223_v8  ;;  %v7385_v5 = vmul.f32 %v13995_v13, %v14038_v41  ;;  %v5743_v60 = vld [vmem:[#allocation3 + $0x159] sm:$0xff] }
 0x5a3   : > { %v7922_v22 = vadd.f32 %v7890_v25, %v7821_v59  ;;  %v6710_v10 = vadd.f32 %v6678_v0, %v6609_v4  ;;  %v6779_v20 = vmul.f32 %v13923_v28, %v15216_v32  ;;  %v7486_v26 = vmul.f32 %v14008_v62, %v14049_v54  ;;  %v5642_v59 = vld [vmem:[#allocation3 + $0x158] sm:$0xff] }
 0x5a4   : > { %v7316_v56 = vadd.f32 %v7284_v30, %v7215_v6  ;;  %v7587_v25 = vmul.f32 %v15217_v49, %v14059_v18  ;;  %v6114_v16 = vadd.f32 %v6082_v21, %v6013_v17  ;;  %v7689_v55 = vmul.f32 %v14030_v9, %v7652_v34  ;;  %v15224_v30 = vld [vmem:[#allocation22_spill] sm:$0xff] }
 0x5a5   : > { %v8023_v37 = vadd.f32 %v7991_v31, %v7922_v22  ;;  %v6811_v12 = vadd.f32 %v6779_v20, %v6710_v10  ;;  %v6880_v41 = vmul.f32 %v13938_v15, %v13790_v1  ;;  %v7790_v32 = vmul.f32 %v14106_v38, %v7753_v45  ;;  %v7854_v31 = vld [vmem:[#allocation3 + $0x122] sm:$0xff]  ;;  %v15225_v22 = vld [vmem:[#allocation12_spill] sm:$0xff]  ;;  %v5844_v17 = vld [vmem:[#allocation3 + $0x15a] sm:$0xff] }
 0x5a6   : > { %v7417_v2 = vadd.f32 %v7385_v5, %v7316_v56  ;;  %v6216_v44 = vadd.f32 %v6184_v11, %v6114_v16  ;;  %v6285_v54 = vmul.f32 %v13686_v7, %v15224_v30  ;;  %v6981_v0 = vmul.f32 %v13850_v14, %v13792_v24  ;;  %v7955_v21 = vld [vmem:[#allocation3 + $0x123] sm:$0xff]  ;;  %v5945_v10 = vld [vmem:[#allocation3 + $0x15b] sm:$0xff] }
 0x5a7   : > { %v8124_v6 = vadd.f32 %v8092_v63, %v8023_v37  ;;  %v6912_v18 = vadd.f32 %v6880_v41, %v6811_v12  ;;  %v6386_v34 = vmul.f32 %v13779_v53, %v15225_v22  ;;  %v5679_v8 = vmul.f32 %v13862_v40, %v5642_v59  ;;  %v15226_v37 = vld [vmem:[#allocation10_spill] sm:$0xff] }
 0x5a8   : > { %v7518_v4 = vadd.f32 %v7486_v26, %v7417_v2  ;;  %v6317_v63 = vadd.f32 %v6285_v54, %v6216_v44  ;;  %v5780_v11 = vmul.f32 %v13699_v43, %v5743_v60  ;;  %v7891_v5 = vmul.f32 %v14119_v23, %v7854_v31  ;;  %v6652_v16 = vld [vmem:[#allocation3 + $0x180] sm:$0xff] }
 0x5a9   : > { %v8188_v1 = vsel %vm339_vm2, %v8124_v6, 0.0  ;;  %v7013_v45 = vadd.f32 %v6981_v0, %v6912_v18  ;;  %v7082_v24 = vmul.f32 %v13871_v39, %v13798_v46  ;;  %v6487_v26 = vmul.f32 %v13713_v3, %v15226_v37  ;;  %v6046_v6 = vld [vmem:[#allocation3 + $0x15c] sm:$0xff]  ;;  %v8056_v31 = vld [vmem:[#allocation3 + $0x124] sm:$0xff] }
 0x5aa   : > { %8189 = vadd.xlane.f32.xlu0 %v8188_v1  ;;  %v7619_v56 = vadd.f32 %v7587_v25, %v7518_v4  ;;  %v6418_v20 = vadd.f32 %v6386_v34, %v6317_v63  ;;  %v5812_v2 = vadd.f32 %v5780_v11, %v5679_v8  ;;  %v5881_v12 = vmul.f32 %v13626_v47, %v5844_v17  ;;  %v15227_v46 = vld [vmem:[#allocation17_spill] sm:$0xff]  ;;  %v14195_v34 = vld [vmem:[#allocation3 + $0x181] sm:$0xff] }
 0x5ab   : > { %v7992_v59 = vmul.f32 %v14141_v42, %v7955_v21  ;;  %v7114_v60 = vadd.f32 %v7082_v24, %v7013_v45  ;;  %v7184_v25 = vmul.f32 %v13885_v50, %v14077_v33  ;;  %v6588_v30 = vmul.f32 %v13723_v36, %v15227_v46  ;;  %v7653_v17 = vld [vmem:[#allocation3 + $0x128] sm:$0xff]  ;;  %v15228_v63 = vld [vmem:[#allocation21_spill] sm:$0xff] }
 0x5ac   : > { %v7721_v41 = vadd.f32 %v7689_v55, %v7619_v56  ;;  %v6519_v44 = vadd.f32 %v6487_v26, %v6418_v20  ;;  %v5913_v54 = vadd.f32 %v5881_v12, %v5812_v2  ;;  %v5982_v4 = vmul.f32 %v13734_v35, %v5945_v10  ;;  %v7754_v10 = vld [vmem:[#allocation3 + $0x129] sm:$0xff] }
 0x5ad   : > { %v7216_v0 = vadd.f32 %v7184_v25, %v7114_v60  ;;  %v7285_v55 = vmul.f32 %v13986_v48, %v14087_v19  ;;  %v6689_v22 = vmul.f32 %v13899_v51, %v6652_v16  ;;  %v6083_v21 = vmul.f32 %v13651_v61, %v6046_v6  ;;  %v14203_v19 = vld [vmem:[#allocation3 + $0x182] sm:$0xff]  ;;  %v7855_v60 = vld [vmem:[#allocation3 + $0x12a] sm:$0xff] }
 0x5ae   : > { %v7822_v18 = vadd.f32 %v7790_v32, %v7721_v41  ;;  %v6620_v33 = vadd.f32 %v6588_v30, %v6519_v44  ;;  %v6014_v1 = vadd.f32 %v5982_v4, %v5913_v54  ;;  %v6185_v8 = vmul.f32 %v13657_v58, %v15228_v63  ;;  %v14209_v26 = vld [vmem:[#allocation3 + $0x183] sm:$0xff] }
 0x5af   : > { %v8093_v56 = vmul.f32 %v14148_v27, %v8056_v31  ;;  %v7317_v32 = vadd.f32 %v7285_v55, %v7216_v0  ;;  %v7386_v45 = vmul.f32 %v13995_v13, %v14097_v29  ;;  %v7487_v24 = vmul.f32 %v14008_v62, %v14124_v52  ;;  %v5643_v41 = vld [vmem:[#allocation3 + $0x168] sm:$0xff]  ;;  %v15229_v31 = vld [vmem:[#allocation13_spill] sm:$0xff] }
 0x5b0   : > { %v7923_v11 = vadd.f32 %v7891_v5, %v7822_v18  ;;  %v6721_v20 = vadd.f32 %v6689_v22, %v6620_v33  ;;  %v6790_v37 = vmul.f32 %v13923_v28, %v14195_v34  ;;  %v6115_v16 = vadd.f32 %v6083_v21, %v6014_v1  ;;  %v5744_v46 = vld [vmem:[#allocation3 + $0x169] sm:$0xff]  ;;  %v15230_v55 = vld [vmem:[#allocation37_spill] sm:$0xff] }
 0x5b1   : > { %v7418_v2 = vadd.f32 %v7386_v45, %v7317_v32  ;;  %v7588_v12 = vmul.f32 %v15217_v49, %v14126_v57  ;;  %v7690_v29 = vmul.f32 %v14030_v9, %v7653_v17  ;;  %v6891_v52 = vmul.f32 %v13938_v15, %v14203_v19  ;;  %v14221_v4 = vld [vmem:[#allocation3 + $0x184] sm:$0xff]  ;;  %v8057_v32 = vld [vmem:[#allocation3 + $0x12c] sm:$0xff] }
 0x5b2   : > { %v8024_v5 = vadd.f32 %v7992_v59, %v7923_v11  ;;  %v6822_v25 = vadd.f32 %v6790_v37, %v6721_v20  ;;  %v6217_v6 = vadd.f32 %v6185_v8, %v6115_v16  ;;  %v6286_v44 = vmul.f32 %v13686_v7, %v15229_v31  ;;  %v5845_v33 = vld [vmem:[#allocation3 + $0x16a] sm:$0xff]  ;;  %v15231_v20 = vld [vmem:[#allocation14_spill] sm:$0xff] }
 0x5b3   : > { %v7519_v54 = vadd.f32 %v7487_v24, %v7418_v2  ;;  %v7791_v59 = vmul.f32 %v14106_v38, %v7754_v10  ;;  %v6992_v57 = vmul.f32 %v13850_v14, %v14209_v26  ;;  %v6387_v22 = vmul.f32 %v13779_v53, %v15230_v55  ;;  %v5946_v1 = vld [vmem:[#allocation3 + $0x16b] sm:$0xff] }
 0x5b4   : > { %v8125_v30 = vadd.f32 %v8093_v56, %v8024_v5  ;;  %v6923_v18 = vadd.f32 %v6891_v52, %v6822_v25  ;;  %v6318_v0 = vadd.f32 %v6286_v44, %v6217_v6  ;;  %v5680_v17 = vmul.f32 %v13862_v40, %v5643_v41  ;;  %v7956_v56 = vld [vmem:[#allocation3 + $0x12b] sm:$0xff]  ;;  %v15232_v52 = vld [vmem:[#allocation41_spill] sm:$0xff]  ;;  %v15233_v44 = vld [vmem:[#allocation38_spill] sm:$0xff] }
 0x5b5   : > { %v7620_v63 = vadd.f32 %v7588_v12, %v7519_v54  ;;  %v7892_v8 = vmul.f32 %v14119_v23, %v7855_v60  ;;  %v5781_v11 = vmul.f32 %v13699_v43, %v5744_v46  ;;  %v7093_v24 = vmul.f32 %v13871_v39, %v14221_v4  ;;  %v6653_v5 = vld [vmem:[#allocation3 + $0x188] sm:$0xff]  ;;  %v6149_v60 = vld [vmem:[#allocation3 + $0x180] sm:$0xff] }
 0x5b6   : > { %v8191_v21 = vsel %vm339_vm2, %v8125_v30, 0.0  ;;  %v7024_v45 = vadd.f32 %v6992_v57, %v6923_v18  ;;  %v6419_v10 = vadd.f32 %v6387_v22, %v6318_v0  ;;  %v6488_v37 = vmul.f32 %v13713_v3, %v15231_v20  ;;  %v6047_v30 = vld [vmem:[#allocation3 + $0x16c] sm:$0xff]  ;;  %v15236_v20 = vld [vmem:[#allocation69_spill] sm:$0xff] }
 0x5b7   : > { %8192 = vadd.xlane.f32.xlu1 %v8191_v21  ;;  %v7722_v16 = vadd.f32 %v7690_v29, %v7620_v63  ;;  %v5813_v2 = vadd.f32 %v5781_v11, %v5680_v17  ;;  %v5882_v12 = vmul.f32 %v13626_v47, %v5845_v33  ;;  %v5983_v41 = vmul.f32 %v13734_v35, %v5946_v1  ;;  %v14241_v18 = vld [vmem:[#allocation3 + $0x189] sm:$0xff]  ;;  %v14250_v63 = vpop.xlane.xlu0 %8144 }
 0x5b8   : > { %v7125_v25 = vadd.f32 %v7093_v24, %v7024_v45  ;;  %v7195_v6 = vmul.f32 %v13885_v50, %v15232_v52  ;;  %v6520_v31 = vadd.f32 %v6488_v37, %v6419_v10  ;;  %v6589_v46 = vmul.f32 %v13723_v36, %v15233_v44  ;;  %v15234_v35 = vld [vmem:[#allocation27_spill] sm:$0xff]  ;;  %v5644_v52 = vld [vmem:[#allocation3 + $0x170] sm:$0xff] }
 0x5b9   : > { %v7823_v54 = vadd.f32 %v7791_v59, %v7722_v16  ;;  %v7993_v57 = vmul.f32 %v14141_v42, %v7956_v56  ;;  %v8094_v29 = vmul.f32 %v14148_v27, %v8057_v32  ;;  %v5914_v47 = vadd.f32 %v5882_v12, %v5813_v2  ;;  %v14246_v1 = vld [vmem:[#allocation3 + $0x18a] sm:$0xff] }
 0x5ba   : > { %v7227_v0 = vadd.f32 %v7195_v6, %v7125_v25  ;;  %v7296_v55 = vmul.f32 %v13986_v48, %v15234_v35  ;;  %v6621_v22 = vadd.f32 %v6589_v46, %v6520_v31  ;;  %v6690_v17 = vmul.f32 %v13899_v51, %v6653_v5  ;;  %v15235_v56 = vld [vmem:[#allocation43_spill] sm:$0xff]  ;;  %v5745_v6 = vld [vmem:[#allocation3 + $0x171] sm:$0xff] }
 0x5bb   : > { %v7924_v33 = vadd.f32 %v7892_v8, %v7823_v54  ;;  %v6015_v36 = vadd.f32 %v5983_v41, %v5914_v47  ;;  %v6084_v59 = vmul.f32 %v13651_v61, %v6047_v30  ;;  %v6186_v21 = vmul.f32 %v13657_v58, %v6149_v60  ;;  %v15237_v37 = vld [vmem:[#allocation19_spill] sm:$0xff]  ;;  %v14260_v61 = vld [vmem:[#allocation3 + $0x1b0] sm:$0xff] }
 0x5bc   : > { %v7328_v11 = vadd.f32 %v7296_v55, %v7227_v0  ;;  %v7397_v32 = vmul.f32 %v13995_v13, %v15235_v56  ;;  %v6722_v45 = vadd.f32 %v6690_v17, %v6621_v22  ;;  %v6791_v24 = vmul.f32 %v13923_v28, %v14241_v18  ;;  %v14262_v58 = vld [vmem:[#allocation3 + $0x18b] sm:$0xff]  ;;  %v14293_v56 = vld [vmem:[#allocation3 + $0x1b3] sm:$0xff] }
 0x5bd   : > { %v8025_v10 = vadd.f32 %v7993_v57, %v7924_v33  ;;  %v7498_v8 = vmul.f32 %v14008_v62, %v15236_v20  ;;  %v7599_v16 = vmul.f32 %v15217_v49, %v15237_v37  ;;  %v6116_v5 = vadd.f32 %v6084_v59, %v6015_v36  ;;  %v14266_v41 = vld [vmem:[#allocation3 + $0x1b1] sm:$0xff]  ;;  %v14276_v57 = vpop.xlane.xlu0 %8150  ;;  %v6150_v20 = vld [vmem:[#allocation3 + $0x188] sm:$0xff] }
 0x5be   : > { %v7429_v2 = vadd.f32 %v7397_v32, %v7328_v11  ;;  %v7701_v12 = vmul.f32 %v14030_v9, %v14260_v61  ;;  %v6823_v60 = vadd.f32 %v6791_v24, %v6722_v45  ;;  %v6892_v25 = vmul.f32 %v13938_v15, %v14246_v1  ;;  %v14272_v46 = vld [vmem:[#allocation3 + $0x18c] sm:$0xff]  ;;  %v6654_v45 = vld [vmem:[#allocation3 + $0x198] sm:$0xff]  ;;  %v9252_v24 = vld [vmem:[%s14639_s7 + $0x2] ss:$0 sm:$0xff] }
 0x5bf   : > { %v8126_v31 = vadd.f32 %v8094_v29, %v8025_v10  ;;  %v7802_v44 = vmul.f32 %v14106_v38, %v14266_v41  ;;  %v6218_v30 = vadd.f32 %v6186_v21, %v6116_v5  ;;  %v6287_v54 = vmul.f32 %v13686_v7, %v14195_v34  ;;  %v5846_v29 = vld [vmem:[#allocation3 + $0x172] sm:$0xff]  ;;  %v14287_v34 = vpop.xlane.xlu1 %8147 }
 0x5c0   : > { %v7530_v47 = vadd.f32 %v7498_v8, %v7429_v2  ;;  %v6924_v0 = vadd.f32 %v6892_v25, %v6823_v60  ;;  %v6993_v35 = vmul.f32 %v13850_v14, %v14262_v58  ;;  %v6388_v55 = vmul.f32 %v13779_v53, %v14203_v19  ;;  %v14283_v17 = vld [vmem:[#allocation3 + $0x1b2] sm:$0xff] }
 0x5c1   : > { %v8194_v22 = vsel %vm339_vm2, %v8126_v31, 0.0  ;;  %v6319_v33 = vadd.f32 %v6287_v54, %v6218_v30  ;;  %v5681_v36 = vmul.f32 %v13862_v40, %v5644_v52  ;;  %v5782_v7 = vmul.f32 %v13699_v43, %v5745_v6  ;;  %v5947_v19 = vld [vmem:[#allocation3 + $0x173] sm:$0xff]  ;;  %v14314_v31 = vpop.xlane.xlu0 %8153 }
 0x5c2   : > { %8195 = vadd.xlane.f32.xlu0 %v8194_v22  ;;  %v7631_v59 = vadd.f32 %v7599_v16, %v7530_v47  ;;  %v7903_v21 = vmul.f32 %v14119_v23, %v14283_v17  ;;  %v7025_v11 = vadd.f32 %v6993_v35, %v6924_v0  ;;  %v7094_v53 = vmul.f32 %v13871_v39, %v14272_v46  ;;  %v15238_v5 = vld [vmem:[#allocation48_spill] sm:$0xff]  ;;  %v15239_v0 = vld [vmem:[#allocation45_spill] sm:$0xff] }
 0x5c3   : > { %v6420_v32 = vadd.f32 %v6388_v55, %v6319_v33  ;;  %v6489_v40 = vmul.f32 %v13713_v3, %v14209_v26  ;;  %v5814_v43 = vadd.f32 %v5782_v7, %v5681_v36  ;;  %v5883_v10 = vmul.f32 %v9252_v24, %v5846_v29  ;;  %v6048_v60 = vld [vmem:[#allocation3 + $0x174] sm:$0xff]  ;;  %v14307_v3 = vld [vmem:[%s14639_s7 + $0x9] ss:$0 sm:$0xff]  ;;  %v14316_v30 = vpop.xlane.xlu1 %8156  ;;  %v9255_v36 = vld [vmem:[%s14639_s7 + $0x4] ss:$0 sm:$0xff] }
 0x5c4   : > { %v7733_v8 = vadd.f32 %v7701_v12, %v7631_v59  ;;  %v8004_v37 = vmul.f32 %v14141_v42, %v14293_v56  ;;  %v7126_v16 = vadd.f32 %v7094_v53, %v7025_v11  ;;  %v7196_v2 = vmul.f32 %v13885_v50, %v15238_v5  ;;  %v9254_v12 = vld [vmem:[%s14639_s7 + $0x3] ss:$0 sm:$0xff]  ;;  %v6755_v29 = vld [vmem:[#allocation3 + $0x199] sm:$0xff] }
 0x5c5   : > { %v6521_v25 = vadd.f32 %v6489_v40, %v6420_v32  ;;  %v6590_v26 = vmul.f32 %v14307_v3, %v14221_v4  ;;  %v5915_v52 = vadd.f32 %v5883_v10, %v5814_v43  ;;  %v5984_v6 = vmul.f32 %v9254_v12, %v5947_v19  ;;  %v14321_v22 = vld [vmem:[#allocation3 + $0x1b4] sm:$0xff]  ;;  %v7058_v12 = vld [vmem:[#allocation3 + $0x19c] sm:$0xff] }
 0x5c6   : > { %v7834_v54 = vadd.f32 %v7802_v44, %v7733_v8  ;;  %v7228_v47 = vadd.f32 %v7196_v2, %v7126_v16  ;;  %v7297_v35 = vmul.f32 %v13986_v48, %v15239_v0  ;;  %v6691_v55 = vmul.f32 %v13899_v51, %v6654_v45  ;;  %v9256_v44 = vld [vmem:[%s14639_s7 + $0x5] ss:$0 sm:$0xff]  ;;  %v15240_v32 = vld [vmem:[#allocation44_spill] sm:$0xff]  ;;  %v6856_v45 = vld [vmem:[#allocation3 + $0x19a] sm:$0xff]  ;;  %v14334_v8 = vpop.xlane.xlu0 %8159 }
 0x5c7   : > { %v6622_v4 = vadd.f32 %v6590_v26, %v6521_v25  ;;  %v6016_v33 = vadd.f32 %v5984_v6, %v5915_v52  ;;  %v6085_v7 = vmul.f32 %v9255_v36, %v6048_v60  ;;  %v6187_v59 = vmul.f32 %v9256_v44, %v6150_v20  ;;  %v14336_v16 = vpop.xlane.xlu1 %8198  ;;  %v15241_v20 = vld [vmem:[#allocation42_spill] sm:$0xff]  ;;  %v14340_v25 = vld [vmem:[#allocation3 + $0x1b8] sm:$0xff] }
 0x5c8   : > { %v7935_v11 = vadd.f32 %v7903_v21, %v7834_v54  ;;  %v8105_v53 = vmul.f32 %v14148_v27, %v14321_v22  ;;  %v7329_v19 = vadd.f32 %v7297_v35, %v7228_v47  ;;  %v7398_v40 = vmul.f32 %v13995_v13, %v15240_v32  ;;  %v6957_v60 = vld [vmem:[#allocation3 + $0x19b] sm:$0xff]  ;;  %v9257_v54 = vld [vmem:[%s14639_s7 + $0x6] ss:$0 sm:$0xff]  ;;  %v15242_v35 = vld [vmem:[#allocation51_spill] sm:$0xff] }
 0x5c9   : > { %v6723_v43 = vadd.f32 %v6691_v55, %v6622_v4  ;;  %v6792_v24 = vmul.f32 %v13923_v28, %v6755_v29  ;;  %v6117_v10 = vadd.f32 %v6085_v7, %v6016_v33  ;;  %v7499_v21 = vmul.f32 %v14008_v62, %v15241_v20  ;;  %v14351_v4 = vld [vmem:[#allocation3 + $0x1b9] sm:$0xff]  ;;  %v9258_v44 = vld [vmem:[%s14639_s7 + $0x7] ss:$0 sm:$0xff] }
 0x5ca   : > { %v8036_v5 = vadd.f32 %v8004_v37, %v7935_v11  ;;  %v7430_v2 = vadd.f32 %v7398_v40, %v7329_v19  ;;  %v6893_v52 = vmul.f32 %v13938_v15, %v6856_v45  ;;  %v6288_v47 = vmul.f32 %v9257_v54, %v14241_v18  ;;  %v14366_v45 = vld [vmem:[#allocation3 + $0x1ba] sm:$0xff] }
 0x5cb   : > { %v6824_v26 = vadd.f32 %v6792_v24, %v6723_v43  ;;  %v6219_v6 = vadd.f32 %v6187_v59, %v6117_v10  ;;  %v7600_v55 = vmul.f32 %v15217_v49, %v15242_v35  ;;  %v7702_v29 = vmul.f32 %v14030_v9, %v14340_v25  ;;  %v14358_v59 = vpop.xlane.xlu0 %8201  ;;  %v14360_v11 = vpop.xlane.xlu1 %8162  ;;  %v9259_v10 = vld [vmem:[%s14639_s7 + $0x8] ss:$0 sm:$0xff] }
 0x5cc   : > { %v8137_v0 = vadd.f32 %v8105_v53, %v8036_v5  ;;  %v7531_v37 = vadd.f32 %v7499_v21, %v7430_v2  ;;  %v6994_v36 = vmul.f32 %v13850_v14, %v6957_v60  ;;  %v6389_v18 = vmul.f32 %v9258_v44, %v14246_v1  ;;  %v6655_v21 = vld [vmem:[#allocation3 + $0x1a0] sm:$0xff] }
 0x5cd   : > { %v6925_v33 = vadd.f32 %v6893_v52, %v6824_v26  ;;  %v6320_v7 = vadd.f32 %v6288_v47, %v6219_v6  ;;  %v7803_v32 = vmul.f32 %v14106_v38, %v14351_v4  ;;  %v7095_v40 = vmul.f32 %v13871_v39, %v7058_v12  ;;  %v14376_v60 = vld [vmem:[#allocation3 + $0x1bb] sm:$0xff] }
 0x5ce   : > { %v8227_v53 = vsel %vm339_vm2, %v8137_v0, 0.0  ;;  %v7632_v19 = vadd.f32 %v7600_v55, %v7531_v37  ;;  %v7197_v24 = vmul.f32 %v13885_v50, %v14260_v61  ;;  %v6490_v5 = vmul.f32 %v9259_v10, %v14262_v58  ;;  %v6756_v0 = vld [vmem:[#allocation3 + $0x1a1] sm:$0xff] }
 0x5cf   : > { %8228 = vadd.xlane.f32.xlu1 %v8227_v53  ;;  %v7026_v43 = vadd.f32 %v6994_v36, %v6925_v33  ;;  %v6421_v1 = vadd.f32 %v6389_v18, %v6320_v7  ;;  %v7904_v20 = vmul.f32 %v14119_v23, %v14366_v45  ;;  %v7298_v52 = vmul.f32 %v13986_v48, %v14266_v41  ;;  %v14382_v6 = vpop.xlane.xlu0 %8165  ;;  %v14384_v54 = vpop.xlane.xlu1 %8204  ;;  %v14388_v37 = vld [vmem:[#allocation3 + $0x1bc] sm:$0xff] }
 0x5d0   : > { %v7734_v2 = vadd.f32 %v7702_v29, %v7632_v19  ;;  %v6591_v61 = vmul.f32 %v14307_v3, %v14272_v46  ;;  %v8005_v47 = vmul.f32 %v14141_v42, %v14376_v60  ;;  %v7399_v55 = vmul.f32 %v13995_v13, %v14283_v17  ;;  %v6857_v3 = vld [vmem:[#allocation3 + $0x1a2] sm:$0xff] }
 0x5d1   : > { %v7127_v26 = vadd.f32 %v7095_v40, %v7026_v43  ;;  %v6522_v12 = vadd.f32 %v6490_v5, %v6421_v1  ;;  %v6692_v29 = vmul.f32 %v13899_v51, %v6655_v21  ;;  %v8106_v46 = vmul.f32 %v14148_v27, %v14388_v37  ;;  %v6958_v40 = vld [vmem:[#allocation3 + $0x1a3] sm:$0xff] }
 0x5d2   : > { %v7835_v58 = vadd.f32 %v7803_v32, %v7734_v2  ;;  %v7500_v7 = vmul.f32 %v14008_v62, %v14293_v56  ;;  %v6793_v18 = vmul.f32 %v13923_v28, %v6756_v0  ;;  %v7666_v32 = vld [vmem:[#allocation3 + $0x1c8] sm:$0xff]  ;;  %v8309_v51 = vlaneseq }
 0x5d3   : > { %v7229_v35 = vadd.f32 %v7197_v24, %v7127_v26  ;;  %v6623_v41 = vadd.f32 %v6591_v61, %v6522_v12  ;;  %v14398_v53 = vpop.xlane.xlu0 %8207  ;;  %v14400_v19 = vpop.xlane.xlu1 %8168  ;;  %v7601_v24 = vmul.f32 %v15217_v49, %v14321_v22  ;;  %v7767_v1 = vld [vmem:[#allocation3 + $0x1c9] sm:$0xff]  ;;  %v6894_v56 = vmul.f32 %v13938_v15, %v6857_v3 }
 0x5d4   : > { %v7936_v33 = vadd.f32 %v7904_v20, %v7835_v58  ;;  %v7059_v28 = vld [vmem:[#allocation3 + $0x1a4] sm:$0xff]  ;;  %v7703_v20 = vmul.f32 %v14030_v9, %v7666_v32  ;;  %v6995_v26 = vmul.f32 %v13850_v14, %v6958_v40  ;;  %v7804_v58 = vmul.f32 %v14106_v38, %v7767_v1 }
 0x5d5   : > { %v7330_v36 = vadd.f32 %v7298_v52, %v7229_v35  ;;  %v6724_v44 = vadd.f32 %v6692_v29, %v6623_v41  ;;  %v7868_v22 = vld [vmem:[#allocation3 + $0x1ca] sm:$0xff]  ;;  %v7198_v41 = vmul.f32 %v13885_v50, %v14340_v25  ;;  %v8312_v14 = vshrl.u32 %v8309_v51, 7 }
 0x5d6   : > { %v8037_v17 = vadd.f32 %v8005_v47, %v7936_v33  ;;  %v8310_v47 = vand.u32 127, %v8309_v51  ;;  %v7969_v0 = vld [vmem:[#allocation3 + $0x1cb] sm:$0xff]  ;;  %v7400_v50 = vmul.f32 %v13995_v13, %v14366_v45 }
 0x5d7   : > { %v7431_v43 = vadd.f32 %v7399_v55, %v7330_v36  ;;  %v6825_v10 = vadd.f32 %v6793_v18, %v6724_v44  ;;  %v14409_v52 = vpop.xlane.xlu0 %8171  ;;  %v8211_v12 = vpop.xlane.xlu1 %8210  ;;  %v7096_v55 = vmul.f32 %v13871_v39, %v7059_v28  ;;  %v7299_v36 = vmul.f32 %v13986_v48, %v14351_v4  ;;  %v8070_v18 = vld [vmem:[#allocation3 + $0x1cc] sm:$0xff] }
 0x5d8   : > { %v8138_v5 = vadd.f32 %v8106_v46, %v8037_v17  ;;  %v8315_v29 = vadd.s32 4294967288, %v8310_v47  ;;  %v7905_v46 = vmul.f32 %v14119_v23, %v7868_v22  ;;  %v8006_v44 = vmul.f32 %v14141_v42, %v7969_v0 }
 0x5d9   : > { %v7532_v2 = vadd.f32 %v7500_v7, %v7431_v43  ;;  %v6926_v21 = vadd.f32 %v6894_v56, %v6825_v10  ;;  %v14421_v17 = vstv %s14402_s24  ;;  %v14428_v51 = vsub.s32 %v8310_v47, %v8312_v14  ;;  %v7667_v56 = vld [vmem:[#allocation3 + $0x1d0] sm:$0xff]  ;;  %s14584_s24 = scalar_lea.hbm %s14640_s8, %s8939_s19 }
 0x5da   : > { %v8230_v61 = vsel %vm339_vm2, %v8138_v5, 0.0  ;;  %v8262_v25 = vadd.f32 %v14421_v17, %v8211_v12  ;;  %v14430_v43 = vsub.s32 %v8315_v29, %v8312_v14  ;;  %v7501_v10 = vmul.f32 %v14008_v62, %v14376_v60  ;;  %v7869_v60 = vld [vmem:[#allocation3 + $0x1d2] sm:$0xff] }
 0x5db   : > { %8231 = vadd.xlane.f32.xlu0 %v8230_v61  ;;  %v7633_v15 = vadd.f32 %v7601_v24, %v7532_v2  ;;  %v7027_v35 = vadd.f32 %v6995_v26, %v6926_v21  ;;  %v8214_v7 = vpop.xlane.xlu0 %8213  ;;  %v14426_v40 = vpop.xlane.xlu1 %8174  ;;  %v8107_v24 = vmul.f32 %v14148_v27, %v8070_v18  ;;  %v7602_v2 = vmul.f32 %v15217_v49, %v14388_v37  ;;  %v7768_v26 = vld [vmem:[#allocation3 + $0x1d1] sm:$0xff] }
 0x5dc   : > { %v8263_v48 = vadd.f32 %v14421_v17, %v8214_v7  ;;  %v8415_v13 = vrot.slane %v8262_v25, %v14428_v51  ;;  %v7704_v62 = vmul.f32 %v14030_v9, %v7667_v56  ;;  %v7805_v0 = vmul.f32 %v14106_v38, %v7768_v26  ;;  %v7970_v37 = vld [vmem:[#allocation3 + $0x1d3] sm:$0xff] }
 0x5dd   : > { %v7735_v33 = vadd.f32 %v7703_v20, %v7633_v15  ;;  %v7128_v3 = vadd.f32 %v7096_v55, %v7027_v35  ;;  %v8071_v14 = vld [vmem:[#allocation3 + $0x1d4] sm:$0xff]  ;;  %v8245_v56 = vadd.f32 %v14421_v17, %v14334_v8  ;;  %v8246_v8 = vadd.f32 %v14421_v17, %v14360_v11 }
 0x5de   : > { %v8419_v45 = vrot.slane %v8263_v48, %v14430_v43 }
 0x5df   : > { %v7836_v32 = vadd.f32 %v7804_v58, %v7735_v33  ;;  %v7230_v39 = vadd.f32 %v7198_v41, %v7128_v3  ;;  %v8178_v20 = vpop.xlane.xlu0 %8177  ;;  %v8217_v21 = vpop.xlane.xlu1 %8216  ;;  %v7906_v41 = vmul.f32 %v14119_v23, %v7869_v60 }
 0x5e0   : > { %v14441_v12 = vsel %vm8320_vm9, %v8419_v45, %v8415_v13  ;;  %v8264_v22 = vadd.f32 %v14421_v17, %v8217_v21  ;;  %v8240_v13 = vadd.f32 %v14421_v17, %v14250_v63  ;;  %v8247_v45 = vadd.f32 %v14421_v17, %v14382_v6 }
 0x5e1   : > { %v7937_v4 = vadd.f32 %v7905_v46, %v7836_v32  ;;  %v7331_v1 = vadd.f32 %v7299_v36, %v7230_v39  ;;  %v8007_v46 = vmul.f32 %v14141_v42, %v7970_v37  ;;  %v8108_v36 = vmul.f32 %v14148_v27, %v8071_v14 }
 0x5e2   : > { %v8424_v29 = vrot.slane %v8264_v22, %v14428_v51  ;;  %v8243_v27 = vadd.f32 %v14421_v17, %v14314_v31  ;;  %v8244_v31 = vadd.f32 %v14421_v17, %v14316_v30  ;;  %v8248_v6 = vadd.f32 %v14421_v17, %v14400_v19 }
 0x5e3   : > { %v8038_v5 = vadd.f32 %v8006_v44, %v7937_v4  ;;  %v7432_v28 = vadd.f32 %v7400_v50, %v7331_v1  ;;  %v8242_v1 = vadd.f32 %v14421_v17, %v14276_v57  ;;  %v8249_v57 = vadd.f32 %v14421_v17, %v14409_v52 }
 0x5e4   : > { %v8314_v30 = vrot.slane %v8240_v13, %v14428_v51  ;;  %v8347_v52 = vrot.slane %v8247_v45, %v14430_v43  ;;  %v8334_v26 = vrot.slane %v8244_v31, %v14428_v51  ;;  %v8343_v19 = vrot.slane %v8246_v8, %v14428_v51 }
 0x5e5   : > { %v8139_v61 = vadd.f32 %v8107_v24, %v8038_v5  ;;  %v7533_v58 = vadd.f32 %v7501_v10, %v7432_v28  ;;  %v8241_v10 = vadd.f32 %v14421_v17, %v14287_v34  ;;  %v8329_v5 = vrot.slane %v8243_v27, %v14430_v43 }
 0x5e6   : > { %v8325_v34 = vrot.slane %v8242_v1, %v14428_v51  ;;  %v8338_v28 = vrot.slane %v8245_v56, %v14430_v43  ;;  %v8259_v27 = vadd.f32 %v14421_v17, %v14358_v59  ;;  %v8261_v1 = vadd.f32 %v14421_v17, %v14398_v53 }
 0x5e7   : > { %v8233_v47 = vsel %vm339_vm2, %v8139_v61, 0.0  ;;  %v7634_v15 = vadd.f32 %v7602_v2, %v7533_v58  ;;  %v8220_v49 = vpop.xlane.xlu0 %8219  ;;  %v8319_v63 = vrot.slane %v8241_v10, %v14430_v43  ;;  %v8251_v2 = vadd.f32 %v14421_v17, %v8178_v20 }
 0x5e8   : > { %8234 = vadd.xlane.f32.xlu1 %v8233_v47  ;;  %v8265_v35 = vadd.f32 %v14421_v17, %v8220_v49  ;;  %v8330_v11 = vsel %vm8320_vm9, %v8329_v5, %v8325_v34  ;;  %v8356_v61 = vrot.slane %v8249_v57, %v14430_v43  ;;  %v8250_v58 = vadd.f32 %v14421_v17, %v14426_v40 }
 0x5e9   : > { %v7736_v55 = vadd.f32 %v7704_v62, %v7634_v15  ;;  %v8321_v60 = vsel %vm8320_vm9, %v8319_v63, %v8314_v30  ;;  %v8339_v22 = vsel %vm8320_vm9, %v8338_v28, %v8334_v26  ;;  %v8352_v47 = vrot.slane %v8248_v6, %v14428_v51 }
 0x5ea   : > { %v8428_v9 = vrot.slane %v8265_v35, %v14430_v43  ;;  %v8365_v15 = vrot.slane %v8251_v2, %v14430_v43  ;;  %v8458_v40 = vsel %vm8457_vm10, %v8330_v11, %v8321_v60  ;;  %v8361_v35 = vrot.slane %v8250_v58, %v14428_v51 }
 0x5eb   : > { %v7837_v33 = vadd.f32 %v7805_v0, %v7736_v55  ;;  %v8348_v0 = vsel %vm8320_vm9, %v8347_v52, %v8343_v19  ;;  %v8357_v37 = vsel %vm8320_vm9, %v8356_v61, %v8352_v47  ;;  %v8258_v10 = vadd.f32 %v14421_v17, %v14336_v16 }
 0x5ec   : > { %v14453_v3 = vsel %vm8320_vm9, %v8428_v9, %v8424_v29  ;;  %v8272_v29 = vld [vmem:[%s14509_s18] sm:$0xff]  ;;  %v8274_v9 = vstv %s14484_s25  ;;  %v8260_v13 = vadd.f32 %v14421_v17, %v14384_v54  ;;  %v8401_v5 = vrot.slane %v8259_v27, %v14430_v43  ;;  %s9275_s25 = scalar_lea.vmem %s14586_s20, 256 }
 0x5ed   : > { %v7938_v38 = vadd.f32 %v7906_v41, %v7837_v33  ;;  %v8460_v41 = vsel %vm8459_vm11, %v8339_v22, %v8458_v40  ;;  %v8410_v57 = vrot.slane %v8261_v1, %v14430_v43  ;;  %v8397_v59 = vrot.slane %v8258_v10, %v14428_v51  ;;  %p9276_p9 = scmp.ne.s32.totalorder %s14586_s20, %s9275_s25  ;;  %p9283_p0 = scmp.lt.s32.totalorder %s9281_s12, %s9275_s25 }
 0x5ee   : > { %v8406_v16 = vrot.slane %v8260_v13, %v14428_v51 }
 0x5ef   : > { %v8039_v7 = vadd.f32 %v8007_v46, %v7938_v38  ;;  %v8462_v46 = vsel %vm8461_vm12, %v8348_v0, %v8460_v41  ;;  %v8366_v38 = vsel %vm8320_vm9, %v8365_v15, %v8361_v35  ;;  %v8402_v8 = vsel %vm8320_vm9, %v8401_v5, %v8397_v59  ;;  %p9277_p10 = pnand %p9276_p9, %p9435_p5  ;;  %p9284_p1 = por %p9283_p0, %p9282_p13 }
 0x5f0   : > { %v8411_v63 = vsel %vm8320_vm9, %v8410_v57, %v8406_v16 }
 0x5f1   : > { %v8140_v44 = vadd.f32 %v8108_v36, %v8039_v7  ;;  %v8464_v7 = vsel %vm8463_vm13, %v8357_v37, %v8462_v46  ;;  %p9278_p12 = pneg %p9277_p10 }
 0x5f3   : > { %v8236_v18 = vsel %vm339_vm2, %v8140_v44, 0.0  ;;  %v8181_v23 = vpop.xlane.xlu1 %8180  ;;  %p9285_p2 = pnand %p9284_p1, %p9278_p12 }
 0x5f4   : > { %8237 = vadd.xlane.f32.xlu0 %v8236_v18  ;;  %v8252_v20 = vadd.f32 %v14421_v17, %v8181_v23  ;;  %v8275_v23 = vmul.f32 %v8274_v9, %v8272_v29 }
 0x5f6   : > { %v8370_v14 = vrot.slane %v8252_v20, %v14428_v51 }
 0x600   : > { %v8184_v32 = vpop.xlane.xlu0 %8183 }
 0x601   : > { %v8253_v21 = vadd.f32 %v14421_v17, %v8184_v32 }
 0x603   : > { %v8374_v49 = vrot.slane %v8253_v21, %v14430_v43 }
 0x605   : > { %v8375_v44 = vsel %vm8320_vm9, %v8374_v49, %v8370_v14 }
 0x60e   : > { %v8223_v39 = vpop.xlane.xlu1 %8222 }
 0x60f   : > { %v8266_v50 = vadd.f32 %v14421_v17, %v8223_v39  ;;  %v8466_v39 = vsel %vm8465_vm14, %v8366_v38, %v8464_v7 }
 0x611   : > { %v8433_v42 = vrot.slane %v8266_v50, %v14428_v51  ;;  %v8468_v50 = vsel %vm8467_vm15, %v8375_v44, %v8466_v39 }
 0x619   : > { %v8226_v25 = vpop.xlane.xlu0 %8225 }
 0x61a   : > { %v8267_v48 = vadd.f32 %v14421_v17, %v8226_v25 }
 0x61c   : > { %v8437_v4 = vrot.slane %v8267_v48, %v14430_v43 }
 0x61e   : > { %v14462_v24 = vsel %vm8320_vm9, %v8437_v4, %v8433_v42 }
 0x626   : > { %v8187_v62 = vpop.xlane.xlu1 %8186 }
 0x627   : > { %v8254_v55 = vadd.f32 %v14421_v17, %v8187_v62 }
 0x629   : > { %v8379_v18 = vrot.slane %v8254_v55, %v14428_v51 }
 0x633   : > { %v8190_v33 = vpop.xlane.xlu0 %8189 }
 0x634   : > { %v8255_v36 = vadd.f32 %v14421_v17, %v8190_v33 }
 0x636   : > { %v8383_v32 = vrot.slane %v8255_v36, %v14430_v43 }
 0x638   : > { %v8384_v25 = vsel %vm8320_vm9, %v8383_v32, %v8379_v18 }
 0x639   : > { %v8470_v48 = vsel %vm8469_vm0, %v8384_v25, %v8468_v50 }
 0x63a   : > { %v8480_v42 = vadd.f32 %v8470_v48, %v8275_v23 }
 0x63c   : > { %8482 = vst.msk [vmem:[%s14535_s23] sm:$0xff] %vm1406_vm5, %v8480_v42 }
 0x640   : > { %v8193_v4 = vpop.xlane.xlu1 %8192 }
 0x641   : > { %v8256_v56 = vadd.f32 %v14421_v17, %v8193_v4 }
 0x643   : > { %v8388_v34 = vrot.slane %v8256_v56, %v14428_v51 }
 0x64b   : > { %v8196_v45 = vpop.xlane.xlu0 %8195 }
 0x64c   : > { %v8257_v31 = vadd.f32 %v14421_v17, %v8196_v45 }
 0x64e   : > { %v8392_v53 = vrot.slane %v8257_v31, %v14430_v43 }
 0x650   : > { %v8393_v54 = vsel %vm8320_vm9, %v8392_v53, %v8388_v34 }
 0x651   : > { %v8471_v28 = vsel %vm8457_vm10, %v8402_v8, %v8393_v54 }
 0x652   : > { %v8472_v6 = vsel %vm8459_vm11, %v8411_v63, %v8471_v28 }
 0x653   : > { %v8473_v2 = vsel %vm8461_vm12, %v14441_v12, %v8472_v6 }
 0x654   : > { %v8474_v30 = vsel %vm8463_vm13, %v14453_v3, %v8473_v2  ;;  %v8273_v3 = vld [vmem:[%s14509_s18 + $0x8] sm:$0xff] }
 0x655   : > { %v8475_v52 = vsel %vm8465_vm14, %v14462_v24, %v8474_v30  ;;  %v8276_v47 = vmul.f32 %v8274_v9, %v8273_v3 }
 0x658   : > { %v8229_v21 = vpop.xlane.xlu1 %8228 }
 0x659   : > { %v8268_v61 = vadd.f32 %v14421_v17, %v8229_v21 }
 0x65b   : > { %v8442_v12 = vrot.slane %v8268_v61, %v14428_v51 }
 0x664   : > { %v8232_v11 = vpop.xlane.xlu0 %8231 }
 0x665   : > { %v8269_v26 = vadd.f32 %v14421_v17, %v8232_v11 }
 0x667   : > { %v8446_v19 = vrot.slane %v8269_v26, %v14430_v43 }
 0x669   : > { %v8447_v60 = vsel %vm8320_vm9, %v8446_v19, %v8442_v12 }
 0x66a   : > { %v8476_v40 = vsel %vm8467_vm15, %v8447_v60, %v8475_v52 }
 0x671   : > { %v8235_v58 = vpop.xlane.xlu1 %8234 }
 0x672   : > { %v8270_v20 = vadd.f32 %v14421_v17, %v8235_v58 }
 0x674   : > { %v8451_v22 = vrot.slane %v8270_v20, %v14428_v51 }
 0x67d   : > { %v8238_v62 = vpop.xlane.xlu0 %8237 }
 0x67e   : > { %v8271_v24 = vadd.f32 %v14421_v17, %v8238_v62 }
 0x680   : > { %v8455_v15 = vrot.slane %v8271_v24, %v14430_v43 }
 0x682   : > { %v8456_v0 = vsel %vm8320_vm9, %v8455_v15, %v8451_v22 }
 0x683   : > { %v8477_v49 = vsel %vm8469_vm0, %v8456_v0, %v8476_v40 }
 0x684   : > { %v8481_v17 = vadd.f32 %v8477_v49, %v8276_v47 }
 0x686   : > { %8483 = vst.msk [vmem:[%s14535_s23 + $0x8] sm:$0xff] %vm1406_vm5, %v8481_v17 }
 0x687   : > { %9288 = shalt.err (!%p9285_p2)
}
 0x688   : > { %s9289_s18 = scalar_lea.hbm %s14584_s24, 256  ;;  %s9293_s23 = scalar_lea.hbm %s14640_s8, 512 }
 0x689   : > { %p9290_p3 = scmp.ne.s32.totalorder %s14584_s24, %s9289_s18  ;;  %p9294_p8 = scmp.lt.s32.totalorder %s14584_s24, %s14640_s8 }
 0x68a   : > { %p9295_p11 = scmp.lt.s32.totalorder %s9293_s23, %s9289_s18 }
 0x68b   : > { %p9291_p4 = pnand %p9290_p3, %p9435_p5 }
 0x68c   : > { %p9296_p9 = por %p9295_p11, %p9294_p8 }
 0x68d   : > { %p9292_p7 = pneg %p9291_p4 }
 0x68f   : > { %p9297_p10 = pnand %p9296_p9, %p9292_p7 }
 0x691   : > { %9300 = shalt.err (!%p9297_p10)
}
 0x692   : > { %s9350_s22 = smov 128   ;;  %s9351_s25 = smov 8  }
 0x693   : > { %9028 = dma.vmem_to_hbm [thread:$0]  (%p9435_p5), %s14586_s20, 256, %s14584_s24, %s14592_s9, %s9350_s22, %s9350_s22, %s9351_s25  }
 0x694 PF: > { %p9040_p12 = scmp.ge.s32.totalorder %s9339_s30, 2  ;;  %s8513_s26 = sand.u32 1, %s9327_s27  }
 0x695   : > { %s8514_s10 = scalar_lea.sflag [#allocation5], %s8513_s26 }
 0x696   : > { %p9035_p13 = pnand %p9040_p12, %p9439_p6 }
 0x698   : > { %p9036_p0 = pneg %p9035_p13 }
 0x69a   : > { %9322 = dma.done.wait (%p9036_p0), %s8514_s10, 256  }
 0x69b   : > { %9324 = vsyncadd (%p9036_p0), %s8514_s10, 4294967040  ;;  %p19_p1 = scmp.ge.s32.totalorder %s9422_s11, 4   ;;  %s15243_s27 = smov %s9331_s28 }
 0x69c   : > { %s15244_s28 = smov %s9335_s29  ;;  %s15245_s29 = smov %s9433_s14 }
 0x69d   : > { %s15246_s30 = smov %s9422_s11  ;;  %21 = sbr.rel (!%p19_p1) target bundleno = 4 (0x4), region = 107 }
 0x6a2   :  { %8519 = vsyncpa [#allocation5], 1 }
 0x6a3   :  { %8521 = vsyncpa [#allocation5 + $0x1], 1 }
 0x6a4   :  { %8522 = vsyncpa [#allocation6], 1 }
 0x6a5   :  { %8524 = vsyncpa [#allocation6 + $0x1], 1 }

</bundles_post_ra>
